<compile_context>
chip_gen: v5e
topology: v5e:2x2
jax: 0.10.0
libtpu: 0.0.40
codegen_flags: <defaults>
</compile_context>

<pallas_src>
import functools

import jax
import jax.numpy as jnp
from jax.experimental import pallas as pl
from jax.experimental.pallas import tpu as pltpu


# ------------------------------ kernel helpers ----------------------------- #

def _silu(v):
    # x * sigmoid(x); exp lives on the EUP, pl.reciprocal avoids the multi-op
    # VPU divide sequence (approx=True would be fully EUP but is not needed
    # for this accuracy budget).
    return v * pl.reciprocal(1.0 + jnp.exp(-v), approx=False)


def _group_norm_2d(h2d, p_ref, gamma_ref, beta_ref, eps):
    """GroupNorm on an (H*W, C) f32 tile.

    p_ref is a (C, C) group-averaging matrix: P[i, j] = 1/(group_size*H*W) if
    channels i, j share a group else 0, so `sums @ P` produces the per-channel
    broadcast group mean on the MXU (no lane<->sublane reshuffles).
    Statistics are kept in f32 regardless of the conv compute dtype.
    """
    dn = (((1,), (0,)), ((), ()))
    s = jnp.sum(h2d, axis=0, keepdims=True)                       # (1, C)
    sq = jnp.sum(h2d * h2d, axis=0, keepdims=True)                # (1, C)
    mean = jax.lax.dot_general(s, p_ref[...], dn,
                               preferred_element_type=jnp.float32)
    msq = jax.lax.dot_general(sq, p_ref[...], dn,
                              preferred_element_type=jnp.float32)
    var = msq - mean * mean
    inv = jax.lax.rsqrt(var + eps)
    return (h2d - mean) * inv * gamma_ref[...] + beta_ref[...]


def _fill_fold(fold_ref, h3, H, W, C):
    """Write h (H, W, C) into the kw-folded halo scratch.

    Layout: fold[r, ow, kw*C + ci] == padded(h)[r, ow + kw, ci].
    Border rows 0 / H+1 are zeroed once per step by the caller; the two column
    strips that can hold the *other* conv's stale data (kw=0 at col 0, kw=2 at
    col W-1) are re-zeroed here with tiny (H, 1, C) stores.
    """
    zcol = jnp.zeros((H, 1, C), fold_ref.dtype)
    fold_ref[pl.ds(1, H), pl.ds(0, 1), pl.ds(0, C)] = zcol
    fold_ref[pl.ds(1, H), pl.ds(W - 1, 1), pl.ds(2 * C, C)] = zcol

    hh = h3.astype(fold_ref.dtype)
    fold_ref[pl.ds(1, H), pl.ds(1, W - 1), pl.ds(0, C)] = hh[:, : W - 1, :]
    fold_ref[pl.ds(1, H), pl.ds(0, W), pl.ds(C, C)] = hh
    fold_ref[pl.ds(1, H), pl.ds(0, W - 1), pl.ds(2 * C, C)] = hh[:, 1:, :]


def _conv3x3_folded(fold_ref, w_ref, bias_ref, H, W, Cout):
    """3x3 / stride-1 conv from the kw-folded halo scratch.

    Only 3 MXU contractions (one per kh), each with K = 3*Cin, operands in the
    fold scratch dtype (bf16 by default) with f32 accumulation; accumulator is
    initialised with the broadcast bias.  Each kh slice is a pure outer-dim
    offset (no sublane/lane relayout).
    """
    C3 = w_ref.shape[1]                                           # 3 * Cin
    acc = jnp.broadcast_to(bias_ref[...].astype(jnp.float32), (H * W, Cout))
    dn = (((1,), (0,)), ((), ()))
    for kh in range(3):
        patch = fold_ref[pl.ds(kh, H), :, pl.ds(0, C3)]           # (H, W, 3*Cin)
        acc = acc + jax.lax.dot_general(
            patch.reshape(H * W, C3), w_ref[kh], dn,
            preferred_element_type=jnp.float32)
    return acc                                                    # (H*W, Cout) f32


# ------------------------------ fused kernel ------------------------------- #

def _resnet_block_kernel(*refs, eps, has_temb, has_shortcut):
    it = iter(refs)
    x_ref = next(it)
    temb_ref = next(it) if has_temb else None
    g1_ref, b1_ref, p1_ref = next(it), next(it), next(it)
    w1_ref, cb1_ref = next(it), next(it)
    if has_temb:
        tw_ref, tb_ref = next(it), next(it)
    g2_ref, b2_ref, p2_ref = next(it), next(it), next(it)
    w2_ref, cb2_ref = next(it), next(it)
    if has_shortcut:
        ws_ref, sb_ref = next(it), next(it)
    o_ref = next(it)
    fold_ref = next(it)

    H, W, Cin = x_ref.shape
    Cout = o_ref.shape[-1]
    HW = H * W
    f32 = jnp.float32

    # Zero only the halo border rows; the interior is fully overwritten by
    # _fill_fold each step and the two stale column strips are re-zeroed there.
    zrow = jnp.zeros((1,) + fold_ref.shape[1:], fold_ref.dtype)
    fold_ref[pl.ds(0, 1)] = zrow
    fold_ref[pl.ds(H + 1, 1)] = zrow

    # ---- norm1 -> SiLU -> conv1 ----
    x2d = x_ref[...].reshape(HW, Cin)
    h = _silu(_group_norm_2d(x2d.astype(f32), p1_ref, g1_ref, b1_ref, eps))
    _fill_fold(fold_ref, h.reshape(H, W, Cin), H, W, Cin)
    h1 = _conv3x3_folded(fold_ref, w1_ref, cb1_ref, H, W, Cout)   # (HW, Cout) f32

    # ---- timestep embedding: h += Linear(SiLU(temb)) (compile-time branch) ----
    if has_temb:
        t = _silu(temb_ref[...].astype(f32))                      # (1, Tc)
        h1 = h1 + (jax.lax.dot_general(
            t, tw_ref[...].astype(f32), (((1,), (0,)), ((), ())),
            preferred_element_type=f32) + tb_ref[...])            # (1, Cout) bcast

    # ---- norm2 -> SiLU -> dropout (eval: identity) -> conv2 ----
    # TODO(synk): training-mode dropout would use pltpu.prng_seed/prng_random_bits.
    h2 = _silu(_group_norm_2d(h1, p2_ref, g2_ref, b2_ref, eps))
    _fill_fold(fold_ref, h2.reshape(H, W, Cout), H, W, Cout)
    h3 = _conv3x3_folded(fold_ref, w2_ref, cb2_ref, H, W, Cout)   # (HW, Cout) f32

    # ---- shortcut (1x1 conv == channel matmul) + residual ----
    if has_shortcut:
        xs = jax.lax.dot_general(
            x2d.astype(ws_ref.dtype), ws_ref[...], (((1,), (0,)), ((), ())),
            preferred_element_type=f32) + sb_ref[...]
    else:
        xs = x2d.astype(f32)

    o_ref[...] = (xs + h3).reshape(H, W, Cout).astype(o_ref.dtype)


# -------------------------------- wrappers --------------------------------- #

def _group_avg_matrix(C, num_groups, hw):
    cs = C // num_groups
    gid = jnp.arange(C) // cs
    same = (gid[:, None] == gid[None, :]).astype(jnp.float32)
    return same * (1.0 / float(cs * hw))


def resnet_block_nhwc(x, temb, params, *, num_groups=32, eps=1e-6,
                      conv_dtype=jnp.bfloat16):
    """ResnetBlock forward on NHWC input (no layout transposes).

    x: (B, H, W, Cin); temb: (B, Tc) or None.
    conv_dtype: operand dtype for the conv/shortcut MXU matmuls (f32 acc).
                None -> use x.dtype (exact path).

    params (all jnp arrays):
      norm1_gamma (Cin,), norm1_beta (Cin,)
      conv1_w (3,3,Cin,Cout) HWIO, conv1_b (Cout,)
      temb_w (Tc, Cout)  [PyTorch Linear weight transposed], temb_b (Cout,)
      norm2_gamma (Cout,), norm2_beta (Cout,)
      conv2_w (3,3,Cout,Cout) HWIO, conv2_b (Cout,)
      nin_w (Cin, Cout), nin_b (Cout,)   [only when Cin != Cout]
    """
    B, H, W, Cin = x.shape
    Cout = params["conv1_w"].shape[-1]
    has_shortcut = (Cin != Cout)
    has_temb = temb is not None
    if has_shortcut and "nin_w" not in params:
        # TODO(synk): conv_shortcut=True (3x3 shortcut conv) path not implemented.
        raise NotImplementedError("only the default 1x1 nin_shortcut is supported")

    dt = x.dtype
    f32 = jnp.float32
    if conv_dtype is None:
        conv_dtype = dt
    Cmax = max(Cin, Cout)

    p1 = _group_avg_matrix(Cin, num_groups, H * W)
    p2 = _group_avg_matrix(Cout, num_groups, H * W)

    # (3,3,Ci,Co) HWIO -> (3, 3*Ci, Co): contraction index j = kw*Ci + ci,
    # matching the kw-folded lane layout of the halo scratch.
    w1 = params["conv1_w"].reshape(3, 3 * Cin, Cout).astype(conv_dtype)
    w2 = params["conv2_w"].reshape(3, 3 * Cout, Cout).astype(conv_dtype)

    args = [x]
    specs = [pl.BlockSpec((None, H, W, Cin), lambda b: (b, 0, 0, 0))]
    if has_temb:
        Tc = temb.shape[-1]
        args.append(temb.reshape(B, 1, Tc).astype(f32))
        specs.append(pl.BlockSpec((None, 1, Tc), lambda b: (b, 0, 0)))

    rep_args = [
        params["norm1_gamma"].reshape(1, Cin).astype(f32),
        params["norm1_beta"].reshape(1, Cin).astype(f32),
        p1,
        w1,
        params["conv1_b"].reshape(1, Cout).astype(f32),
    ]
    if has_temb:
        rep_args += [params["temb_w"].astype(f32),
                     params["temb_b"].reshape(1, Cout).astype(f32)]
    rep_args += [
        params["norm2_gamma"].reshape(1, Cout).astype(f32),
        params["norm2_beta"].reshape(1, Cout).astype(f32),
        p2,
        w2,
        params["conv2_b"].reshape(1, Cout).astype(f32),
    ]
    if has_shortcut:
        rep_args += [params["nin_w"].astype(conv_dtype),
                     params["nin_b"].reshape(1, Cout).astype(f32)]

    def _rep(a):
        nd = a.ndim
        # TODO(synk): pipeline_mode=pl.Buffered(1) for these constant-index
        # inputs to reclaim the second pipeline buffer's VMEM on v7x.
        return pl.BlockSpec(a.shape, lambda b, _nd=nd: (0,) * _nd)

    args += rep_args
    specs += [_rep(a) for a in rep_args]

    kernel = functools.partial(_resnet_block_kernel, eps=eps,
                               has_temb=has_temb, has_shortcut=has_shortcut)

    return pl.pallas_call(
        kernel,
        out_shape=jax.ShapeDtypeStruct((B, H, W, Cout), dt),
        grid_spec=pltpu.PrefetchScalarGridSpec(
            num_scalar_prefetch=0,
            grid=(B,),
            in_specs=specs,
            out_specs=pl.BlockSpec((None, H, W, Cout), lambda b: (b, 0, 0, 0)),
            scratch_shapes=[
                # single shared kw-folded halo scratch for both convs
                pltpu.VMEM((H + 2, W, 3 * Cmax), conv_dtype),
            ],
        ),
        compiler_params=pltpu.CompilerParams(
            dimension_semantics=("parallel",)),
    )(*args)


def resnet_block(x_nchw, temb, params, *, num_groups=32, eps=1e-6,
                 conv_dtype=jnp.bfloat16):
    """NCHW interface matching the PyTorch module (the Pallas core is NHWC).

    TODO(synk): keep the surrounding model NHWC end-to-end and call
    resnet_block_nhwc directly to drop these two full HBM transpose passes.
    """
    x = jnp.transpose(x_nchw, (0, 2, 3, 1))
    out = resnet_block_nhwc(x, temb, params, num_groups=num_groups, eps=eps,
                            conv_dtype=conv_dtype)
    return jnp.transpose(out, (0, 3, 1, 2))


# ------------------------------ pure-JAX reference ------------------------- #

def _ref_group_norm(x, num_groups, gamma, beta, eps):
    B, H, W, C = x.shape
    xg = x.reshape(B, H, W, num_groups, C // num_groups)
    mean = xg.mean(axis=(1, 2, 4), keepdims=True)
    var = ((xg - mean) ** 2).mean(axis=(1, 2, 4), keepdims=True)
    xn = ((xg - mean) * jax.lax.rsqrt(var + eps)).reshape(B, H, W, C)
    return xn * gamma.reshape(1, 1, 1, C) + beta.reshape(1, 1, 1, C)


def ref_resnet_block(x_nchw, temb, params, num_groups=32, eps=1e-6,
                     conv_dtype=jnp.float32):
    """Reference; conv_dtype mirrors the kernel's MXU operand dtype."""
    hp = jax.lax.Precision.HIGHEST
    f32 = jnp.float32
    x = jnp.transpose(x_nchw, (0, 2, 3, 1)).astype(f32)
    Cin = x.shape[-1]
    Cout = params["conv1_w"].shape[-1]

    def conv(h, w, b):
        out = jax.lax.conv_general_dilated(
            h.astype(conv_dtype), w.astype(conv_dtype), (1, 1), ((1, 1), (1, 1)),
            dimension_numbers=("NHWC", "HWIO", "NHWC"),
            preferred_element_type=f32, precision=hp)
        return out + b.astype(f32)

    h = _ref_group_norm(x, num_groups, params["norm1_gamma"], params["norm1_beta"], eps)
    h = h * jax.nn.sigmoid(h)
    h = conv(h, params["conv1_w"], params["conv1_b"])
    if temb is not None:
        t = temb.astype(f32)
        t = t * jax.nn.sigmoid(t)
        h = h + (jnp.dot(t, params["temb_w"].astype(f32), precision=hp)
                 + params["temb_b"].astype(f32))[:, None, None, :]
    h = _ref_group_norm(h, num_groups, params["norm2_gamma"], params["norm2_beta"], eps)
    h = h * jax.nn.sigmoid(h)
    h = conv(h, params["conv2_w"], params["conv2_b"])
    if Cin != Cout:
        x = jnp.einsum("bhwc,cd->bhwd", x.astype(conv_dtype),
                       params["nin_w"].astype(conv_dtype), precision=hp,
                       preferred_element_type=f32) + params["nin_b"].astype(f32)
    return jnp.transpose(x + h, (0, 3, 1, 2))


def make_params(key, Cin, Cout, Tc, dtype=jnp.float32):
    k = jax.random.split(key, 12)
    p = {
        "norm1_gamma": 1.0 + 0.1 * jax.random.normal(k[0], (Cin,), dtype),
        "norm1_beta": 0.1 * jax.random.normal(k[1], (Cin,), dtype),
        "conv1_w": 0.1 * jax.random.normal(k[2], (3, 3, Cin, Cout), dtype),
        "conv1_b": 0.1 * jax.random.normal(k[3], (Cout,), dtype),
        "temb_w": 0.05 * jax.random.normal(k[4], (Tc, Cout), dtype),
        "temb_b": 0.1 * jax.random.normal(k[5], (Cout,), dtype),
        "norm2_gamma": 1.0 + 0.1 * jax.random.normal(k[6], (Cout,), dtype),
        "norm2_beta": 0.1 * jax.random.normal(k[7], (Cout,), dtype),
        "conv2_w": 0.1 * jax.random.normal(k[8], (3, 3, Cout, Cout), dtype),
        "conv2_b": 0.1 * jax.random.normal(k[9], (Cout,), dtype),
    }
    if Cin != Cout:
        p["nin_w"] = 0.1 * jax.random.normal(k[10], (Cin, Cout), dtype)
        p["nin_b"] = 0.1 * jax.random.normal(k[11], (Cout,), dtype)
    return p


# ---------------------------------- main ----------------------------------- #

if __name__ == "__main__":
    key = jax.random.PRNGKey(0)
    kx, kt, kpA, kpB = jax.random.split(key, 4)

    B, Cin, H, W = 2, 32, 16, 16     # GroupNorm(32) needs channels % 32 == 0
    Tc = 128                         # temb_channels
    CoutA = 64

    x = jax.random.normal(kx, (B, Cin, H, W), jnp.float32)
    temb = jax.random.normal(kt, (B, Tc), jnp.float32)

    # --- channel-changing block (1x1 nin_shortcut) with temb, exact f32 path ---
    pA = make_params(kpA, Cin, CoutA, Tc)
    outA = jax.block_until_ready(resnet_block(x, temb, pA, conv_dtype=jnp.float32))
    refA = ref_resnet_block(x, temb, pA, conv_dtype=jnp.float32)
    assert outA.shape == (B, CoutA, H, W)
    errA = float(jnp.max(jnp.abs(outA - refA)))
    assert jnp.allclose(outA, refA, atol=2e-3, rtol=2e-3), errA

    # --- same-channel block, temb=None, bf16 MXU operands (default perf path) ---
    pB = make_params(kpB, Cin, Cin, Tc)
    outB = jax.block_until_ready(resnet_block(x, None, pB))   # conv_dtype=bf16
    refB = ref_resnet_block(x, None, pB, conv_dtype=jnp.bfloat16)
    assert outB.shape == (B, Cin, H, W)
    errB = float(jnp.max(jnp.abs(outB - refB)))
    assert jnp.allclose(outB, refB, atol=5e-3, rtol=5e-3), errB

    print("KERNEL_OK")
</pallas_src>

<mosaic_0001>
module attributes {stable_mosaic.version = 11 : i64} {
  func.func @_resnet_block_kernel(%arg0: i32, %arg1: memref<1x16x16x32xf32, #tpu.memory_space<vmem>>, %arg2: memref<1x1x128xf32, #tpu.memory_space<vmem>>, %arg3: memref<1x32xf32, #tpu.memory_space<vmem>>, %arg4: memref<1x32xf32, #tpu.memory_space<vmem>>, %arg5: memref<32x32xf32, #tpu.memory_space<vmem>>, %arg6: memref<3x96x64xf32, #tpu.memory_space<vmem>>, %arg7: memref<1x64xf32, #tpu.memory_space<vmem>>, %arg8: memref<128x64xf32, #tpu.memory_space<vmem>>, %arg9: memref<1x64xf32, #tpu.memory_space<vmem>>, %arg10: memref<1x64xf32, #tpu.memory_space<vmem>>, %arg11: memref<1x64xf32, #tpu.memory_space<vmem>>, %arg12: memref<64x64xf32, #tpu.memory_space<vmem>>, %arg13: memref<3x192x64xf32, #tpu.memory_space<vmem>>, %arg14: memref<1x64xf32, #tpu.memory_space<vmem>>, %arg15: memref<32x64xf32, #tpu.memory_space<vmem>>, %arg16: memref<1x64xf32, #tpu.memory_space<vmem>>, %arg17: memref<1x16x16x64xf32, #tpu.memory_space<vmem>>, %arg18: memref<18x16x192xf32, #tpu.memory_space<vmem>>) attributes {dimension_semantics = [#tpu.dimension_semantics<parallel>], iteration_bounds = array<i64: 2>, scalar_prefetch = 0 : i64, scratch_operands = 1 : i64, tpu.core_type = #tpu.core_type<tc>, window_params = [{transform_indices = @transform_0, window_bounds = array<i64: 1, 16, 16, 32>}, {transform_indices = @transform_1, window_bounds = array<i64: 1, 1, 128>}, {pipeline_mode = #tpu.pipeline_mode<synchronous>, transform_indices = @transform_2, window_bounds = array<i64: 1, 32>}, {pipeline_mode = #tpu.pipeline_mode<synchronous>, transform_indices = @transform_3, window_bounds = array<i64: 1, 32>}, {pipeline_mode = #tpu.pipeline_mode<synchronous>, transform_indices = @transform_4, window_bounds = array<i64: 32, 32>}, {pipeline_mode = #tpu.pipeline_mode<synchronous>, transform_indices = @transform_5, window_bounds = array<i64: 3, 96, 64>}, {pipeline_mode = #tpu.pipeline_mode<synchronous>, transform_indices = @transform_6, window_bounds = array<i64: 1, 64>}, {pipeline_mode = #tpu.pipeline_mode<synchronous>, transform_indices = @transform_7, window_bounds = array<i64: 128, 64>}, {pipeline_mode = #tpu.pipeline_mode<synchronous>, transform_indices = @transform_8, window_bounds = array<i64: 1, 64>}, {pipeline_mode = #tpu.pipeline_mode<synchronous>, transform_indices = @transform_9, window_bounds = array<i64: 1, 64>}, {pipeline_mode = #tpu.pipeline_mode<synchronous>, transform_indices = @transform_10, window_bounds = array<i64: 1, 64>}, {pipeline_mode = #tpu.pipeline_mode<synchronous>, transform_indices = @transform_11, window_bounds = array<i64: 64, 64>}, {pipeline_mode = #tpu.pipeline_mode<synchronous>, transform_indices = @transform_12, window_bounds = array<i64: 3, 192, 64>}, {pipeline_mode = #tpu.pipeline_mode<synchronous>, transform_indices = @transform_13, window_bounds = array<i64: 1, 64>}, {pipeline_mode = #tpu.pipeline_mode<synchronous>, transform_indices = @transform_14, window_bounds = array<i64: 32, 64>}, {pipeline_mode = #tpu.pipeline_mode<synchronous>, transform_indices = @transform_15, window_bounds = array<i64: 1, 64>}, {transform_indices = @transform_16, window_bounds = array<i64: 1, 16, 16, 64>}]} {
    %cst = arith.constant 0.000000e+00 : f32
    %0 = vector.broadcast %cst : f32 to vector<1x16x192xf32>
    %c0 = arith.constant 0 : index
    %c0_0 = arith.constant 0 : index
    %c0_1 = arith.constant 0 : index
    %1 = vector.load %arg18[%c0, %c0_0, %c0_1] : memref<18x16x192xf32, #tpu.memory_space<vmem>>, vector<1x16x192xf32>
    tpu.vector_store %arg18[%c0, %c0_0, %c0_1], %0 {strides = array<i32>} : memref<18x16x192xf32, #tpu.memory_space<vmem>>, vector<1x16x192xf32>,
    %c17 = arith.constant 17 : index
    %c0_2 = arith.constant 0 : index
    %c0_3 = arith.constant 0 : index
    %2 = vector.load %arg18[%c17, %c0_2, %c0_3] : memref<18x16x192xf32, #tpu.memory_space<vmem>>, vector<1x16x192xf32>
    tpu.vector_store %arg18[%c17, %c0_2, %c0_3], %0 {strides = array<i32>} : memref<18x16x192xf32, #tpu.memory_space<vmem>>, vector<1x16x192xf32>,
    %c0_4 = arith.constant 0 : index
    %c0_5 = arith.constant 0 : index
    %c0_6 = arith.constant 0 : index
    %c0_7 = arith.constant 0 : index
    %3 = vector.load %arg1[%c0_4, %c0_5, %c0_6, %c0_7] : memref<1x16x16x32xf32, #tpu.memory_space<vmem>>, vector<1x16x16x32xf32>
    %4 = vector.shape_cast %3 : vector<1x16x16x32xf32> to vector<16x16x32xf32>
    %5 = vector.shape_cast %4 : vector<16x16x32xf32> to vector<256x32xf32>
    %cst_8 = arith.constant dense<0.000000e+00> : vector<32xf32>
    %6 = vector.multi_reduction <add>, %5, %cst_8 [0] : vector<256x32xf32> to vector<32xf32>
    %7 = vector.shape_cast %6 : vector<32xf32> to vector<1x32xf32>
    %8 = arith.mulf %5, %5 : vector<256x32xf32>
    %cst_9 = arith.constant dense<0.000000e+00> : vector<32xf32>
    %9 = vector.multi_reduction <add>, %8, %cst_9 [0] : vector<256x32xf32> to vector<32xf32>
    %10 = vector.shape_cast %9 : vector<32xf32> to vector<1x32xf32>
    %c0_10 = arith.constant 0 : index
    %c0_11 = arith.constant 0 : index
    %11 = vector.load %arg5[%c0_10, %c0_11] : memref<32x32xf32, #tpu.memory_space<vmem>>, vector<32x32xf32>
    %cst_12 = arith.constant dense<0.000000e+00> : vector<1x32xf32>
    %12 = tpu.matmul %7, %11, %cst_12 {dimension_numbers = #tpu.dot_dimension_numbers<[1], [0], [0], [1], [0, 0, 1, 1], [], []>} : vector<1x32xf32>, vector<32x32xf32>, vector<1x32xf32> -> vector<1x32xf32>
    %c0_13 = arith.constant 0 : index
    %c0_14 = arith.constant 0 : index
    %13 = vector.load %arg5[%c0_13, %c0_14] : memref<32x32xf32, #tpu.memory_space<vmem>>, vector<32x32xf32>
    %cst_15 = arith.constant dense<0.000000e+00> : vector<1x32xf32>
    %14 = tpu.matmul %10, %13, %cst_15 {dimension_numbers = #tpu.dot_dimension_numbers<[1], [0], [0], [1], [0, 0, 1, 1], [], []>} : vector<1x32xf32>, vector<32x32xf32>, vector<1x32xf32> -> vector<1x32xf32>
    %15 = arith.mulf %12, %12 : vector<1x32xf32>
    %16 = arith.subf %14, %15 : vector<1x32xf32>
    %cst_16 = arith.constant 9.99999997E-7 : f32
    %17 = vector.broadcast %cst_16 : f32 to vector<1x32xf32>
    %18 = arith.addf %16, %17 : vector<1x32xf32>
    %19 = math.rsqrt %18 : vector<1x32xf32>
    %20 = vector.broadcast %12 : vector<1x32xf32> to vector<256x32xf32>
    %21 = arith.subf %5, %20 : vector<256x32xf32>
    %22 = vector.broadcast %19 : vector<1x32xf32> to vector<256x32xf32>
    %23 = arith.mulf %21, %22 : vector<256x32xf32>
    %c0_17 = arith.constant 0 : index
    %c0_18 = arith.constant 0 : index
    %24 = vector.load %arg3[%c0_17, %c0_18] : memref<1x32xf32, #tpu.memory_space<vmem>>, vector<1x32xf32>
    %25 = vector.broadcast %24 : vector<1x32xf32> to vector<256x32xf32>
    %26 = arith.mulf %23, %25 : vector<256x32xf32>
    %c0_19 = arith.constant 0 : index
    %c0_20 = arith.constant 0 : index
    %27 = vector.load %arg4[%c0_19, %c0_20] : memref<1x32xf32, #tpu.memory_space<vmem>>, vector<1x32xf32>
    %28 = vector.broadcast %27 : vector<1x32xf32> to vector<256x32xf32>
    %29 = arith.addf %26, %28 : vector<256x32xf32>
    %cst_21 = arith.constant 0.000000e+00 : f32
    %30 = vector.broadcast %cst_21 : f32 to vector<256x32xf32>
    %31 = arith.subf %30, %29 : vector<256x32xf32>
    %32 = math.exp %31 : vector<256x32xf32>
    %cst_22 = arith.constant 1.000000e+00 : f32
    %33 = vector.broadcast %cst_22 : f32 to vector<256x32xf32>
    %34 = arith.addf %33, %32 : vector<256x32xf32>
    %35 = tpu.reciprocal %34 : vector<256x32xf32> -> vector<256x32xf32>
    %36 = arith.mulf %29, %35 : vector<256x32xf32>
    %37 = vector.shape_cast %36 : vector<256x32xf32> to vector<16x16x32xf32>
    %cst_23 = arith.constant 0.000000e+00 : f32
    %38 = vector.broadcast %cst_23 : f32 to vector<16x1x32xf32>
    %c1 = arith.constant 1 : index
    %c0_24 = arith.constant 0 : index
    %c0_25 = arith.constant 0 : index
    %39 = vector.load %arg18[%c1, %c0_24, %c0_25] : memref<18x16x192xf32, #tpu.memory_space<vmem>>, vector<16x1x32xf32>
    tpu.vector_store %arg18[%c1, %c0_24, %c0_25], %38 {strides = array<i32>} : memref<18x16x192xf32, #tpu.memory_space<vmem>>, vector<16x1x32xf32>,
    %c1_26 = arith.constant 1 : index
    %c15 = arith.constant 15 : index
    %c64 = arith.constant 64 : index
    %40 = vector.load %arg18[%c1_26, %c15, %c64] : memref<18x16x192xf32, #tpu.memory_space<vmem>>, vector<16x1x32xf32>
    tpu.vector_store %arg18[%c1_26, %c15, %c64], %38 {strides = array<i32>} : memref<18x16x192xf32, #tpu.memory_space<vmem>>, vector<16x1x32xf32>,
    %41 = vector.extract_strided_slice %37 {offsets = [0, 0, 0], sizes = [16, 15, 32], strides = [1, 1, 1]} : vector<16x16x32xf32> to vector<16x15x32xf32>
    %c1_27 = arith.constant 1 : index
    %c1_28 = arith.constant 1 : index
    %c0_29 = arith.constant 0 : index
    %42 = vector.load %arg18[%c1_27, %c1_28, %c0_29] : memref<18x16x192xf32, #tpu.memory_space<vmem>>, vector<16x15x32xf32>
    tpu.vector_store %arg18[%c1_27, %c1_28, %c0_29], %41 {strides = array<i32>} : memref<18x16x192xf32, #tpu.memory_space<vmem>>, vector<16x15x32xf32>,
    %c1_30 = arith.constant 1 : index
    %c0_31 = arith.constant 0 : index
    %c32 = arith.constant 32 : index
    %43 = vector.load %arg18[%c1_30, %c0_31, %c32] : memref<18x16x192xf32, #tpu.memory_space<vmem>>, vector<16x16x32xf32>
    tpu.vector_store %arg18[%c1_30, %c0_31, %c32], %37 {strides = array<i32>} : memref<18x16x192xf32, #tpu.memory_space<vmem>>, vector<16x16x32xf32>,
    %44 = vector.extract_strided_slice %37 {offsets = [0, 1, 0], sizes = [16, 15, 32], strides = [1, 1, 1]} : vector<16x16x32xf32> to vector<16x15x32xf32>
    %c1_32 = arith.constant 1 : index
    %c0_33 = arith.constant 0 : index
    %c64_34 = arith.constant 64 : index
    %45 = vector.load %arg18[%c1_32, %c0_33, %c64_34] : memref<18x16x192xf32, #tpu.memory_space<vmem>>, vector<16x15x32xf32>
    tpu.vector_store %arg18[%c1_32, %c0_33, %c64_34], %44 {strides = array<i32>} : memref<18x16x192xf32, #tpu.memory_space<vmem>>, vector<16x15x32xf32>,
    %c0_35 = arith.constant 0 : index
    %c0_36 = arith.constant 0 : index
    %46 = vector.load %arg7[%c0_35, %c0_36] : memref<1x64xf32, #tpu.memory_space<vmem>>, vector<1x64xf32>
    %47 = vector.shape_cast %46 : vector<1x64xf32> to vector<1x64xf32>
    %48 = vector.broadcast %47 : vector<1x64xf32> to vector<256x64xf32>
    %c0_37 = arith.constant 0 : index
    %c0_38 = arith.constant 0 : index
    %c0_39 = arith.constant 0 : index
    %49 = vector.load %arg18[%c0_37, %c0_38, %c0_39] : memref<18x16x192xf32, #tpu.memory_space<vmem>>, vector<16x16x96xf32>
    %50 = vector.shape_cast %49 : vector<16x16x96xf32> to vector<256x96xf32>
    %c0_40 = arith.constant 0 : index
    %c0_41 = arith.constant 0 : index
    %c0_42 = arith.constant 0 : index
    %51 = vector.load %arg6[%c0_40, %c0_41, %c0_42] : memref<3x96x64xf32, #tpu.memory_space<vmem>>, vector<1x96x64xf32>
    %52 = vector.shape_cast %51 : vector<1x96x64xf32> to vector<96x64xf32>
    %cst_43 = arith.constant dense<0.000000e+00> : vector<256x64xf32>
    %53 = tpu.matmul %50, %52, %cst_43 {dimension_numbers = #tpu.dot_dimension_numbers<[1], [0], [0], [1], [0, 0, 1, 1], [], []>} : vector<256x96xf32>, vector<96x64xf32>, vector<256x64xf32> -> vector<256x64xf32>
    %54 = arith.addf %48, %53 : vector<256x64xf32>
    %c1_44 = arith.constant 1 : index
    %c0_45 = arith.constant 0 : index
    %c0_46 = arith.constant 0 : index
    %55 = vector.load %arg18[%c1_44, %c0_45, %c0_46] : memref<18x16x192xf32, #tpu.memory_space<vmem>>, vector<16x16x96xf32>
    %56 = vector.shape_cast %55 : vector<16x16x96xf32> to vector<256x96xf32>
    %c1_47 = arith.constant 1 : index
    %c0_48 = arith.constant 0 : index
    %c0_49 = arith.constant 0 : index
    %57 = vector.load %arg6[%c1_47, %c0_48, %c0_49] : memref<3x96x64xf32, #tpu.memory_space<vmem>>, vector<1x96x64xf32>
    %58 = vector.shape_cast %57 : vector<1x96x64xf32> to vector<96x64xf32>
    %cst_50 = arith.constant dense<0.000000e+00> : vector<256x64xf32>
    %59 = tpu.matmul %56, %58, %cst_50 {dimension_numbers = #tpu.dot_dimension_numbers<[1], [0], [0], [1], [0, 0, 1, 1], [], []>} : vector<256x96xf32>, vector<96x64xf32>, vector<256x64xf32> -> vector<256x64xf32>
    %60 = arith.addf %54, %59 : vector<256x64xf32>
    %c2 = arith.constant 2 : index
    %c0_51 = arith.constant 0 : index
    %c0_52 = arith.constant 0 : index
    %61 = vector.load %arg18[%c2, %c0_51, %c0_52] : memref<18x16x192xf32, #tpu.memory_space<vmem>>, vector<16x16x96xf32>
    %62 = vector.shape_cast %61 : vector<16x16x96xf32> to vector<256x96xf32>
    %c2_53 = arith.constant 2 : index
    %c0_54 = arith.constant 0 : index
    %c0_55 = arith.constant 0 : index
    %63 = vector.load %arg6[%c2_53, %c0_54, %c0_55] : memref<3x96x64xf32, #tpu.memory_space<vmem>>, vector<1x96x64xf32>
    %64 = vector.shape_cast %63 : vector<1x96x64xf32> to vector<96x64xf32>
    %cst_56 = arith.constant dense<0.000000e+00> : vector<256x64xf32>
    %65 = tpu.matmul %62, %64, %cst_56 {dimension_numbers = #tpu.dot_dimension_numbers<[1], [0], [0], [1], [0, 0, 1, 1], [], []>} : vector<256x96xf32>, vector<96x64xf32>, vector<256x64xf32> -> vector<256x64xf32>
    %66 = arith.addf %60, %65 : vector<256x64xf32>
    %c0_57 = arith.constant 0 : index
    %c0_58 = arith.constant 0 : index
    %c0_59 = arith.constant 0 : index
    %67 = vector.load %arg2[%c0_57, %c0_58, %c0_59] : memref<1x1x128xf32, #tpu.memory_space<vmem>>, vector<1x1x128xf32>
    %68 = vector.shape_cast %67 : vector<1x1x128xf32> to vector<1x128xf32>
    %cst_60 = arith.constant 0.000000e+00 : f32
    %69 = vector.broadcast %cst_60 : f32 to vector<1x128xf32>
    %70 = arith.subf %69, %68 : vector<1x128xf32>
    %71 = math.exp %70 : vector<1x128xf32>
    %cst_61 = arith.constant 1.000000e+00 : f32
    %72 = vector.broadcast %cst_61 : f32 to vector<1x128xf32>
    %73 = arith.addf %72, %71 : vector<1x128xf32>
    %74 = tpu.reciprocal %73 : vector<1x128xf32> -> vector<1x128xf32>
    %75 = arith.mulf %68, %74 : vector<1x128xf32>
    %c0_62 = arith.constant 0 : index
    %c0_63 = arith.constant 0 : index
    %76 = vector.load %arg8[%c0_62, %c0_63] : memref<128x64xf32, #tpu.memory_space<vmem>>, vector<128x64xf32>
    %cst_64 = arith.constant dense<0.000000e+00> : vector<1x64xf32>
    %77 = tpu.matmul %75, %76, %cst_64 {dimension_numbers = #tpu.dot_dimension_numbers<[1], [0], [0], [1], [0, 0, 1, 1], [], []>} : vector<1x128xf32>, vector<128x64xf32>, vector<1x64xf32> -> vector<1x64xf32>
    %c0_65 = arith.constant 0 : index
    %c0_66 = arith.constant 0 : index
    %78 = vector.load %arg9[%c0_65, %c0_66] : memref<1x64xf32, #tpu.memory_space<vmem>>, vector<1x64xf32>
    %79 = arith.addf %77, %78 : vector<1x64xf32>
    %80 = vector.broadcast %79 : vector<1x64xf32> to vector<256x64xf32>
    %81 = arith.addf %66, %80 : vector<256x64xf32>
    %cst_67 = arith.constant dense<0.000000e+00> : vector<64xf32>
    %82 = vector.multi_reduction <add>, %81, %cst_67 [0] : vector<256x64xf32> to vector<64xf32>
    %83 = vector.shape_cast %82 : vector<64xf32> to vector<1x64xf32>
    %84 = arith.mulf %81, %81 : vector<256x64xf32>
    %cst_68 = arith.constant dense<0.000000e+00> : vector<64xf32>
    %85 = vector.multi_reduction <add>, %84, %cst_68 [0] : vector<256x64xf32> to vector<64xf32>
    %86 = vector.shape_cast %85 : vector<64xf32> to vector<1x64xf32>
    %c0_69 = arith.constant 0 : index
    %c0_70 = arith.constant 0 : index
    %87 = vector.load %arg12[%c0_69, %c0_70] : memref<64x64xf32, #tpu.memory_space<vmem>>, vector<64x64xf32>
    %cst_71 = arith.constant dense<0.000000e+00> : vector<1x64xf32>
    %88 = tpu.matmul %83, %87, %cst_71 {dimension_numbers = #tpu.dot_dimension_numbers<[1], [0], [0], [1], [0, 0, 1, 1], [], []>} : vector<1x64xf32>, vector<64x64xf32>, vector<1x64xf32> -> vector<1x64xf32>
    %c0_72 = arith.constant 0 : index
    %c0_73 = arith.constant 0 : index
    %89 = vector.load %arg12[%c0_72, %c0_73] : memref<64x64xf32, #tpu.memory_space<vmem>>, vector<64x64xf32>
    %cst_74 = arith.constant dense<0.000000e+00> : vector<1x64xf32>
    %90 = tpu.matmul %86, %89, %cst_74 {dimension_numbers = #tpu.dot_dimension_numbers<[1], [0], [0], [1], [0, 0, 1, 1], [], []>} : vector<1x64xf32>, vector<64x64xf32>, vector<1x64xf32> -> vector<1x64xf32>
    %91 = arith.mulf %88, %88 : vector<1x64xf32>
    %92 = arith.subf %90, %91 : vector<1x64xf32>
    %cst_75 = arith.constant 9.99999997E-7 : f32
    %93 = vector.broadcast %cst_75 : f32 to vector<1x64xf32>
    %94 = arith.addf %92, %93 : vector<1x64xf32>
    %95 = math.rsqrt %94 : vector<1x64xf32>
    %96 = vector.broadcast %88 : vector<1x64xf32> to vector<256x64xf32>
    %97 = arith.subf %81, %96 : vector<256x64xf32>
    %98 = vector.broadcast %95 : vector<1x64xf32> to vector<256x64xf32>
    %99 = arith.mulf %97, %98 : vector<256x64xf32>
    %c0_76 = arith.constant 0 : index
    %c0_77 = arith.constant 0 : index
    %100 = vector.load %arg10[%c0_76, %c0_77] : memref<1x64xf32, #tpu.memory_space<vmem>>, vector<1x64xf32>
    %101 = vector.broadcast %100 : vector<1x64xf32> to vector<256x64xf32>
    %102 = arith.mulf %99, %101 : vector<256x64xf32>
    %c0_78 = arith.constant 0 : index
    %c0_79 = arith.constant 0 : index
    %103 = vector.load %arg11[%c0_78, %c0_79] : memref<1x64xf32, #tpu.memory_space<vmem>>, vector<1x64xf32>
    %104 = vector.broadcast %103 : vector<1x64xf32> to vector<256x64xf32>
    %105 = arith.addf %102, %104 : vector<256x64xf32>
    %cst_80 = arith.constant 0.000000e+00 : f32
    %106 = vector.broadcast %cst_80 : f32 to vector<256x64xf32>
    %107 = arith.subf %106, %105 : vector<256x64xf32>
    %108 = math.exp %107 : vector<256x64xf32>
    %cst_81 = arith.constant 1.000000e+00 : f32
    %109 = vector.broadcast %cst_81 : f32 to vector<256x64xf32>
    %110 = arith.addf %109, %108 : vector<256x64xf32>
    %111 = tpu.reciprocal %110 : vector<256x64xf32> -> vector<256x64xf32>
    %112 = arith.mulf %105, %111 : vector<256x64xf32>
    %113 = vector.shape_cast %112 : vector<256x64xf32> to vector<16x16x64xf32>
    %cst_82 = arith.constant 0.000000e+00 : f32
    %114 = vector.broadcast %cst_82 : f32 to vector<16x1x64xf32>
    %c1_83 = arith.constant 1 : index
    %c0_84 = arith.constant 0 : index
    %c0_85 = arith.constant 0 : index
    %115 = vector.load %arg18[%c1_83, %c0_84, %c0_85] : memref<18x16x192xf32, #tpu.memory_space<vmem>>, vector<16x1x64xf32>
    tpu.vector_store %arg18[%c1_83, %c0_84, %c0_85], %114 {strides = array<i32>} : memref<18x16x192xf32, #tpu.memory_space<vmem>>, vector<16x1x64xf32>,
    %c1_86 = arith.constant 1 : index
    %c15_87 = arith.constant 15 : index
    %c128 = arith.constant 128 : index
    %116 = vector.load %arg18[%c1_86, %c15_87, %c128] : memref<18x16x192xf32, #tpu.memory_space<vmem>>, vector<16x1x64xf32>
    tpu.vector_store %arg18[%c1_86, %c15_87, %c128], %114 {strides = array<i32>} : memref<18x16x192xf32, #tpu.memory_space<vmem>>, vector<16x1x64xf32>,
    %117 = vector.extract_strided_slice %113 {offsets = [0, 0, 0], sizes = [16, 15, 64], strides = [1, 1, 1]} : vector<16x16x64xf32> to vector<16x15x64xf32>
    %c1_88 = arith.constant 1 : index
    %c1_89 = arith.constant 1 : index
    %c0_90 = arith.constant 0 : index
    %118 = vector.load %arg18[%c1_88, %c1_89, %c0_90] : memref<18x16x192xf32, #tpu.memory_space<vmem>>, vector<16x15x64xf32>
    tpu.vector_store %arg18[%c1_88, %c1_89, %c0_90], %117 {strides = array<i32>} : memref<18x16x192xf32, #tpu.memory_space<vmem>>, vector<16x15x64xf32>,
    %c1_91 = arith.constant 1 : index
    %c0_92 = arith.constant 0 : index
    %c64_93 = arith.constant 64 : index
    %119 = vector.load %arg18[%c1_91, %c0_92, %c64_93] : memref<18x16x192xf32, #tpu.memory_space<vmem>>, vector<16x16x64xf32>
    tpu.vector_store %arg18[%c1_91, %c0_92, %c64_93], %113 {strides = array<i32>} : memref<18x16x192xf32, #tpu.memory_space<vmem>>, vector<16x16x64xf32>,
    %120 = vector.extract_strided_slice %113 {offsets = [0, 1, 0], sizes = [16, 15, 64], strides = [1, 1, 1]} : vector<16x16x64xf32> to vector<16x15x64xf32>
    %c1_94 = arith.constant 1 : index
    %c0_95 = arith.constant 0 : index
    %c128_96 = arith.constant 128 : index
    %121 = vector.load %arg18[%c1_94, %c0_95, %c128_96] : memref<18x16x192xf32, #tpu.memory_space<vmem>>, vector<16x15x64xf32>
    tpu.vector_store %arg18[%c1_94, %c0_95, %c128_96], %120 {strides = array<i32>} : memref<18x16x192xf32, #tpu.memory_space<vmem>>, vector<16x15x64xf32>,
    %c0_97 = arith.constant 0 : index
    %c0_98 = arith.constant 0 : index
    %122 = vector.load %arg14[%c0_97, %c0_98] : memref<1x64xf32, #tpu.memory_space<vmem>>, vector<1x64xf32>
    %123 = vector.shape_cast %122 : vector<1x64xf32> to vector<1x64xf32>
    %124 = vector.broadcast %123 : vector<1x64xf32> to vector<256x64xf32>
    %c0_99 = arith.constant 0 : index
    %c0_100 = arith.constant 0 : index
    %c0_101 = arith.constant 0 : index
    %125 = vector.load %arg18[%c0_99, %c0_100, %c0_101] : memref<18x16x192xf32, #tpu.memory_space<vmem>>, vector<16x16x192xf32>
    %126 = vector.shape_cast %125 : vector<16x16x192xf32> to vector<256x192xf32>
    %c0_102 = arith.constant 0 : index
    %c0_103 = arith.constant 0 : index
    %c0_104 = arith.constant 0 : index
    %127 = vector.load %arg13[%c0_102, %c0_103, %c0_104] : memref<3x192x64xf32, #tpu.memory_space<vmem>>, vector<1x192x64xf32>
    %128 = vector.shape_cast %127 : vector<1x192x64xf32> to vector<192x64xf32>
    %cst_105 = arith.constant dense<0.000000e+00> : vector<256x64xf32>
    %129 = tpu.matmul %126, %128, %cst_105 {dimension_numbers = #tpu.dot_dimension_numbers<[1], [0], [0], [1], [0, 0, 1, 1], [], []>} : vector<256x192xf32>, vector<192x64xf32>, vector<256x64xf32> -> vector<256x64xf32>
    %130 = arith.addf %124, %129 : vector<256x64xf32>
    %c1_106 = arith.constant 1 : index
    %c0_107 = arith.constant 0 : index
    %c0_108 = arith.constant 0 : index
    %131 = vector.load %arg18[%c1_106, %c0_107, %c0_108] : memref<18x16x192xf32, #tpu.memory_space<vmem>>, vector<16x16x192xf32>
    %132 = vector.shape_cast %131 : vector<16x16x192xf32> to vector<256x192xf32>
    %c1_109 = arith.constant 1 : index
    %c0_110 = arith.constant 0 : index
    %c0_111 = arith.constant 0 : index
    %133 = vector.load %arg13[%c1_109, %c0_110, %c0_111] : memref<3x192x64xf32, #tpu.memory_space<vmem>>, vector<1x192x64xf32>
    %134 = vector.shape_cast %133 : vector<1x192x64xf32> to vector<192x64xf32>
    %cst_112 = arith.constant dense<0.000000e+00> : vector<256x64xf32>
    %135 = tpu.matmul %132, %134, %cst_112 {dimension_numbers = #tpu.dot_dimension_numbers<[1], [0], [0], [1], [0, 0, 1, 1], [], []>} : vector<256x192xf32>, vector<192x64xf32>, vector<256x64xf32> -> vector<256x64xf32>
    %136 = arith.addf %130, %135 : vector<256x64xf32>
    %c2_113 = arith.constant 2 : index
    %c0_114 = arith.constant 0 : index
    %c0_115 = arith.constant 0 : index
    %137 = vector.load %arg18[%c2_113, %c0_114, %c0_115] : memref<18x16x192xf32, #tpu.memory_space<vmem>>, vector<16x16x192xf32>
    %138 = vector.shape_cast %137 : vector<16x16x192xf32> to vector<256x192xf32>
    %c2_116 = arith.constant 2 : index
    %c0_117 = arith.constant 0 : index
    %c0_118 = arith.constant 0 : index
    %139 = vector.load %arg13[%c2_116, %c0_117, %c0_118] : memref<3x192x64xf32, #tpu.memory_space<vmem>>, vector<1x192x64xf32>
    %140 = vector.shape_cast %139 : vector<1x192x64xf32> to vector<192x64xf32>
    %cst_119 = arith.constant dense<0.000000e+00> : vector<256x64xf32>
    %141 = tpu.matmul %138, %140, %cst_119 {dimension_numbers = #tpu.dot_dimension_numbers<[1], [0], [0], [1], [0, 0, 1, 1], [], []>} : vector<256x192xf32>, vector<192x64xf32>, vector<256x64xf32> -> vector<256x64xf32>
    %142 = arith.addf %136, %141 : vector<256x64xf32>
    %c0_120 = arith.constant 0 : index
    %c0_121 = arith.constant 0 : index
    %143 = vector.load %arg15[%c0_120, %c0_121] : memref<32x64xf32, #tpu.memory_space<vmem>>, vector<32x64xf32>
    %cst_122 = arith.constant dense<0.000000e+00> : vector<256x64xf32>
    %144 = tpu.matmul %5, %143, %cst_122 {dimension_numbers = #tpu.dot_dimension_numbers<[1], [0], [0], [1], [0, 0, 1, 1], [], []>} : vector<256x32xf32>, vector<32x64xf32>, vector<256x64xf32> -> vector<256x64xf32>
    %c0_123 = arith.constant 0 : index
    %c0_124 = arith.constant 0 : index
    %145 = vector.load %arg16[%c0_123, %c0_124] : memref<1x64xf32, #tpu.memory_space<vmem>>, vector<1x64xf32>
    %146 = vector.broadcast %145 : vector<1x64xf32> to vector<256x64xf32>
    %147 = arith.addf %144, %146 : vector<256x64xf32>
    %148 = arith.addf %147, %142 : vector<256x64xf32>
    %149 = vector.shape_cast %148 : vector<256x64xf32> to vector<16x16x64xf32>
    %c0_125 = arith.constant 0 : index
    %c0_126 = arith.constant 0 : index
    %c0_127 = arith.constant 0 : index
    %c0_128 = arith.constant 0 : index
    %150 = vector.load %arg17[%c0_125, %c0_126, %c0_127, %c0_128] : memref<1x16x16x64xf32, #tpu.memory_space<vmem>>, vector<1x16x16x64xf32>
    %151 = vector.shape_cast %150 : vector<1x16x16x64xf32> to vector<16x16x64xf32>
    %152 = vector.shape_cast %149 : vector<16x16x64xf32> to vector<1x16x16x64xf32>
    tpu.vector_store %arg17[%c0_125, %c0_126, %c0_127, %c0_128], %152 {strides = array<i32>} : memref<1x16x16x64xf32, #tpu.memory_space<vmem>>, vector<1x16x16x64xf32>,
    return
  }
  func.func @transform_0(%arg0: i32) -> (i32, i32, i32, i32) {
    %c0_i32 = arith.constant 0 : i32
    %c0_i32_0 = arith.constant 0 : i32
    %c0_i32_1 = arith.constant 0 : i32
    %c0_i32_2 = arith.constant 0 : i32
    return %arg0, %c0_i32, %c0_i32_0, %c0_i32_1 : i32, i32, i32, i32
  }
  func.func @transform_1(%arg0: i32) -> (i32, i32, i32) {
    %c0_i32 = arith.constant 0 : i32
    %c0_i32_0 = arith.constant 0 : i32
    %c0_i32_1 = arith.constant 0 : i32
    return %arg0, %c0_i32, %c0_i32_0 : i32, i32, i32
  }
  func.func @transform_2(%arg0: i32) -> (i32, i32) {
    %c0_i32 = arith.constant 0 : i32
    %c0_i32_0 = arith.constant 0 : i32
    %c0_i32_1 = arith.constant 0 : i32
    return %c0_i32, %c0_i32_0 : i32, i32
  }
  func.func @transform_3(%arg0: i32) -> (i32, i32) {
    %c0_i32 = arith.constant 0 : i32
    %c0_i32_0 = arith.constant 0 : i32
    %c0_i32_1 = arith.constant 0 : i32
    return %c0_i32, %c0_i32_0 : i32, i32
  }
  func.func @transform_4(%arg0: i32) -> (i32, i32) {
    %c0_i32 = arith.constant 0 : i32
    %c0_i32_0 = arith.constant 0 : i32
    %c0_i32_1 = arith.constant 0 : i32
    return %c0_i32, %c0_i32_0 : i32, i32
  }
  func.func @transform_5(%arg0: i32) -> (i32, i32, i32) {
    %c0_i32 = arith.constant 0 : i32
    %c0_i32_0 = arith.constant 0 : i32
    %c0_i32_1 = arith.constant 0 : i32
    %c0_i32_2 = arith.constant 0 : i32
    return %c0_i32, %c0_i32_0, %c0_i32_1 : i32, i32, i32
  }
  func.func @transform_6(%arg0: i32) -> (i32, i32) {
    %c0_i32 = arith.constant 0 : i32
    %c0_i32_0 = arith.constant 0 : i32
    %c0_i32_1 = arith.constant 0 : i32
    return %c0_i32, %c0_i32_0 : i32, i32
  }
  func.func @transform_7(%arg0: i32) -> (i32, i32) {
    %c0_i32 = arith.constant 0 : i32
    %c0_i32_0 = arith.constant 0 : i32
    %c0_i32_1 = arith.constant 0 : i32
    return %c0_i32, %c0_i32_0 : i32, i32
  }
  func.func @transform_8(%arg0: i32) -> (i32, i32) {
    %c0_i32 = arith.constant 0 : i32
    %c0_i32_0 = arith.constant 0 : i32
    %c0_i32_1 = arith.constant 0 : i32
    return %c0_i32, %c0_i32_0 : i32, i32
  }
  func.func @transform_9(%arg0: i32) -> (i32, i32) {
    %c0_i32 = arith.constant 0 : i32
    %c0_i32_0 = arith.constant 0 : i32
    %c0_i32_1 = arith.constant 0 : i32
    return %c0_i32, %c0_i32_0 : i32, i32
  }
  func.func @transform_10(%arg0: i32) -> (i32, i32) {
    %c0_i32 = arith.constant 0 : i32
    %c0_i32_0 = arith.constant 0 : i32
    %c0_i32_1 = arith.constant 0 : i32
    return %c0_i32, %c0_i32_0 : i32, i32
  }
  func.func @transform_11(%arg0: i32) -> (i32, i32) {
    %c0_i32 = arith.constant 0 : i32
    %c0_i32_0 = arith.constant 0 : i32
    %c0_i32_1 = arith.constant 0 : i32
    return %c0_i32, %c0_i32_0 : i32, i32
  }
  func.func @transform_12(%arg0: i32) -> (i32, i32, i32) {
    %c0_i32 = arith.constant 0 : i32
    %c0_i32_0 = arith.constant 0 : i32
    %c0_i32_1 = arith.constant 0 : i32
    %c0_i32_2 = arith.constant 0 : i32
    return %c0_i32, %c0_i32_0, %c0_i32_1 : i32, i32, i32
  }
  func.func @transform_13(%arg0: i32) -> (i32, i32) {
    %c0_i32 = arith.constant 0 : i32
    %c0_i32_0 = arith.constant 0 : i32
    %c0_i32_1 = arith.constant 0 : i32
    return %c0_i32, %c0_i32_0 : i32, i32
  }
  func.func @transform_14(%arg0: i32) -> (i32, i32) {
    %c0_i32 = arith.constant 0 : i32
    %c0_i32_0 = arith.constant 0 : i32
    %c0_i32_1 = arith.constant 0 : i32
    return %c0_i32, %c0_i32_0 : i32, i32
  }
  func.func @transform_15(%arg0: i32) -> (i32, i32) {
    %c0_i32 = arith.constant 0 : i32
    %c0_i32_0 = arith.constant 0 : i32
    %c0_i32_1 = arith.constant 0 : i32
    return %c0_i32, %c0_i32_0 : i32, i32
  }
  func.func @transform_16(%arg0: i32) -> (i32, i32, i32, i32) {
    %c0_i32 = arith.constant 0 : i32
    %c0_i32_0 = arith.constant 0 : i32
    %c0_i32_1 = arith.constant 0 : i32
    %c0_i32_2 = arith.constant 0 : i32
    return %arg0, %c0_i32, %c0_i32_0, %c0_i32_1 : i32, i32, i32, i32
  }
}

</mosaic_0001>

<bundles_post_ra>
// kernel: tpu_custom_call.1
= control target key start
LH: loop header
LB: loop body
LE: loop exit
PB: predicated region body
PF: predicated region fallthrough
CT: control target
= control target key end

     0   :  { %s11954_s0 = inlined_call_operand.vmem [shape: f32[2,16,16,32], index: 0, kind: input, shape index: {}]   ;;  %s11955_s1 = inlined_call_operand.vmem [shape: f32[2,1,128], index: 1, kind: input, shape index: {}]   ;;  %s11956_s2 = inlined_call_operand.vmem [shape: f32[1,32], index: 2, kind: input, shape index: {}]   ;;  %s11957_s3 = inlined_call_operand.vmem [shape: f32[1,32], index: 3, kind: input, shape index: {}]   ;;  %s11958_s4 = inlined_call_operand.vmem [shape: f32[32,32], index: 4, kind: input, shape index: {}]   ;;  %s11959_s5 = inlined_call_operand.vmem [shape: f32[3,96,64], index: 5, kind: input, shape index: {}]   ;;  %s11960_s6 = inlined_call_operand.vmem [shape: f32[1,64], index: 6, kind: input, shape index: {}]   ;;  %s11961_s7 = inlined_call_operand.vmem [shape: f32[128,64], index: 7, kind: input, shape index: {}]   ;;  %s11962_s8 = inlined_call_operand.vmem [shape: f32[1,64], index: 8, kind: input, shape index: {}]   ;;  %s11963_s9 = inlined_call_operand.vmem [shape: f32[1,64], index: 9, kind: input, shape index: {}]   ;;  %s11964_s10 = inlined_call_operand.vmem [shape: f32[1,64], index: 10, kind: input, shape index: {}]   ;;  %s11965_s11 = inlined_call_operand.vmem [shape: f32[64,64], index: 11, kind: input, shape index: {}]   ;;  %s11966_s12 = inlined_call_operand.vmem [shape: f32[3,192,64], index: 12, kind: input, shape index: {}]   ;;  %s11967_s13 = inlined_call_operand.vmem [shape: f32[1,64], index: 13, kind: input, shape index: {}]   ;;  %s11968_s14 = inlined_call_operand.vmem [shape: f32[32,64], index: 14, kind: input, shape index: {}]   ;;  %s11969_s15 = inlined_call_operand.vmem [shape: f32[1,64], index: 15, kind: input, shape index: {}]   ;;  %s11970_s16 = inlined_call_operand.hbm [shape: f32[2,16,16,64], index: 16, kind: output, shape index: {}]  }
   0x1   :  { %11986 = sst [smem:[#allocation81_spill]] %s11954_s0 }
   0x2   :  { %11987 = sst [smem:[#allocation82_spill]] %s11955_s1 }
   0x3   :  { %11988 = sst [smem:[#allocation83_spill]] %s11956_s2 }
   0x4   :  { %21 = vsyncpa [#allocation4], 0 }
   0x5   :  { %23 = vsyncpa [#allocation4 + $0x1], 0  ;;  %s6973_s21 = smov 0   ;;  %s6975_s22 = smov 0  }
   0x6   :  { %s6977_s23 = smov 0   ;;  %s6979_s24 = smov 0  }
   0x7 LB: > { %11989 = sst [smem:[#allocation6_spill]] %s6877_s23  ;;  %s6994_s25 = sadd.s32 4294967295, %s6881_s24   ;;  %s6881_s24 = sphi %s6979_s24, %s12451_s24   ;;  %s6877_s23 = sphi %s6977_s23, %s12456_s23   ;;  %s6873_s22 = sphi %s6975_s22, %s12455_s22   ;;  %s6869_s21 = sphi %s6973_s21, %s12454_s21  }
   0x8   : > { %s6101_s26 = sadd.s32 4294967294, %s6881_s24   ;;  %s6998_s27 = sadd.s32 1, %s6881_s24  }
   0x9   : > { %11990 = sst [smem:[#allocation7_spill]] %s6998_s27  ;;  %s382_s28 = sadd.s32 1, %s6877_s23 }
   0xa   : > { %s379_s29 = ssub.s32 %s6881_s24, %s6998_s27  ;;  %p392_p0 = scmp.ne.s32.totalorder %s6877_s23, %s6873_s22 }
   0xb   : > { %p380_p1 = scmp.eq.s32.totalorder %s379_s29, 0  ;;  %p393_p2 = scmp.eq.s32.totalorder %s6994_s25, 1 }
   0xc   : > { %p398_p3 = scmp.ne.s32.totalorder %s6873_s22, %s6869_s21  ;;  %p399_p4 = scmp.eq.s32.totalorder %s6101_s26, 1 }
   0xd   : > { %s7009_s30 = scalar_select %p380_p1, %s6877_s23, %s382_s28  }
   0xe   : > { %p7011_p5 = por %p393_p2, %p392_p0  ;;  %p7015_p6 = por %p399_p4, %p398_p3 }
   0xf   : > { %11991 = sst [smem:[#allocation8_spill]] %s7009_s30  ;;  %p6104_p7 = scmp.ge.s32.totalorder %s6881_s24, 1 }
  0x10   : > { %s11993_s17 = scalar_select %p7015_p6, 1, 0 }
  0x11   : > { %p473_p8 = scmp.lt.s32.totalorder %s6881_s24, 3 }
  0x12   : > { %11994 = sst [smem:[#allocation9_spill]] %s11993_s17 }
  0x13   : > { %p474_p9 = pnand %p6104_p7, %p473_p8 }
  0x15   : > { %477 = sbr.rel (%p474_p9) target bundleno = 2017 (0x7e1), region = 84 }
  0x1a   : > { %v750_v0 = vld [vmem:[%s11958_s4 + $0x18] sm:$0xff]  ;;  %v749_v1 = vld [vmem:[%s11958_s4 + $0x10] sm:$0xff]  ;;  %p526_p10 = scmp.lt.s32.totalorder %s6994_s25, 1  ;;  %v748_v2 = vld [vmem:[%s11958_s4 + $0x8] sm:$0xff]  ;;  %vm11975_vm0 = vcmask 261120   ;;  %s11995_s26 = sld [smem:[#allocation81_spill]] }
  0x1b   : > { %766 = vmatpush.msra.mxu0 %v750_v0  ;;  %v747_v3 = vld [vmem:[%s11958_s4] sm:$0xff]  ;;  %s11996_s2 = sld [smem:[#allocation83_spill]]  ;;  %s11976_s19 = smov 64  }
  0x1c   : > { %s7032_s30 = scalar_select %p526_p10, %s6994_s25, 1 }
  0x1d   : > { %767 = vmatpush.msra.mxu0 %v749_v1  ;;  %s12081_s1 = sld [smem:[#allocation82_spill]] }
  0x1e   : > { %s6413_s18 = sshll.u32 %s7032_s30, 8 }
  0x1f   : > { %768 = vmatpush.msra.mxu0 %v748_v2 }
  0x20   : > { %s7041_s17 = scalar_lea.vmem %s11995_s26, %s6413_s18  ;;  %s6883_s18 = smov 32  }
  0x21   : > { %v7044_v4 = vld [vmem:[%s7041_s17] sm:$0xff]  ;;  %v7047_v5 = vld [vmem:[%s7041_s17 + $0x8] sm:$0xff]  ;;  %v7050_v6 = vld [vmem:[%s7041_s17 + $0x10] sm:$0xff]  ;;  %769 = vmatpush.msra.mxu0 %v747_v3 }
  0x22   : > { %v7053_v7 = vld [vmem:[%s7041_s17 + $0x18] sm:$0xff]  ;;  %v577_v8 = vsel %vm11975_vm0, %v7044_v4, 0.0  ;;  %v578_v9 = vsel %vm11975_vm0, %v7047_v5, 0.0  ;;  %v580_v10 = vsel %vm11975_vm0, %v7050_v6, 0.0  ;;  %v7062_v11 = vld [vmem:[%s7041_s17 + $0x20] sm:$0xff]  ;;  %v7067_v14 = vld [vmem:[%s7041_s17 + $0x28] sm:$0xff]  ;;  %v646_v23 = vmul.f32 %v7044_v4, %v7044_v4 }
  0x23   : > { %v579_v12 = vadd.f32 %v578_v9, %v577_v8  ;;  %789 = vmatpush.msrb.mxu0 %v750_v0  ;;  %v582_v13 = vsel %vm11975_vm0, %v7053_v7, 0.0  ;;  %v584_v16 = vsel %vm11975_vm0, %v7062_v11, 0.0  ;;  %v7072_v17 = vld [vmem:[%s7041_s17 + $0x30] sm:$0xff]  ;;  %v586_v19 = vsel %vm11975_vm0, %v7067_v14, 0.0  ;;  %v7077_v20 = vld [vmem:[%s7041_s17 + $0x38] sm:$0xff]  ;;  %v7084_v24 = vld [vmem:[%s7041_s17 + $0x40] sm:$0xff]  ;;  %s533_s28 = scalar_lea.vmem %s12081_s1, %s7032_s30 }
  0x24   : > { %v588_v22 = vsel %vm11975_vm0, %v7072_v17, 0.0  ;;  %v647_v26 = vmul.f32 %v7047_v5, %v7047_v5  ;;  %v648_v27 = vmul.f32 %v7050_v6, %v7050_v6  ;;  %v590_v28 = vsel %vm11975_vm0, %v7077_v20, 0.0  ;;  %v7093_v29 = vld [vmem:[%s7041_s17 + $0x48] sm:$0xff]  ;;  %v7101_v34 = vld [vmem:[%s7041_s17 + $0x50] sm:$0xff]  ;;  %v7110_v41 = vld [vmem:[%s7041_s17 + $0x58] sm:$0xff] }
  0x25   : > { %v581_v15 = vadd.f32 %v580_v10, %v579_v12  ;;  %790 = vmatpush.msrb.mxu0 %v749_v1  ;;  %v649_v31 = vmul.f32 %v7053_v7, %v7053_v7  ;;  %v592_v32 = vsel %vm11975_vm0, %v7084_v24, 0.0  ;;  %v678_v33 = vsel %vm11975_vm0, %v646_v23, 0.0  ;;  %v7118_v47 = vld [vmem:[%s7041_s17 + $0x60] sm:$0xff]  ;;  %v7126_v53 = vld [vmem:[%s7041_s17 + $0x68] sm:$0xff]  ;;  %v7134_v59 = vld [vmem:[%s7041_s17 + $0x70] sm:$0xff] }
  0x26   : > { %v650_v36 = vmul.f32 %v7062_v11, %v7062_v11  ;;  %v679_v37 = vsel %vm11975_vm0, %v647_v26, 0.0  ;;  %v681_v38 = vsel %vm11975_vm0, %v648_v27, 0.0  ;;  %v594_v39 = vsel %vm11975_vm0, %v7093_v29, 0.0  ;;  %v7142_v1 = vld [vmem:[%s7041_s17 + $0x78] sm:$0xff]  ;;  %v7150_v12 = vld [vmem:[%s7041_s17 + $0x80] sm:$0xff] }
  0x27   : > { %v583_v18 = vadd.f32 %v582_v13, %v581_v15  ;;  %791 = vmatpush.msrb.mxu0 %v748_v2  ;;  %v680_v40 = vadd.f32 %v679_v37, %v678_v33  ;;  %v651_v43 = vmul.f32 %v7067_v14, %v7067_v14  ;;  %v683_v44 = vsel %vm11975_vm0, %v649_v31, 0.0 }
  0x28   : > { %v596_v45 = vsel %vm11975_vm0, %v7101_v34, 0.0  ;;  %v652_v49 = vmul.f32 %v7072_v17, %v7072_v17  ;;  %v685_v50 = vsel %vm11975_vm0, %v650_v36, 0.0  ;;  %v598_v51 = vsel %vm11975_vm0, %v7110_v41, 0.0  ;;  %v563_v36 = vld [vmem:[%s7041_s17 + $0x98] sm:$0xff] }
  0x29   : > { %v585_v21 = vadd.f32 %v584_v16, %v583_v18  ;;  %792 = vmatpush.msrb.mxu0 %v747_v3  ;;  %v682_v46 = vadd.f32 %v681_v38, %v680_v40  ;;  %v653_v55 = vmul.f32 %v7077_v20, %v7077_v20  ;;  %v687_v56 = vsel %vm11975_vm0, %v651_v43, 0.0  ;;  %v564_v43 = vld [vmem:[%s7041_s17 + $0xa0] sm:$0xff] }
  0x2a   : > { %v600_v57 = vsel %vm11975_vm0, %v7118_v47, 0.0  ;;  %v654_v61 = vmul.f32 %v7084_v24, %v7084_v24  ;;  %v689_v62 = vsel %vm11975_vm0, %v652_v49, 0.0  ;;  %v602_v63 = vsel %vm11975_vm0, %v7126_v53, 0.0 }
  0x2b   : > { %v587_v25 = vadd.f32 %v586_v19, %v585_v21  ;;  %v684_v52 = vadd.f32 %v683_v44, %v682_v46  ;;  %v655_v3 = vmul.f32 %v7093_v29, %v7093_v29  ;;  %v691_v8 = vsel %vm11975_vm0, %v653_v55, 0.0  ;;  %v7158_v21 = vld [vmem:[%s7041_s17 + $0x88] sm:$0xff] }
  0x2c   : > { %v604_v9 = vsel %vm11975_vm0, %v7134_v59, 0.0  ;;  %v656_v15 = vmul.f32 %v7101_v34, %v7101_v34  ;;  %v693_v16 = vsel %vm11975_vm0, %v654_v61, 0.0  ;;  %v606_v18 = vsel %vm11975_vm0, %v7142_v1, 0.0 }
  0x2d   : > { %v589_v30 = vadd.f32 %v588_v22, %v587_v25  ;;  %v686_v58 = vadd.f32 %v685_v50, %v684_v52  ;;  %v657_v23 = vmul.f32 %v7110_v41, %v7110_v41  ;;  %v695_v25 = vsel %vm11975_vm0, %v655_v3, 0.0  ;;  %v565_v50 = vld [vmem:[%s7041_s17 + $0xa8] sm:$0xff] }
  0x2e   : > { %v608_v26 = vsel %vm11975_vm0, %v7150_v12, 0.0  ;;  %v658_v31 = vmul.f32 %v7118_v47, %v7118_v47  ;;  %v610_v33 = vsel %vm11975_vm0, %v7158_v21, 0.0  ;;  %v659_v38 = vmul.f32 %v7126_v53, %v7126_v53 }
  0x2f   : > { %v591_v35 = vadd.f32 %v590_v28, %v589_v30  ;;  %v688_v0 = vadd.f32 %v687_v56, %v686_v58  ;;  %v562_v28 = vld [vmem:[%s7041_s17 + $0x90] sm:$0xff]  ;;  %v661_v52 = vmul.f32 %v7142_v1, %v7142_v1  ;;  %v616_v55 = vsel %vm11975_vm0, %v564_v43, 0.0 }
  0x30   : > { %v612_v40 = vsel %vm11975_vm0, %v562_v28, 0.0  ;;  %v701_v46 = vsel %vm11975_vm0, %v658_v31, 0.0  ;;  %v663_v3 = vmul.f32 %v7158_v21, %v7158_v21 }
  0x31   : > { %v593_v42 = vadd.f32 %v592_v32, %v591_v35  ;;  %v690_v10 = vadd.f32 %v689_v62, %v688_v0  ;;  %v697_v32 = vsel %vm11975_vm0, %v656_v15, 0.0  ;;  %v618_v62 = vsel %vm11975_vm0, %v565_v50, 0.0  ;;  %v567_v0 = vld [vmem:[%s7041_s17 + $0xb8] sm:$0xff] }
  0x33   : > { %v595_v48 = vadd.f32 %v594_v39, %v593_v42  ;;  %v692_v19 = vadd.f32 %v691_v8, %v690_v10  ;;  %v699_v39 = vsel %vm11975_vm0, %v657_v23, 0.0  ;;  %v707_v8 = vsel %vm11975_vm0, %v661_v52, 0.0  ;;  %v569_v23 = vld [vmem:[%s7041_s17 + $0xc8] sm:$0xff] }
  0x35   : > { %v597_v54 = vadd.f32 %v596_v45, %v595_v48  ;;  %v694_v27 = vadd.f32 %v693_v16, %v692_v19  ;;  %v660_v45 = vmul.f32 %v7134_v59, %v7134_v59  ;;  %v614_v48 = vsel %vm11975_vm0, %v563_v36, 0.0 }
  0x36   : > { %v664_v16 = vmul.f32 %v562_v28, %v562_v28  ;;  %v622_v19 = vsel %vm11975_vm0, %v567_v0, 0.0 }
  0x37   : > { %v599_v60 = vadd.f32 %v598_v51, %v597_v54  ;;  %v696_v35 = vadd.f32 %v695_v25, %v694_v27  ;;  %v703_v54 = vsel %vm11975_vm0, %v659_v38, 0.0  ;;  %v705_v61 = vsel %vm11975_vm0, %v660_v45, 0.0 }
  0x38   : > { %v711_v27 = vsel %vm11975_vm0, %v663_v3, 0.0  ;;  %v713_v28 = vsel %vm11975_vm0, %v664_v16, 0.0 }
  0x39   : > { %v601_v2 = vadd.f32 %v600_v57, %v599_v60  ;;  %v698_v42 = vadd.f32 %v697_v32, %v696_v35  ;;  %v566_v57 = vld [vmem:[%s7041_s17 + $0xb0] sm:$0xff]  ;;  %v662_v60 = vmul.f32 %v7150_v12, %v7150_v12  ;;  %v666_v35 = vmul.f32 %v564_v43, %v564_v43 }
  0x3a   : > { %v570_v32 = vld [vmem:[%s7041_s17 + $0xd0] sm:$0xff] }
  0x3b   : > { %v603_v13 = vadd.f32 %v602_v63, %v601_v2  ;;  %v700_v49 = vadd.f32 %v699_v39, %v698_v42  ;;  %v571_v39 = vld [vmem:[%s7041_s17 + $0xd8] sm:$0xff]  ;;  %v667_v42 = vmul.f32 %v565_v50, %v565_v50  ;;  %v717_v43 = vsel %vm11975_vm0, %v666_v35, 0.0 }
  0x3d   : > { %v605_v22 = vadd.f32 %v604_v9, %v603_v13  ;;  %v702_v56 = vadd.f32 %v701_v46, %v700_v49  ;;  %v620_v9 = vsel %vm11975_vm0, %v566_v57, 0.0  ;;  %v568_v13 = vld [vmem:[%s7041_s17 + $0xc0] sm:$0xff]  ;;  %v668_v49 = vmul.f32 %v566_v57, %v566_v57 }
  0x3e   : > { %v572_v46 = vld [vmem:[%s7041_s17 + $0xe0] sm:$0xff]  ;;  %v719_v50 = vsel %vm11975_vm0, %v667_v42, 0.0 }
  0x3f   : > { %v607_v30 = vadd.f32 %v606_v18, %v605_v22  ;;  %v704_v63 = vadd.f32 %v703_v54, %v702_v56  ;;  %v709_v18 = vsel %vm11975_vm0, %v662_v60, 0.0  ;;  %v573_v54 = vld [vmem:[%s7041_s17 + $0xe8] sm:$0xff]  ;;  %v669_v56 = vmul.f32 %v567_v0, %v567_v0 }
  0x40   : > { %v634_v57 = vsel %vm11975_vm0, %v573_v54, 0.0  ;;  %v674_v35 = vmul.f32 %v572_v46, %v572_v46 }
  0x41   : > { %v609_v37 = vadd.f32 %v608_v26, %v607_v30  ;;  %v706_v10 = vadd.f32 %v705_v61, %v704_v63  ;;  %v665_v26 = vmul.f32 %v563_v36, %v563_v36  ;;  %v624_v30 = vsel %vm11975_vm0, %v568_v13, 0.0  ;;  %v574_v61 = vld [vmem:[%s7041_s17 + $0xf0] sm:$0xff] }
  0x42   : > { %v670_v63 = vmul.f32 %v568_v13, %v568_v13  ;;  %v636_v0 = vsel %vm11975_vm0, %v574_v61, 0.0 }
  0x43   : > { %v611_v44 = vadd.f32 %v610_v33, %v609_v37  ;;  %v708_v22 = vadd.f32 %v707_v8, %v706_v10  ;;  %v626_v37 = vsel %vm11975_vm0, %v569_v23, 0.0  ;;  %v715_v36 = vsel %vm11975_vm0, %v665_v26, 0.0  ;;  %v575_v8 = vld [vmem:[%s7041_s17 + $0xf8] sm:$0xff] }
  0x44   : > { %v671_v10 = vmul.f32 %v569_v23, %v569_v23 }
  0x45   : > { %v613_v51 = vadd.f32 %v612_v40, %v611_v44  ;;  %v710_v31 = vadd.f32 %v709_v18, %v708_v22  ;;  %v628_v44 = vsel %vm11975_vm0, %v570_v32, 0.0  ;;  %v725_v22 = vsel %vm11975_vm0, %v670_v63, 0.0 }
  0x47   : > { %v615_v58 = vadd.f32 %v614_v48, %v613_v51  ;;  %v712_v38 = vadd.f32 %v711_v27, %v710_v31  ;;  %v630_v51 = vsel %vm11975_vm0, %v571_v39, 0.0  ;;  %v673_v27 = vmul.f32 %v571_v39, %v571_v39 }
  0x48   : > { %v677_v39 = vmul.f32 %v575_v8, %v575_v8 }
  0x49   : > { %v617_v2 = vadd.f32 %v616_v55, %v615_v58  ;;  %v714_v45 = vadd.f32 %v713_v28, %v712_v38  ;;  %v632_v58 = vsel %vm11975_vm0, %v572_v46, 0.0  ;;  %v675_v38 = vmul.f32 %v573_v54, %v573_v54 }
  0x4a   : > { %v739_v54 = vsel %vm11975_vm0, %v677_v39, 0.0 }
  0x4b   : > { %v619_v15 = vadd.f32 %v618_v62, %v617_v2  ;;  %v716_v52 = vadd.f32 %v715_v36, %v714_v45  ;;  %v721_v2 = vsel %vm11975_vm0, %v668_v49, 0.0  ;;  %v676_v36 = vmul.f32 %v574_v61, %v574_v61 }
  0x4c   : > { %v735_v49 = vsel %vm11975_vm0, %v675_v38, 0.0 }
  0x4d   : > { %v621_v25 = vadd.f32 %v620_v9, %v619_v15  ;;  %v718_v60 = vadd.f32 %v717_v43, %v716_v52  ;;  %v723_v15 = vsel %vm11975_vm0, %v669_v56, 0.0  ;;  %v737_v46 = vsel %vm11975_vm0, %v676_v36, 0.0 }
  0x4f   : > { %v623_v33 = vadd.f32 %v622_v19, %v621_v25  ;;  %v720_v3 = vadd.f32 %v719_v50, %v718_v60  ;;  %v672_v19 = vmul.f32 %v570_v32, %v570_v32  ;;  %v638_v25 = vsel %vm11975_vm0, %v575_v8, 0.0 }
  0x51   : > { %v625_v40 = vadd.f32 %v624_v30, %v623_v33  ;;  %v722_v16 = vadd.f32 %v721_v2, %v720_v3  ;;  %v727_v30 = vsel %vm11975_vm0, %v671_v10, 0.0  ;;  %v729_v23 = vsel %vm11975_vm0, %v672_v19, 0.0 }
  0x53   : > { %v627_v48 = vadd.f32 %v626_v37, %v625_v40  ;;  %v724_v13 = vadd.f32 %v723_v15, %v722_v16  ;;  %v731_v40 = vsel %vm11975_vm0, %v673_v27, 0.0 }
  0x55   : > { %v629_v55 = vadd.f32 %v628_v44, %v627_v48  ;;  %v726_v31 = vadd.f32 %v725_v22, %v724_v13  ;;  %v733_v44 = vsel %vm11975_vm0, %v674_v35, 0.0 }
  0x57   : > { %v631_v62 = vadd.f32 %v630_v51, %v629_v55  ;;  %v728_v28 = vadd.f32 %v727_v30, %v726_v31  ;;  %v7240_v31 = vld [vmem:[%s11996_s2] ss:$0 sm:$0xff] }
  0x59   : > { %v633_v9 = vadd.f32 %v632_v58, %v631_v62  ;;  %v730_v32 = vadd.f32 %v729_v23, %v728_v28 }
  0x5b   : > { %v635_v18 = vadd.f32 %v634_v57, %v633_v9  ;;  %v732_v45 = vadd.f32 %v731_v40, %v730_v32 }
  0x5d   : > { %v637_v26 = vadd.f32 %v636_v0, %v635_v18  ;;  %v734_v43 = vadd.f32 %v733_v44, %v732_v45 }
  0x5f   : > { %v639_v33 = vadd.f32 %v638_v25, %v637_v26  ;;  %v736_v52 = vadd.f32 %v735_v49, %v734_v43 }
  0x61   : > { %v640_v37 = vrot.slane %v639_v33, 4  ;;  %v738_v56 = vadd.f32 %v737_v46, %v736_v52 }
  0x63   : > { %v641_v42 = vadd.f32 %v640_v37, %v639_v33  ;;  %v740_v58 = vadd.f32 %v739_v54, %v738_v56 }
  0x65   : > { %v642_v48 = vrot.slane %v641_v42, 2  ;;  %v741_v60 = vrot.slane %v740_v58, 4 }
  0x67   : > { %v643_v51 = vadd.f32 %v642_v48, %v641_v42  ;;  %v742_v61 = vadd.f32 %v741_v60, %v740_v58 }
  0x69   : > { %v644_v55 = vrot.slane %v643_v51, 1  ;;  %v743_v62 = vrot.slane %v742_v61, 2 }
  0x6b   : > { %v645_v50 = vadd.f32 %v644_v55, %v643_v51  ;;  %v744_v63 = vadd.f32 %v743_v62, %v742_v61 }
  0x6d   : > { %6108 = vmatmul.msk.f32.vlgmr.msra.gmra.mxu0 %vm11975_vm0, %v645_v50  ;;  %v745_v2 = vrot.slane %v744_v63, 1 }
  0x6f   : > { %v746_v57 = vadd.f32 %v745_v2, %v744_v63 }
  0x75   : > { %6109 = vmatmul.msk.f32.vlgmr.msrb.gmra.mxu0 %vm11975_vm0, %v746_v57  ;;  %vm1866_vm0 = vcmask 1046528  }
  0xea   : > { %v771_v3 = vpop.f32.mrf.mxu0 }
  0xeb   : > { %v797_v8 = vmul.f32 %v771_v3, %v771_v3  ;;  %v7231_v22 = vperm.slane %v771_v3, 0 }
  0xed   : > { %v813_v27 = vsub.f32 %v7050_v6, %v7231_v22  ;;  %v812_v33 = vsub.f32 %v7047_v5, %v7231_v22  ;;  %v811_v35 = vsub.f32 %v7044_v4, %v7231_v22  ;;  %v814_v23 = vsub.f32 %v7053_v7, %v7231_v22  ;;  %v7260_v4 = vld [vmem:[%s11957_s3] ss:$0 sm:$0xff] }
  0xee   : > { %v815_v28 = vsub.f32 %v7062_v11, %v7231_v22  ;;  %v816_v6 = vsub.f32 %v7067_v14, %v7231_v22  ;;  %v818_v37 = vsub.f32 %v7077_v20, %v7231_v22  ;;  %v817_v38 = vsub.f32 %v7072_v17, %v7231_v22 }
  0xef   : > { %v819_v49 = vsub.f32 %v7084_v24, %v7231_v22  ;;  %v820_v2 = vsub.f32 %v7093_v29, %v7231_v22  ;;  %v821_v29 = vsub.f32 %v7101_v34, %v7231_v22 }
  0xf2   : > { %v794_v9 = vpop.f32.mrf.mxu0 }
  0xf3   : > { %v798_v10 = vsub.f32 %v794_v9, %v797_v8 }
  0xf5   : > { %v799_v15 = vadd.f32 1e-06, %v798_v10 }
  0xf7   : > { %6502 = vrsqrt.f32 %v799_v15  ;;  %vm806_vm2 = vweird.f32 %v799_v15 }
  0xfd   : > { %v6503_v0 = vpop.eup %6502 }
  0xfe   : > { %v801_v16 = vmul.f32 %v6503_v0, %v799_v15  ;;  %vm807_vm1 = vweird.f32 %v6503_v0 }
  0xff   : > { %vm808_vm3 = vmor %vm806_vm2, %vm807_vm1 }
 0x100   : > { %v802_v18 = vmul.f32 %v6503_v0, %v801_v16 }
 0x102   : > { %v803_v19 = vmul.f32 0.5, %v802_v18 }
 0x104   : > { %v804_v25 = vsub.f32 1.5, %v803_v19 }
 0x106   : > { %v805_v13 = vmul.f32 %v6503_v0, %v804_v25 }
 0x108   : > { %v809_v26 = vsel %vm808_vm3, %v6503_v0, %v805_v13 }
 0x109   : > { %v7235_v30 = vperm.slane %v809_v26, 0 }
 0x10b   : > { %v846_v5 = vmul.f32 %v7235_v30, %v813_v27  ;;  %v845_v7 = vmul.f32 %v7235_v30, %v812_v33  ;;  %v844_v11 = vmul.f32 %v7235_v30, %v811_v35  ;;  %v847_v40 = vmul.f32 %v7235_v30, %v814_v23 }
 0x10c   : > { %v848_v14 = vmul.f32 %v7235_v30, %v815_v28  ;;  %v849_v20 = vmul.f32 %v7235_v30, %v816_v6  ;;  %v851_v32 = vmul.f32 %v7235_v30, %v818_v37  ;;  %v850_v17 = vmul.f32 %v7235_v30, %v817_v38 }
 0x10d   : > { %v882_v42 = vmul.f32 %v7240_v31, %v846_v5  ;;  %v881_v36 = vmul.f32 %v7240_v31, %v845_v7  ;;  %v880_v44 = vmul.f32 %v7240_v31, %v844_v11  ;;  %v883_v45 = vmul.f32 %v7240_v31, %v847_v40 }
 0x10e   : > { %v884_v48 = vmul.f32 %v7240_v31, %v848_v14  ;;  %v885_v39 = vmul.f32 %v7240_v31, %v849_v20  ;;  %v887_v24 = vmul.f32 %v7240_v31, %v851_v32  ;;  %v886_v56 = vmul.f32 %v7240_v31, %v850_v17 }
 0x10f   : > { %v7278_v43 = vadd.f32 %v7260_v4, %v882_v42  ;;  %v7281_v51 = vadd.f32 %v7260_v4, %v881_v36  ;;  %v7284_v46 = vadd.f32 %v7260_v4, %v880_v44  ;;  %v7287_v52 = vadd.f32 %v7260_v4, %v883_v45 }
 0x110   : > { %v7290_v55 = vadd.f32 %v7260_v4, %v884_v48  ;;  %v7293_v54 = vadd.f32 %v7260_v4, %v885_v39  ;;  %v852_v9 = vmul.f32 %v7235_v30, %v819_v49  ;;  %v7307_v15 = vadd.f32 %v7260_v4, %v887_v24 }
 0x111   : > { %v950_v50 = vsub.f32 0.0, %v7278_v43  ;;  %v949_v58 = vsub.f32 0.0, %v7281_v51  ;;  %v948_v60 = vsub.f32 0.0, %v7284_v46  ;;  %v951_v61 = vsub.f32 0.0, %v7287_v52 }
 0x112   : > { %v952_v62 = vsub.f32 0.0, %v7290_v55  ;;  %v953_v63 = vsub.f32 0.0, %v7293_v54  ;;  %v853_v0 = vmul.f32 %v7235_v30, %v820_v2  ;;  %v7311_v18 = vadd.f32 %v7260_v4, %v886_v56 }
 0x113   : > { %v984_v57 = vmul.f32 1.442695, %v950_v50  ;;  %v982_v3 = vmul.f32 1.442695, %v949_v58  ;;  %v980_v8 = vmul.f32 1.442695, %v948_v60  ;;  %v888_v25 = vmul.f32 %v7240_v31, %v852_v9 }
 0x114   : > { %v986_v10 = vmul.f32 1.442695, %v951_v61  ;;  %v988_v16 = vmul.f32 1.442695, %v952_v62  ;;  %v990_v19 = vmul.f32 1.442695, %v953_v63  ;;  %v889_v13 = vmul.f32 %v7240_v31, %v853_v0 }
 0x115   : > { %6504 = vpow2.f32 %v984_v57  ;;  %v955_v26 = vsub.f32 0.0, %v7307_v15  ;;  %v854_v27 = vmul.f32 %v7235_v30, %v821_v29  ;;  %v822_v33 = vsub.f32 %v7110_v41, %v7231_v22 }
 0x116   : > { %6506 = vpow2.f32 %v982_v3  ;;  %v954_v35 = vsub.f32 0.0, %v7311_v18  ;;  %v824_v23 = vsub.f32 %v7126_v53, %v7231_v22  ;;  %v7326_v6 = vadd.f32 %v7260_v4, %v888_v25 }
 0x117   : > { %6508 = vpow2.f32 %v980_v8  ;;  %v855_v34 = vmul.f32 %v7235_v30, %v822_v33  ;;  %v7329_v37 = vadd.f32 %v7260_v4, %v889_v13  ;;  %v994_v7 = vmul.f32 1.442695, %v955_v26 }
 0x118   : > { %6510 = vpow2.f32 %v986_v10  ;;  %v857_v38 = vmul.f32 %v7235_v30, %v824_v23  ;;  %v890_v11 = vmul.f32 %v7240_v31, %v854_v27  ;;  %v992_v14 = vmul.f32 1.442695, %v954_v35 }
 0x119   : > { %6512 = vpow2.f32 %v988_v16  ;;  %v891_v32 = vmul.f32 %v7240_v31, %v855_v34  ;;  %v823_v17 = vsub.f32 %v7118_v47, %v7231_v22  ;;  %v825_v42 = vsub.f32 %v7134_v59, %v7231_v22 }
 0x11a   : > { %6514 = vpow2.f32 %v990_v19  ;;  %v956_v44 = vsub.f32 0.0, %v7326_v6  ;;  %v957_v45 = vsub.f32 0.0, %v7329_v37  ;;  %v893_v48 = vmul.f32 %v7240_v31, %v857_v38 }
 0x11b   : > { %v6505_v28 = vpop.eup %6504  ;;  %v7352_v56 = vadd.f32 %v7260_v4, %v890_v11  ;;  %v7362_v63 = vadd.f32 %v7260_v4, %v891_v32  ;;  %v858_v47 = vmul.f32 %v7235_v30, %v825_v42 }
 0x11c   : > { %v6507_v5 = vpop.eup %6506  ;;  %v7332_v41 = vadd.f32 1.0, %v6505_v28  ;;  %v7367_v57 = vmul.f32 1.442695, %v956_v44  ;;  %v7370_v3 = vadd.f32 %v7260_v4, %v893_v48 }
 0x11d   : > { %v6509_v40 = vpop.eup %6508  ;;  %v7335_v53 = vadd.f32 1.0, %v6507_v5 }
 0x11e   : > { %v6511_v20 = vpop.eup %6510  ;;  %6516 = vrcp.f32 %v7332_v41  ;;  %v7347_v49 = vadd.f32 1.0, %v6509_v40  ;;  %v1113_v50 = vand.u32 2147483647, %v7332_v41  ;;  %v1115_v58 = vand.u32 2147483648, %v7332_v41 }
 0x11f   : > { %v6513_v36 = vpop.eup %6512  ;;  %6518 = vrcp.f32 %v7335_v53  ;;  %v7349_v24 = vadd.f32 1.0, %v6511_v20  ;;  %v1099_v61 = vand.u32 2147483647, %v7335_v53  ;;  %v1101_v62 = vand.u32 2147483648, %v7335_v53 }
 0x120   : > { %v6515_v39 = vpop.eup %6514  ;;  %6520 = vpow2.f32 %v994_v7  ;;  %v7356_v60 = vadd.f32 1.0, %v6513_v36  ;;  %vm1109_vm4 = vweird.f32 %v7332_v41  ;;  %vm1095_vm5 = vweird.f32 %v7335_v53 }
 0x121   : > { %6522 = vpow2.f32 %v992_v14  ;;  %v7365_v2 = vadd.f32 1.0, %v6515_v39  ;;  %v1087_v9 = vand.u32 2147483648, %v7347_v49  ;;  %vm7377_vm6 = vcmp.eq.f32.partialorder %v1113_v50, 8.507059e+37 }
 0x122   : > { %6524 = vrcp.f32 %v7347_v49  ;;  %v1116_v19 = vor.u32 1.1754944e-38, %v1115_v58  ;;  %v1085_v29 = vand.u32 2147483647, %v7347_v49  ;;  %v1129_v25 = vand.u32 2147483648, %v7349_v24 }
 0x123   : > { %6526 = vrcp.f32 %v7349_v24  ;;  %vm7384_vm7 = vcmp.eq.f32.partialorder %v1099_v61, 8.507059e+37  ;;  %v1102_v33 = vor.u32 1.1754944e-38, %v1101_v62  ;;  %v1127_v35 = vand.u32 2147483647, %v7349_v24 }
 0x124   : > { %v6517_v8 = vpop.eup %6516  ;;  %6528 = vrcp.f32 %v7356_v60  ;;  %vm1081_vm8 = vweird.f32 %v7347_v49  ;;  %v1143_v28 = vand.u32 2147483648, %v7356_v60  ;;  %v1088_v7 = vor.u32 1.1754944e-38, %v1087_v9 }
 0x125   : > { %v6519_v10 = vpop.eup %6518  ;;  %v1105_v0 = vmul.f32 %v6517_v8, %v7332_v41  ;;  %6530 = vrcp.f32 %v7365_v2  ;;  %vm1110_vm9 = vweird.f32 %v6517_v8  ;;  %vm1123_vm10 = vweird.f32 %v7349_v24 }
 0x126   : > { %v6521_v13 = vpop.eup %6520  ;;  %v1091_v26 = vmul.f32 %v6519_v10, %v7335_v53  ;;  %vm1096_vm11 = vweird.f32 %v6519_v10  ;;  %vm7396_vm12 = vcmp.eq.f32.partialorder %v1085_v29, 8.507059e+37  ;;  %v1130_v32 = vor.u32 1.1754944e-38, %v1129_v25  ;;  %vm1111_vm15 = vmor %vm1109_vm4, %vm1110_vm9 }
 0x127   : > { %v7389_v23 = vpop.eup %6522  ;;  %v1106_v34 = vsub.f32 1.0, %v1105_v0  ;;  %vm7402_vm14 = vcmp.eq.f32.partialorder %v1127_v35, 8.507059e+37  ;;  %v1141_v50 = vand.u32 2147483647, %v7356_v60  ;;  %v1155_v58 = vand.u32 2147483647, %v7365_v2  ;;  %vm1097_vm3 = vmor %vm1095_vm5, %vm1096_vm11 }
 0x128   : > { %v6525_v38 = vpop.eup %6524  ;;  %v1092_v5 = vsub.f32 1.0, %v1091_v26  ;;  %v1144_v0 = vor.u32 1.1754944e-38, %v1143_v28  ;;  %6532 = vpow2.f32 %v7367_v57 }
 0x129   : > { %v6527_v11 = vpop.eup %6526  ;;  %v1107_v40 = vmul.f32 %v6517_v8, %v1106_v34  ;;  %v1077_v14 = vmul.f32 %v6525_v38, %v7347_v49  ;;  %vm1082_vm1 = vweird.f32 %v6525_v38  ;;  %vm1142_vm9 = vcmp.eq.f32.partialorder %v1141_v50, 8.507059e+37 }
 0x12a   : > { %v6529_v36 = vpop.eup %6528  ;;  %v1093_v44 = vmul.f32 %v6519_v10, %v1092_v5  ;;  %v1119_v48 = vmul.f32 %v6527_v11, %v7349_v24  ;;  %vm1124_vm2 = vweird.f32 %v6527_v11  ;;  %vm1083_vm4 = vmor %vm1081_vm8, %vm1082_vm1  ;;  %v7446_v24 = vadd.f32 1.0, %v7389_v23 }
 0x12b   : > { %v1108_v61 = vadd.f32 %v6517_v8, %v1107_v40  ;;  %v1078_v62 = vsub.f32 1.0, %v1077_v14  ;;  %v1133_v9 = vmul.f32 %v6529_v36, %v7356_v60  ;;  %v6531_v26 = vpop.eup %6530  ;;  %vm1138_vm13 = vweird.f32 %v6529_v36  ;;  %vm1125_vm5 = vmor %vm1123_vm10, %vm1124_vm2 }
 0x12c   : > { %v1094_v29 = vadd.f32 %v6519_v10, %v1093_v44  ;;  %v1120_v25 = vsub.f32 1.0, %v1119_v48  ;;  %v1147_v14 = vmul.f32 %v6531_v26, %v7365_v2  ;;  %vm1152_vm8 = vweird.f32 %v6531_v26 }
 0x12d   : > { %v1112_v35 = vsel %vm1111_vm15, %v6517_v8, %v1108_v61  ;;  %v1079_v34 = vmul.f32 %v6525_v38, %v1078_v62  ;;  %v1134_v5 = vsub.f32 1.0, %v1133_v9  ;;  %vm1151_vm10 = vweird.f32 %v7365_v2 }
 0x12e   : > { %v1117_v28 = vsel %vm7377_vm6, %v1116_v19, %v1112_v35  ;;  %v1098_v40 = vsel %vm1097_vm3, %v6519_v10, %v1094_v29  ;;  %v1121_v41 = vmul.f32 %v6527_v11, %v1120_v25  ;;  %v1148_v10 = vsub.f32 1.0, %v1147_v14  ;;  %vm1153_vm11 = vmor %vm1151_vm10, %vm1152_vm8 }
 0x12f   : > { %v7419_v44 = vmul.f32 %v1117_v28, %v7278_v43  ;;  %v1103_v8 = vsel %vm7384_vm7, %v1102_v33, %v1098_v40  ;;  %v1080_v48 = vadd.f32 %v6525_v38, %v1079_v34  ;;  %v1135_v53 = vmul.f32 %v6529_v36, %v1134_v5 }
 0x130   : > { %v7424_v61 = vmul.f32 %v1103_v8, %v7281_v51  ;;  %v1122_v16 = vadd.f32 %v6527_v11, %v1121_v41  ;;  %v7429_v19 = vadd.f32 1.0, %v6521_v13  ;;  %v1157_v51 = vand.u32 2147483648, %v7365_v2 }
 0x131   : > { %1741 = vrot.lane.b32.xlu2 %v7419_v44, %s6883_s18  ;;  %v1084_v43 = vsel %vm1083_vm4, %v6525_v38, %v1080_v48  ;;  %v1136_v27 = vadd.f32 %v6529_v36, %v1135_v53  ;;  %vm12005_vm6 = vweird.f32 %v7356_v60  ;;  %v1149_v62 = vmul.f32 %v6531_v26, %v1148_v10 }
 0x132   : > { %1739 = vrot.lane.b32.xlu1 %v7424_v61, %s6883_s18  ;;  %v1089_v49 = vsel %vm7396_vm12, %v1088_v7, %v1084_v43  ;;  %v1126_v13 = vsel %vm1125_vm5, %v6527_v11, %v1122_v16  ;;  %vm1139_vm7 = vmor %vm12005_vm6, %vm1138_vm13  ;;  %v1870_v7 = vrot.slane %v7419_v44, 1  ;;  %6534 = vrcp.f32 %v7429_v19 }
 0x133   : > { %v7449_v33 = vmul.f32 %v1089_v49, %v7284_v46  ;;  %v1131_v57 = vsel %vm7402_vm14, %v1130_v32, %v1126_v13  ;;  %v1140_v38 = vsel %vm1139_vm7, %v6529_v36, %v1136_v27  ;;  %v1150_v23 = vadd.f32 %v6531_v26, %v1149_v62  ;;  %v6533_v36 = vpop.eup %6532 }
 0x134   : > { %v7454_v20 = vmul.f32 %v1131_v57, %v7287_v52  ;;  %v1145_v60 = vsel %vm1142_vm9, %v1144_v0, %v1140_v38  ;;  %v998_v46 = vmul.f32 1.442695, %v957_v45  ;;  %v1158_v52 = vor.u32 1.1754944e-38, %v1157_v51 }
 0x135   : > { %1737 = vrot.lane.b32.xlu0 %v7449_v33, %s6883_s18  ;;  %6536 = vrcp.f32 %v7446_v24  ;;  %v958_v32 = vsub.f32 0.0, %v7352_v56  ;;  %v1868_v39 = vrot.slane %v7424_v61, 1  ;;  %v1154_v50 = vsel %vm1153_vm11, %v6531_v26, %v1150_v23 }
 0x136   : > { %v1871_v11 = vrot.slane %v7454_v20, 1  ;;  %vm1156_vm12 = vcmp.eq.f32.partialorder %v1155_v58, 8.507059e+37  ;;  %v959_v9 = vsub.f32 0.0, %v7362_v63  ;;  %v1867_v0 = vrot.slane %v7449_v33, 1 }
 0x137   : > { %v7474_v29 = vmul.f32 %v1145_v60, %v7290_v55  ;;  %v1159_v25 = vsel %vm1156_vm12, %v1158_v52, %v1154_v50  ;;  %v1183_v35 = vand.u32 2147483647, %v7429_v19  ;;  %v1185_v26 = vand.u32 2147483648, %v7429_v19 }
 0x138   : > { %v1872_v45 = vsel %vm1866_vm0, %v1870_v7, %v1871_v11  ;;  %v826_v2 = vsub.f32 %v7142_v1, %v7231_v22  ;;  %v827_v58 = vsub.f32 %v7150_v12, %v7231_v22  ;;  %v6535_v34 = vpop.eup %6534  ;;  %v7485_v55 = vmul.f32 %v1159_v25, %v7293_v54 }
 0x139   : > { %1919 = vrot.lane.b32.xlu2 %v1872_v45, %s11976_s19  ;;  %6538 = vpow2.f32 %v998_v46  ;;  %v7487_v5 = vadd.f32 1.0, %v6533_v36  ;;  %v1000_v28 = vmul.f32 1.442695, %v958_v32  ;;  %v1175_v40 = vmul.f32 %v6535_v34, %v7429_v19 }
 0x13a   : > { %1917 = vrot.lane.b32.xlu1 %v1868_v39, %s11976_s19  ;;  %vm1179_vm13 = vweird.f32 %v7429_v19  ;;  %v1002_v41 = vmul.f32 1.442695, %v959_v9  ;;  %v961_v1 = vsub.f32 0.0, %v7370_v3  ;;  %v1869_v8 = vsel %vm1866_vm0, %v1867_v0, %v1868_v39 }
 0x13b   : > { %v6537_v14 = vpop.eup %6536  ;;  %v1873_v48 = vrot.slane %v7474_v29, 1  ;;  %v1169_v53 = vand.u32 2147483647, %v7446_v24  ;;  %6540 = vrcp.f32 %v7487_v5  ;;  %v1176_v54 = vsub.f32 1.0, %v1175_v40 }
 0x13c   : > { %vm7497_vm14 = vcmp.eq.f32.partialorder %v1183_v35, 8.507059e+37  ;;  %v1186_v10 = vor.u32 1.1754944e-38, %v1185_v26  ;;  %v1161_v43 = vmul.f32 %v6537_v14, %v7446_v24  ;;  %v1874_v27 = vrot.slane %v7485_v55, 1 }
 0x13d   : > { %1915 = vrot.lane.b32.xlu0 %v1869_v8, %s11976_s19  ;;  %vm1180_vm15 = vweird.f32 %v6535_v34  ;;  %v1171_v51 = vand.u32 2147483648, %v7446_v24  ;;  %6542 = vpow2.f32 %v1000_v28  ;;  %v1177_v49 = vmul.f32 %v6535_v34, %v1176_v54 }
 0x13e   : > { %v1162_v13 = vsub.f32 1.0, %v1161_v43  ;;  %6544 = vpow2.f32 %v1002_v41  ;;  %v1006_v57 = vmul.f32 1.442695, %v961_v1  ;;  %vm1165_vm1 = vweird.f32 %v7446_v24  ;;  %vm1181_vm4 = vmor %vm1179_vm13, %vm1180_vm15 }
 0x13f   : > { %v6539_v38 = vpop.eup %6538  ;;  %vm1166_vm2 = vweird.f32 %v6537_v14  ;;  %vm7505_vm3 = vcmp.eq.f32.partialorder %v1169_v53, 8.507059e+37  ;;  %v1197_v7 = vand.u32 2147483647, %v7487_v5  ;;  %v1178_v60 = vadd.f32 %v6535_v34, %v1177_v49 }
 0x140   : > { %v1163_v23 = vmul.f32 %v6537_v14, %v1162_v13  ;;  %v7512_v46 = vadd.f32 1.0, %v6539_v38  ;;  %v1199_v52 = vand.u32 2147483648, %v7487_v5  ;;  %v1875_v36 = vsel %vm1866_vm0, %v1873_v48, %v1874_v27  ;;  %vm1167_vm6 = vmor %vm1165_vm1, %vm1166_vm2 }
 0x141   : > { %1745 = vrot.lane.b32.xlu2 %v7474_v29, %s6883_s18  ;;  %v6541_v32 = vpop.eup %6540  ;;  %v1172_v39 = vor.u32 1.1754944e-38, %v1171_v51  ;;  %vm1193_vm5 = vweird.f32 %v7487_v5  ;;  %v856_v50 = vmul.f32 %v7235_v30, %v823_v17  ;;  %v1182_v9 = vsel %vm1181_vm4, %v6535_v34, %v1178_v60 }
 0x142   : > { %1921 = vrot.lane.b32.xlu1 %v1871_v11, %s11976_s19  ;;  %v1164_v45 = vadd.f32 %v6537_v14, %v1163_v23  ;;  %v1189_v0 = vmul.f32 %v6541_v32, %v7487_v5  ;;  %6546 = vpow2.f32 %v1006_v57  ;;  %v1187_v25 = vsel %vm7497_vm14, %v1186_v10, %v1182_v9 }
 0x143   : > { %v6543_v11 = vpop.eup %6542  ;;  %vm7531_vm7 = vcmp.eq.f32.partialorder %v1197_v7, 8.507059e+37  ;;  %6548 = vrcp.f32 %v7512_v46  ;;  %v1200_v34 = vor.u32 1.1754944e-38, %v1199_v52  ;;  %v859_v24 = vmul.f32 %v7235_v30, %v826_v2 }
 0x144   : > { %v6545_v17 = vpop.eup %6544  ;;  %v1168_v35 = vsel %vm1167_vm6, %v6537_v14, %v1164_v45  ;;  %v1190_v26 = vsub.f32 1.0, %v1189_v0  ;;  %v7544_v28 = vmul.f32 %v1187_v25, %v7307_v15  ;;  %v7548_v41 = vadd.f32 1.0, %v6543_v11 }
 0x145   : > { %1743 = vrot.lane.b32.xlu0 %v7454_v20, %s6883_s18  ;;  %v1173_v40 = vsel %vm7505_vm3, %v1172_v39, %v1168_v35  ;;  %v7550_v59 = vadd.f32 1.0, %v6545_v17  ;;  %vm1194_vm8 = vweird.f32 %v6541_v32  ;;  %v892_v14 = vmul.f32 %v7240_v31, %v856_v50 }
 0x146   : > { %v7553_v42 = vmul.f32 %v1173_v40, %v7311_v18  ;;  %v1191_v1 = vmul.f32 %v6541_v32, %v1190_v26  ;;  %v1211_v8 = vand.u32 2147483647, %v7512_v46  ;;  %v1213_v2 = vand.u32 2147483648, %v7512_v46  ;;  %vm1195_vm9 = vmor %vm1193_vm5, %vm1194_vm8 }
 0x147   : > { %6550 = vrcp.f32 %v7548_v41  ;;  %v894_v15 = vmul.f32 %v7240_v31, %v858_v47  ;;  %v895_v18 = vmul.f32 %v7240_v31, %v859_v24  ;;  %v860_v54 = vmul.f32 %v7235_v30, %v827_v58 }
 0x148   : > { %v6547_v48 = vpop.eup %6546  ;;  %v1192_v53 = vadd.f32 %v6541_v32, %v1191_v1  ;;  %6552 = vrcp.f32 %v7550_v59  ;;  %v1876_v10 = vrot.slane %v7553_v42, 1  ;;  %v1877_v43 = vrot.slane %v7544_v28, 1 }
 0x149   : > { %1925 = vrot.lane.b32.xlu2 %v1874_v27, %s11976_s19  ;;  %v6549_v16 = vpop.eup %6548  ;;  %vm1207_vm10 = vweird.f32 %v7512_v46  ;;  %v828_v27 = vsub.f32 %v7158_v21, %v7231_v22  ;;  %v1225_v51 = vand.u32 2147483647, %v7548_v41  ;;  %v1227_v49 = vand.u32 2147483648, %v7548_v41 }
 0x14a   : > { %1747 = vrot.lane.b32.xlu1 %v7485_v55, %s6883_s18  ;;  %v1196_v12 = vsel %vm1195_vm9, %v6541_v32, %v1192_v53  ;;  %v1203_v58 = vmul.f32 %v6549_v16, %v7512_v46  ;;  %vm7580_vm11 = vcmp.eq.f32.partialorder %v1211_v8, 8.507059e+37  ;;  %v1214_v57 = vor.u32 1.1754944e-38, %v1213_v2 }
 0x14b   : > { %v1239_v5 = vand.u32 2147483647, %v7550_v59  ;;  %v1241_v38 = vand.u32 2147483648, %v7550_v59  ;;  %v1201_v21 = vsel %vm7531_vm7, %v1200_v34, %v1196_v12  ;;  %vm1221_vm12 = vweird.f32 %v7548_v41 }
 0x14c   : > { %v1204_v62 = vsub.f32 1.0, %v1203_v58  ;;  %v7590_v7 = vadd.f32 1.0, %v6547_v48  ;;  %v1878_v23 = vsel %vm1866_vm0, %v1876_v10, %v1877_v43  ;;  %vm1235_vm13 = vweird.f32 %v7550_v59 }
 0x14d   : > { %1923 = vrot.lane.b32.xlu0 %v1875_v36, %s11976_s19  ;;  %v6551_v60 = vpop.eup %6550  ;;  %v7597_v52 = vadd.f32 %v7260_v4, %v892_v14  ;;  %v7600_v32 = vadd.f32 %v7260_v4, %v894_v15  ;;  %v7603_v36 = vadd.f32 %v7260_v4, %v895_v18  ;;  %vm1208_vm14 = vweird.f32 %v6549_v16 }
 0x14e   : > { %v6553_v39 = vpop.eup %6552  ;;  %v1205_v50 = vmul.f32 %v6549_v16, %v1204_v62  ;;  %v1217_v9 = vmul.f32 %v6551_v60, %v7548_v41  ;;  %vm7606_vm15 = vcmp.eq.f32.partialorder %v1225_v51, 8.507059e+37  ;;  %v1228_v0 = vor.u32 1.1754944e-38, %v1227_v49  ;;  %vm1209_vm2 = vmor %vm1207_vm10, %vm1208_vm14 }
 0x14f   : > { %v7611_v11 = vmul.f32 %v1201_v21, %v7326_v6  ;;  %v1231_v25 = vmul.f32 %v6553_v39, %v7550_v59  ;;  %vm7614_vm1 = vcmp.eq.f32.partialorder %v1239_v5, 8.507059e+37  ;;  %v1242_v47 = vor.u32 1.1754944e-38, %v1241_v38 }
 0x150   : > { %6554 = vrcp.f32 %v7590_v7  ;;  %v1206_v17 = vadd.f32 %v6549_v16, %v1205_v50  ;;  %v1218_v35 = vsub.f32 1.0, %v1217_v9  ;;  %v896_v26 = vmul.f32 %v7240_v31, %v860_v54 }
 0x151   : > { %1751 = vrot.lane.b32.xlu2 %v7544_v28, %s6883_s18  ;;  %v861_v34 = vmul.f32 %v7235_v30, %v828_v27  ;;  %v1232_v6 = vsub.f32 1.0, %v1231_v25  ;;  %v960_v24 = vsub.f32 0.0, %v7597_v52  ;;  %v962_v40 = vsub.f32 0.0, %v7600_v32 }
 0x152   : > { %1927 = vrot.lane.b32.xlu1 %v1878_v23, %s11976_s19  ;;  %v963_v1 = vsub.f32 0.0, %v7603_v36  ;;  %v1210_v14 = vsel %vm1209_vm2, %v6549_v16, %v1206_v17  ;;  %v1219_v8 = vmul.f32 %v6551_v60, %v1218_v35  ;;  %vm1222_vm3 = vweird.f32 %v6551_v60 }
 0x153   : > { %vm1236_vm4 = vweird.f32 %v6553_v39  ;;  %v1215_v2 = vsel %vm7580_vm11, %v1214_v57, %v1210_v14  ;;  %v1233_v15 = vmul.f32 %v6553_v39, %v1232_v6  ;;  %v1004_v48 = vmul.f32 1.442695, %v960_v24  ;;  %vm1223_vm5 = vmor %vm1221_vm12, %vm1222_vm3 }
 0x154   : > { %v1008_v53 = vmul.f32 1.442695, %v962_v40  ;;  %v7635_v46 = vmul.f32 %v1215_v2, %v7329_v37  ;;  %v1879_v18 = vrot.slane %v7611_v11, 1  ;;  %v1220_v54 = vadd.f32 %v6551_v60, %v1219_v8  ;;  %vm1237_vm6 = vmor %vm1235_vm13, %vm1236_vm4  ;;  %v6767_v8 = vld [vmem:[%s7041_s17 + $0x90] sm:$0xff] }
 0x155   : > { %1749 = vrot.lane.b32.xlu0 %v7553_v42, %s6883_s18  ;;  %v7639_v16 = vadd.f32 %v7260_v4, %v896_v26  ;;  %v1234_v27 = vadd.f32 %v6553_v39, %v1233_v15  ;;  %6556 = vpow2.f32 %v1004_v48  ;;  %v1010_v12 = vmul.f32 1.442695, %v963_v1 }
 0x156   : > { %v6555_v10 = vpop.eup %6554  ;;  %v897_v58 = vmul.f32 %v7240_v31, %v861_v34  ;;  %v1880_v51 = vrot.slane %v7635_v46, 1  ;;  %v1224_v37 = vsel %vm1223_vm5, %v6551_v60, %v1220_v54  ;;  %v1267_v13 = vand.u32 2147483647, %v7590_v7  ;;  %v6766_v60 = vld [vmem:[%s7041_s17 + $0x98] sm:$0xff] }
 0x157   : > { %v1259_v49 = vmul.f32 %v6555_v10, %v7590_v7  ;;  %v1229_v41 = vsel %vm7606_vm15, %v1228_v0, %v1224_v37  ;;  %v1238_v57 = vsel %vm1237_vm6, %v6553_v39, %v1234_v27  ;;  %6558 = vpow2.f32 %v1008_v53 }
 0x158   : > { %v964_v5 = vsub.f32 0.0, %v7639_v16  ;;  %v1881_v38 = vsel %vm1866_vm0, %v1879_v18, %v1880_v51  ;;  %v1243_v21 = vsel %vm7614_vm1, %v1242_v47, %v1238_v57  ;;  %v830_v59 = vsub.f32 %v6766_v60, %v7231_v22 }
 0x159   : > { %v1260_v62 = vsub.f32 1.0, %v1259_v49  ;;  %1931 = vrot.lane.b32.xlu2 %v1881_v38, %s11976_s19  ;;  %v1269_v23 = vand.u32 2147483648, %v7590_v7  ;;  %6560 = vpow2.f32 %v1010_v12  ;;  %v7663_v50 = vadd.f32 %v7260_v4, %v897_v58 }
 0x15a   : > { %1753 = vrot.lane.b32.xlu1 %v7611_v11, %s6883_s18  ;;  %v1012_v39 = vmul.f32 1.442695, %v964_v5  ;;  %v7666_v9 = vmul.f32 %v1229_v41, %v7352_v56  ;;  %vm1264_vm7 = vweird.f32 %v6555_v10  ;;  %v863_v0 = vmul.f32 %v7235_v30, %v830_v59 }
 0x15b   : > { %v1261_v45 = vmul.f32 %v6555_v10, %v1260_v62  ;;  %v6557_v25 = vpop.eup %6556  ;;  %v7670_v19 = vmul.f32 %v1243_v21, %v7362_v63  ;;  %v965_v47 = vsub.f32 0.0, %v7663_v50  ;;  %vm1263_vm8 = vweird.f32 %v7590_v7 }
 0x15c   : > { %6562 = vpow2.f32 %v1012_v39  ;;  %v7677_v56 = vadd.f32 1.0, %v6557_v25  ;;  %vm1265_vm9 = vmor %vm1263_vm8, %vm1264_vm7  ;;  %vm1268_vm10 = vcmp.eq.f32.partialorder %v1267_v13, 8.507059e+37  ;;  %v1270_v26 = vor.u32 1.1754944e-38, %v1269_v23  ;;  %v7719_v13 = vld [vmem:[%s7041_s17 + $0xa8] sm:$0xff] }
 0x15d   : > { %1929 = vrot.lane.b32.xlu0 %v1877_v43, %s11976_s19  ;;  %v1262_v17 = vadd.f32 %v6555_v10, %v1261_v45  ;;  %v6559_v35 = vpop.eup %6558  ;;  %v1014_v34 = vmul.f32 1.442695, %v965_v47  ;;  %v1882_v63 = vrot.slane %v7666_v9, 1  ;;  %v899_v24 = vmul.f32 %v7240_v31, %v863_v0 }
 0x15e   : > { %6564 = vrcp.f32 %v7677_v56  ;;  %v1883_v43 = vrot.slane %v7670_v19, 1  ;;  %v7683_v7 = vadd.f32 1.0, %v6559_v35  ;;  %v829_v2 = vsub.f32 %v6767_v8, %v7231_v22 }
 0x15f   : > { %v1266_v6 = vsel %vm1265_vm9, %v6555_v10, %v1262_v17  ;;  %v6561_v40 = vpop.eup %6560  ;;  %6566 = vpow2.f32 %v1014_v34  ;;  %v1253_v53 = vand.u32 2147483647, %v7677_v56  ;;  %v1255_v18 = vand.u32 2147483648, %v7677_v56 }
 0x160   : > { %v1271_v1 = vsel %vm1268_vm10, %v1270_v26, %v1266_v6  ;;  %v7685_v14 = vadd.f32 1.0, %v6561_v40  ;;  %6568 = vrcp.f32 %v7683_v7  ;;  %v7700_v54 = vadd.f32 %v7260_v4, %v899_v24 }
 0x161   : > { %1757 = vrot.lane.b32.xlu2 %v7666_v9, %s6883_s18  ;;  %v7693_v48 = vmul.f32 %v1271_v1, %v7370_v3  ;;  %v1627_v10 = vrot.slane %v7419_v44, 7  ;;  %v1884_v27 = vsel %vm1866_vm0, %v1882_v63, %v1883_v43  ;;  %v862_v12 = vmul.f32 %v7235_v30, %v829_v2  ;;  %v7706_v3 = vld [vmem:[%s7041_s17 + $0xa0] sm:$0xff]  ;;  %v6144_v44 = vld [vmem:[%s11959_s5 + $0x70] sm:$0xff] }
 0x162   : > { %v6563_v15 = vpop.eup %6562  ;;  %1933 = vrot.lane.b32.xlu1 %v1880_v51, %s11976_s19  ;;  %6570 = vrcp.f32 %v7685_v14  ;;  %v831_v58 = vsub.f32 %v7706_v3, %v7231_v22  ;;  %vm1249_vm11 = vweird.f32 %v7677_v56  ;;  %v1281_v37 = vand.u32 2147483647, %v7683_v7 }
 0x163   : > { %v7716_v49 = vadd.f32 1.0, %v6563_v15  ;;  %v832_v41 = vsub.f32 %v7719_v13, %v7231_v22  ;;  %vm7725_vm12 = vcmp.eq.f32.partialorder %v1253_v53, 8.507059e+37  ;;  %v1256_v21 = vor.u32 1.1754944e-38, %v1255_v18 }
 0x164   : > { %v7710_v51 = vpop.eup %6564  ;;  %v1886_v62 = vrot.slane %v7693_v48, 1  ;;  %v1283_v60 = vand.u32 2147483648, %v7683_v7  ;;  %vm1277_vm13 = vweird.f32 %v7683_v7  ;;  %v1295_v59 = vand.u32 2147483647, %v7685_v14 }
 0x165   : > { %1755 = vrot.lane.b32.xlu0 %v7635_v46, %s6883_s18  ;;  %v6567_v57 = vpop.eup %6566  ;;  %v1245_v5 = vmul.f32 %v7710_v51, %v7677_v56  ;;  %v1297_v23 = vand.u32 2147483648, %v7685_v14  ;;  %6572 = vrcp.f32 %v7716_v49  ;;  %v967_v39 = vsub.f32 0.0, %v7700_v54 }
 0x166   : > { %v7736_v45 = vpop.eup %6568  ;;  %vm1291_vm14 = vweird.f32 %v7685_v14  ;;  %v7739_v25 = vadd.f32 1.0, %v6567_v57  ;;  %vm1704_vm15 = vcmask 261121   ;;  %v898_v47 = vmul.f32 %v7240_v31, %v862_v12 }
 0x167   : > { %v1246_v0 = vsub.f32 1.0, %v1245_v5  ;;  %vm1250_vm1 = vweird.f32 %v7710_v51  ;;  %v1273_v35 = vmul.f32 %v7736_v45, %v7683_v7  ;;  %vm7747_vm2 = vcmp.eq.f32.partialorder %v1281_v37, 8.507059e+37  ;;  %1707 = vst.msk [vmem:[#allocation2 + $0x40] sm:$0xfe] %vm1704_vm15, %v1627_v10 }
 0x168   : > { %v7742_v17 = vpop.eup %6570  ;;  %v1311_v34 = vand.u32 2147483648, %v7716_v49  ;;  %v1309_v6 = vand.u32 2147483647, %v7716_v49  ;;  %6574 = vrcp.f32 %v7739_v25  ;;  %v6885_v24 = vmov 0.0   ;;  %vm1251_vm5 = vmor %vm1249_vm11, %vm1250_vm1 }
 0x169   : > { %1937 = vrot.lane.b32.xlu2 %v1883_v43, %s11976_s19  ;;  %v1247_v31 = vmul.f32 %v7710_v51, %v1246_v0  ;;  %v1287_v63 = vmul.f32 %v7742_v17, %v7685_v14  ;;  %534 = vst [vmem:[#allocation2] sm:$0xff] %v6885_v24  ;;  %v1274_v40 = vsub.f32 1.0, %v1273_v35  ;;  %v1284_v1 = vor.u32 1.1754944e-38, %v1283_v60 }
 0x16a   : > { %1759 = vrot.lane.b32.xlu1 %v7670_v19, %s6883_s18  ;;  %vm7764_vm3 = vcmp.eq.f32.partialorder %v1295_v59, 8.507059e+37  ;;  %v1298_v43 = vor.u32 1.1754944e-38, %v1297_v23  ;;  %vm1305_vm4 = vweird.f32 %v7716_v49  ;;  %v1018_v53 = vmul.f32 1.442695, %v967_v39 }
 0x16b   : > { %v1248_v2 = vadd.f32 %v7710_v51, %v1247_v31  ;;  %v1288_v15 = vsub.f32 1.0, %v1287_v63  ;;  %v7771_v18 = vadd.f32 %v7260_v4, %v898_v47  ;;  %v7773_v12 = vpop.eup %6572  ;;  %v1275_v37 = vmul.f32 %v7736_v45, %v1274_v40  ;;  %v2092_v4 = vld [vmem:[%s11959_s5 + $0x58] sm:$0xff] }
 0x16c   : > { %vm1278_vm6 = vweird.f32 %v7736_v45  ;;  %v7782_v57 = vor.u32 1.1754944e-38, %v1311_v34  ;;  %vm1557_vm7 = vcmask 253952   ;;  %vm1292_vm8 = vweird.f32 %v7742_v17  ;;  %2194 = vmatpush.msra.mxu0 %v2092_v4  ;;  %6415 = vmatpush.msra.mxu2 %v2092_v4 }
 0x16d   : > { %1935 = vrot.lane.b32.xlu0 %v1884_v27, %s11976_s19  ;;  %v2091_v27 = vld [vmem:[%s11959_s5 + $0x50] sm:$0xff]  ;;  %v1252_v5 = vsel %vm1251_vm5, %v7710_v51, %v1248_v2  ;;  %v1289_v56 = vmul.f32 %v7742_v17, %v1288_v15  ;;  %v1301_v60 = vmul.f32 %v7773_v12, %v7716_v49  ;;  %vm7795_vm9 = vcmp.eq.f32.partialorder %v1309_v6, 8.507059e+37  ;;  %1559 = vst.msk [vmem:[#allocation2 + $0x40] sm:$0x1] %vm1557_vm7, %v6885_v24  ;;  %vm7817_vm11 = vmor %vm1277_vm13, %vm1278_vm6  ;;  %v2088_v49 = vld [vmem:[%s11959_s5 + $0x38] sm:$0xff] }
 0x16e   : > { %v1257_v23 = vsel %vm7725_vm12, %v1256_v21, %v1252_v5  ;;  %v1276_v51 = vadd.f32 %v7736_v45, %v1275_v37  ;;  %vm1319_vm10 = vweird.f32 %v7739_v25  ;;  %v1325_v39 = vand.u32 2147483648, %v7739_v25  ;;  %1558 = vst.msk [vmem:[#allocation2 + $0x20] sm:$0x1] %vm1557_vm7, %v6885_v24  ;;  %v7808_v0 = vpop.eup %6574  ;;  %2195 = vmatpush.msra.mxu0 %v2091_v27  ;;  %vm1293_vm12 = vmor %vm1291_vm14, %vm1292_vm8  ;;  %6416 = vmatpush.msra.mxu2 %v2091_v27  ;;  %v7906_v27 = vld [vmem:[%s11996_s2] ss:$0 sm:$0xff] }
 0x16f   : > { %6576 = vpow2.f32 %v1018_v53  ;;  %v7811_v47 = vmul.f32 %v1257_v23, %v7597_v52  ;;  %v1290_v21 = vadd.f32 %v7742_v17, %v1289_v56  ;;  %v1302_v35 = vsub.f32 1.0, %v1301_v60  ;;  %1560 = vst.msk [vmem:[#allocation2 + $0x60] sm:$0x1] %vm1557_vm7, %v6885_v24  ;;  %v2090_v52 = vld [vmem:[%s11959_s5 + $0x48] sm:$0xff]  ;;  %v2087_v23 = vld [vmem:[%s11959_s5 + $0x30] sm:$0xff] }
 0x170   : > { %v966_v34 = vsub.f32 0.0, %v7771_v18  ;;  %v1280_v7 = vsel %vm7817_vm11, %v7736_v45, %v1276_v51  ;;  %vm1306_vm13 = vweird.f32 %v7773_v12  ;;  %v1315_v31 = vmul.f32 %v7808_v0, %v7739_v25  ;;  %1561 = vst.msk [vmem:[#allocation2 + $0x80] sm:$0x1] %vm1557_vm7, %v6885_v24  ;;  %2196 = vmatpush.msra.mxu0 %v2090_v52  ;;  %6417 = vmatpush.msra.mxu2 %v2090_v52 }
 0x171   : > { %v864_v63 = vmul.f32 %v7235_v30, %v831_v58  ;;  %1763 = vrot.lane.b32.xlu2 %v7693_v48, %s6883_s18  ;;  %v1885_v14 = vrot.slane %v7811_v47, 1  ;;  %v1285_v45 = vsel %vm7747_vm2, %v1284_v1, %v1280_v7  ;;  %v1294_v6 = vsel %vm1293_vm12, %v7742_v17, %v1290_v21  ;;  %1562 = vst.msk [vmem:[#allocation2 + $0xa0] sm:$0x1] %vm1557_vm7, %v6885_v24  ;;  %vm7881_vm14 = vmor %vm1305_vm4, %vm1306_vm13  ;;  %v7950_v7 = vld [vmem:[%s11957_s3] ss:$0 sm:$0xff] }
 0x172   : > { %v1303_v40 = vmul.f32 %v7773_v12, %v1302_v35  ;;  %v1299_v3 = vsel %vm7764_vm3, %v1298_v43, %v1294_v6  ;;  %v7856_v58 = vmul.f32 %v1285_v45, %v7600_v32  ;;  %v1316_v2 = vsub.f32 1.0, %v1315_v31  ;;  %1563 = vst.msk [vmem:[#allocation2 + $0xc0] sm:$0x1] %vm1557_vm7, %v6885_v24 }
 0x173   : > { %v1016_v26 = vmul.f32 1.442695, %v966_v34  ;;  %v1887_v17 = vsel %vm1866_vm0, %v1885_v14, %v1886_v62  ;;  %v7864_v1 = vmul.f32 %v1299_v3, %v7603_v36  ;;  %1564 = vst.msk [vmem:[#allocation2 + $0xe0] sm:$0x1] %vm1557_vm7, %v6885_v24  ;;  %v865_v32 = vmul.f32 %v7235_v30, %v832_v41  ;;  %v2089_v41 = vld [vmem:[%s11959_s5 + $0x40] sm:$0xff]  ;;  %v2086_v34 = vld [vmem:[%s11959_s5 + $0x28] sm:$0xff] }
 0x174   : > { %v1304_v8 = vadd.f32 %v7773_v12, %v1303_v40  ;;  %1939 = vrot.lane.b32.xlu1 %v1887_v17, %s11976_s19  ;;  %v1888_v15 = vrot.slane %v7856_v58, 1  ;;  %v1317_v13 = vmul.f32 %v7808_v0, %v1316_v2  ;;  %vm1320_vm1 = vweird.f32 %v7808_v0  ;;  %1565 = vst.msk [vmem:[#allocation2 + $0x100] sm:$0x1] %vm1557_vm7, %v6885_v24  ;;  %2197 = vmatpush.msra.mxu0 %v2089_v41  ;;  %v6772_v14 = vld [vmem:[%s7041_s17 + $0xb0] sm:$0xff] }
 0x175   : > { %v6577_v43 = vpop.eup %6576  ;;  %1761 = vrot.lane.b32.xlu0 %v7811_v47, %s6883_s18  ;;  %6578 = vpow2.f32 %v1016_v26  ;;  %v1889_v53 = vrot.slane %v7864_v1, 1  ;;  %1566 = vst.msk [vmem:[#allocation2 + $0x120] sm:$0x1] %vm1557_vm7, %v6885_v24  ;;  %v900_v5 = vmul.f32 %v7906_v27, %v864_v63  ;;  %6418 = vmatpush.msra.mxu2 %v2089_v41  ;;  %v1323_v60 = vand.u32 2147483647, %v7739_v25  ;;  %vm7926_vm2 = vmor %vm1319_vm10, %vm1320_vm1  ;;  %v6773_v41 = vld [vmem:[%s7041_s17 + $0xb8] sm:$0xff] }
 0x176   : > { %v1308_v37 = vsel %vm7881_vm14, %v7773_v12, %v1304_v8  ;;  %v7901_v4 = vadd.f32 1.0, %v6577_v43  ;;  %v1318_v12 = vadd.f32 %v7808_v0, %v1317_v13  ;;  %1567 = vst.msk [vmem:[#allocation2 + $0x140] sm:$0x1] %vm1557_vm7, %v6885_v24  ;;  %v901_v51 = vmul.f32 %v7906_v27, %v865_v32  ;;  %2198 = vmatpush.msra.mxu0 %v2088_v49 }
 0x177   : > { %v1313_v56 = vsel %vm7795_vm9, %v7782_v57, %v1308_v37  ;;  %v1624_v38 = vrot.slane %v7449_v33, 7  ;;  %v1630_v21 = vrot.slane %v7474_v29, 7  ;;  %1568 = vst.msk [vmem:[#allocation2 + $0x160] sm:$0x1] %vm1557_vm7, %v6885_v24  ;;  %6419 = vmatpush.msra.mxu2 %v2088_v49  ;;  %v1890_v59 = vsel %vm1866_vm0, %v1888_v15, %v1889_v53  ;;  %v6778_v33 = vld [vmem:[%s7041_s17 + $0xe0] sm:$0xff] }
 0x178   : > { %6580 = vrcp.f32 %v7901_v4  ;;  %v7937_v35 = vmul.f32 %v1313_v56, %v7639_v16  ;;  %v1322_v52 = vsel %vm7926_vm2, %v7808_v0, %v1318_v12  ;;  %1569 = vst.msk [vmem:[#allocation2 + $0x180] sm:$0x1] %vm1557_vm7, %v6885_v24  ;;  %v7953_v31 = vadd.f32 %v7950_v7, %v900_v5  ;;  %2199 = vmatpush.msra.mxu0 %v2087_v23  ;;  %v6774_v56 = vld [vmem:[%s7041_s17 + $0xc8] sm:$0xff] }
 0x179   : > { %v1639_v16 = vrot.slane %v7666_v9, 7  ;;  %1943 = vrot.lane.b32.xlu2 %v1890_v59, %s11976_s19  ;;  %v1326_v0 = vor.u32 1.1754944e-38, %v1325_v39  ;;  %1570 = vst.msk [vmem:[#allocation2 + $0x1a0] sm:$0x1] %vm1557_vm7, %v6885_v24  ;;  %v7962_v63 = vadd.f32 %v7950_v7, %v901_v51  ;;  %v833_v45 = vsub.f32 %v6772_v14, %v7231_v22  ;;  %6420 = vmatpush.msra.mxu2 %v2087_v23  ;;  %v2085_v59 = vld [vmem:[%s11959_s5 + $0x20] sm:$0xff] }
 0x17a   : > { %vm1324_vm3 = vcmp.eq.f32.partialorder %v1323_v60, 8.507059e+37  ;;  %1571 = vst.msk [vmem:[#allocation2 + $0x1c0] sm:$0x1] %vm1557_vm7, %v6885_v24  ;;  %v1351_v40 = vand.u32 2147483647, %v7901_v4  ;;  %v968_v25 = vsub.f32 0.0, %v7953_v31  ;;  %2200 = vmatpush.msra.mxu0 %v2086_v34  ;;  %vm1347_vm4 = vweird.f32 %v7901_v4 }
 0x17b   : > { %v6579_v6 = vpop.eup %6578  ;;  %v1327_v39 = vsel %vm1324_vm3, %v1326_v0, %v1322_v52  ;;  %1572 = vst.msk [vmem:[#allocation2 + $0x1e0] sm:$0x1] %vm1557_vm7, %v6885_v24  ;;  %v969_v2 = vsub.f32 0.0, %v7962_v63  ;;  %v866_v26 = vmul.f32 %v7235_v30, %v833_v45  ;;  %v1648_v17 = vrot.slane %v7937_v35, 7  ;;  %6421 = vmatpush.msra.mxu2 %v2086_v34  ;;  %v6775_v0 = vld [vmem:[%s7041_s17 + $0xc0] sm:$0xff] }
 0x17c   : > { %v7972_v3 = vadd.f32 1.0, %v6579_v6  ;;  %1765 = vrot.lane.b32.xlu1 %v7856_v58, %s6883_s18  ;;  %1573 = vst.msk [vmem:[#allocation2 + $0x200] sm:$0x1] %vm1557_vm7, %v6885_v24  ;;  %v1353_v8 = vand.u32 2147483648, %v7901_v4  ;;  %v1020_v32 = vmul.f32 1.442695, %v968_v25  ;;  %v834_v49 = vsub.f32 %v6773_v41, %v7231_v22  ;;  %2201 = vmatpush.msra.mxu0 %v2085_v59 }
 0x17d   : > { %1941 = vrot.lane.b32.xlu0 %v1886_v62, %s11976_s19  ;;  %v1625_v15 = vrot.slane %v7424_v61, 7  ;;  %v1634_v36 = vrot.slane %v7544_v28, 7  ;;  %1705 = vst.msk [vmem:[#allocation2 + $0x20] sm:$0xfe] %vm1704_vm15, %v1624_v38  ;;  %v7995_v62 = vmul.f32 %v1327_v39, %v7663_v50  ;;  %v1891_v37 = vrot.slane %v7937_v35, 1  ;;  %6422 = vmatpush.msra.mxu2 %v2085_v59  ;;  %v2081_v23 = vld [vmem:[%s11959_s5] sm:$0xff] }
 0x17e   : > { %v7985_v43 = vpop.eup %6580  ;;  %6582 = vrcp.f32 %v7972_v3  ;;  %1709 = vst.msk [vmem:[#allocation2 + $0x60] sm:$0xfe] %vm1704_vm15, %v1630_v21  ;;  %v1022_v50 = vmul.f32 1.442695, %v969_v2  ;;  %v902_v5 = vmul.f32 %v7906_v27, %v866_v26  ;;  %v836_v12 = vsub.f32 %v6774_v56, %v7231_v22 }
 0x17f   : > { %v1343_v13 = vmul.f32 %v7985_v43, %v7901_v4  ;;  %6584 = vpow2.f32 %v1020_v32  ;;  %1715 = vst.msk [vmem:[#allocation2 + $0xc0] sm:$0xfe] %vm1704_vm15, %v1639_v16  ;;  %vm1833_vm5 = vcmask 523520   ;;  %vm8014_vm6 = vcmp.eq.f32.partialorder %v1351_v40, 8.507059e+37  ;;  %v2084_v40 = vld [vmem:[%s11959_s5 + $0x18] sm:$0xff] }
 0x180   : > { %1721 = vst.msk [vmem:[#allocation2 + $0x120] sm:$0xfe] %vm1704_vm15, %v1648_v17  ;;  %v1354_v51 = vor.u32 1.1754944e-38, %v1353_v8  ;;  %v867_v57 = vmul.f32 %v7235_v30, %v834_v49  ;;  %6586 = vpow2.f32 %v1022_v50  ;;  %v8025_v52 = vadd.f32 %v7950_v7, %v902_v5  ;;  %v2083_v50 = vld [vmem:[%s11959_s5 + $0x10] sm:$0xff]  ;;  %2202 = vmatpush.msra.mxu0 %v2084_v40  ;;  %6423 = vmatpush.msra.mxu2 %v2084_v40 }
 0x181   : > { %v1344_v60 = vsub.f32 1.0, %v1343_v13  ;;  %1769 = vrot.lane.b32.xlu2 %v7937_v35, %s6883_s18  ;;  %v869_v34 = vmul.f32 %v7235_v30, %v836_v12  ;;  %v835_v14 = vsub.f32 %v6775_v0, %v7231_v22  ;;  %v1892_v45 = vrot.slane %v7995_v62, 1 }
 0x182   : > { %vm1348_vm7 = vweird.f32 %v7985_v43  ;;  %v903_v25 = vmul.f32 %v7906_v27, %v867_v57  ;;  %vm1333_vm8 = vweird.f32 %v7972_v3  ;;  %v1337_v2 = vand.u32 2147483647, %v7972_v3  ;;  %v6776_v57 = vld [vmem:[%s7041_s17 + $0xd0] sm:$0xff]  ;;  %2203 = vmatpush.msra.mxu0 %v2083_v50  ;;  %6424 = vmatpush.msra.mxu2 %v2083_v50 }
 0x183   : > { %v1345_v6 = vmul.f32 %v7985_v43, %v1344_v60  ;;  %v970_v26 = vsub.f32 0.0, %v8025_v52  ;;  %v868_v8 = vmul.f32 %v7235_v30, %v835_v14  ;;  %v1339_v49 = vand.u32 2147483648, %v7972_v3  ;;  %vm8062_vm9 = vmor %vm1347_vm4, %vm1348_vm7 }
 0x184   : > { %v8037_v39 = vpop.eup %6582  ;;  %1945 = vrot.lane.b32.xlu1 %v1889_v53, %s11976_s19  ;;  %v8056_v5 = vadd.f32 %v7950_v7, %v903_v25  ;;  %v905_v60 = vmul.f32 %v7906_v27, %v869_v34  ;;  %v837_v59 = vsub.f32 %v6776_v57, %v7231_v22  ;;  %v1893_v0 = vsel %vm1866_vm0, %v1891_v37, %v1892_v45  ;;  %v6777_v25 = vld [vmem:[%s7041_s17 + $0xd8] sm:$0xff] }
 0x185   : > { %v6585_v32 = vpop.eup %6584  ;;  %1767 = vrot.lane.b32.xlu0 %v7864_v1, %s6883_s18  ;;  %v1346_v13 = vadd.f32 %v7985_v43, %v1345_v6  ;;  %v1329_v41 = vmul.f32 %v8037_v39, %v7972_v3  ;;  %v1024_v12 = vmul.f32 1.442695, %v970_v26  ;;  %v2082_v6 = vld [vmem:[%s11959_s5 + $0x8] sm:$0xff]  ;;  %v838_v26 = vsub.f32 %v6777_v25, %v7231_v22 }
 0x186   : > { %v8066_v56 = vadd.f32 1.0, %v6585_v32  ;;  %v6587_v32 = vpop.eup %6586  ;;  %v904_v37 = vmul.f32 %v7906_v27, %v868_v8  ;;  %v870_v40 = vmul.f32 %v7235_v30, %v837_v59  ;;  %vm1334_vm10 = vweird.f32 %v8037_v39  ;;  %2204 = vmatpush.msra.mxu0 %v2082_v6  ;;  %6425 = vmatpush.msra.mxu2 %v2082_v6 }
 0x187   : > { %v1350_v4 = vsel %vm8062_vm9, %v7985_v43, %v1346_v13  ;;  %v1330_v14 = vsub.f32 1.0, %v1329_v41  ;;  %vm2011_vm11 = vcmask 785920   ;;  %v8087_v13 = vadd.f32 1.0, %v6587_v32  ;;  %vm8119_vm1 = vmor %vm1333_vm8, %vm1334_vm10 }
 0x188   : > { %v1355_v34 = vsel %vm8014_vm6, %v1354_v51, %v1350_v4  ;;  %6588 = vrcp.f32 %v8066_v56  ;;  %v971_v41 = vsub.f32 0.0, %v8056_v5  ;;  %vm1574_vm12 = vcmask 778752   ;;  %v6153_v51 = vld [vmem:[%s11959_s5 + $0xb8] sm:$0xff]  ;;  %2205 = vmatpush.msra.mxu0 %v2081_v23  ;;  %6426 = vmatpush.msra.mxu2 %v2081_v23  ;;  %v6151_v23 = vld [vmem:[%s11959_s5 + $0xa8] sm:$0xff] }
 0x189   : > { %v1331_v43 = vmul.f32 %v8037_v39, %v1330_v14  ;;  %1949 = vrot.lane.b32.xlu2 %v1892_v45, %s11976_s19  ;;  %6590 = vpow2.f32 %v1024_v12  ;;  %vm1623_vm13 = vcmask 1040384   ;;  %v8098_v8 = vadd.f32 %v7950_v7, %v905_v60  ;;  %1575 = vst.msk [vmem:[#allocation2 + $0x37] sm:$0x1] %vm1574_vm12, %v6885_v24  ;;  %6427 = vmatpush.msra.mxu1 %v6153_v51  ;;  %v6152_v60 = vld [vmem:[%s11959_s5 + $0xb0] sm:$0xff] }
 0x18a   : > { %v8101_v53 = vmul.f32 %v1355_v34, %v7700_v54  ;;  %vm8104_vm14 = vcmp.eq.f32.partialorder %v1337_v2, 8.507059e+37  ;;  %v1365_v57 = vand.u32 2147483647, %v8066_v56  ;;  %6428 = vmatpush.msra.mxu3 %v6153_v51  ;;  %v1340_v2 = vor.u32 1.1754944e-38, %v1339_v49  ;;  %1576 = vst.msk [vmem:[#allocation2 + $0x57] sm:$0x1] %vm1574_vm12, %v6885_v24  ;;  %2480 = vmatpush.msrb.mxu0 %v6153_v51 }
 0x18b   : > { %v1742_v50 = vpop.permute.xlu2 %1741  ;;  %v1332_v45 = vadd.f32 %v8037_v39, %v1331_v43  ;;  %6592 = vrcp.f32 %v8087_v13  ;;  %v8125_v59 = vadd.f32 %v7950_v7, %v904_v37  ;;  %v871_v4 = vmul.f32 %v7235_v30, %v838_v26  ;;  %6429 = vmatpush.msra.mxu1 %v6152_v60  ;;  %1577 = vst.msk [vmem:[#allocation2 + $0x77] sm:$0x1] %vm1574_vm12, %v6885_v24 }
 0x18c   : > { %1836 = vst.msk [vmem:[#allocation2 + $0x40] sm:$0xff] %vm1833_vm5, %v1742_v50  ;;  %1771 = vrot.lane.b32.xlu1 %v7995_v62, %s6883_s18  ;;  %v1626_v49 = vsel %vm1623_vm13, %v1624_v38, %v1625_v15  ;;  %vm2093_vm2 = vcmask 785408   ;;  %v1026_v14 = vmul.f32 1.442695, %v971_v41  ;;  %v1367_v25 = vand.u32 2147483648, %v8066_v56  ;;  %6430 = vmatpush.msra.mxu3 %v6152_v60 }
 0x18d   : > { %1947 = vrot.lane.b32.xlu0 %v1893_v0, %s11976_s19  ;;  %v1336_v3 = vsel %vm8119_vm1, %v8037_v39, %v1332_v45  ;;  %vm12040_vm3 = vcmask 261120   ;;  %6110 = vmatmul.msk.f32.vlgmr.msra.gmra.mxu0 %vm2093_vm2, %v6885_v24  ;;  %v973_v61 = vsub.f32 0.0, %v8098_v8  ;;  %v839_v38 = vsub.f32 %v6778_v33, %v7231_v22  ;;  %1578 = vst.msk [vmem:[#allocation2 + $0x97] sm:$0x1] %vm1574_vm12, %v6885_v24 }
 0x18e   : > { %v8141_v6 = vpop.eup %6588  ;;  %v1341_v0 = vsel %vm8104_vm14, %v1340_v2, %v1336_v3  ;;  %1706 = vst.msk [vmem:[#allocation2 + $0x30] sm:$0xff] %vm12040_vm3, %v1626_v49  ;;  %v1895_v39 = vrot.slane %v8101_v53, 1  ;;  %vm8158_vm4 = vcmp.eq.f32.partialorder %v1365_v57, 8.507059e+37  ;;  %6594 = vpow2.f32 %v1026_v14  ;;  %2481 = vmatpush.msrb.mxu0 %v6152_v60  ;;  %6431 = vmatpush.msra.mxu1 %v6151_v23  ;;  %v6150_v3 = vld [vmem:[%s11959_s5 + $0xa0] sm:$0xff] }
 0x18f   : > { %v8153_v15 = vmul.f32 %v1341_v0, %v7771_v18  ;;  %v1357_v26 = vmul.f32 %v8141_v6, %v8066_v56  ;;  %v6591_v34 = vpop.eup %6590  ;;  %vm1361_vm6 = vweird.f32 %v8066_v56  ;;  %v1379_v18 = vand.u32 2147483647, %v8087_v13  ;;  %1579 = vst.msk [vmem:[#allocation2 + $0xb7] sm:$0x1] %vm1574_vm12, %v6885_v24  ;;  %6432 = vmatpush.msra.mxu3 %v6151_v23 }
 0x190   : > { %v1030_v37 = vmul.f32 1.442695, %v973_v61  ;;  %v906_v43 = vmul.f32 %v7906_v27, %v870_v40  ;;  %v8170_v45 = vadd.f32 1.0, %v6591_v34  ;;  %v972_v51 = vsub.f32 0.0, %v8125_v59  ;;  %1580 = vst.msk [vmem:[#allocation2 + $0xd7] sm:$0x1] %vm1574_vm12, %v6885_v24  ;;  %2482 = vmatpush.msrb.mxu0 %v6151_v23  ;;  %6433 = vmatpush.msra.mxu1 %v6150_v3 }
 0x191   : > { %v1894_v41 = vrot.slane %v8153_v15, 1  ;;  %v1358_v50 = vsub.f32 1.0, %v1357_v26  ;;  %v8175_v12 = vpop.eup %6592  ;;  %1775 = vrot.lane.b32.xlu2 %v8101_v53, %s6883_s18  ;;  %v1368_v57 = vor.u32 1.1754944e-38, %v1367_v25  ;;  %vm1375_vm7 = vweird.f32 %v8087_v13  ;;  %1581 = vst.msk [vmem:[#allocation2 + $0xf7] sm:$0x1] %vm1574_vm12, %v6885_v24  ;;  %v6149_v26 = vld [vmem:[%s11959_s5 + $0x98] sm:$0xff]  ;;  %6434 = vmatpush.msra.mxu3 %v6150_v3 }
 0x192   : > { %v1381_v40 = vand.u32 2147483648, %v8087_v13  ;;  %6596 = vpow2.f32 %v1030_v37  ;;  %vm1362_vm8 = vweird.f32 %v8141_v6  ;;  %v1371_v2 = vmul.f32 %v8175_v12, %v8087_v13  ;;  %1582 = vst.msk [vmem:[#allocation2 + $0x117] sm:$0x1] %vm1574_vm12, %v6885_v24  ;;  %v6148_v23 = vld [vmem:[%s11959_s5 + $0x90] sm:$0xff]  ;;  %2483 = vmatpush.msrb.mxu0 %v6150_v3  ;;  %6435 = vmatpush.msra.mxu1 %v6149_v26  ;;  %v6147_v3 = vld [vmem:[%s11959_s5 + $0x88] sm:$0xff] }
 0x193   : > { %v1920_v60 = vpop.permute.xlu2 %1919  ;;  %v1359_v54 = vmul.f32 %v8141_v6, %v1358_v50  ;;  %v907_v49 = vmul.f32 %v7906_v27, %v871_v4  ;;  %v1896_v14 = vsel %vm1866_vm0, %v1894_v41, %v1895_v39  ;;  %vm8200_vm9 = vcmp.eq.f32.partialorder %v1379_v18, 8.507059e+37  ;;  %vm8222_vm10 = vmor %vm1361_vm6, %vm1362_vm8  ;;  %1583 = vst.msk [vmem:[#allocation2 + $0x137] sm:$0x1] %vm1574_vm12, %v6885_v24  ;;  %6436 = vmatpush.msra.mxu3 %v6149_v26 }
 0x194   : > { %2015 = vst.msk [vmem:[#allocation2 + $0x40] sm:$0xff] %vm2011_vm11, %v1920_v60  ;;  %6598 = vrcp.f32 %v8170_v45  ;;  %v8206_v25 = vadd.f32 %v7950_v7, %v906_v43  ;;  %v6595_v61 = vpop.eup %6594  ;;  %1951 = vrot.lane.b32.xlu1 %v1896_v14, %s11976_s19  ;;  %v1372_v33 = vsub.f32 1.0, %v1371_v2  ;;  %v1028_v34 = vmul.f32 1.442695, %v972_v51  ;;  %2484 = vmatpush.msrb.mxu0 %v6149_v26 }
 0x195   : > { %1773 = vrot.lane.b32.xlu0 %v8153_v15, %s6883_s18  ;;  %v1360_v4 = vadd.f32 %v8141_v6, %v1359_v54  ;;  %v872_v18 = vmul.f32 %v7235_v30, %v839_v38  ;;  %vm1376_vm14 = vweird.f32 %v8175_v12  ;;  %v1393_v43 = vand.u32 2147483647, %v8170_v45  ;;  %6111 = vmatmul.msk.f32.gmra.mxu0 %vm2093_vm2, %v6885_v24  ;;  %1584 = vst.msk [vmem:[#allocation2 + $0x157] sm:$0x1] %vm1574_vm12, %v6885_v24 }
 0x196   : > { %v8230_v41 = vadd.f32 1.0, %v6595_v61  ;;  %v1633_v50 = vrot.slane %v7553_v42, 7  ;;  %v1373_v38 = vmul.f32 %v8175_v12, %v1372_v33  ;;  %v1395_v51 = vand.u32 2147483648, %v8170_v45  ;;  %1585 = vst.msk [vmem:[#allocation2 + $0x177] sm:$0x1] %vm1574_vm12, %v6885_v24  ;;  %vm8268_vm3 = vmor %vm1375_vm7, %vm1376_vm14  ;;  %6437 = vmatpush.msra.mxu1 %v6148_v23  ;;  %2485 = vmatpush.msrb.mxu0 %v6148_v23 }
 0x197   : > { %v1364_v56 = vsel %vm8222_vm10, %v8141_v6, %v1360_v4  ;;  %6600 = vpow2.f32 %v1028_v34  ;;  %v1382_v2 = vor.u32 1.1754944e-38, %v1381_v40  ;;  %v8251_v6 = vadd.f32 %v7950_v7, %v907_v49  ;;  %1586 = vst.msk [vmem:[#allocation2 + $0x197] sm:$0x1] %vm1574_vm12, %v6885_v24  ;;  %6438 = vmatpush.msra.mxu3 %v6148_v23 }
 0x198   : > { %v6597_v60 = vpop.eup %6596  ;;  %v1369_v54 = vsel %vm8158_vm4, %v1368_v57, %v1364_v56  ;;  %6602 = vrcp.f32 %v8230_v41  ;;  %v1374_v14 = vadd.f32 %v8175_v12, %v1373_v38  ;;  %vm1389_vm1 = vweird.f32 %v8170_v45  ;;  %1587 = vst.msk [vmem:[#allocation2 + $0x1b7] sm:$0x1] %vm1574_vm12, %v6885_v24  ;;  %6439 = vmatpush.msra.mxu1 %v6147_v3  ;;  %2486 = vmatpush.msrb.mxu0 %v6147_v3 }
 0x199   : > { %v8255_v61 = vmul.f32 %v1369_v54, %v7953_v31  ;;  %v8260_v32 = vadd.f32 1.0, %v6597_v60  ;;  %v1635_v31 = vsel %vm1623_vm13, %v1633_v50, %v1634_v36  ;;  %v1628_v13 = vrot.slane %v7454_v20, 7  ;;  %1588 = vst.msk [vmem:[#allocation2 + $0x1d7] sm:$0x1] %vm1574_vm12, %v6885_v24  ;;  %v6146_v20 = vld [vmem:[%s11959_s5 + $0x80] sm:$0xff]  ;;  %6440 = vmatpush.msra.mxu3 %v6147_v3 }
 0x19a   : > { %v8262_v57 = vpop.eup %6598  ;;  %v974_v49 = vsub.f32 0.0, %v8206_v25  ;;  %v908_v4 = vmul.f32 %v7906_v27, %v872_v18  ;;  %v1378_v33 = vsel %vm8268_vm3, %v8175_v12, %v1374_v14  ;;  %vm8290_vm4 = vcmp.eq.f32.partialorder %v1393_v43, 8.507059e+37  ;;  %1589 = vst.msk [vmem:[#allocation2 + $0x1f7] sm:$0x1] %vm1574_vm12, %v6885_v24  ;;  %6441 = vmatpush.msra.mxu1 %v6146_v20  ;;  %2487 = vmatpush.msrb.mxu0 %v6146_v20 }
 0x19b   : > { %v1746_v28 = vpop.permute.xlu2 %1745  ;;  %v1385_v26 = vmul.f32 %v8262_v57, %v8170_v45  ;;  %v8294_v34 = vor.u32 1.1754944e-38, %v1395_v51  ;;  %v1383_v12 = vsel %vm8200_vm9, %v1382_v2, %v1378_v33  ;;  %v1407_v18 = vand.u32 2147483647, %v8230_v41  ;;  %1590 = vst.msk [vmem:[#allocation2 + $0x217] sm:$0x1] %vm1574_vm12, %v6885_v24  ;;  %6442 = vmatpush.msra.mxu3 %v6146_v20 }
 0x19c   : > { %1838 = vst.msk [vmem:[#allocation2 + $0x60] sm:$0xff] %vm1833_vm5, %v1746_v28  ;;  %6604 = vrcp.f32 %v8260_v32  ;;  %v975_v37 = vsub.f32 0.0, %v8251_v6  ;;  %v8308_v56 = vmul.f32 %v1383_v12, %v7962_v63  ;;  %v1897_v38 = vrot.slane %v8255_v61, 1  ;;  %1777 = vrot.lane.b32.xlu1 %v8255_v61, %s6883_s18  ;;  %v6145_v63 = vld [vmem:[%s11959_s5 + $0x78] sm:$0xff] }
 0x19d   : > { %v6601_v43 = vpop.eup %6600  ;;  %1953 = vrot.lane.b32.xlu0 %v1895_v39, %s11976_s19  ;;  %v1386_v0 = vsub.f32 1.0, %v1385_v26  ;;  %vm1403_vm6 = vweird.f32 %v8230_v41  ;;  %v1629_v39 = vsel %vm1623_vm13, %v1627_v10, %v1628_v13  ;;  %v1032_v60 = vmul.f32 1.442695, %v974_v49  ;;  %1711 = vst.msk [vmem:[#allocation2 + $0x80] sm:$0xfe] %vm1704_vm15, %v1633_v50  ;;  %6443 = vmatpush.msra.mxu1 %v6145_v63  ;;  %v6779_v13 = vld [vmem:[%s7041_s17 + $0xe8] sm:$0xff] }
 0x19e   : > { %v8322_v51 = vpop.eup %6602  ;;  %v8326_v23 = vadd.f32 1.0, %v6601_v43  ;;  %v8332_v54 = vadd.f32 %v7950_v7, %v908_v4  ;;  %v1898_v2 = vrot.slane %v8308_v56, 1  ;;  %vm1390_vm7 = vweird.f32 %v8262_v57  ;;  %2488 = vmatpush.msrb.mxu0 %v6145_v63  ;;  %6444 = vmatpush.msra.mxu3 %v6145_v63 }
 0x19f   : > { %v1387_v14 = vmul.f32 %v8262_v57, %v1386_v0  ;;  %v1399_v24 = vmul.f32 %v8322_v51, %v8230_v41  ;;  %vm12051_vm12 = vcmask 261120   ;;  %vm8343_vm8 = vcmp.eq.f32.partialorder %v1407_v18, 8.507059e+37  ;;  %vm8365_vm10 = vmor %vm1389_vm1, %vm1390_vm7  ;;  %6445 = vmatpush.msra.mxu1 %v6144_v44 }
 0x1a0   : > { %1712 = vst.msk [vmem:[#allocation2 + $0x90] sm:$0xff] %vm12051_vm12, %v1635_v31  ;;  %v1409_v40 = vand.u32 2147483648, %v8230_v41  ;;  %6606 = vrcp.f32 %v8326_v23  ;;  %v840_v31 = vsub.f32 %v6779_v13, %v7231_v22  ;;  %v1899_v49 = vsel %vm1866_vm0, %v1897_v38, %v1898_v2  ;;  %vm12054_vm9 = vmmov %vm12051_vm12  ;;  %v6143_v38 = vld [vmem:[%s11959_s5 + $0x68] sm:$0xff]  ;;  %6446 = vmatpush.msra.mxu3 %v6144_v44  ;;  %2489 = vmatpush.msrb.mxu0 %v6144_v44 }
 0x1a1   : > { %v1388_v3 = vadd.f32 %v8262_v57, %v1387_v14  ;;  %v1400_v4 = vsub.f32 1.0, %v1399_v24  ;;  %v1435_v33 = vand.u32 2147483647, %v8260_v32  ;;  %1708 = vst.msk [vmem:[#allocation2 + $0x50] sm:$0xff] %vm12054_vm9, %v1629_v39  ;;  %1955 = vrot.lane.b32.xlu2 %v1899_v49, %s11976_s19  ;;  %vm2013_vm14 = vcmask 784896   ;;  %6447 = vmatpush.msra.mxu1 %v6143_v38 }
 0x1a2   : > { %v8358_v42 = vpop.eup %6604  ;;  %v1437_v28 = vand.u32 2147483648, %v8260_v32  ;;  %6608 = vpow2.f32 %v1032_v60  ;;  %v1034_v26 = vmul.f32 1.442695, %v975_v37  ;;  %v976_v20 = vsub.f32 0.0, %v8332_v54  ;;  %v6142_v37 = vld [vmem:[%s11959_s5 + $0x60] sm:$0xff]  ;;  %6448 = vmatpush.msra.mxu3 %v6143_v38  ;;  %2490 = vmatpush.msrb.mxu0 %v6143_v38 }
 0x1a3   : > { %v1392_v12 = vsel %vm8365_vm10, %v8262_v57, %v1388_v3  ;;  %v8374_v18 = vpop.permute.xlu2 %1925  ;;  %v1401_v45 = vmul.f32 %v8322_v51, %v1400_v4  ;;  %vm1404_vm1 = vweird.f32 %v8322_v51  ;;  %v1427_v43 = vmul.f32 %v8358_v42, %v8260_v32  ;;  %6449 = vmatpush.msra.mxu1 %v6142_v37 }
 0x1a4   : > { %v1397_v57 = vsel %vm8290_vm4, %v8294_v34, %v1392_v12  ;;  %v1740_v0 = vpop.permute.xlu1 %1739  ;;  %v1410_v39 = vor.u32 1.1754944e-38, %v1409_v40  ;;  %vm1431_vm3 = vweird.f32 %v8260_v32  ;;  %6610 = vpow2.f32 %v1034_v26  ;;  %1957 = vrot.lane.b32.xlu1 %v1898_v2, %s11976_s19  ;;  %vm8405_vm4 = vmor %vm1403_vm6, %vm1404_vm1  ;;  %v6780_v12 = vld [vmem:[%s7041_s17 + $0xf8] sm:$0xff]  ;;  %6450 = vmatpush.msra.mxu3 %v6142_v37 }
 0x1a5   : > { %v8391_v60 = vmul.f32 %v1397_v57, %v8025_v52  ;;  %1779 = vrot.lane.b32.xlu0 %v8308_v56, %s6883_s18  ;;  %1835 = vst.msk [vmem:[#allocation2 + $0x30] sm:$0xff] %vm1833_vm5, %v1740_v0  ;;  %v1402_v63 = vadd.f32 %v8322_v51, %v1401_v45  ;;  %v1428_v36 = vsub.f32 1.0, %v1427_v43  ;;  %v1631_v34 = vrot.slane %v7485_v55, 7  ;;  %2491 = vmatpush.msrb.mxu0 %v6142_v37 }
 0x1a6   : > { %v8399_v14 = vpop.eup %6606  ;;  %vm1432_vm7 = vweird.f32 %v8358_v42  ;;  %vm8410_vm12 = vcmp.eq.f32.partialorder %v1435_v33, 8.507059e+37  ;;  %v1438_v24 = vor.u32 1.1754944e-38, %v1437_v28  ;;  %v1036_v40 = vmul.f32 1.442695, %v976_v20 }
 0x1a7   : > { %v1657_v55 = vrot.slane %v8391_v60, 7  ;;  %v1738_v13 = vpop.permute.xlu0 %1737  ;;  %v1406_v41 = vsel %vm8405_vm4, %v8322_v51, %v1402_v63  ;;  %v1429_v49 = vmul.f32 %v8358_v42, %v1428_v36  ;;  %v873_v3 = vmul.f32 %v7235_v30, %v840_v31  ;;  %vm8444_vm6 = vmor %vm1431_vm3, %vm1432_vm7 }
 0x1a8   : > { %v6609_v4 = vpop.eup %6608  ;;  %1834 = vst.msk [vmem:[#allocation2 + $0x20] sm:$0xff] %vm1833_vm5, %v1738_v13  ;;  %v1411_v33 = vsel %vm8343_vm8, %v1410_v39, %v1406_v41  ;;  %v1900_v50 = vrot.slane %v8391_v60, 1  ;;  %v1413_v28 = vmul.f32 %v8399_v14, %v8326_v23  ;;  %v1632_v51 = vsel %vm1623_vm13, %v1630_v21, %v1631_v34  ;;  %vm12063_vm8 = vmmov %vm12054_vm9  ;;  %v6781_v34 = vld [vmem:[%s7041_s17 + $0xf0] sm:$0xff] }
 0x1a9   : > { %1727 = vst.msk [vmem:[#allocation2 + $0x180] sm:$0xfe] %vm1704_vm15, %v1657_v55  ;;  %v8433_v44 = vmul.f32 %v1411_v33, %v8056_v5  ;;  %v1430_v10 = vadd.f32 %v8358_v42, %v1429_v49  ;;  %v8436_v31 = vadd.f32 1.0, %v6609_v4  ;;  %6612 = vpow2.f32 %v1036_v40  ;;  %1781 = vrot.lane.b32.xlu2 %v8391_v60, %s6883_s18 }
 0x1aa   : > { %v6611_v26 = vpop.eup %6610  ;;  %v1414_v21 = vsub.f32 1.0, %v1413_v28  ;;  %v1421_v5 = vand.u32 2147483647, %v8326_v23  ;;  %v1423_v20 = vand.u32 2147483648, %v8326_v23  ;;  %1710 = vst.msk [vmem:[#allocation2 + $0x70] sm:$0xff] %vm12063_vm8, %v1632_v51  ;;  %v842_v45 = vsub.f32 %v6780_v12, %v7231_v22 }
 0x1ab   : > { %v1901_v43 = vrot.slane %v8433_v44, 1  ;;  %v1752_v38 = vpop.permute.xlu2 %1751  ;;  %v1434_v32 = vsel %vm8444_vm6, %v8358_v42, %v1430_v10  ;;  %v8457_v57 = vadd.f32 1.0, %v6611_v26  ;;  %6614 = vrcp.f32 %v8436_v31 }
 0x1ac   : > { %1841 = vst.msk [vmem:[#allocation2 + $0x90] sm:$0xff] %vm1833_vm5, %v1752_v38  ;;  %v1918_v0 = vpop.permute.xlu1 %1917  ;;  %v1439_v39 = vsel %vm8410_vm12, %v1438_v24, %v1434_v32  ;;  %v1415_v63 = vmul.f32 %v8399_v14, %v1414_v21  ;;  %vm1418_vm9 = vweird.f32 %v8399_v14  ;;  %v909_v36 = vmul.f32 %v7906_v27, %v873_v3  ;;  %1783 = vrot.lane.b32.xlu1 %v8433_v44, %s6883_s18 }
 0x1ad   : > { %v1902_v42 = vsel %vm1866_vm0, %v1900_v50, %v1901_v43  ;;  %2014 = vst.msk [vmem:[#allocation2 + $0x30] sm:$0x7f] %vm2013_vm14, %v1918_v0  ;;  %6616 = vrcp.f32 %v8457_v57  ;;  %v875_v37 = vmul.f32 %v7235_v30, %v842_v45  ;;  %v841_v52 = vsub.f32 %v6781_v34, %v7231_v22 }
 0x1ae   : > { %1959 = vrot.lane.b32.xlu0 %v1902_v42, %s11976_s19  ;;  %v8476_v2 = vmul.f32 %v1439_v39, %v8098_v8  ;;  %v1416_v24 = vadd.f32 %v8399_v14, %v1415_v63  ;;  %vm1417_vm10 = vweird.f32 %v8326_v23  ;;  %v1643_v13 = vrot.slane %v7693_v48, 7 }
 0x1af   : > { %v6613_v40 = vpop.eup %6612  ;;  %v1916_v41 = vpop.permute.xlu0 %1915  ;;  %vm1419_vm1 = vmor %vm1417_vm10, %vm1418_vm9  ;;  %v1424_v49 = vor.u32 1.1754944e-38, %v1423_v20  ;;  %v1449_v3 = vand.u32 2147483647, %v8436_v31  ;;  %v874_v22 = vmul.f32 %v7235_v30, %v841_v52  ;;  %vm1422_vm3 = vcmp.eq.f32.partialorder %v1421_v5, 8.507059e+37 }
 0x1b0   : > { %2012 = vst.msk [vmem:[#allocation2 + $0x20] sm:$0xff] %vm2011_vm11, %v1916_v41  ;;  %v1420_v8 = vsel %vm1419_vm1, %v8399_v14, %v1416_v24  ;;  %v8487_v4 = vadd.f32 1.0, %v6613_v40  ;;  %v8490_v23 = vadd.f32 %v7950_v7, %v909_v36  ;;  %vm1445_vm4 = vweird.f32 %v8436_v31 }
 0x1b1   : > { %v6615_v48 = vpop.eup %6614  ;;  %v1425_v33 = vsel %vm1422_vm3, %v1424_v49, %v1420_v8  ;;  %v1451_v50 = vand.u32 2147483648, %v8436_v31  ;;  %v911_v28 = vmul.f32 %v7906_v27, %v875_v37  ;;  %1961 = vrot.lane.b32.xlu2 %v1901_v43, %s11976_s19  ;;  %v1904_v14 = vrot.slane %v8476_v2, 1 }
 0x1b2   : > { %v8497_v30 = vmul.f32 %v1425_v33, %v8125_v59  ;;  %v1441_v51 = vmul.f32 %v6615_v48, %v8436_v31  ;;  %6618 = vrcp.f32 %v8487_v4  ;;  %vm8502_vm7 = vcmp.eq.f32.partialorder %v1449_v3, 8.507059e+37 }
 0x1b3   : > { %v6617_v10 = vpop.eup %6616  ;;  %vm1459_vm12 = vweird.f32 %v8457_v57  ;;  %v977_v29 = vsub.f32 0.0, %v8490_v23  ;;  %v910_v21 = vmul.f32 %v7906_v27, %v874_v22  ;;  %v8510_v5 = vpop.permute.xlu2 %1931  ;;  %v1463_v43 = vand.u32 2147483647, %v8457_v57 }
 0x1b4   : > { %v1903_v59 = vrot.slane %v8497_v30, 1  ;;  %v1922_v20 = vpop.permute.xlu1 %1921  ;;  %v1442_v12 = vsub.f32 1.0, %v1441_v51  ;;  %v1455_v45 = vmul.f32 %v6617_v10, %v8457_v57  ;;  %vm1446_vm6 = vweird.f32 %v6615_v48 }
 0x1b5   : > { %v1465_v38 = vand.u32 2147483648, %v8457_v57  ;;  %v1038_v32 = vmul.f32 1.442695, %v977_v29  ;;  %v8516_v0 = vadd.f32 %v7950_v7, %v911_v28  ;;  %v1642_v36 = vrot.slane %v7811_v47, 7  ;;  %vm1447_vm9 = vmor %vm1445_vm4, %vm1446_vm6 }
 0x1b6   : > { %v1905_v27 = vsel %vm1866_vm0, %v1903_v59, %v1904_v14  ;;  %1785 = vrot.lane.b32.xlu0 %v8497_v30, %s6883_s18  ;;  %v1443_v39 = vmul.f32 %v6615_v48, %v1442_v12  ;;  %v1456_v63 = vsub.f32 1.0, %v1455_v45  ;;  %vm1460_vm8 = vweird.f32 %v6617_v10 }
 0x1b7   : > { %1963 = vrot.lane.b32.xlu1 %v1905_v27, %s11976_s19  ;;  %v1744_v42 = vpop.permute.xlu0 %1743  ;;  %v8525_v37 = vld [vmem:[#allocation2 + $0x20] sm:$0xff]  ;;  %6620 = vpow2.f32 %v1038_v32  ;;  %v979_v34 = vsub.f32 0.0, %v8516_v0  ;;  %v8529_v52 = vadd.f32 %v7950_v7, %v910_v21  ;;  %v1644_v41 = vsel %vm1623_vm13, %v1642_v36, %v1643_v13  ;;  %vm1461_vm3 = vmor %vm1459_vm12, %vm1460_vm8  ;;  %1717 = vst.msk [vmem:[#allocation2 + $0xe0] sm:$0xfe] %vm1704_vm15, %v1642_v36  ;;  %v8584_v32 = vld [vmem:[#allocation2 + $0x30] sm:$0xff] }
 0x1b8   : > { %v8531_v24 = vpop.eup %6618  ;;  %1837 = vst.msk [vmem:[#allocation2 + $0x50] sm:$0xff] %vm1833_vm5, %v1744_v42  ;;  %6112 = vmatmul.msk.f32.gmra.mxu0 %vm2093_vm2, %v8525_v37  ;;  %v1444_v47 = vadd.f32 %v6615_v48, %v1443_v39  ;;  %v1457_v40 = vmul.f32 %v6617_v10, %v1456_v63  ;;  %v1636_v49 = vrot.slane %v7611_v11, 7  ;;  %v1452_v7 = vor.u32 1.1754944e-38, %v1451_v50 }
 0x1b9   : > { %2016 = vst.msk [vmem:[#allocation2 + $0x50] sm:$0x7f] %vm2013_vm14, %v1922_v20  ;;  %v1469_v3 = vmul.f32 %v8531_v24, %v8487_v4  ;;  %v1042_v22 = vmul.f32 1.442695, %v979_v34  ;;  %v978_v8 = vsub.f32 0.0, %v8529_v52  ;;  %1787 = vrot.lane.b32.xlu2 %v8476_v2, %s6883_s18  ;;  %vm8547_vm10 = vcmp.eq.f32.partialorder %v1463_v43, 8.507059e+37 }
 0x1ba   : > { %v1448_v33 = vsel %vm1447_vm9, %v6615_v48, %v1444_v47  ;;  %v1458_v13 = vadd.f32 %v6617_v10, %v1457_v40  ;;  %v1466_v28 = vor.u32 1.1754944e-38, %v1465_v38  ;;  %vm12068_vm1 = vcmask 261120   ;;  %1713 = vst.msk [vmem:[#allocation2 + $0xa0] sm:$0xfe] %vm1704_vm15, %v1636_v49 }
 0x1bb   : > { %1718 = vst.msk [vmem:[#allocation2 + $0xf0] sm:$0xff] %vm12068_vm1, %v1644_v41  ;;  %v1453_v31 = vsel %vm8502_vm7, %v1452_v7, %v1448_v33  ;;  %v1470_v50 = vsub.f32 1.0, %v1469_v3  ;;  %6622 = vpow2.f32 %v1042_v22  ;;  %v1040_v48 = vmul.f32 1.442695, %v978_v8  ;;  %v1758_v21 = vpop.permute.xlu2 %1757  ;;  %vm12069_vm8 = vmmov %vm12068_vm1  ;;  %v8623_v33 = vld [vmem:[#allocation2 + $0x40] sm:$0xff] }
 0x1bc   : > { %v1462_v51 = vsel %vm1461_vm3, %v6617_v10, %v1458_v13  ;;  %v8559_v29 = vmul.f32 %v1453_v31, %v8206_v25  ;;  %v1748_v59 = vpop.permute.xlu1 %1747  ;;  %v1477_v20 = vand.u32 2147483647, %v8487_v4  ;;  %v1479_v26 = vand.u32 2147483648, %v8487_v4  ;;  %1844 = vst.msk [vmem:[#allocation2 + $0xc0] sm:$0xff] %vm1833_vm5, %v1758_v21 }
 0x1bd   : > { %v6621_v12 = vpop.eup %6620  ;;  %v1467_v57 = vsel %vm8547_vm10, %v1466_v28, %v1462_v51  ;;  %v1471_v45 = vmul.f32 %v8531_v24, %v1470_v50  ;;  %vm1474_vm4 = vweird.f32 %v8531_v24  ;;  %6624 = vpow2.f32 %v1040_v48  ;;  %1839 = vst.msk [vmem:[#allocation2 + $0x70] sm:$0xff] %vm1833_vm5, %v1748_v59 }
 0x1be   : > { %v8570_v25 = vmul.f32 %v1467_v57, %v8251_v6  ;;  %v1906_v10 = vrot.slane %v8559_v29, 1  ;;  %1965 = vrot.lane.b32.xlu0 %v1904_v14, %s11976_s19  ;;  %v8577_v43 = vadd.f32 1.0, %v6621_v12  ;;  %v1637_v38 = vrot.slane %v7635_v46, 7  ;;  %2018 = vst.msk [vmem:[#allocation2 + $0x70] sm:$0x7f] %vm2013_vm14, %v8374_v18 }
 0x1bf   : > { %1789 = vrot.lane.b32.xlu1 %v8559_v29, %s6883_s18  ;;  %v1924_v6 = vpop.permute.xlu0 %1923  ;;  %v1472_v27 = vadd.f32 %v8531_v24, %v1471_v45  ;;  %vm1473_vm7 = vweird.f32 %v8487_v4  ;;  %v1480_v18 = vor.u32 1.1754944e-38, %v1479_v26  ;;  %vm1478_vm6 = vcmp.eq.f32.partialorder %v1477_v20, 8.507059e+37 }
 0x1c0   : > { %v1907_v14 = vrot.slane %v8570_v25, 1  ;;  %2017 = vst.msk [vmem:[#allocation2 + $0x60] sm:$0xff] %vm2011_vm11, %v1924_v6  ;;  %6113 = vmatmul.msk.f32.gmra.mxu0 %vm2093_vm2, %v8584_v32  ;;  %v8592_v46 = vld [vmem:[#allocation2 + $0x50] sm:$0xff]  ;;  %vm1475_vm12 = vmor %vm1473_vm7, %vm1474_vm4  ;;  %6626 = vrcp.f32 %v8577_v43  ;;  %v1638_v63 = vsel %vm1623_vm13, %v1636_v49, %v1637_v38  ;;  %v1640_v22 = vrot.slane %v7670_v19, 7 }
 0x1c1   : > { %v6623_v39 = vpop.eup %6622  ;;  %6157 = vmatmul.msk.f32.vlgmr.msra.gmra.mxu1 %vm2093_vm2, %v8592_v46  ;;  %v1476_v4 = vsel %vm1475_vm12, %v8531_v24, %v1472_v27  ;;  %1714 = vst.msk [vmem:[#allocation2 + $0xb0] sm:$0xff] %vm12069_vm8, %v1638_v63  ;;  %v1652_v8 = vrot.slane %v8101_v53, 7  ;;  %v1491_v19 = vand.u32 2147483647, %v8577_v43  ;;  %v1493_v53 = vand.u32 2147483648, %v8577_v43  ;;  %vm12072_vm7 = vmmov %vm12068_vm1 }
 0x1c2   : > { %v1908_v36 = vsel %vm1866_vm0, %v1906_v10, %v1907_v14  ;;  %v1481_v42 = vsel %vm1478_vm6, %v1480_v18, %v1476_v4  ;;  %v8602_v34 = vadd.f32 1.0, %v6623_v39  ;;  %v1641_v28 = vsel %vm1623_vm13, %v1639_v16, %v1640_v22 }
 0x1c3   : > { %v6625_v47 = vpop.eup %6624  ;;  %1967 = vrot.lane.b32.xlu2 %v1908_v36, %s11976_s19  ;;  %v8607_v40 = vmul.f32 %v1481_v42, %v8332_v54  ;;  %v8609_v41 = vpop.permute.xlu2 %1937  ;;  %v1651_v50 = vrot.slane %v8153_v15, 7  ;;  %v1661_v51 = vrot.slane %v8476_v2, 7  ;;  %vm1487_vm9 = vweird.f32 %v8577_v43  ;;  %1716 = vst.msk [vmem:[#allocation2 + $0xd0] sm:$0xff] %vm12068_vm1, %v1641_v28 }
 0x1c4   : > { %v1928_v7 = vpop.permute.xlu1 %1927  ;;  %6628 = vrcp.f32 %v8602_v34  ;;  %v8613_v49 = vadd.f32 1.0, %v6625_v47  ;;  %v1645_v9 = vrot.slane %v7856_v58, 7  ;;  %v1646_v2 = vrot.slane %v7864_v1, 7 }
 0x1c5   : > { %v1666_v24 = vrot.slane %v8607_v40, 7  ;;  %v1653_v15 = vsel %vm1623_vm13, %v1651_v50, %v1652_v8  ;;  %1723 = vst.msk [vmem:[#allocation2 + $0x140] sm:$0xfe] %vm1704_vm15, %v1651_v50  ;;  %vm8654_vm3 = vcmp.eq.f32.partialorder %v1491_v19, 8.507059e+37  ;;  %v1494_v20 = vor.u32 1.1754944e-38, %v1493_v53  ;;  %v8682_v63 = vld [vmem:[#allocation2 + $0x70] sm:$0xff] }
 0x1c6   : > { %v6627_v3 = vpop.eup %6626  ;;  %1791 = vrot.lane.b32.xlu0 %v8570_v25, %s6883_s18  ;;  %6630 = vrcp.f32 %v8613_v49  ;;  %vm1515_vm4 = vweird.f32 %v8602_v34  ;;  %1724 = vst.msk [vmem:[#allocation2 + $0x150] sm:$0xff] %vm12072_vm7, %v1653_v15  ;;  %v1649_v12 = vrot.slane %v7995_v62, 7  ;;  %v1519_v1 = vand.u32 2147483647, %v8602_v34 }
 0x1c7   : > { %1733 = vst.msk [vmem:[#allocation2 + $0x1e0] sm:$0xfe] %vm1704_vm15, %v1666_v24  ;;  %1969 = vrot.lane.b32.xlu1 %v1907_v14, %s11976_s19  ;;  %v1750_v54 = vpop.permute.xlu0 %1749  ;;  %v8625_v13 = vld [vmem:[#allocation2 + $0x60] sm:$0xff]  ;;  %v1483_v11 = vmul.f32 %v6627_v3, %v8577_v43  ;;  %vm1488_vm10 = vweird.f32 %v6627_v3  ;;  %v1660_v38 = vrot.slane %v8497_v30, 7  ;;  %v1909_v6 = vrot.slane %v8607_v40, 1 }
 0x1c8   : > { %1840 = vst.msk [vmem:[#allocation2 + $0x80] sm:$0xff] %vm1833_vm5, %v1750_v54  ;;  %6114 = vmatmul.msk.f32.gmra.mxu0 %vm2093_vm2, %v8623_v33  ;;  %vm1489_vm12 = vmor %vm1487_vm9, %vm1488_vm10  ;;  %v1521_v62 = vand.u32 2147483648, %v8602_v34  ;;  %v1647_v43 = vsel %vm1623_vm13, %v1645_v9, %v1646_v2  ;;  %v1654_v39 = vrot.slane %v8255_v61, 7  ;;  %v1655_v42 = vrot.slane %v8308_v56, 7 }
 0x1c9   : > { %2019 = vst.msk [vmem:[#allocation2 + $0x80] sm:$0xff] %vm2011_vm11, %v1928_v7  ;;  %6158 = vmatmul.msk.f32.gmra.mxu1 %vm2093_vm2, %v8625_v13  ;;  %v1484_v31 = vsub.f32 1.0, %v1483_v11  ;;  %v1507_v7 = vand.u32 2147483648, %v8613_v49  ;;  %v1505_v56 = vand.u32 2147483647, %v8613_v49  ;;  %vm12073_vm10 = vmmov %vm12068_vm1  ;;  %vm1520_vm1 = vcmp.eq.f32.partialorder %v1519_v1, 8.507059e+37 }
 0x1ca   : > { %v8641_v48 = vpop.eup %6628  ;;  %1719 = vst.msk [vmem:[#allocation2 + $0x100] sm:$0xfe] %vm1704_vm15, %v1645_v9  ;;  %v1522_v35 = vor.u32 1.1754944e-38, %v1521_v62  ;;  %v1656_v53 = vsel %vm1623_vm13, %v1654_v39, %v1655_v42  ;;  %v2941_v62 = vld [vmem:[%s11961_s7 + $0x68] sm:$0xff]  ;;  %v6196_v42 = vld [vmem:[%s11959_s5 + $0x110] sm:$0xff] }
 0x1cb   : > { %1793 = vrot.lane.b32.xlu2 %v8607_v40, %s6883_s18  ;;  %v1485_v16 = vmul.f32 %v6627_v3, %v1484_v31  ;;  %v1511_v21 = vmul.f32 %v8641_v48, %v8602_v34  ;;  %v1764_v26 = vpop.permute.xlu2 %1763  ;;  %vm1516_vm6 = vweird.f32 %v8641_v48  ;;  %1720 = vst.msk [vmem:[#allocation2 + $0x110] sm:$0xff] %vm12073_vm10, %v1647_v43  ;;  %v1658_v34 = vrot.slane %v8433_v44, 7 }
 0x1cc   : > { %v1754_v58 = vpop.permute.xlu1 %1753  ;;  %v6631_v57 = vpop.eup %6630  ;;  %1847 = vst.msk [vmem:[#allocation2 + $0xf0] sm:$0xff] %vm1833_vm5, %v1764_v26  ;;  %vm1517_vm8 = vmor %vm1515_vm4, %vm1516_vm6  ;;  %vm1501_vm4 = vweird.f32 %v8613_v49  ;;  %v1508_v44 = vor.u32 1.1754944e-38, %v1507_v7  ;;  %vm1506_vm6 = vcmp.eq.f32.partialorder %v1505_v56, 8.507059e+37 }
 0x1cd   : > { %v1486_v45 = vadd.f32 %v6627_v3, %v1485_v16  ;;  %v1512_v10 = vsub.f32 1.0, %v1511_v21  ;;  %1842 = vst.msk [vmem:[#allocation2 + $0xa0] sm:$0xff] %vm1833_vm5, %v1754_v58  ;;  %v1497_v27 = vmul.f32 %v6631_v57, %v8613_v49  ;;  %vm1502_vm9 = vweird.f32 %v6631_v57 }
 0x1ce   : > { %2021 = vst.msk [vmem:[#allocation2 + $0xa0] sm:$0xff] %vm2011_vm11, %v8510_v5  ;;  %v1650_v5 = vsel %vm1623_vm13, %v1648_v17, %v1649_v12 }
 0x1cf   : > { %v1490_v14 = vsel %vm1489_vm12, %v6627_v3, %v1486_v45  ;;  %v1930_v18 = vpop.permute.xlu0 %1929  ;;  %v1513_v30 = vmul.f32 %v8641_v48, %v1512_v10  ;;  %v1498_v36 = vsub.f32 1.0, %v1497_v27  ;;  %v1662_v3 = vsel %vm1623_vm13, %v1660_v38, %v1661_v51  ;;  %vm1503_vm12 = vmor %vm1501_vm4, %vm1502_vm9  ;;  %1729 = vst.msk [vmem:[#allocation2 + $0x1a0] sm:$0xfe] %vm1704_vm15, %v1660_v38  ;;  %v2943_v45 = vld [vmem:[%s11961_s7 + $0x78] sm:$0xff] }
 0x1d0   : > { %v1495_v4 = vsel %vm8654_vm3, %v1494_v20, %v1490_v14  ;;  %2020 = vst.msk [vmem:[#allocation2 + $0x90] sm:$0x7f] %vm2013_vm14, %v1930_v18  ;;  %6115 = vmatmul.msk.f32.gmra.mxu0 %vm2093_vm2, %v8592_v46  ;;  %vm12074_vm3 = vmmov %vm12072_vm7  ;;  %v1659_v51 = vsel %vm1623_vm13, %v1657_v55, %v1658_v34  ;;  %v8730_v21 = vld [vmem:[#allocation2 + $0x80] sm:$0xff]  ;;  %2945 = vmatpush.msrb.mxu1 %v2943_v45 }
 0x1d1   : > { %v8689_v47 = vmul.f32 %v1495_v4, %v8490_v23  ;;  %6159 = vmatmul.msk.f32.gmra.mxu1 %vm2093_vm2, %v8682_v63  ;;  %v1514_v61 = vadd.f32 %v8641_v48, %v1513_v30  ;;  %v1499_v17 = vmul.f32 %v6631_v57, %v1498_v36  ;;  %1722 = vst.msk [vmem:[#allocation2 + $0x130] sm:$0xff] %vm12074_vm3, %v1650_v5  ;;  %vm12075_vm7 = vmmov %vm12074_vm3  ;;  %v2940_v18 = vld [vmem:[%s11961_s7 + $0x60] sm:$0xff]  ;;  %v6197_v4 = vld [vmem:[%s11959_s5 + $0x118] sm:$0xff] }
 0x1d2   : > { %1730 = vst.msk [vmem:[#allocation2 + $0x1b0] sm:$0xff] %vm12075_vm7, %v1662_v3  ;;  %vm12077_vm9 = vmmov %vm12074_vm3  ;;  %v2938_v36 = vld [vmem:[%s11961_s7 + $0x50] sm:$0xff]  ;;  %v8814_v5 = vld [vmem:[#allocation2] sm:$0xff]  ;;  %2767 = vmatpush.msra.mxu0 %v6197_v4 }
 0x1d3   : > { %v1910_v23 = vrot.slane %v8689_v47, 1  ;;  %1795 = vrot.lane.b32.xlu1 %v8689_v47, %s6883_s18  ;;  %v1518_v22 = vsel %vm1517_vm8, %v8641_v48, %v1514_v61  ;;  %v1500_v54 = vadd.f32 %v6631_v57, %v1499_v17  ;;  %v8710_v11 = vpop.permute.xlu2 %1943  ;;  %1725 = vst.msk [vmem:[#allocation2 + $0x160] sm:$0xfe] %vm1704_vm15, %v1654_v39  ;;  %vm12076_vm8 = vmmov %vm12074_vm3  ;;  %v1667_v20 = vrot.slane %v8689_v47, 7  ;;  %v2939_v39 = vld [vmem:[%s11961_s7 + $0x58] sm:$0xff]  ;;  %v2937_v47 = vld [vmem:[%s11961_s7 + $0x48] sm:$0xff] }
 0x1d4   : > { %v1523_v8 = vsel %vm1520_vm1, %v1522_v35, %v1518_v22  ;;  %v1934_v19 = vpop.permute.xlu1 %1933  ;;  %1726 = vst.msk [vmem:[#allocation2 + $0x170] sm:$0xff] %vm12076_vm8, %v1656_v53  ;;  %vm12079_vm10 = vmmov %vm12074_vm3  ;;  %v6195_v35 = vld [vmem:[%s11959_s5 + $0x108] sm:$0xff]  ;;  %v2936_v17 = vld [vmem:[%s11961_s7 + $0x40] sm:$0xff]  ;;  %2768 = vmatpush.msra.mxu0 %v6196_v42 }
 0x1d5   : > { %1973 = vrot.lane.b32.xlu2 %v1910_v23, %s11976_s19  ;;  %v1911_v28 = vsel %vm1866_vm0, %v1909_v6, %v1910_v23  ;;  %v1555_v31 = vmul.f32 %v1523_v8, %v8516_v0  ;;  %v1504_v49 = vsel %vm1503_vm12, %v6631_v57, %v1500_v54  ;;  %v1663_v0 = vrot.slane %v8559_v29, 7  ;;  %1728 = vst.msk [vmem:[#allocation2 + $0x190] sm:$0xff] %vm12077_vm9, %v1659_v51  ;;  %vm12080_vm1 = vmmov %vm12074_vm3  ;;  %v8776_v1 = vld [vmem:[#allocation2 + $0xa0] sm:$0xff]  ;;  %v2942_v6 = vld [vmem:[%s11961_s7 + $0x70] sm:$0xff] }
 0x1d6   : > { %1971 = vrot.lane.b32.xlu0 %v1911_v28, %s11976_s19  ;;  %v1509_v50 = vsel %vm1506_vm6, %v1508_v44, %v1504_v49  ;;  %v1668_v57 = vsel %vm1623_vm13, %v1666_v24, %v1667_v20  ;;  %2946 = vmatpush.msrb.mxu1 %v2942_v6  ;;  %v6194_v23 = vld [vmem:[%s11959_s5 + $0x100] sm:$0xff]  ;;  %v2935_v22 = vld [vmem:[%s11961_s7 + $0x38] sm:$0xff]  ;;  %v2934_v54 = vld [vmem:[%s11961_s7 + $0x30] sm:$0xff] }
 0x1d7   : > { %v1756_v48 = vpop.permute.xlu0 %1755  ;;  %v1554_v9 = vmul.f32 %v1509_v50, %v8529_v52  ;;  %v1913_v16 = vrot.slane %v1555_v31, 1  ;;  %v1670_v60 = vrot.slane %v1555_v31, 7  ;;  %1731 = vst.msk [vmem:[#allocation2 + $0x1c0] sm:$0xfe] %vm1704_vm15, %v1663_v0  ;;  %v1664_v52 = vrot.slane %v8570_v25, 7  ;;  %v8753_v12 = vld [vmem:[#allocation2 + $0x90] sm:$0xff]  ;;  %2769 = vmatpush.msra.mxu0 %v6195_v35 }
 0x1d8   : > { %1843 = vst.msk [vmem:[#allocation2 + $0xb0] sm:$0xff] %vm1833_vm5, %v1756_v48  ;;  %6116 = vmatmul.msk.f32.gmra.mxu0 %vm2093_vm2, %v8625_v13  ;;  %2947 = vmatpush.msrb.mxu1 %v2941_v62  ;;  %v6193_v8 = vld [vmem:[%s11959_s5 + $0xf8] sm:$0xff]  ;;  %v2933_v28 = vld [vmem:[%s11961_s7 + $0x28] sm:$0xff]  ;;  %v2932_v49 = vld [vmem:[%s11961_s7 + $0x20] sm:$0xff] }
 0x1d9   : > { %2022 = vst.msk [vmem:[#allocation2 + $0xb0] sm:$0x7f] %vm2013_vm14, %v1934_v19  ;;  %6160 = vmatmul.msk.f32.gmra.mxu1 %vm2093_vm2, %v8730_v21  ;;  %v1912_v15 = vrot.slane %v1554_v9, 1  ;;  %v1669_v55 = vrot.slane %v1554_v9, 7  ;;  %v1665_v58 = vsel %vm1623_vm13, %v1663_v0, %v1664_v52  ;;  %2770 = vmatpush.msra.mxu0 %v6194_v23  ;;  %v6190_v50 = vld [vmem:[%s11959_s5 + $0xe0] sm:$0xff]  ;;  %v2931_v51 = vld [vmem:[%s11961_s7 + $0x18] sm:$0xff] }
 0x1da   : > { %1732 = vst.msk [vmem:[#allocation2 + $0x1d0] sm:$0xff] %vm12079_vm10, %v1665_v58  ;;  %2948 = vmatpush.msrb.mxu1 %v2940_v18  ;;  %v6189_v0 = vld [vmem:[%s11959_s5 + $0xd8] sm:$0xff] }
 0x1db   : > { %v1914_v29 = vsel %vm1866_vm0, %v1912_v15, %v1913_v16  ;;  %v1770_v2 = vpop.permute.xlu2 %1769  ;;  %1735 = vst.msk [vmem:[#allocation2 + $0x200] sm:$0xfe] %vm1704_vm15, %v1669_v55  ;;  %v1671_v25 = vsel %vm1623_vm13, %v1669_v55, %v1670_v60  ;;  %vm12078_vm15 = vmmov %vm12074_vm3  ;;  %vm3981_vm3 = vcmask 516096   ;;  %2771 = vmatpush.msra.mxu0 %v6193_v8  ;;  %v2930_v15 = vld [vmem:[%s11961_s7 + $0x10] sm:$0xff]  ;;  %v6187_v55 = vld [vmem:[%s11959_s5 + $0xc8] sm:$0xff] }
 0x1dc   : > { %v1760_v59 = vpop.permute.xlu1 %1759  ;;  %1975 = vrot.lane.b32.xlu1 %v1914_v29, %s11976_s19  ;;  %1850 = vst.msk [vmem:[#allocation2 + $0x120] sm:$0xff] %vm1833_vm5, %v1770_v2  ;;  %2949 = vmatpush.msrb.mxu1 %v2939_v39  ;;  %v8937_v29 = vld [vmem:[%s533_s28] sm:$0x1]  ;;  %v2929_v2 = vld [vmem:[%s11961_s7 + $0x8] sm:$0xff]  ;;  %s6839_s28 = scalar_lea.hbm %s11970_s16, 512 }
 0x1dd   : > { %1799 = vrot.lane.b32.xlu2 %v1555_v31, %s6883_s18  ;;  %1845 = vst.msk [vmem:[#allocation2 + $0xd0] sm:$0xff] %vm1833_vm5, %v1760_v59  ;;  %v6191_v31 = vld [vmem:[%s11959_s5 + $0xe8] sm:$0xff]  ;;  %v6186_v59 = vld [vmem:[%s11959_s5 + $0xc0] sm:$0xff]  ;;  %v2909_v20 = vsub.f32 0.0, %v8937_v29 }
 0x1de   : > { %1797 = vrot.lane.b32.xlu0 %v1554_v9, %s6883_s18  ;;  %2024 = vst.msk [vmem:[#allocation2 + $0xd0] sm:$0x7f] %vm2013_vm14, %v8609_v41  ;;  %2950 = vmatpush.msrb.mxu1 %v2938_v36  ;;  %v6188_v9 = vld [vmem:[%s11959_s5 + $0xd0] sm:$0xff] }
 0x1df   : > { %v1936_v26 = vpop.permute.xlu0 %1935  ;;  %1736 = vst.msk [vmem:[#allocation2 + $0x210] sm:$0xff] %vm12078_vm15, %v1671_v25  ;;  %v2910_v58 = vmul.f32 1.442695, %v2909_v20 }
 0x1e0   : > { %2023 = vst.msk [vmem:[#allocation2 + $0xc0] sm:$0xff] %vm2011_vm11, %v1936_v26  ;;  %6117 = vmatmul.msk.f32.gmra.mxu0 %vm2093_vm2, %v8682_v63  ;;  %v8796_v43 = vld [vmem:[#allocation2 + $0xb0] sm:$0xff]  ;;  %2951 = vmatpush.msrb.mxu1 %v2937_v47  ;;  %v2928_v26 = vld [vmem:[%s11961_s7] sm:$0xff] }
 0x1e1   : > { %6161 = vmatmul.msk.f32.gmra.mxu1 %vm2093_vm2, %v8753_v12  ;;  %1734 = vst.msk [vmem:[#allocation2 + $0x1f0] sm:$0xff] %vm12080_vm1, %v1668_v57  ;;  %6632 = vpow2.f32 %v2910_v58 }
 0x1e2   : > { %3982 = vst.msk [vmem:[#allocation2 + $0x20] sm:$0x1] %vm3981_vm3, %v8814_v5  ;;  %2952 = vmatpush.msrb.mxu1 %v2936_v17 }
 0x1e3   : > { %v8763_v41 = vpop.permute.xlu2 %1949  ;;  %3998 = vst.msk [vmem:[#allocation2 + $0x3f] sm:$0x1] %vm3981_vm3, %v8814_v5 }
 0x1e4   : > { %3999 = vst.msk [vmem:[#allocation2 + $0x5f] sm:$0x1] %vm3981_vm3, %v8814_v5  ;;  %2953 = vmatpush.msrb.mxu1 %v2935_v22 }
 0x1e5   : > { %v8769_v40 = vld [vmem:[#allocation2 + $0xd0] sm:$0xff]  ;;  %4000 = vst.msk [vmem:[#allocation2 + $0x7f] sm:$0x1] %vm3981_vm3, %v8814_v5 }
 0x1e6   : > { %1977 = vrot.lane.b32.xlu0 %v1913_v16, %s11976_s19  ;;  %v1940_v24 = vpop.permute.xlu1 %1939  ;;  %6123 = vmatmul.msk.f32.vlgmr.msra.gmra.mxu2 %vm2093_vm2, %v8769_v40  ;;  %4001 = vst.msk [vmem:[#allocation2 + $0x9f] sm:$0x1] %vm3981_vm3, %v8814_v5  ;;  %s12124_s19 = smov 64  }
 0x1e7   : > { %v1762_v10 = vpop.permute.xlu0 %1761  ;;  %v8829_v3 = vld [vmem:[#allocation2 + $0xc0] sm:$0xff]  ;;  %4002 = vst.msk [vmem:[#allocation2 + $0xbf] sm:$0x1] %vm3981_vm3, %v8814_v5  ;;  %2954 = vmatpush.msrb.mxu1 %v2934_v54 }
 0x1e8   : > { %1846 = vst.msk [vmem:[#allocation2 + $0xe0] sm:$0xff] %vm1833_vm5, %v1762_v10  ;;  %6118 = vmatmul.msk.f32.gmra.mxu0 %vm2093_vm2, %v8730_v21 }
 0x1e9   : > { %2025 = vst.msk [vmem:[#allocation2 + $0xe0] sm:$0xff] %vm2011_vm11, %v1940_v24  ;;  %6162 = vmatmul.msk.f32.gmra.mxu1 %vm2093_vm2, %v8776_v1  ;;  %v6633_v24 = vpop.eup %6632 }
 0x1ea   : > { %4003 = vst.msk [vmem:[#allocation2 + $0xdf] sm:$0x1] %vm3981_vm3, %v8814_v5  ;;  %2955 = vmatpush.msrb.mxu1 %v2933_v28 }
 0x1eb   : > { %v1776_v38 = vpop.permute.xlu2 %1775  ;;  %4004 = vst.msk [vmem:[#allocation2 + $0xff] sm:$0x1] %vm3981_vm3, %v8814_v5 }
 0x1ec   : > { %1853 = vst.msk [vmem:[#allocation2 + $0x150] sm:$0xff] %vm1833_vm5, %v1776_v38  ;;  %2956 = vmatpush.msrb.mxu1 %v2932_v49 }
 0x1ed   : > { %4005 = vst.msk [vmem:[#allocation2 + $0x11f] sm:$0x1] %vm3981_vm3, %v8814_v5 }
 0x1ee   : > { %v1766_v27 = vpop.permute.xlu1 %1765  ;;  %4006 = vst.msk [vmem:[#allocation2 + $0x13f] sm:$0x1] %vm3981_vm3, %v8814_v5  ;;  %2957 = vmatpush.msrb.mxu1 %v2931_v51 }
 0x1ef   : > { %v1942_v14 = vpop.permute.xlu0 %1941  ;;  %1848 = vst.msk [vmem:[#allocation2 + $0x100] sm:$0xff] %vm1833_vm5, %v1766_v27 }
 0x1f0   : > { %6119 = vmatmul.msk.f32.gmra.mxu0 %vm2093_vm2, %v8753_v12  ;;  %v8794_v30 = vld [vmem:[#allocation2 + $0xe0] sm:$0xff]  ;;  %2027 = vst.msk [vmem:[#allocation2 + $0x100] sm:$0xff] %vm2011_vm11, %v8710_v11  ;;  %v6192_v11 = vld [vmem:[%s11959_s5 + $0xf0] sm:$0xff]  ;;  %2958 = vmatpush.msrb.mxu1 %v2930_v15 }
 0x1f1   : > { %6124 = vmatmul.msk.f32.gmra.mxu2 %vm2093_vm2, %v8794_v30  ;;  %6163 = vmatmul.msk.f32.gmra.mxu1 %vm2093_vm2, %v8796_v43  ;;  %2026 = vst.msk [vmem:[#allocation2 + $0xf0] sm:$0x7f] %vm2013_vm14, %v1942_v14 }
 0x1f2   : > { %2772 = vmatpush.msra.mxu0 %v6192_v11  ;;  %4007 = vst.msk [vmem:[#allocation2 + $0x15f] sm:$0x1] %vm3981_vm3, %v8814_v5  ;;  %2959 = vmatpush.msrb.mxu1 %v2929_v2 }
 0x1f3   : > { %4008 = vst.msk [vmem:[#allocation2 + $0x17f] sm:$0x1] %vm3981_vm3, %v8814_v5 }
 0x1f4   : > { %2773 = vmatpush.msra.mxu0 %v6191_v31  ;;  %4009 = vst.msk [vmem:[#allocation2 + $0x19f] sm:$0x1] %vm3981_vm3, %v8814_v5  ;;  %2960 = vmatpush.msrb.mxu1 %v2928_v26 }
 0x1f5   : > { %4010 = vst.msk [vmem:[#allocation2 + $0x1bf] sm:$0x1] %vm3981_vm3, %v8814_v5 }
 0x1f6   : > { %v1946_v61 = vpop.permute.xlu1 %1945  ;;  %2774 = vmatpush.msra.mxu0 %v6190_v50  ;;  %4011 = vst.msk [vmem:[#allocation2 + $0x1df] sm:$0x1] %vm3981_vm3, %v8814_v5 }
 0x1f7   : > { %v1768_v7 = vpop.permute.xlu0 %1767  ;;  %v8886_v44 = vld [vmem:[#allocation2 + $0x100] sm:$0xff]  ;;  %4012 = vst.msk [vmem:[#allocation2 + $0x1ff] sm:$0x1] %vm3981_vm3, %v8814_v5 }
 0x1f8   : > { %1849 = vst.msk [vmem:[#allocation2 + $0x110] sm:$0xff] %vm1833_vm5, %v1768_v7  ;;  %6120 = vmatmul.msk.f32.gmra.mxu0 %vm2093_vm2, %v8776_v1  ;;  %v8838_v56 = vld [vmem:[#allocation2 + $0xf0] sm:$0xff] }
 0x1f9   : > { %2028 = vst.msk [vmem:[#allocation2 + $0x110] sm:$0x7f] %vm2013_vm14, %v1946_v61  ;;  %6164 = vmatmul.msk.f32.gmra.mxu1 %vm2093_vm2, %v8829_v3  ;;  %6167 = vmatmul.msk.f32.vlgmr.msra.gmra.mxu3 %vm2093_vm2, %v8838_v56 }
 0x1fa   : > { %6125 = vmatmul.msk.f32.gmra.mxu2 %vm2093_vm2, %v8838_v56  ;;  %2775 = vmatpush.msra.mxu0 %v6189_v0  ;;  %4013 = vst.msk [vmem:[#allocation2 + $0x21f] sm:$0x1] %vm3981_vm3, %v8814_v5 }
 0x1fb   : > { %v8856_v34 = vpop.permute.xlu2 %1955  ;;  %3983 = vst.msk [vmem:[#allocation2 + $0x40] sm:$0x1] %vm3981_vm3, %v8814_v5 }
 0x1fc   : > { %2776 = vmatpush.msra.mxu0 %v6188_v9  ;;  %3984 = vst.msk [vmem:[#allocation2 + $0x60] sm:$0x1] %vm3981_vm3, %v8814_v5 }
 0x1fd   : > { %3985 = vst.msk [vmem:[#allocation2 + $0x80] sm:$0x1] %vm3981_vm3, %v8814_v5 }
 0x1fe   : > { %v1772_v19 = vpop.permute.xlu1 %1771  ;;  %2777 = vmatpush.msra.mxu0 %v6187_v55  ;;  %3986 = vst.msk [vmem:[#allocation2 + $0xa0] sm:$0x1] %vm3981_vm3, %v8814_v5 }
 0x1ff   : > { %v1948_v53 = vpop.permute.xlu0 %1947  ;;  %1851 = vst.msk [vmem:[#allocation2 + $0x130] sm:$0xff] %vm1833_vm5, %v1772_v19 }
 0x200   : > { %6121 = vmatmul.msk.f32.gmra.mxu0 %vm2093_vm2, %v8796_v43  ;;  %2030 = vst.msk [vmem:[#allocation2 + $0x130] sm:$0x7f] %vm2013_vm14, %v8763_v41  ;;  %v8933_v52 = vld [vmem:[#allocation2 + $0x110] sm:$0xff] }
 0x201   : > { %6165 = vmatmul.msk.f32.gmra.mxu1 %vm2093_vm2, %v8769_v40  ;;  %2029 = vst.msk [vmem:[#allocation2 + $0x120] sm:$0xff] %vm2011_vm11, %v1948_v53  ;;  %6168 = vmatmul.msk.f32.gmra.mxu3 %vm2093_vm2, %v8886_v44 }
 0x202   : > { %6126 = vmatmul.msk.f32.gmra.mxu2 %vm2093_vm2, %v8886_v44  ;;  %2778 = vmatpush.msra.mxu0 %v6186_v59  ;;  %3987 = vst.msk [vmem:[#allocation2 + $0xc0] sm:$0x1] %vm3981_vm3, %v8814_v5 }
 0x203   : > { %v1782_v48 = vpop.permute.xlu2 %1781  ;;  %3988 = vst.msk [vmem:[#allocation2 + $0xe0] sm:$0x1] %vm3981_vm3, %v8814_v5 }
 0x204   : > { %1856 = vst.msk [vmem:[#allocation2 + $0x180] sm:$0xff] %vm1833_vm5, %v1782_v48 }
 0x205   : > { %3989 = vst.msk [vmem:[#allocation2 + $0x100] sm:$0x1] %vm3981_vm3, %v8814_v5 }
 0x206   : > { %v1952_v16 = vpop.permute.xlu1 %1951 }
 0x207   : > { %v1774_v60 = vpop.permute.xlu0 %1773  ;;  %v8990_v62 = vld [vmem:[#allocation2 + $0x130] sm:$0xff] }
 0x208   : > { %1852 = vst.msk [vmem:[#allocation2 + $0x140] sm:$0xff] %vm1833_vm5, %v1774_v60  ;;  %6122 = vmatmul.msk.f32.gmra.mxu0 %vm2093_vm2, %v8829_v3  ;;  %v8970_v45 = vld [vmem:[#allocation2 + $0x120] sm:$0xff] }
 0x209   : > { %2031 = vst.msk [vmem:[#allocation2 + $0x140] sm:$0xff] %vm2011_vm11, %v1952_v16  ;;  %6166 = vmatmul.msk.f32.gmra.mxu1 %vm2093_vm2, %v8794_v30  ;;  %6169 = vmatmul.msk.f32.gmra.mxu3 %vm2093_vm2, %v8933_v52 }
 0x20a   : > { %6127 = vmatmul.msk.f32.gmra.mxu2 %vm2093_vm2, %v8933_v52  ;;  %3990 = vst.msk [vmem:[#allocation2 + $0x120] sm:$0x1] %vm3981_vm3, %v8814_v5  ;;  %v9014_v7 = vpop.f32.mrf.mxu0 }
 0x20b   : > { %v1962_v25 = vpop.permute.xlu2 %1961 }
 0x20e   : > { %v1778_v57 = vpop.permute.xlu1 %1777 }
 0x20f   : > { %v1954_v41 = vpop.permute.xlu0 %1953  ;;  %1854 = vst.msk [vmem:[#allocation2 + $0x160] sm:$0xff] %vm1833_vm5, %v1778_v57 }
 0x210   : > { %6154 = vmatmul.msk.f32.vlgmr.msrb.gmra.mxu0 %vm2093_vm2, %v8525_v37  ;;  %2033 = vst.msk [vmem:[#allocation2 + $0x160] sm:$0xff] %vm2011_vm11, %v8856_v34  ;;  %v2912_v37 = vadd.f32 1.0, %v6633_v24  ;;  %v9000_v27 = vld [vmem:[#allocation2 + $0x140] sm:$0xff] }
 0x211   : > { %2032 = vst.msk [vmem:[#allocation2 + $0x150] sm:$0x7f] %vm2013_vm14, %v1954_v41  ;;  %6170 = vmatmul.msk.f32.gmra.mxu3 %vm2093_vm2, %v8970_v45 }
 0x212   : > { %6128 = vmatmul.msk.f32.gmra.mxu2 %vm2093_vm2, %v8970_v45  ;;  %6634 = vrcp.f32 %v2912_v37  ;;  %3991 = vst.msk [vmem:[#allocation2 + $0x140] sm:$0x1] %vm3981_vm3, %v8814_v5  ;;  %v2924_v36 = vand.u32 2147483648, %v2912_v37  ;;  %vm2918_vm4 = vweird.f32 %v2912_v37  ;;  %v2922_v61 = vand.u32 2147483647, %v2912_v37  ;;  %v9035_v31 = vpop.f32.mrf.mxu0 }
 0x213   : > { %v1788_v10 = vpop.permute.xlu2 %1787 }
 0x214   : > { %1859 = vst.msk [vmem:[#allocation2 + $0x1b0] sm:$0xff] %vm1833_vm5, %v1788_v10  ;;  %v2925_v17 = vor.u32 1.1754944e-38, %v2924_v36  ;;  %vm2923_vm6 = vcmp.eq.f32.partialorder %v2922_v61, 8.507059e+37 }
 0x216   : > { %v1958_v38 = vpop.permute.xlu1 %1957 }
 0x217   : > { %v1780_v6 = vpop.permute.xlu0 %1779  ;;  %v9004_v18 = vld [vmem:[#allocation2 + $0x160] sm:$0xff] }
 0x218   : > { %1855 = vst.msk [vmem:[#allocation2 + $0x170] sm:$0xff] %vm1833_vm5, %v1780_v6  ;;  %6155 = vmatmul.msk.f32.gmra.mxu0 %vm2093_vm2, %v8584_v32  ;;  %v6635_v32 = vpop.eup %6634  ;;  %v9026_v53 = vld [vmem:[#allocation2 + $0x150] sm:$0xff] }
 0x219   : > { %2034 = vst.msk [vmem:[#allocation2 + $0x170] sm:$0x7f] %vm2013_vm14, %v1958_v38  ;;  %6171 = vmatmul.msk.f32.gmra.mxu3 %vm2093_vm2, %v8990_v62  ;;  %v2914_v39 = vmul.f32 %v6635_v32, %v2912_v37  ;;  %vm2919_vm7 = vweird.f32 %v6635_v32 }
 0x21a   : > { %6129 = vmatmul.msk.f32.gmra.mxu2 %vm2093_vm2, %v8990_v62  ;;  %3992 = vst.msk [vmem:[#allocation2 + $0x160] sm:$0x1] %vm3981_vm3, %v8814_v5  ;;  %vm2920_vm12 = vmor %vm2918_vm4, %vm2919_vm7 }
 0x21b   : > { %v2915_v47 = vsub.f32 1.0, %v2914_v39 }
 0x21d   : > { %v1968_v14 = vpop.permute.xlu2 %1967  ;;  %v2916_v35 = vmul.f32 %v6635_v32, %v2915_v47 }
 0x21e   : > { %v1784_v4 = vpop.permute.xlu1 %1783 }
 0x21f   : > { %1857 = vst.msk [vmem:[#allocation2 + $0x190] sm:$0xff] %vm1833_vm5, %v1784_v4  ;;  %v2917_v23 = vadd.f32 %v6635_v32, %v2916_v35 }
 0x220   : > { %v1960_v42 = vpop.permute.xlu0 %1959  ;;  %6156 = vmatmul.msk.f32.gmra.mxu0 %vm2093_vm2, %v8623_v33  ;;  %2036 = vst.msk [vmem:[#allocation2 + $0x190] sm:$0x7f] %vm2013_vm14, %v1962_v25  ;;  %v9054_v9 = vld [vmem:[#allocation2 + $0x170] sm:$0xff] }
 0x221   : > { %2035 = vst.msk [vmem:[#allocation2 + $0x180] sm:$0xff] %vm2011_vm11, %v1960_v42  ;;  %6172 = vmatmul.msk.f32.gmra.mxu3 %vm2093_vm2, %v9000_v27  ;;  %v2921_v34 = vsel %vm2920_vm12, %v6635_v32, %v2917_v23  ;;  %vm4369_vm12 = vcmask 522240  }
 0x222   : > { %6130 = vmatmul.msk.f32.gmra.mxu2 %vm2093_vm2, %v9000_v27  ;;  %v2926_v8 = vsel %vm2923_vm6, %v2925_v17, %v2921_v34 }
 0x223   : > { %v2927_v54 = vmul.f32 %v2926_v8, %v8937_v29 }
 0x225   : > { %v1794_v22 = vpop.permute.xlu2 %1793  ;;  %2961 = vmatmul.f32.vlgmr.msrb.gmra.mxu1 %v2927_v54 }
 0x226   : > { %1862 = vst.msk [vmem:[#allocation2 + $0x1e0] sm:$0xff] %vm1833_vm5, %v1794_v22 }
 0x228   : > { %v1786_v11 = vpop.permute.xlu0 %1785  ;;  %6198 = vmatmul.msk.f32.vlgmr.msra.gmra.mxu0 %vm2093_vm2, %v8623_v33  ;;  %v9031_v28 = vld [vmem:[#allocation2 + $0x180] sm:$0xff] }
 0x229   : > { %v1964_v19 = vpop.permute.xlu1 %1963  ;;  %1858 = vst.msk [vmem:[#allocation2 + $0x1a0] sm:$0xff] %vm1833_vm5, %v1786_v11  ;;  %6173 = vmatmul.msk.f32.gmra.mxu3 %vm2093_vm2, %v9026_v53 }
 0x22a   : > { %2037 = vst.msk [vmem:[#allocation2 + $0x1a0] sm:$0xff] %vm2011_vm11, %v1964_v19  ;;  %6131 = vmatmul.msk.f32.gmra.mxu2 %vm2093_vm2, %v9026_v53 }
 0x22b   : > { %3993 = vst.msk [vmem:[#allocation2 + $0x180] sm:$0x1] %vm3981_vm3, %v8814_v5 }
 0x22f   : > { %v1974_v33 = vpop.permute.xlu2 %1973 }
 0x230   : > { %v1966_v49 = vpop.permute.xlu0 %1965  ;;  %6199 = vmatmul.msk.f32.gmra.mxu0 %vm2093_vm2, %v8592_v46 }
 0x231   : > { %v1790_v50 = vpop.permute.xlu1 %1789  ;;  %2038 = vst.msk [vmem:[#allocation2 + $0x1b0] sm:$0x7f] %vm2013_vm14, %v1966_v49  ;;  %6174 = vmatmul.msk.f32.gmra.mxu3 %vm2093_vm2, %v9004_v18  ;;  %v9059_v16 = vld [vmem:[#allocation2 + $0x1a0] sm:$0xff] }
 0x232   : > { %1860 = vst.msk [vmem:[#allocation2 + $0x1c0] sm:$0xff] %vm1833_vm5, %v1790_v50  ;;  %6132 = vmatmul.msk.f32.gmra.mxu2 %vm2093_vm2, %v9004_v18 }
 0x233   : > { %2039 = vst.msk [vmem:[#allocation2 + $0x1c0] sm:$0xff] %vm2011_vm11, %v1968_v14 }
 0x234   : > { %3994 = vst.msk [vmem:[#allocation2 + $0x1a0] sm:$0x1] %vm3981_vm3, %v8814_v5 }
 0x235   : > { %v9048_v48 = vpop.f32.mrf.mxu0 }
 0x237   : > { %v1800_v51 = vpop.permute.xlu2 %1799 }
 0x238   : > { %1865 = vst.msk [vmem:[#allocation2 + $0x210] sm:$0xff] %vm1833_vm5, %v1800_v51  ;;  %v1792_v0 = vpop.permute.xlu0 %1791  ;;  %6200 = vmatmul.msk.f32.gmra.mxu0 %vm2093_vm2, %v8625_v13 }
 0x239   : > { %v1970_v46 = vpop.permute.xlu1 %1969  ;;  %1861 = vst.msk [vmem:[#allocation2 + $0x1d0] sm:$0xff] %vm1833_vm5, %v1792_v0  ;;  %6175 = vmatmul.msk.f32.gmra.mxu3 %vm2093_vm2, %v9054_v9 }
 0x23a   : > { %2040 = vst.msk [vmem:[#allocation2 + $0x1d0] sm:$0x7f] %vm2013_vm14, %v1970_v46  ;;  %6133 = vmatmul.msk.f32.gmra.mxu2 %vm2093_vm2, %v9054_v9  ;;  %v9069_v13 = vld [vmem:[#allocation2 + $0x1c0] sm:$0xff] }
 0x23b   : > { %3995 = vst.msk [vmem:[#allocation2 + $0x1c0] sm:$0x1] %vm3981_vm3, %v8814_v5 }
 0x23d   : > { %v9065_v60 = vpop.f32.mrf.mxu0 }
 0x23e   : > { %v9220_v61 = vpop.f32.mrf.mxu1 }
 0x240   : > { %6201 = vmatmul.msk.f32.gmra.mxu0 %vm2093_vm2, %v8682_v63  ;;  %v9084_v63 = vld [vmem:[#allocation2 + $0x190] sm:$0xff] }
 0x241   : > { %6176 = vmatmul.msk.f32.gmra.mxu3 %vm2093_vm2, %v9031_v28  ;;  %v2362_v41 = vld [vmem:[#allocation2 + $0x1d0] sm:$0xff] }
 0x242   : > { %6134 = vmatmul.msk.f32.gmra.mxu2 %vm2093_vm2, %v9031_v28 }
 0x245   : > { %v1796_v15 = vpop.permute.xlu1 %1795  ;;  %v9077_v55 = vpop.f32.mrf.mxu0 }
 0x246   : > { %1863 = vst.msk [vmem:[#allocation2 + $0x1f0] sm:$0xff] %vm1833_vm5, %v1796_v15  ;;  %v9230_v22 = vpop.f32.mrf.mxu1 }
 0x247   : > { %2042 = vst.msk [vmem:[#allocation2 + $0x1f0] sm:$0x7f] %vm2013_vm14, %v1974_v33 }
 0x248   : > { %v1972_v29 = vpop.permute.xlu0 %1971  ;;  %6202 = vmatmul.msk.f32.gmra.mxu0 %vm2093_vm2, %v8730_v21 }
 0x249   : > { %2041 = vst.msk [vmem:[#allocation2 + $0x1e0] sm:$0xff] %vm2011_vm11, %v1972_v29  ;;  %6177 = vmatmul.msk.f32.gmra.mxu3 %vm2093_vm2, %v9084_v63 }
 0x24a   : > { %6135 = vmatmul.msk.f32.gmra.mxu2 %vm2093_vm2, %v9084_v63 }
 0x24d   : > { %v9090_v2 = vpop.f32.mrf.mxu0 }
 0x24e   : > { %v1976_v59 = vpop.permute.xlu1 %1975  ;;  %v2508_v19 = vpop.f32.mrf.mxu1 }
 0x250   : > { %v1798_v20 = vpop.permute.xlu0 %1797  ;;  %6203 = vmatmul.msk.f32.gmra.mxu0 %vm2093_vm2, %v8753_v12  ;;  %v9098_v21 = vld [vmem:[#allocation2 + $0x1e0] sm:$0xff]  ;;  %v2360_v12 = vld [vmem:[#allocation2 + $0x1b0] sm:$0xff] }
 0x251   : > { %1864 = vst.msk [vmem:[#allocation2 + $0x200] sm:$0xff] %vm1833_vm5, %v1798_v20  ;;  %6178 = vmatmul.msk.f32.gmra.mxu3 %vm2093_vm2, %v9059_v16  ;;  %vm11984_vm5 = vcmask 523264  }
 0x252   : > { %2043 = vst.msk [vmem:[#allocation2 + $0x200] sm:$0xff] %vm2011_vm11, %v1976_v59  ;;  %6136 = vmatmul.msk.f32.gmra.mxu2 %vm2093_vm2, %v9059_v16 }
 0x253   : > { %3996 = vst.msk [vmem:[#allocation2 + $0x1e0] sm:$0x1] %vm3981_vm3, %v8814_v5 }
 0x254   : > { %536 = vst.msk [vmem:[#allocation2 + $0x8] sm:$0xff] %vm11984_vm5, %v8814_v5 }
 0x255   : > { %v9104_v25 = vpop.f32.mrf.mxu0  ;;  %538 = vst.msk [vmem:[#allocation2 + $0x18] sm:$0xff] %vm11984_vm5, %v8814_v5 }
 0x256   : > { %541 = vst.msk [vmem:[#allocation2 + $0x228] sm:$0xff] %vm11984_vm5, %v8814_v5  ;;  %v2511_v49 = vpop.f32.mrf.mxu1 }
 0x257   : > { %543 = vst.msk [vmem:[#allocation2 + $0x238] sm:$0xff] %vm11984_vm5, %v8814_v5 }
 0x258   : > { %v1978_v26 = vpop.permute.xlu0 %1977  ;;  %6204 = vmatmul.msk.f32.gmra.mxu0 %vm2093_vm2, %v8776_v1 }
 0x259   : > { %2044 = vst.msk [vmem:[#allocation2 + $0x210] sm:$0x7f] %vm2013_vm14, %v1978_v26  ;;  %6179 = vmatmul.msk.f32.gmra.mxu3 %vm2093_vm2, %v2360_v12  ;;  %v9115_v57 = vld [vmem:[#allocation2 + $0x200] sm:$0xff] }
 0x25a   : > { %6137 = vmatmul.msk.f32.gmra.mxu2 %vm2093_vm2, %v2360_v12  ;;  %3997 = vst.msk [vmem:[#allocation2 + $0x200] sm:$0x1] %vm3981_vm3, %v8814_v5 }
 0x25d   : > { %v9111_v58 = vpop.f32.mrf.mxu0 }
 0x25e   : > { %v2514_v46 = vpop.f32.mrf.mxu1 }
 0x260   : > { %6205 = vmatmul.msk.f32.gmra.mxu0 %vm2093_vm2, %v8796_v43  ;;  %v2366_v37 = vld [vmem:[#allocation2 + $0x210] sm:$0xff] }
 0x261   : > { %6180 = vmatmul.msk.f32.gmra.mxu3 %vm2093_vm2, %v9069_v13 }
 0x262   : > { %6138 = vmatmul.msk.f32.gmra.mxu2 %vm2093_vm2, %v9069_v13 }
 0x265   : > { %v9123_v1 = vpop.f32.mrf.mxu0 }
 0x266   : > { %v2517_v15 = vpop.f32.mrf.mxu1 }
 0x268   : > { %6206 = vmatmul.msk.f32.gmra.mxu0 %vm2093_vm2, %v8829_v3  ;;  %v2364_v3 = vld [vmem:[#allocation2 + $0x1f0] sm:$0xff] }
 0x269   : > { %6181 = vmatmul.msk.f32.gmra.mxu3 %vm2093_vm2, %v2362_v41 }
 0x26a   : > { %6139 = vmatmul.msk.f32.gmra.mxu2 %vm2093_vm2, %v2362_v41 }
 0x26d   : > { %v9129_v43 = vpop.f32.mrf.mxu0 }
 0x270   : > { %6207 = vmatmul.msk.f32.gmra.mxu0 %vm2093_vm2, %v8769_v40 }
 0x271   : > { %6182 = vmatmul.msk.f32.gmra.mxu3 %vm2093_vm2, %v9098_v21 }
 0x272   : > { %6140 = vmatmul.msk.f32.gmra.mxu2 %vm2093_vm2, %v9098_v21 }
 0x275   : > { %v9137_v24 = vpop.f32.mrf.mxu0 }
 0x278   : > { %6208 = vmatmul.msk.f32.gmra.mxu0 %vm2093_vm2, %v8794_v30 }
 0x279   : > { %6183 = vmatmul.msk.f32.gmra.mxu3 %vm2093_vm2, %v2364_v3 }
 0x27a   : > { %6141 = vmatmul.msk.f32.gmra.mxu2 %vm2093_vm2, %v2364_v3 }
 0x27c   : > { %v9207_v39 = vpop.f32.mrf.mxu3 }
 0x27d   : > { %v9143_v10 = vpop.f32.mrf.mxu0 }
 0x280   : > { %6209 = vmatmul.msk.f32.gmra.mxu0 %vm2093_vm2, %v8838_v56 }
 0x281   : > { %6184 = vmatmul.msk.f32.gmra.mxu3 %vm2093_vm2, %v9115_v57 }
 0x284   : > { %v9217_v47 = vpop.f32.mrf.mxu3 }
 0x285   : > { %v9149_v40 = vpop.f32.mrf.mxu0 }
 0x288   : > { %6210 = vmatmul.msk.f32.gmra.mxu0 %vm2093_vm2, %v8886_v44 }
 0x289   : > { %6185 = vmatmul.msk.f32.gmra.mxu3 %vm2093_vm2, %v2366_v37 }
 0x28c   : > { %v9228_v23 = vpop.f32.mrf.mxu3 }
 0x28d   : > { %v9160_v30 = vpop.f32.mrf.mxu0 }
 0x290   : > { %6211 = vmatmul.msk.f32.gmra.mxu0 %vm2093_vm2, %v8933_v52 }
 0x294   : > { %v9237_v54 = vpop.f32.mrf.mxu3 }
 0x295   : > { %v9166_v56 = vpop.f32.mrf.mxu0 }
 0x298   : > { %6212 = vmatmul.msk.f32.gmra.mxu0 %vm2093_vm2, %v8970_v45 }
 0x29d   : > { %v9170_v44 = vpop.f32.mrf.mxu0 }
 0x2a0   : > { %6213 = vmatmul.msk.f32.gmra.mxu0 %vm2093_vm2, %v8990_v62 }
 0x2a5   : > { %v9174_v38 = vpop.f32.mrf.mxu0 }
 0x2a8   : > { %6214 = vmatmul.msk.f32.gmra.mxu0 %vm2093_vm2, %v9000_v27 }
 0x2ad   : > { %v9178_v6 = vpop.f32.mrf.mxu0 }
 0x2b0   : > { %6215 = vmatmul.msk.f32.gmra.mxu0 %vm2093_vm2, %v9026_v53 }
 0x2b5   : > { %v9182_v52 = vpop.f32.mrf.mxu0 }
 0x2b8   : > { %6216 = vmatmul.msk.f32.gmra.mxu0 %vm2093_vm2, %v9004_v18  ;;  %v9205_v18 = vpop.f32.mrf.mxu2 }
 0x2bd   : > { %v9186_v45 = vpop.f32.mrf.mxu0 }
 0x2c0   : > { %6217 = vmatmul.msk.f32.gmra.mxu0 %vm2093_vm2, %v9054_v9  ;;  %v9213_v36 = vpop.f32.mrf.mxu2 }
 0x2c5   : > { %v9190_v62 = vpop.f32.mrf.mxu0 }
 0x2c8   : > { %6218 = vmatmul.msk.f32.gmra.mxu0 %vm2093_vm2, %v9031_v28  ;;  %v9224_v17 = vpop.f32.mrf.mxu2  ;;  %v9245_v28 = vpop.f32.mrf.mxu3 }
 0x2cd   : > { %v9194_v27 = vpop.f32.mrf.mxu0 }
 0x2d0   : > { %6219 = vmatmul.msk.f32.gmra.mxu0 %vm2093_vm2, %v9084_v63  ;;  %v9235_v8 = vpop.f32.mrf.mxu2  ;;  %v9254_v0 = vpop.f32.mrf.mxu3 }
 0x2d5   : > { %v9198_v32 = vpop.f32.mrf.mxu0 }
 0x2d8   : > { %6220 = vmatmul.msk.f32.gmra.mxu0 %vm2093_vm2, %v9059_v16  ;;  %v9243_v53 = vpop.f32.mrf.mxu2 }
 0x2dd   : > { %v9202_v14 = vpop.f32.mrf.mxu0 }
 0x2e0   : > { %6221 = vmatmul.msk.f32.gmra.mxu0 %vm2093_vm2, %v2360_v12  ;;  %v9250_v50 = vpop.f32.mrf.mxu2 }
 0x2e5   : > { %v9209_v4 = vpop.f32.mrf.mxu0 }
 0x2e8   : > { %6222 = vmatmul.msk.f32.gmra.mxu0 %vm2093_vm2, %v9069_v13  ;;  %v9260_v16 = vpop.f32.mrf.mxu2  ;;  %v9264_v13 = vpop.f32.mrf.mxu3 }
 0x2ed   : > { %v9215_v42 = vpop.f32.mrf.mxu0 }
 0x2f0   : > { %6223 = vmatmul.msk.f32.gmra.mxu0 %vm2093_vm2, %v2362_v41  ;;  %v9268_v63 = vpop.f32.mrf.mxu2  ;;  %v9270_v59 = vpop.f32.mrf.mxu3 }
 0x2f1   : > { %12089 = vst [vmem:[#allocation17_spill] sm:$0xff] %v9270_v59 }
 0x2f5   : > { %v9222_v35 = vpop.f32.mrf.mxu0 }
 0x2f6   : > { %12082 = vst [vmem:[#allocation10_spill] sm:$0xff] %v9222_v35 }
 0x2f8   : > { %6224 = vmatmul.msk.f32.gmra.mxu0 %vm2093_vm2, %v9098_v21  ;;  %v2520_v21 = vpop.f32.mrf.mxu1  ;;  %v9274_v26 = vpop.f32.mrf.mxu2 }
 0x2f9   : > { %v9276_v12 = vpop.f32.mrf.mxu3 }
 0x2fa   : > { %12091 = vst [vmem:[#allocation19_spill] sm:$0xff] %v9276_v12 }
 0x2fd   : > { %v9232_v34 = vpop.f32.mrf.mxu0 }
 0x2fe   : > { %12083 = vst [vmem:[#allocation11_spill] sm:$0xff] %v9232_v34 }
 0x300   : > { %6225 = vmatmul.msk.f32.gmra.mxu0 %vm2093_vm2, %v2364_v3  ;;  %v2523_v41 = vpop.f32.mrf.mxu1 }
 0x305   : > { %v9239_v11 = vpop.f32.mrf.mxu0 }
 0x306   : > { %12084 = vst [vmem:[#allocation12_spill] sm:$0xff] %v9239_v11 }
 0x308   : > { %6226 = vmatmul.msk.f32.gmra.mxu0 %vm2093_vm2, %v9115_v57 }
 0x30d   : > { %v9247_v33 = vpop.f32.mrf.mxu0 }
 0x30e   : > { %12085 = vst [vmem:[#allocation13_spill] sm:$0xff] %v9247_v33 }
 0x310   : > { %6227 = vmatmul.msk.f32.gmra.mxu0 %vm2093_vm2, %v2366_v37  ;;  %v9284_v37 = vpop.f32.mrf.mxu3 }
 0x311   : > { %12095 = vst [vmem:[#allocation23_spill] sm:$0xff] %v9284_v37 }
 0x315   : > { %v9252_v51 = vpop.f32.mrf.mxu0 }
 0x316   : > { %12086 = vst [vmem:[#allocation14_spill] sm:$0xff] %v9252_v51 }
 0x318   : > { %6228 = vmatmul.msk.f32.gmra.mxu0 %vm2093_vm2, %v8814_v5 }
 0x31d   : > { %v9258_v9 = vpop.f32.mrf.mxu0 }
 0x31e   : > { %12087 = vst [vmem:[#allocation15_spill] sm:$0xff] %v9258_v9 }
 0x320   : > { %6229 = vmatmul.msk.f32.gmra.mxu0 %vm2093_vm2, %v8814_v5  ;;  %v9280_v5 = vpop.f32.mrf.mxu2 }
 0x321   : > { %12093 = vst [vmem:[#allocation21_spill] sm:$0xff] %v9280_v5 }
 0x325   : > { %v9266_v29 = vpop.f32.mrf.mxu0 }
 0x326   : > { %12088 = vst [vmem:[#allocation16_spill] sm:$0xff] %v9266_v29  ;;  %v2526_v29 = vpop.f32.mrf.mxu1 }
 0x328   : > { %v9288_v51 = vpop.f32.mrf.mxu2 }
 0x329   : > { %12097 = vst [vmem:[#allocation25_spill] sm:$0xff] %v9288_v51 }
 0x32d   : > { %v9272_v20 = vpop.f32.mrf.mxu0 }
 0x32e   : > { %12090 = vst [vmem:[#allocation18_spill] sm:$0xff] %v9272_v20  ;;  %v9290_v20 = vpop.f32.mrf.mxu3  ;;  %v2529_v33 = vpop.f32.mrf.mxu1 }
 0x32f   : > { %12098 = vst [vmem:[#allocation26_spill] sm:$0xff] %v9290_v20 }
 0x330   : > { %v9294_v12 = vpop.f32.mrf.mxu2 }
 0x331   : > { %12100 = vst [vmem:[#allocation28_spill] sm:$0xff] %v9294_v12 }
 0x335   : > { %v9278_v57 = vpop.f32.mrf.mxu0 }
 0x336   : > { %12092 = vst [vmem:[#allocation20_spill] sm:$0xff] %v9278_v57  ;;  %v9299_v57 = vld [vmem:[%s11960_s6] ss:$0 sm:$0xff]  ;;  %v2962_v37 = vpop.f32.mrf.mxu1 }
 0x337   : > { %v2304_v20 = vadd.f32 %v9299_v57, %v9035_v31  ;;  %v2306_v12 = vadd.f32 %v9299_v57, %v9065_v60  ;;  %v2307_v59 = vadd.f32 %v9299_v57, %v9077_v55  ;;  %v2308_v31 = vadd.f32 %v9299_v57, %v9090_v2 }
 0x338   : > { %v2310_v60 = vadd.f32 %v9299_v57, %v9111_v58 }
 0x339   : > { %v2590_v5 = vadd.f32 %v9166_v56, %v2304_v20  ;;  %v2311_v56 = vadd.f32 %v9299_v57, %v9123_v1  ;;  %v2592_v2 = vadd.f32 %v9220_v61, %v2306_v12  ;;  %v2593_v58 = vadd.f32 %v9230_v22, %v2307_v59 }
 0x33a   : > { %v2314_v1 = vadd.f32 %v9299_v57, %v9143_v10  ;;  %v2316_v61 = vadd.f32 %v9299_v57, %v9205_v18  ;;  %v2596_v22 = vadd.f32 %v2514_v46, %v2310_v60  ;;  %v2323_v60 = vadd.f32 %v9299_v57, %v9268_v63 }
 0x33b   : > { %v2877_v35 = vadd.f32 %v9178_v6, %v2590_v5  ;;  %v9338_v6 = vpop.f32.mrf.mxu2  ;;  %v2879_v10 = vadd.f32 %v9186_v45, %v2592_v2 }
 0x33c   : > { %v9359_v18 = vadd.f32 %v9207_v39, %v2316_v61 }
 0x33d   : > { %v9282_v3 = vpop.f32.mrf.mxu0 }
 0x33e   : > { %12094 = vst [vmem:[#allocation22_spill] sm:$0xff] %v9282_v3  ;;  %v9301_v3 = vpop.f32.mrf.mxu3 }
 0x33f   : > { %12101 = vst [vmem:[#allocation29_spill] sm:$0xff] %v9301_v3  ;;  %v2305_v3 = vadd.f32 %v9299_v57, %v9048_v48  ;;  %v2312_v48 = vadd.f32 %v9299_v57, %v9129_v43 }
 0x341   : > { %v2591_v55 = vadd.f32 %v9170_v44, %v2305_v3  ;;  %v2598_v59 = vadd.f32 %v2520_v21, %v2312_v48 }
 0x343   : > { %v2878_v43 = vadd.f32 %v9182_v52, %v2591_v55  ;;  %v2317_v52 = vadd.f32 %v9299_v57, %v9213_v36  ;;  %v2319_v36 = vadd.f32 %v9299_v57, %v9235_v8  ;;  %v2321_v8 = vadd.f32 %v9299_v57, %v9250_v50  ;;  %v9414_v3 = vpop.f32.mrf.mxu2 }
 0x344   : > { %v2322_v50 = vadd.f32 %v9299_v57, %v9260_v16 }
 0x345   : > { %v9286_v9 = vpop.f32.mrf.mxu0  ;;  %v9371_v45 = vadd.f32 %v9217_v47, %v2317_v52  ;;  %v9389_v47 = vadd.f32 %v9237_v54, %v2319_v36  ;;  %v9409_v5 = vadd.f32 %v9254_v0, %v2321_v8  ;;  %v2883_v0 = vadd.f32 %v9202_v14, %v2596_v22  ;;  %v12104_v36 = vld [vmem:[#allocation17_spill] sm:$0xff] }
 0x346   : > { %12096 = vst [vmem:[#allocation24_spill] sm:$0xff] %v9286_v9  ;;  %v2944_v9 = vld [vmem:[%s11962_s8] sm:$0x1]  ;;  %v9441_v63 = vadd.f32 %v9264_v13, %v2322_v50  ;;  %v12106_v50 = vld [vmem:[#allocation21_spill] sm:$0xff] }
 0x347   : > { %v2963_v34 = vadd.f32 %v2962_v37, %v2944_v9 }
 0x349   : > { %v9335_v9 = vperm.slane %v2963_v34, 0 }
 0x34b   : > { %v9349_v34 = vadd.f32 %v9335_v9, %v2877_v35  ;;  %v2318_v35 = vadd.f32 %v9299_v57, %v9224_v17  ;;  %v9367_v46 = vadd.f32 %v9335_v9, %v2878_v43  ;;  %v2320_v17 = vadd.f32 %v9299_v57, %v9243_v53 }
 0x34c   : > { %v2885_v43 = vadd.f32 %v9215_v42, %v2598_v59  ;;  %v9450_v22 = vadd.f32 %v9335_v9, %v2883_v0  ;;  %v9480_v0 = vpop.f32.mrf.mxu2 }
 0x34d   : > { %v9292_v11 = vpop.f32.mrf.mxu0  ;;  %v3068_v21 = vmul.f32 %v9349_v34, %v9349_v34  ;;  %v9380_v12 = vadd.f32 %v9228_v23, %v2318_v35  ;;  %v2999_v53 = vsel %vm11984_vm5, %v9349_v34, 0.0  ;;  %v12103_v35 = vld [vmem:[#allocation10_spill] sm:$0xff] }
 0x34e   : > { %12099 = vst [vmem:[#allocation27_spill] sm:$0xff] %v9292_v11  ;;  %v2303_v11 = vadd.f32 %v9299_v57, %v9014_v7 }
 0x350   : > { %v2589_v7 = vadd.f32 %v9160_v30, %v2303_v11  ;;  %v2594_v11 = vadd.f32 %v2508_v19, %v2308_v31  ;;  %v2597_v19 = vadd.f32 %v2517_v15, %v2311_v56  ;;  %v2880_v15 = vadd.f32 %v9190_v62, %v2593_v58 }
 0x351   : > { %v3001_v31 = vsel %vm11984_vm5, %v9367_v46, 0.0 }
 0x352   : > { %v2876_v30 = vadd.f32 %v9174_v38, %v2589_v7  ;;  %v9351_v38 = vpop.f32.mrf.mxu3  ;;  %v2881_v62 = vadd.f32 %v9194_v27, %v2594_v11  ;;  %v3069_v27 = vmul.f32 %v9367_v46, %v9367_v46  ;;  %v9404_v54 = vadd.f32 %v9335_v9, %v2880_v15 }
 0x353   : > { %v2884_v14 = vadd.f32 %v9209_v4, %v2597_v19  ;;  %v2324_v4 = vadd.f32 %v9299_v57, %v9274_v26 }
 0x354   : > { %v9423_v16 = vadd.f32 %v9335_v9, %v2881_v62  ;;  %v3071_v58 = vmul.f32 %v9404_v54, %v9404_v54  ;;  %v3005_v61 = vsel %vm11984_vm5, %v9404_v54, 0.0  ;;  %v9467_v62 = vadd.f32 %v9335_v9, %v2885_v43 }
 0x355   : > { %v9308_v51 = vpop.f32.mrf.mxu0  ;;  %v9460_v52 = vadd.f32 %v9335_v9, %v2884_v14 }
 0x356   : > { %12102 = vst [vmem:[#allocation30_spill] sm:$0xff] %v9308_v51  ;;  %v2309_v51 = vadd.f32 %v9299_v57, %v9104_v25  ;;  %v2313_v25 = vadd.f32 %v9299_v57, %v9137_v24  ;;  %v2315_v24 = vadd.f32 %v9299_v57, %v9149_v40  ;;  %v9362_v40 = vadd.f32 %v9335_v9, %v2876_v30 }
 0x357   : > { %v3106_v42 = vsel %vm11984_vm5, %v3071_v58, 0.0  ;;  %v3007_v59 = vsel %vm11984_vm5, %v9423_v16, 0.0  ;;  %v3076_v43 = vmul.f32 %v9467_v62, %v9467_v62 }
 0x358   : > { %v2595_v44 = vadd.f32 %v2511_v49, %v2309_v51  ;;  %v2599_v49 = vadd.f32 %v2523_v41, %v2313_v25  ;;  %v2600_v51 = vadd.f32 %v2526_v29, %v2314_v1  ;;  %v9375_v39 = vadd.f32 %v2529_v33, %v2315_v24 }
 0x359   : > { %v9385_v29 = vadd.f32 %v9335_v9, %v2879_v10  ;;  %v3067_v33 = vmul.f32 %v9362_v40, %v9362_v40  ;;  %v9397_v41 = vadd.f32 %v9245_v28, %v2320_v17  ;;  %v3100_v28 = vsel %vm11984_vm5, %v3068_v21, 0.0 }
 0x35a   : > { %v2882_v23 = vadd.f32 %v9198_v32, %v2595_v44  ;;  %v2998_v32 = vsel %vm11984_vm5, %v9362_v40, 0.0  ;;  %v9432_v2 = vpop.f32.mrf.mxu3  ;;  %v3102_v25 = vsel %vm11984_vm5, %v3069_v27, 0.0  ;;  %v3072_v24 = vmul.f32 %v9423_v16, %v9423_v16  ;;  %v12105_v27 = vld [vmem:[#allocation11_spill] sm:$0xff] }
 0x35b   : > { %v3070_v7 = vmul.f32 %v9385_v29, %v9385_v29  ;;  %v3099_v56 = vsel %vm11984_vm5, %v3067_v33, 0.0  ;;  %v3000_v48 = vadd.f32 %v2999_v53, %v2998_v32  ;;  %v3003_v30 = vsel %vm11984_vm5, %v9385_v29, 0.0 }
 0x35c   : > { %v9430_v55 = vadd.f32 %v9335_v9, %v2882_v23  ;;  %v3101_v11 = vadd.f32 %v3100_v28, %v3099_v56  ;;  %v2886_v15 = vadd.f32 %v12103_v35, %v2599_v49  ;;  %v9464_v21 = vadd.f32 %v12104_v36, %v2323_v60 }
 0x35d   : > { %v9353_v20 = vpop.f32.mrf.mxu0  ;;  %v3002_v1 = vadd.f32 %v3001_v31, %v3000_v48  ;;  %v3104_v44 = vsel %vm11984_vm5, %v3070_v7, 0.0  ;;  %v3108_v33 = vsel %vm11984_vm5, %v3072_v24, 0.0  ;;  %v3074_v53 = vmul.f32 %v9450_v22, %v9450_v22 }
 0x35e   : > { %v3103_v13 = vadd.f32 %v3102_v25, %v3101_v11  ;;  %v3073_v10 = vmul.f32 %v9430_v55, %v9430_v55  ;;  %v3009_v23 = vsel %vm11984_vm5, %v9430_v55, 0.0  ;;  %v2887_v49 = vadd.f32 %v12105_v27, %v2600_v51  ;;  %v12107_v51 = vld [vmem:[#allocation12_spill] sm:$0xff] }
 0x35f   : > { %v3004_v19 = vadd.f32 %v3003_v30, %v3002_v1  ;;  %v2325_v32 = vadd.f32 %v9299_v57, %v12106_v50  ;;  %v3011_v60 = vsel %vm11984_vm5, %v9450_v22, 0.0  ;;  %v3075_v56 = vmul.f32 %v9460_v52, %v9460_v52  ;;  %v12108_v30 = vld [vmem:[#allocation19_spill] sm:$0xff] }
 0x360   : > { %v3105_v17 = vadd.f32 %v3104_v44, %v3103_v13  ;;  %v3110_v7 = vsel %vm11984_vm5, %v3073_v10, 0.0  ;;  %v9487_v48 = vadd.f32 %v9335_v9, %v2886_v15  ;;  %v2888_v25 = vadd.f32 %v12107_v51, %v9375_v39  ;;  %v12109_v39 = vld [vmem:[#allocation13_spill] sm:$0xff] }
 0x361   : > { %v3006_v26 = vadd.f32 %v3005_v61, %v3004_v19  ;;  %v9492_v58 = vadd.f32 %v12108_v30, %v2324_v4  ;;  %v3112_v44 = vsel %vm11984_vm5, %v3074_v53, 0.0  ;;  %v3013_v61 = vsel %vm11984_vm5, %v9460_v52, 0.0  ;;  %v12110_v4 = vld [vmem:[#allocation25_spill] sm:$0xff] }
 0x362   : > { %v3107_v28 = vadd.f32 %v3106_v42, %v3105_v17  ;;  %v9494_v1 = vpop.f32.mrf.mxu3  ;;  %v9502_v24 = vadd.f32 %v9335_v9, %v2887_v49  ;;  %v2889_v13 = vadd.f32 %v12109_v39, %v9359_v18  ;;  %v2326_v19 = vadd.f32 %v9299_v57, %v12110_v4  ;;  %v12112_v18 = vld [vmem:[#allocation23_spill] sm:$0xff]  ;;  %v9548_v39 = vpop.f32.mrf.mxu2 }
 0x363   : > { %v3008_v31 = vadd.f32 %v3007_v59, %v3006_v26  ;;  %v12111_v59 = vld [vmem:[#allocation14_spill] sm:$0xff]  ;;  %v3114_v15 = vsel %vm11984_vm5, %v3075_v56, 0.0  ;;  %v3015_v36 = vsel %vm11984_vm5, %v9467_v62, 0.0  ;;  %v3077_v17 = vmul.f32 %v9487_v48, %v9487_v48 }
 0x364   : > { %v3109_v14 = vadd.f32 %v3108_v33, %v3107_v28  ;;  %v2890_v35 = vadd.f32 %v12111_v59, %v9371_v45  ;;  %v9516_v26 = vadd.f32 %v9335_v9, %v2888_v25  ;;  %v9519_v33 = vadd.f32 %v12112_v18, %v2325_v32  ;;  %v12114_v32 = vld [vmem:[#allocation28_spill] sm:$0xff] }
 0x365   : > { %v9416_v37 = vpop.f32.mrf.mxu0  ;;  %v3010_v11 = vadd.f32 %v3009_v23, %v3008_v31  ;;  %v3116_v27 = vsel %vm11984_vm5, %v3076_v43, 0.0  ;;  %v3017_v45 = vsel %vm11984_vm5, %v9487_v48, 0.0  ;;  %v3078_v50 = vmul.f32 %v9502_v24, %v9502_v24  ;;  %v12113_v31 = vld [vmem:[#allocation15_spill] sm:$0xff]  ;;  %v12115_v43 = vld [vmem:[#allocation16_spill] sm:$0xff] }
 0x366   : > { %v3111_v10 = vadd.f32 %v3110_v7, %v3109_v14  ;;  %v9529_v28 = vadd.f32 %v9335_v9, %v2889_v13  ;;  %v2891_v7 = vadd.f32 %v12113_v31, %v9380_v12  ;;  %v9536_v25 = vadd.f32 %v9335_v9, %v2890_v35  ;;  %v12116_v12 = vld [vmem:[#allocation26_spill] sm:$0xff]  ;;  %v12119_v31 = vld [vmem:[#allocation29_spill] sm:$0xff] }
 0x367   : > { %v3012_v42 = vadd.f32 %v3011_v60, %v3010_v11  ;;  %v2327_v60 = vadd.f32 %v9299_v57, %v12114_v32  ;;  %v3118_v30 = vsel %vm11984_vm5, %v3077_v17, 0.0  ;;  %v3019_v14 = vsel %vm11984_vm5, %v9502_v24, 0.0 }
 0x368   : > { %v3113_v23 = vadd.f32 %v3112_v44, %v3111_v10  ;;  %v3079_v11 = vmul.f32 %v9516_v26, %v9516_v26  ;;  %v2892_v44 = vadd.f32 %v12115_v43, %v9389_v47  ;;  %v12117_v10 = vld [vmem:[#allocation18_spill] sm:$0xff]  ;;  %v3120_v59 = vsel %vm11984_vm5, %v3078_v50, 0.0 }
 0x369   : > { %v3014_v53 = vadd.f32 %v3013_v61, %v3012_v42  ;;  %v9546_v61 = vadd.f32 %v12116_v12, %v2326_v19  ;;  %v2893_v42 = vadd.f32 %v12117_v10, %v9397_v41  ;;  %v3021_v35 = vsel %vm11984_vm5, %v9516_v26, 0.0 }
 0x36a   : > { %v3115_v56 = vadd.f32 %v3114_v15, %v3113_v23  ;;  %v3080_v15 = vmul.f32 %v9529_v28, %v9529_v28  ;;  %v9558_v47 = vadd.f32 %v9335_v9, %v2891_v7  ;;  %v2328_v19 = vadd.f32 %v9299_v57, %v9338_v6 }
 0x36b   : > { %v3016_v51 = vadd.f32 %v3015_v36, %v3014_v53  ;;  %v9562_v36 = vpop.f32.mrf.mxu3  ;;  %v3081_v41 = vmul.f32 %v9536_v25, %v9536_v25  ;;  %v3122_v23 = vsel %vm11984_vm5, %v3079_v11, 0.0  ;;  %v3023_v53 = vsel %vm11984_vm5, %v9529_v28, 0.0 }
 0x36c   : > { %v3117_v13 = vadd.f32 %v3116_v27, %v3115_v56  ;;  %v9570_v27 = vadd.f32 %v9335_v9, %v2892_v44  ;;  %v2613_v6 = vadd.f32 %v12119_v31, %v2327_v60  ;;  %v9576_v56 = vadd.f32 %v9335_v9, %v2893_v42  ;;  %v12120_v60 = vld [vmem:[#allocation22_spill] sm:$0xff] }
 0x36d   : > { %v9469_v8 = vpop.f32.mrf.mxu0  ;;  %v3018_v4 = vadd.f32 %v3017_v45, %v3016_v51  ;;  %v12118_v45 = vld [vmem:[#allocation20_spill] sm:$0xff]  ;;  %v3025_v11 = vsel %vm11984_vm5, %v9536_v25, 0.0  ;;  %v2895_v43 = vadd.f32 %v12120_v60, %v9441_v63  ;;  %v2329_v44 = vadd.f32 %v9299_v57, %v9414_v3 }
 0x36e   : > { %v3119_v17 = vadd.f32 %v3118_v30, %v3117_v13  ;;  %v2894_v50 = vadd.f32 %v12118_v45, %v9409_v5  ;;  %v9583_v30 = vld [vmem:[%s11965_s11 + $0x38] sm:$0xff]  ;;  %v3082_v5 = vmul.f32 %v9558_v47, %v9558_v47  ;;  %v3027_v10 = vsel %vm11984_vm5, %v9558_v47, 0.0  ;;  %v12121_v63 = vld [vmem:[#allocation24_spill] sm:$0xff]  ;;  %v12122_v45 = vld [vmem:[#allocation27_spill] sm:$0xff] }
 0x36f   : > { %v3020_v18 = vadd.f32 %v3019_v14, %v3018_v4  ;;  %v3124_v14 = vsel %vm11984_vm5, %v3080_v15, 0.0  ;;  %3187 = vmatpush.msra.mxu1 %v9583_v30  ;;  %v3126_v4 = vsel %vm11984_vm5, %v3081_v41, 0.0  ;;  %v3083_v42 = vmul.f32 %v9570_v27, %v9570_v27 }
 0x370   : > { %v3121_v7 = vadd.f32 %v3120_v59, %v3119_v17  ;;  %v9601_v59 = vadd.f32 %v9335_v9, %v2894_v50  ;;  %v2614_v15 = vadd.f32 %v9351_v38, %v2328_v19  ;;  %v3128_v41 = vsel %vm11984_vm5, %v3082_v5, 0.0  ;;  %v2294_v38 = vpop.f32.mrf.mxu2 }
 0x371   : > { %v3022_v32 = vadd.f32 %v3021_v35, %v3020_v18  ;;  %v2896_v35 = vadd.f32 %v12121_v63, %v9464_v21  ;;  %v3084_v18 = vmul.f32 %v9576_v56, %v9576_v56  ;;  %v2897_v50 = vadd.f32 %v12122_v45, %v9492_v58 }
 0x372   : > { %v3123_v12 = vadd.f32 %v3122_v23, %v3121_v7  ;;  %v3029_v23 = vsel %vm11984_vm5, %v9570_v27, 0.0  ;;  %v2330_v21 = vadd.f32 %v9299_v57, %v9480_v0  ;;  %v12123_v7 = vld [vmem:[#allocation30_spill] sm:$0xff]  ;;  %v3085_v5 = vmul.f32 %v9601_v59, %v9601_v59 }
 0x373   : > { %v3024_v13 = vadd.f32 %v3023_v53, %v3022_v32  ;;  %v9612_v53 = vadd.f32 %v9335_v9, %v2895_v43  ;;  %v2898_v32 = vadd.f32 %v12123_v7, %v9519_v33  ;;  %v9626_v60 = vadd.f32 %v9335_v9, %v2896_v35  ;;  %v2580_v0 = vpop.f32.mrf.mxu3 }
 0x374   : > { %v3125_v17 = vadd.f32 %v3124_v14, %v3123_v12  ;;  %v3130_v14 = vsel %vm11984_vm5, %v3083_v42, 0.0  ;;  %v2615_v58 = vadd.f32 %v9432_v2, %v2329_v44  ;;  %v3033_v33 = vsel %vm11984_vm5, %v9601_v59, 0.0 }
 0x375   : > { %v9522_v49 = vpop.f32.mrf.mxu0  ;;  %v3026_v3 = vadd.f32 %v3025_v11, %v3024_v13  ;;  %v3031_v11 = vsel %vm11984_vm5, %v9576_v56, 0.0  ;;  %v3132_v13 = vsel %vm11984_vm5, %v3084_v18, 0.0  ;;  %v9635_v42 = vadd.f32 %v9335_v9, %v2897_v50 }
 0x376   : > { %v3127_v19 = vadd.f32 %v3126_v4, %v3125_v17  ;;  %v2899_v63 = vadd.f32 %v9353_v20, %v9546_v61  ;;  %v2331_v2 = vadd.f32 %v9299_v57, %v9548_v39  ;;  %v9642_v17 = vadd.f32 %v9335_v9, %v2898_v32 }
 0x377   : > { %v3028_v31 = vadd.f32 %v3027_v10, %v3026_v3  ;;  %v3086_v10 = vmul.f32 %v9612_v53, %v9612_v53  ;;  %v3134_v3 = vsel %vm11984_vm5, %v3085_v5, 0.0  ;;  %v3035_v18 = vsel %vm11984_vm5, %v9612_v53, 0.0 }
 0x378   : > { %v3129_v43 = vadd.f32 %v3128_v41, %v3127_v19  ;;  %v3087_v41 = vmul.f32 %v9626_v60, %v9626_v60  ;;  %v2616_v20 = vadd.f32 %v9494_v1, %v2330_v21  ;;  %v2901_v39 = vadd.f32 %v9469_v8, %v2614_v15  ;;  %v9666_v8 = vld [vmem:[%s11965_s11 + $0x30] sm:$0xff]  ;;  %v9671_v15 = vld [vmem:[%s11965_s11 + $0x28] sm:$0xff] }
 0x379   : > { %v3030_v12 = vadd.f32 %v3029_v23, %v3028_v31  ;;  %v2900_v23 = vadd.f32 %v9416_v37, %v2613_v6  ;;  %v3136_v50 = vsel %vm11984_vm5, %v3086_v10, 0.0  ;;  %v3037_v19 = vsel %vm11984_vm5, %v9626_v60, 0.0  ;;  %3188 = vmatpush.msra.mxu1 %v9666_v8 }
 0x37a   : > { %v3131_v44 = vadd.f32 %v3130_v14, %v3129_v43  ;;  %v3088_v31 = vmul.f32 %v9635_v42, %v9635_v42  ;;  %v9658_v7 = vadd.f32 %v9335_v9, %v2899_v63  ;;  %v2332_v32 = vadd.f32 %v9299_v57, %v2294_v38  ;;  %v2297_v43 = vpop.f32.mrf.mxu2  ;;  %v9688_v63 = vld [vmem:[%s11965_s11 + $0x20] sm:$0xff] }
 0x37b   : > { %v3032_v35 = vadd.f32 %v3031_v11, %v3030_v12  ;;  %v3089_v1 = vmul.f32 %v9642_v17, %v9642_v17  ;;  %v3138_v21 = vsel %vm11984_vm5, %v3087_v41, 0.0  ;;  %v3039_v38 = vsel %vm11984_vm5, %v9635_v42, 0.0  ;;  %3189 = vmatpush.msra.mxu1 %v9671_v15 }
 0x37c   : > { %v3133_v61 = vadd.f32 %v3132_v13, %v3131_v44  ;;  %v9677_v14 = vadd.f32 %v9335_v9, %v2900_v23  ;;  %v2902_v11 = vadd.f32 %v9522_v49, %v2615_v58  ;;  %v2617_v5 = vadd.f32 %v9562_v36, %v2331_v2  ;;  %v9701_v23 = vld [vmem:[%s11965_s11 + $0x18] sm:$0xff] }
 0x37d   : > { %v9578_v51 = vpop.f32.mrf.mxu0  ;;  %v3034_v45 = vadd.f32 %v3033_v33, %v3032_v35  ;;  %v9683_v33 = vadd.f32 %v9335_v9, %v2901_v39  ;;  %v3140_v44 = vsel %vm11984_vm5, %v3088_v31, 0.0  ;;  %v3041_v49 = vsel %vm11984_vm5, %v9642_v17, 0.0  ;;  %v2583_v35 = vpop.f32.mrf.mxu3  ;;  %3190 = vmatpush.msra.mxu1 %v9688_v63  ;;  %v9717_v31 = vld [vmem:[%s11965_s11 + $0x10] sm:$0xff] }
 0x37e   : > { %v3135_v37 = vadd.f32 %v3134_v3, %v3133_v61  ;;  %v3090_v36 = vmul.f32 %v9658_v7, %v9658_v7  ;;  %v2903_v58 = vadd.f32 %v9578_v51, %v2616_v20  ;;  %v2618_v2 = vadd.f32 %v2580_v0, %v2332_v32 }
 0x37f   : > { %v3036_v6 = vadd.f32 %v3035_v18, %v3034_v45  ;;  %v3142_v41 = vsel %vm11984_vm5, %v3089_v1, 0.0  ;;  %v3043_v61 = vsel %vm11984_vm5, %v9658_v7, 0.0  ;;  %v3091_v45 = vmul.f32 %v9677_v14, %v9677_v14  ;;  %3191 = vmatpush.msra.mxu1 %v9701_v23 }
 0x380   : > { %v3137_v12 = vadd.f32 %v3136_v50, %v3135_v37  ;;  %v9708_v51 = vadd.f32 %v9335_v9, %v2902_v11  ;;  %v2333_v20 = vadd.f32 %v9299_v57, %v2297_v43  ;;  %v3144_v32 = vsel %vm11984_vm5, %v3090_v36, 0.0  ;;  %v3169_v11 = vld [vmem:[%s11965_s11 + $0x8] sm:$0xff] }
 0x381   : > { %v3038_v13 = vadd.f32 %v3037_v19, %v3036_v6  ;;  %v3092_v19 = vmul.f32 %v9683_v33, %v9683_v33  ;;  %v3045_v37 = vsel %vm11984_vm5, %v9677_v14, 0.0  ;;  %v3047_v43 = vsel %vm11984_vm5, %v9683_v33, 0.0  ;;  %3192 = vmatpush.msra.mxu1 %v9717_v31 }
 0x382   : > { %v3139_v3 = vadd.f32 %v3138_v21, %v3137_v12  ;;  %v2619_v1 = vadd.f32 %v2583_v35, %v2333_v20  ;;  %v3093_v12 = vmul.f32 %v9708_v51, %v9708_v51 }
 0x383   : > { %v3040_v18 = vadd.f32 %v3039_v38, %v3038_v13  ;;  %3193 = vmatpush.msra.mxu1 %v3169_v11 }
 0x384   : > { %v3141_v39 = vadd.f32 %v3140_v44, %v3139_v3 }
 0x385   : > { %v2864_v4 = vpop.f32.mrf.mxu0  ;;  %v3042_v50 = vadd.f32 %v3041_v49, %v3040_v18  ;;  %v3148_v49 = vsel %vm11984_vm5, %v3092_v19, 0.0  ;;  %v2586_v19 = vpop.f32.mrf.mxu3 }
 0x386   : > { %v2904_v0 = vadd.f32 %v2864_v4, %v2617_v5  ;;  %v9723_v4 = vadd.f32 %v9335_v9, %v2903_v58  ;;  %v3143_v21 = vadd.f32 %v3142_v41, %v3141_v39  ;;  %v3146_v5 = vsel %vm11984_vm5, %v3091_v45, 0.0  ;;  %v3168_v58 = vld [vmem:[%s11965_s11] sm:$0xff]  ;;  %v2300_v41 = vpop.f32.mrf.mxu2 }
 0x387   : > { %v3044_v38 = vadd.f32 %v3043_v61, %v3042_v50  ;;  %3194 = vmatpush.msra.mxu1 %v3168_v58 }
 0x388   : > { %v9735_v13 = vadd.f32 %v9335_v9, %v2904_v0  ;;  %v3094_v35 = vmul.f32 %v9723_v4, %v9723_v4  ;;  %v3150_v0 = vsel %vm11984_vm5, %v3093_v12, 0.0  ;;  %v3051_v20 = vsel %vm11984_vm5, %v9723_v4, 0.0 }
 0x389   : > { %v3046_v44 = vadd.f32 %v3045_v37, %v3044_v38  ;;  %3210 = vmatpush.msrb.mxu1 %v9583_v30 }
 0x38a   : > { %v3095_v39 = vmul.f32 %v9735_v13, %v9735_v13 }
 0x38b   : > { %v3048_v45 = vadd.f32 %v3047_v43, %v3046_v44  ;;  %3211 = vmatpush.msrb.mxu1 %v9666_v8 }
 0x38d   : > { %v2867_v10 = vpop.f32.mrf.mxu0  ;;  %3212 = vmatpush.msrb.mxu1 %v9671_v15 }
 0x38e   : > { %v2905_v6 = vadd.f32 %v2867_v10, %v2618_v2  ;;  %v3145_v10 = vadd.f32 %v3144_v32, %v3143_v21  ;;  %v3049_v2 = vsel %vm11984_vm5, %v9708_v51, 0.0  ;;  %v3053_v21 = vsel %vm11984_vm5, %v9735_v13, 0.0 }
 0x38f   : > { %v3050_v37 = vadd.f32 %v3049_v2, %v3048_v45  ;;  %3213 = vmatpush.msrb.mxu1 %v9688_v63 }
 0x390   : > { %v9747_v3 = vadd.f32 %v9335_v9, %v2905_v6  ;;  %v3147_v61 = vadd.f32 %v3146_v5, %v3145_v10  ;;  %v2334_v6 = vadd.f32 %v9299_v57, %v2300_v41  ;;  %v3154_v10 = vsel %vm11984_vm5, %v3095_v39, 0.0 }
 0x391   : > { %v3052_v43 = vadd.f32 %v3051_v20, %v3050_v37  ;;  %3214 = vmatpush.msrb.mxu1 %v9701_v23 }
 0x392   : > { %v3149_v32 = vadd.f32 %v3148_v49, %v3147_v61  ;;  %v3096_v38 = vmul.f32 %v9747_v3, %v9747_v3  ;;  %v2620_v12 = vadd.f32 %v2586_v19, %v2334_v6  ;;  %v3055_v30 = vsel %vm11984_vm5, %v9747_v3, 0.0 }
 0x393   : > { %v3054_v49 = vadd.f32 %v3053_v21, %v3052_v43  ;;  %3215 = vmatpush.msrb.mxu1 %v9717_v31 }
 0x394   : > { %v3151_v5 = vadd.f32 %v3150_v0, %v3149_v32  ;;  %v3156_v2 = vsel %vm11984_vm5, %v3096_v38, 0.0 }
 0x395   : > { %v2870_v36 = vpop.f32.mrf.mxu0  ;;  %v3056_v41 = vadd.f32 %v3055_v30, %v3054_v49  ;;  %3216 = vmatpush.msrb.mxu1 %v3169_v11  ;;  %v4492_v11 = vld [vmem:[%s11966_s12 + $0xb8] sm:$0xff]  ;;  %v4491_v49 = vld [vmem:[%s11966_s12 + $0xb0] sm:$0xff] }
 0x396   : > { %v2906_v18 = vadd.f32 %v2870_v36, %v2619_v1  ;;  %v3152_v1 = vsel %vm11984_vm5, %v3094_v35, 0.0  ;;  %4710 = vmatpush.msrb.mxu2 %v4492_v11 }
 0x397   : > { %v3153_v44 = vadd.f32 %v3152_v1, %v3151_v5  ;;  %3217 = vmatpush.msrb.mxu1 %v3168_v58  ;;  %v6279_v58 = vld [vmem:[%s11966_s12 + $0x138] sm:$0xff] }
 0x398   : > { %v9755_v50 = vadd.f32 %v9335_v9, %v2906_v18  ;;  %5032 = vmatpush.msrb.mxu3 %v6279_v58  ;;  %4711 = vmatpush.msrb.mxu2 %v4491_v49 }
 0x399   : > { %v3155_v18 = vadd.f32 %v3154_v10, %v3153_v44  ;;  %v6278_v44 = vld [vmem:[%s11966_s12 + $0x130] sm:$0xff] }
 0x39a   : > { %v3097_v57 = vmul.f32 %v9755_v50, %v9755_v50  ;;  %v3057_v35 = vsel %vm11984_vm5, %v9755_v50, 0.0  ;;  %5033 = vmatpush.msrb.mxu3 %v6278_v44 }
 0x39b   : > { %v3157_v0 = vadd.f32 %v3156_v2, %v3155_v18  ;;  %v3058_v20 = vadd.f32 %v3057_v35, %v3056_v41  ;;  %v4490_v2 = vld [vmem:[%s11966_s12 + $0xa8] sm:$0xff]  ;;  %v6287_v35 = vld [vmem:[%s11966_s12 + $0x178] sm:$0xff]  ;;  %v6286_v18 = vld [vmem:[%s11966_s12 + $0x170] sm:$0xff] }
 0x39c   : > { %v3158_v61 = vsel %vm11984_vm5, %v3097_v57, 0.0  ;;  %4712 = vmatpush.msrb.mxu2 %v4490_v2  ;;  %5153 = vmatpush.msrb.mxu0 %v6287_v35 }
 0x39d   : > { %v2873_v36 = vpop.f32.mrf.mxu0  ;;  %v3159_v19 = vadd.f32 %v3158_v61, %v3157_v0  ;;  %v4488_v61 = vld [vmem:[%s11966_s12 + $0x98] sm:$0xff]  ;;  %v6276_v0 = vld [vmem:[%s11966_s12 + $0x120] sm:$0xff] }
 0x39e   : > { %v2907_v8 = vadd.f32 %v2873_v36, %v2620_v12  ;;  %v6277_v36 = vld [vmem:[%s11966_s12 + $0x128] sm:$0xff]  ;;  %5154 = vmatpush.msrb.mxu0 %v6286_v18 }
 0x39f   : > { %5034 = vmatpush.msrb.mxu3 %v6277_v36 }
 0x3a0   : > { %v9777_v45 = vadd.f32 %v9335_v9, %v2907_v8  ;;  %v4489_v8 = vld [vmem:[%s11966_s12 + $0xa0] sm:$0xff] }
 0x3a1   : > { %4713 = vmatpush.msrb.mxu2 %v4489_v8  ;;  %5035 = vmatpush.msrb.mxu3 %v6276_v0 }
 0x3a2   : > { %v3059_v15 = vsel %vm11984_vm5, %v9777_v45, 0.0  ;;  %v3098_v39 = vmul.f32 %v9777_v45, %v9777_v45 }
 0x3a3   : > { %v3060_v32 = vadd.f32 %v3059_v15, %v3058_v20  ;;  %v6285_v15 = vld [vmem:[%s11966_s12 + $0x168] sm:$0xff]  ;;  %4714 = vmatpush.msrb.mxu2 %v4488_v61 }
 0x3a4   : > { %v3160_v63 = vsel %vm11984_vm5, %v3098_v39, 0.0  ;;  %v4487_v39 = vld [vmem:[%s11966_s12 + $0x90] sm:$0xff]  ;;  %5155 = vmatpush.msrb.mxu0 %v6285_v15 }
 0x3a5   : > { %v3061_v37 = vrot.slane %v3060_v32, 4  ;;  %v3161_v6 = vadd.f32 %v3160_v63, %v3159_v19  ;;  %4715 = vmatpush.msrb.mxu2 %v4487_v39 }
 0x3a7   : > { %v3062_v9 = vadd.f32 %v3061_v37, %v3060_v32  ;;  %v3162_v1 = vrot.slane %v3161_v6, 4  ;;  %v4486_v32 = vld [vmem:[%s11966_s12 + $0x88] sm:$0xff]  ;;  %v4485_v37 = vld [vmem:[%s11966_s12 + $0x80] sm:$0xff] }
 0x3a8   : > { %4716 = vmatpush.msrb.mxu2 %v4486_v32 }
 0x3a9   : > { %v3063_v21 = vrot.slane %v3062_v9, 2  ;;  %v3163_v23 = vadd.f32 %v3162_v1, %v3161_v6  ;;  %v4406_v6 = vld [vmem:[#allocation2 + $0x8] sm:$0xff] }
 0x3aa   : > { %4717 = vmatpush.msrb.mxu2 %v4485_v37 }
 0x3ab   : > { %v3064_v38 = vadd.f32 %v3063_v21, %v3062_v9  ;;  %v3164_v5 = vrot.slane %v3163_v23, 2  ;;  %6232 = vmatmul.msk.f32.vlgmr.msrb.gmra.mxu2 %vm11984_vm5, %v4406_v6  ;;  %v6284_v6 = vld [vmem:[%s11966_s12 + $0x160] sm:$0xff] }
 0x3ac   : > { %5156 = vmatpush.msrb.mxu0 %v6284_v6 }
 0x3ad   : > { %v3065_v43 = vrot.slane %v3064_v38, 1  ;;  %v3165_v10 = vadd.f32 %v3164_v5, %v3163_v23 }
 0x3af   : > { %v3066_v12 = vadd.f32 %v3065_v43, %v3064_v38  ;;  %v3166_v30 = vrot.slane %v3165_v10, 1 }
 0x3b1   : > { %6230 = vmatmul.msk.f32.vlgmr.msra.gmra.mxu1 %vm11984_vm5, %v3066_v12  ;;  %v3167_v57 = vadd.f32 %v3166_v30, %v3165_v10 }
 0x3b9   : > { %6231 = vmatmul.msk.f32.vlgmr.msrb.gmra.mxu1 %vm11984_vm5, %v3167_v57  ;;  %v9843_v57 = vld [vmem:[%s11963_s9] ss:$0 sm:$0xff] }
 0x42e   : > { %v3196_v31 = vpop.f32.mrf.mxu1 }
 0x42f   : > { %v3222_v20 = vmul.f32 %v3196_v31, %v3196_v31  ;;  %v9834_v5 = vperm.slane %v3196_v31, 0  ;;  %v9849_v31 = vld [vmem:[%s11964_s10] ss:$0 sm:$0xff] }
 0x431   : > { %v3238_v10 = vsub.f32 %v9367_v46, %v9834_v5  ;;  %v3237_v44 = vsub.f32 %v9349_v34, %v9834_v5  ;;  %v3236_v18 = vsub.f32 %v9362_v40, %v9834_v5  ;;  %v3241_v32 = vsub.f32 %v9423_v16, %v9834_v5  ;;  %v6282_v16 = vld [vmem:[%s11966_s12 + $0x150] sm:$0xff] }
 0x436   : > { %v3219_v41 = vpop.f32.mrf.mxu1 }
 0x437   : > { %v3223_v19 = vsub.f32 %v3219_v41, %v3222_v20 }
 0x439   : > { %v3224_v63 = vadd.f32 1e-06, %v3223_v19 }
 0x43b   : > { %6636 = vrsqrt.f32 %v3224_v63  ;;  %vm3231_vm2 = vweird.f32 %v3224_v63 }
 0x441   : > { %v6637_v9 = vpop.eup %6636 }
 0x442   : > { %v3226_v1 = vmul.f32 %v6637_v9, %v3224_v63  ;;  %vm3232_vm11 = vweird.f32 %v6637_v9 }
 0x443   : > { %vm3233_vm14 = vmor %vm3231_vm2, %vm3232_vm11 }
 0x444   : > { %v3227_v21 = vmul.f32 %v6637_v9, %v3226_v1  ;;  %v6283_v1 = vld [vmem:[%s11966_s12 + $0x158] sm:$0xff] }
 0x445   : > { %5157 = vmatpush.msrb.mxu0 %v6283_v1 }
 0x446   : > { %v3228_v23 = vmul.f32 0.5, %v3227_v21 }
 0x447   : > { %5158 = vmatpush.msrb.mxu0 %v6282_v16 }
 0x448   : > { %v3229_v38 = vsub.f32 1.5, %v3228_v23 }
 0x44a   : > { %v3230_v43 = vmul.f32 %v6637_v9, %v3229_v38 }
 0x44c   : > { %v3234_v12 = vsel %vm3233_vm14, %v6637_v9, %v3230_v43  ;;  %v4408_v9 = vld [vmem:[#allocation2 + $0x18] sm:$0xff] }
 0x44d   : > { %v9838_v30 = vperm.slane %v3234_v12, 0  ;;  %6233 = vmatmul.msk.f32.gmra.mxu2 %vm11984_vm5, %v4408_v9  ;;  %v6281_v12 = vld [vmem:[%s11966_s12 + $0x148] sm:$0xff] }
 0x44e   : > { %5159 = vmatpush.msrb.mxu0 %v6281_v12 }
 0x44f   : > { %v3271_v11 = vmul.f32 %v9838_v30, %v3238_v10  ;;  %v3270_v36 = vmul.f32 %v9838_v30, %v3237_v44  ;;  %v3269_v61 = vmul.f32 %v9838_v30, %v3236_v18  ;;  %v3274_v21 = vmul.f32 %v9838_v30, %v3241_v32 }
 0x450   : > { %v3240_v18 = vsub.f32 %v9404_v54, %v9834_v5 }
 0x451   : > { %v3307_v58 = vmul.f32 %v9843_v57, %v3271_v11  ;;  %v3306_v35 = vmul.f32 %v9843_v57, %v3270_v36  ;;  %v3305_v20 = vmul.f32 %v9843_v57, %v3269_v61  ;;  %v3310_v43 = vmul.f32 %v9843_v57, %v3274_v21 }
 0x453   : > { %v9855_v46 = vadd.f32 %v9849_v31, %v3307_v58  ;;  %v9861_v8 = vadd.f32 %v9849_v31, %v3306_v35  ;;  %v9869_v39 = vadd.f32 %v9849_v31, %v3305_v20  ;;  %v9890_v11 = vadd.f32 %v9849_v31, %v3310_v43 }
 0x455   : > { %v3375_v49 = vsub.f32 0.0, %v9855_v46  ;;  %v3374_v41 = vsub.f32 0.0, %v9861_v8  ;;  %v3373_v19 = vsub.f32 0.0, %v9869_v39 }
 0x457   : > { %v3409_v2 = vmul.f32 1.442695, %v3375_v49  ;;  %v3407_v34 = vmul.f32 1.442695, %v3374_v41  ;;  %v3405_v63 = vmul.f32 1.442695, %v3373_v19 }
 0x459   : > { %6638 = vpow2.f32 %v3409_v2  ;;  %v3378_v2 = vsub.f32 0.0, %v9890_v11 }
 0x45a   : > { %6640 = vpow2.f32 %v3407_v34 }
 0x45f   : > { %v6639_v0 = vpop.eup %6638 }
 0x460   : > { %v3471_v15 = vadd.f32 1.0, %v6639_v0  ;;  %v6641_v40 = vpop.eup %6640  ;;  %v3415_v0 = vmul.f32 1.442695, %v3378_v2 }
 0x461   : > { %v3470_v37 = vadd.f32 1.0, %v6641_v40  ;;  %v3273_v40 = vmul.f32 %v9838_v30, %v3240_v18 }
 0x462   : > { %6642 = vrcp.f32 %v3471_v15  ;;  %v3538_v58 = vand.u32 2147483647, %v3471_v15  ;;  %v3540_v44 = vand.u32 2147483648, %v3471_v15  ;;  %vm3534_vm9 = vweird.f32 %v3471_v15 }
 0x463   : > { %6644 = vpow2.f32 %v3405_v63  ;;  %v3524_v6 = vand.u32 2147483647, %v3470_v37  ;;  %v3526_v9 = vand.u32 2147483648, %v3470_v37  ;;  %vm3520_vm3 = vweird.f32 %v3470_v37 }
 0x464   : > { %6646 = vrcp.f32 %v3470_v37  ;;  %vm3539_vm10 = vcmp.eq.f32.partialorder %v3538_v58, 8.507059e+37  ;;  %v3541_v20 = vor.u32 1.1754944e-38, %v3540_v44 }
 0x465   : > { %vm3525_vm7 = vcmp.eq.f32.partialorder %v3524_v6, 8.507059e+37 }
 0x468   : > { %v6643_v23 = vpop.eup %6642 }
 0x469   : > { %v3530_v38 = vmul.f32 %v6643_v23, %v3471_v15  ;;  %v6645_v49 = vpop.eup %6644  ;;  %vm3535_vm8 = vweird.f32 %v6643_v23  ;;  %v3309_v15 = vmul.f32 %v9843_v57, %v3273_v40 }
 0x46a   : > { %v6647_v35 = vpop.eup %6646  ;;  %v3469_v41 = vadd.f32 1.0, %v6645_v49  ;;  %vm3536_vm15 = vmor %vm3534_vm9, %vm3535_vm8  ;;  %v3239_v49 = vsub.f32 %v9385_v29, %v9834_v5 }
 0x46b   : > { %v3531_v10 = vsub.f32 1.0, %v3530_v38  ;;  %v3516_v61 = vmul.f32 %v6647_v35, %v3470_v37  ;;  %vm3521_vm1 = vweird.f32 %v6647_v35  ;;  %v3527_v38 = vor.u32 1.1754944e-38, %v3526_v9 }
 0x46c   : > { %6648 = vrcp.f32 %v3469_v41  ;;  %vm3522_vm4 = vmor %vm3520_vm3, %vm3521_vm1  ;;  %v3510_v18 = vand.u32 2147483647, %v3469_v41  ;;  %vm3506_vm11 = vweird.f32 %v3469_v41 }
 0x46d   : > { %v3532_v36 = vmul.f32 %v6643_v23, %v3531_v10  ;;  %v3517_v32 = vsub.f32 1.0, %v3516_v61  ;;  %6650 = vpow2.f32 %v3415_v0  ;;  %v3272_v0 = vmul.f32 %v9838_v30, %v3239_v49  ;;  %v6275_v49 = vld [vmem:[%s11966_s12 + $0x118] sm:$0xff] }
 0x46e   : > { %vm3511_vm14 = vcmp.eq.f32.partialorder %v3510_v18, 8.507059e+37  ;;  %5036 = vmatpush.msrb.mxu3 %v6275_v49 }
 0x46f   : > { %v3533_v34 = vadd.f32 %v6643_v23, %v3532_v36  ;;  %v3518_v54 = vmul.f32 %v6647_v35, %v3517_v32 }
 0x471   : > { %v3537_v19 = vsel %vm3536_vm15, %v6643_v23, %v3533_v34  ;;  %v3519_v21 = vadd.f32 %v6647_v35, %v3518_v54  ;;  %v9903_v23 = vadd.f32 %v9849_v31, %v3309_v15  ;;  %v3512_v34 = vand.u32 2147483648, %v3469_v41 }
 0x472   : > { %v3542_v63 = vsel %vm3539_vm10, %v3541_v20, %v3537_v19  ;;  %v6649_v16 = vpop.eup %6648  ;;  %v3308_v20 = vmul.f32 %v9843_v57, %v3272_v0 }
 0x473   : > { %v9897_v1 = vmul.f32 %v3542_v63, %v9855_v46  ;;  %v6651_v43 = vpop.eup %6650  ;;  %v3523_v12 = vsel %vm3522_vm4, %v6647_v35, %v3519_v21  ;;  %v3502_v46 = vmul.f32 %v6649_v16, %v3469_v41  ;;  %v3377_v10 = vsub.f32 0.0, %v9903_v23 }
 0x474   : > { %v3528_v58 = vsel %vm3525_vm7, %v3527_v38, %v3523_v12  ;;  %v3474_v44 = vadd.f32 1.0, %v6651_v43  ;;  %vm3507_vm6 = vweird.f32 %v6649_v16  ;;  %v9918_v63 = vadd.f32 %v9849_v31, %v3308_v20 }
 0x475   : > { %4163 = vrot.lane.b32.xlu0 %v9897_v1, %s12124_s19  ;;  %v9909_v36 = vmul.f32 %v3528_v58, %v9861_v8  ;;  %v3503_v37 = vsub.f32 1.0, %v3502_v46  ;;  %v3413_v2 = vmul.f32 1.442695, %v3377_v10  ;;  %vm3508_vm2 = vmor %vm3506_vm11, %vm3507_vm6  ;;  %v3513_v8 = vor.u32 1.1754944e-38, %v3512_v34 }
 0x476   : > { %6652 = vrcp.f32 %v3474_v44  ;;  %v3376_v21 = vsub.f32 0.0, %v9918_v63  ;;  %v3244_v38 = vsub.f32 %v9460_v52, %v9834_v5  ;;  %v3580_v43 = vand.u32 2147483647, %v3474_v44  ;;  %v6280_v52 = vld [vmem:[%s11966_s12 + $0x140] sm:$0xff] }
 0x477   : > { %4161 = vrot.lane.b32.xlu2 %v9909_v36, %s12124_s19  ;;  %v4289_v35 = vrot.slane %v9909_v36, 1  ;;  %v3504_v61 = vmul.f32 %v6649_v16, %v3503_v37  ;;  %6654 = vpow2.f32 %v3413_v2  ;;  %v3582_v12 = vand.u32 2147483648, %v3474_v44  ;;  %5160 = vmatpush.msrb.mxu0 %v6280_v52 }
 0x478   : > { %v3411_v10 = vmul.f32 1.442695, %v3376_v21  ;;  %vm3576_vm9 = vweird.f32 %v3474_v44  ;;  %v3277_v37 = vmul.f32 %v9838_v30, %v3244_v38  ;;  %vm3581_vm10 = vcmp.eq.f32.partialorder %v3580_v43, 8.507059e+37 }
 0x479   : > { %4370 = vst.msk [vmem:[#allocation2 + $0x38] sm:$0x7f] %vm4369_vm12, %v4289_v35  ;;  %v3505_v29 = vadd.f32 %v6649_v16, %v3504_v61  ;;  %v3583_v2 = vor.u32 1.1754944e-38, %v3582_v12 }
 0x47a   : > { %v3313_v34 = vmul.f32 %v9843_v57, %v3277_v37 }
 0x47b   : > { %v3509_v19 = vsel %vm3508_vm2, %v6649_v16, %v3505_v29 }
 0x47c   : > { %v6653_v32 = vpop.eup %6652  ;;  %v3514_v40 = vsel %vm3511_vm14, %v3513_v8, %v3509_v19  ;;  %v9941_v29 = vadd.f32 %v9849_v31, %v3313_v34  ;;  %v3243_v8 = vsub.f32 %v9450_v22, %v9834_v5 }
 0x47d   : > { %v6655_v6 = vpop.eup %6654  ;;  %v9921_v9 = vmul.f32 %v3514_v40, %v9869_v39  ;;  %v3572_v54 = vmul.f32 %v6653_v32, %v3474_v44  ;;  %vm3577_vm8 = vweird.f32 %v6653_v32 }
 0x47e   : > { %v3473_v15 = vadd.f32 1.0, %v6655_v6  ;;  %vm3578_vm15 = vmor %vm3576_vm9, %vm3577_vm8  ;;  %v3381_v6 = vsub.f32 0.0, %v9941_v29 }
 0x47f   : > { %4159 = vrot.lane.b32.xlu1 %v9921_v9, %s12124_s19  ;;  %v4288_v41 = vrot.slane %v9921_v9, 1  ;;  %v3573_v16 = vsub.f32 1.0, %v3572_v54 }
 0x480   : > { %6656 = vrcp.f32 %v3473_v15  ;;  %v3568_v54 = vand.u32 2147483648, %v3473_v15  ;;  %v3566_v22 = vand.u32 2147483647, %v3473_v15  ;;  %vm3562_vm3 = vweird.f32 %v3473_v15 }
 0x481   : > { %v4290_v46 = vsel %vm1866_vm0, %v4288_v41, %v4289_v35  ;;  %v3574_v39 = vmul.f32 %v6653_v32, %v3573_v16  ;;  %6658 = vpow2.f32 %v3411_v10  ;;  %v3421_v16 = vmul.f32 1.442695, %v3381_v6 }
 0x482   : > { %4368 = vst.msk [vmem:[#allocation2 + $0x28] sm:$0xff] %vm11984_vm5, %v4290_v46  ;;  %v3569_v12 = vor.u32 1.1754944e-38, %v3568_v54  ;;  %vm3567_vm7 = vcmp.eq.f32.partialorder %v3566_v22, 8.507059e+37 }
 0x483   : > { %v3575_v58 = vadd.f32 %v6653_v32, %v3574_v39 }
 0x485   : > { %v3579_v18 = vsel %vm3578_vm15, %v6653_v32, %v3575_v58 }
 0x486   : > { %v6657_v44 = vpop.eup %6656  ;;  %v3584_v35 = vsel %vm3581_vm10, %v3583_v2, %v3579_v18 }
 0x487   : > { %v3954_v61 = vmul.f32 %v3584_v35, %v9890_v11  ;;  %v3558_v0 = vmul.f32 %v6657_v44, %v3473_v15  ;;  %v6659_v20 = vpop.eup %6658  ;;  %v3276_v11 = vmul.f32 %v9838_v30, %v3243_v8  ;;  %vm3563_vm1 = vweird.f32 %v6657_v44 }
 0x488   : > { %v3472_v21 = vadd.f32 1.0, %v6659_v20  ;;  %vm3564_vm4 = vmor %vm3562_vm3, %vm3563_vm1  ;;  %v3242_v15 = vsub.f32 %v9430_v55, %v9834_v5 }
 0x489   : > { %v4295_v19 = vrot.slane %v3954_v61, 1  ;;  %4169 = vrot.lane.b32.xlu0 %v3954_v61, %s12124_s19  ;;  %v3559_v40 = vsub.f32 1.0, %v3558_v0  ;;  %v4410_v32 = vld [vmem:[#allocation2 + $0x28] sm:$0xff]  ;;  %v3312_v43 = vmul.f32 %v9843_v57, %v3276_v11  ;;  %v4053_v58 = vrot.slane %v3954_v61, 7 }
 0x48a   : > { %6234 = vmatmul.msk.f32.gmra.mxu2 %vm11984_vm5, %v4410_v32  ;;  %6288 = vmatmul.msk.f32.vlgmr.msrb.gmra.mxu0 %vm11984_vm5, %v4410_v32  ;;  %6660 = vrcp.f32 %v3472_v21  ;;  %v3275_v20 = vmul.f32 %v9838_v30, %v3242_v15  ;;  %v3552_v55 = vand.u32 2147483647, %v3472_v21  ;;  %vm3548_vm11 = vweird.f32 %v3472_v21 }
 0x48b   : > { %4374 = vst.msk [vmem:[#allocation2 + $0x78] sm:$0x7f] %vm4369_vm12, %v4295_v19  ;;  %v3560_v41 = vmul.f32 %v6657_v44, %v3559_v40  ;;  %6662 = vpow2.f32 %v3421_v16  ;;  %v9953_v39 = vadd.f32 %v9849_v31, %v3312_v43  ;;  %v3554_v40 = vand.u32 2147483648, %v3472_v21 }
 0x48c   : > { %v3311_v6 = vmul.f32 %v9843_v57, %v3275_v20  ;;  %vm3553_vm14 = vcmp.eq.f32.partialorder %v3552_v55, 8.507059e+37 }
 0x48d   : > { %v3561_v38 = vadd.f32 %v6657_v44, %v3560_v41  ;;  %v3380_v52 = vsub.f32 0.0, %v9953_v39 }
 0x48e   : > { %v9974_v11 = vadd.f32 %v9849_v31, %v3311_v6 }
 0x48f   : > { %v3565_v46 = vsel %vm3564_vm4, %v6657_v44, %v3561_v38  ;;  %v3419_v61 = vmul.f32 1.442695, %v3380_v52  ;;  %v11982_v38 = vrot.slane %v9897_v1, 7 }
 0x490   : > { %v3570_v10 = vsel %vm3567_vm7, %v3569_v12, %v3565_v46  ;;  %v6661_v37 = vpop.eup %6660  ;;  %v3379_v22 = vsub.f32 0.0, %v9974_v11  ;;  %v4291_v46 = vrot.slane %v9897_v1, 1 }
 0x491   : > { %v9956_v49 = vmul.f32 %v3570_v10, %v9903_v23  ;;  %v6663_v2 = vpop.eup %6662  ;;  %v3544_v44 = vmul.f32 %v6661_v37, %v3472_v21  ;;  %vm3549_vm6 = vweird.f32 %v6661_v37 }
 0x492   : > { %v3477_v35 = vadd.f32 1.0, %v6663_v2  ;;  %vm3550_vm2 = vmor %vm3548_vm11, %vm3549_vm6  ;;  %v3417_v21 = vmul.f32 1.442695, %v3379_v22 }
 0x493   : > { %v11983_v18 = vrot.slane %v9956_v49, 7  ;;  %v4294_v34 = vrot.slane %v9956_v49, 1  ;;  %4167 = vrot.lane.b32.xlu2 %v9956_v49, %s12124_s19  ;;  %v3545_v8 = vsub.f32 1.0, %v3544_v44  ;;  %v6274_v44 = vld [vmem:[%s11966_s12 + $0x110] sm:$0xff] }
 0x494   : > { %6664 = vrcp.f32 %v3477_v35  ;;  %5037 = vmatpush.msrb.mxu3 %v6274_v44  ;;  %vm3618_vm9 = vweird.f32 %v3477_v35 }
 0x495   : > { %v4054_v23 = vsel %vm1623_vm13, %v11983_v18, %v4053_v58  ;;  %v4296_v0 = vsel %vm1866_vm0, %v4294_v34, %v4295_v19  ;;  %v3546_v32 = vmul.f32 %v6661_v37, %v3545_v8  ;;  %6666 = vpow2.f32 %v3419_v61  ;;  %v4412_v34 = vld [vmem:[#allocation2 + $0x38] sm:$0xff] }
 0x496   : > { %4373 = vst.msk [vmem:[#allocation2 + $0x68] sm:$0xff] %vm11984_vm5, %v4296_v0  ;;  %v3555_v19 = vor.u32 1.1754944e-38, %v3554_v40  ;;  %6668 = vpow2.f32 %v3417_v21  ;;  %v3247_v61 = vsub.f32 %v9502_v24, %v9834_v5  ;;  %v3624_v0 = vand.u32 2147483648, %v3477_v35  ;;  %6235 = vmatmul.msk.f32.gmra.mxu2 %vm11984_vm5, %v4412_v34  ;;  %6289 = vmatmul.msk.f32.gmra.mxu0 %vm11984_vm5, %v4412_v34 }
 0x497   : > { %4132 = vst.msk [vmem:[#allocation2 + $0x70] sm:$0xff] %vm11984_vm5, %v4054_v23  ;;  %v3547_v54 = vadd.f32 %v6661_v37, %v3546_v32  ;;  %v3622_v23 = vand.u32 2147483647, %v3477_v35 }
 0x498   : > { %v3280_v24 = vmul.f32 %v9838_v30, %v3247_v61  ;;  %v3625_v40 = vor.u32 1.1754944e-38, %v3624_v0 }
 0x499   : > { %v3551_v41 = vsel %vm3550_vm2, %v6661_v37, %v3547_v54  ;;  %vm3623_vm10 = vcmp.eq.f32.partialorder %v3622_v23, 8.507059e+37 }
 0x49a   : > { %v6665_v16 = vpop.eup %6664  ;;  %v3556_v43 = vsel %vm3553_vm14, %v3555_v19, %v3551_v41  ;;  %v3316_v32 = vmul.f32 %v9843_v57, %v3280_v24 }
 0x49b   : > { %v6667_v12 = vpop.eup %6666  ;;  %v3952_v10 = vmul.f32 %v3556_v43, %v9918_v63  ;;  %v3614_v58 = vmul.f32 %v6665_v16, %v3477_v35  ;;  %vm3619_vm8 = vweird.f32 %v6665_v16  ;;  %v3246_v35 = vsub.f32 %v9487_v48, %v9834_v5 }
 0x49c   : > { %v3476_v52 = vadd.f32 1.0, %v6667_v12  ;;  %vm3620_vm15 = vmor %vm3618_vm9, %vm3619_vm8  ;;  %v6669_v6 = vpop.eup %6668  ;;  %v9998_v43 = vadd.f32 %v9849_v31, %v3316_v32 }
 0x49d   : > { %v4050_v2 = vrot.slane %v3952_v10, 7  ;;  %v4292_v15 = vrot.slane %v3952_v10, 1  ;;  %4165 = vrot.lane.b32.xlu1 %v3952_v10, %s12124_s19  ;;  %v3615_v37 = vsub.f32 1.0, %v3614_v58  ;;  %v3475_v22 = vadd.f32 1.0, %v6669_v6 }
 0x49e   : > { %6670 = vrcp.f32 %v3476_v52  ;;  %v3608_v58 = vand.u32 2147483647, %v3476_v52  ;;  %v3610_v21 = vand.u32 2147483648, %v3476_v52  ;;  %vm3604_vm3 = vweird.f32 %v3476_v52 }
 0x49f   : > { %v4051_v63 = vsel %vm1623_vm13, %v11982_v38, %v4050_v2  ;;  %v4293_v8 = vsel %vm1866_vm0, %v4291_v46, %v4292_v15  ;;  %4372 = vst.msk [vmem:[#allocation2 + $0x58] sm:$0x7f] %vm4369_vm12, %v4292_v15  ;;  %v3616_v20 = vmul.f32 %v6665_v16, %v3615_v37  ;;  %6672 = vrcp.f32 %v3475_v22 }
 0x4a0   : > { %4371 = vst.msk [vmem:[#allocation2 + $0x48] sm:$0xff] %vm11984_vm5, %v4293_v8  ;;  %v3279_v37 = vmul.f32 %v9838_v30, %v3246_v35  ;;  %v3611_v48 = vor.u32 1.1754944e-38, %v3610_v21  ;;  %vm3609_vm7 = vcmp.eq.f32.partialorder %v3608_v58, 8.507059e+37  ;;  %vm3590_vm11 = vweird.f32 %v3475_v22 }
 0x4a1   : > { %4130 = vst.msk [vmem:[#allocation2 + $0x50] sm:$0xff] %vm11984_vm5, %v4051_v63  ;;  %v3617_v55 = vadd.f32 %v6665_v16, %v3616_v20 }
 0x4a2   : > { %v3315_v34 = vmul.f32 %v9843_v57, %v3279_v37 }
 0x4a3   : > { %v3621_v54 = vsel %vm3620_vm15, %v6665_v16, %v3617_v55  ;;  %v3384_v16 = vsub.f32 0.0, %v9998_v43  ;;  %v3594_v55 = vand.u32 2147483647, %v3475_v22 }
 0x4a4   : > { %v6671_v19 = vpop.eup %6670  ;;  %v3626_v41 = vsel %vm3623_vm10, %v3625_v40, %v3621_v54  ;;  %v10011_v0 = vadd.f32 %v9849_v31, %v3315_v34  ;;  %v3596_v40 = vand.u32 2147483648, %v3475_v22 }
 0x4a5   : > { %v10001_v12 = vmul.f32 %v3626_v41, %v9941_v29  ;;  %v3600_v46 = vmul.f32 %v6671_v19, %v3476_v52  ;;  %vm3605_vm1 = vweird.f32 %v6671_v19  ;;  %v3427_v15 = vmul.f32 1.442695, %v3384_v16  ;;  %v6673_v44 = vpop.eup %6672 }
 0x4a6   : > { %vm3606_vm4 = vmor %vm3604_vm3, %vm3605_vm1  ;;  %v3586_v23 = vmul.f32 %v6673_v44, %v3475_v22  ;;  %v3383_v24 = vsub.f32 0.0, %v10011_v0  ;;  %v3245_v52 = vsub.f32 %v9467_v62, %v9834_v5  ;;  %vm3591_vm6 = vweird.f32 %v6673_v44 }
 0x4a7   : > { %4175 = vrot.lane.b32.xlu0 %v10001_v12, %s12124_s19  ;;  %v3601_v10 = vsub.f32 1.0, %v3600_v46  ;;  %6674 = vpow2.f32 %v3427_v15  ;;  %vm3592_vm2 = vmor %vm3590_vm11, %vm3591_vm6  ;;  %v3597_v35 = vor.u32 1.1754944e-38, %v3596_v40  ;;  %vm3595_vm14 = vcmp.eq.f32.partialorder %v3594_v55, 8.507059e+37  ;;  %v4414_v55 = vld [vmem:[#allocation2 + $0x48] sm:$0xff] }
 0x4a8   : > { %v3587_v20 = vsub.f32 1.0, %v3586_v23  ;;  %v3250_v23 = vsub.f32 %v9536_v25, %v9834_v5  ;;  %v6273_v40 = vld [vmem:[%s11966_s12 + $0x108] sm:$0xff]  ;;  %6236 = vmatmul.msk.f32.gmra.mxu2 %vm11984_vm5, %v4414_v55  ;;  %6290 = vmatmul.msk.f32.gmra.mxu0 %vm11984_vm5, %v4414_v55 }
 0x4a9   : > { %v3602_v2 = vmul.f32 %v6671_v19, %v3601_v10  ;;  %5038 = vmatpush.msrb.mxu3 %v6273_v40 }
 0x4aa   : > { %v3588_v54 = vmul.f32 %v6673_v44, %v3587_v20 }
 0x4ab   : > { %v3603_v29 = vadd.f32 %v6671_v19, %v3602_v2 }
 0x4ac   : > { %v3589_v46 = vadd.f32 %v6673_v44, %v3588_v54 }
 0x4ad   : > { %v3607_v61 = vsel %vm3606_vm4, %v6671_v19, %v3603_v29  ;;  %v6675_v32 = vpop.eup %6674  ;;  %v3425_v19 = vmul.f32 1.442695, %v3383_v24 }
 0x4ae   : > { %v3612_v63 = vsel %vm3609_vm7, %v3611_v48, %v3607_v61  ;;  %v3480_v41 = vadd.f32 1.0, %v6675_v32  ;;  %v3593_v62 = vsel %vm3592_vm2, %v6673_v44, %v3589_v46  ;;  %v3283_v32 = vmul.f32 %v9838_v30, %v3250_v23 }
 0x4af   : > { %v3956_v8 = vmul.f32 %v3612_v63, %v9953_v39  ;;  %6676 = vpow2.f32 %v3425_v19  ;;  %v3278_v39 = vmul.f32 %v9838_v30, %v3245_v52  ;;  %v3598_v16 = vsel %vm3595_vm14, %v3597_v35, %v3593_v62 }
 0x4b0   : > { %6678 = vrcp.f32 %v3480_v41  ;;  %v10022_v21 = vmul.f32 %v3598_v16, %v9974_v11  ;;  %v3664_v20 = vand.u32 2147483647, %v3480_v41  ;;  %v3666_v24 = vand.u32 2147483648, %v3480_v41 }
 0x4b1   : > { %v4298_v6 = vrot.slane %v3956_v8, 1  ;;  %4173 = vrot.lane.b32.xlu2 %v3956_v8, %s12124_s19  ;;  %v3314_v10 = vmul.f32 %v9843_v57, %v3278_v39  ;;  %v4056_v58 = vrot.slane %v3956_v8, 7  ;;  %vm3660_vm9 = vweird.f32 %v3480_v41 }
 0x4b2   : > { %v11981_v22 = vrot.slane %v10022_v21, 7  ;;  %v4297_v37 = vrot.slane %v10022_v21, 1  ;;  %4171 = vrot.lane.b32.xlu1 %v10022_v21, %s12124_s19  ;;  %v3249_v19 = vsub.f32 %v9529_v28, %v9834_v5  ;;  %v3667_v46 = vor.u32 1.1754944e-38, %v3666_v24 }
 0x4b3   : > { %4376 = vst.msk [vmem:[#allocation2 + $0x98] sm:$0x7f] %vm4369_vm12, %v4298_v6  ;;  %v10025_v2 = vadd.f32 %v9849_v31, %v3314_v10  ;;  %vm3665_vm10 = vcmp.eq.f32.partialorder %v3664_v20, 8.507059e+37 }
 0x4b4   : > { %v4057_v11 = vsel %vm1623_vm13, %v11981_v22, %v4056_v58  ;;  %v4299_v48 = vsel %vm1866_vm0, %v4297_v37, %v4298_v6  ;;  %v3319_v6 = vmul.f32 %v9843_v57, %v3283_v32  ;;  %v3282_v37 = vmul.f32 %v9838_v30, %v3249_v19 }
 0x4b5   : > { %v6677_v15 = vpop.eup %6676  ;;  %v3382_v29 = vsub.f32 0.0, %v10025_v2  ;;  %4375 = vst.msk [vmem:[#allocation2 + $0x88] sm:$0xff] %vm11984_vm5, %v4299_v48 }
 0x4b6   : > { %v6679_v34 = vpop.eup %6678  ;;  %v3479_v44 = vadd.f32 1.0, %v6677_v15  ;;  %4134 = vst.msk [vmem:[#allocation2 + $0x90] sm:$0xff] %vm11984_vm5, %v4057_v11  ;;  %v10050_v62 = vadd.f32 %v9849_v31, %v3319_v6 }
 0x4b7   : > { %v3656_v61 = vmul.f32 %v6679_v34, %v3480_v41  ;;  %v3423_v8 = vmul.f32 1.442695, %v3382_v29  ;;  %vm3661_vm8 = vweird.f32 %v6679_v34 }
 0x4b8   : > { %6680 = vrcp.f32 %v3479_v44  ;;  %vm3662_vm15 = vmor %vm3660_vm9, %vm3661_vm8  ;;  %v3387_v15 = vsub.f32 0.0, %v10050_v62  ;;  %v3650_v29 = vand.u32 2147483647, %v3479_v44  ;;  %v3652_v11 = vand.u32 2147483648, %v3479_v44 }
 0x4b9   : > { %v3657_v63 = vsub.f32 1.0, %v3656_v61  ;;  %6682 = vpow2.f32 %v3423_v8  ;;  %vm3646_vm3 = vweird.f32 %v3479_v44 }
 0x4ba   : > { %v3433_v61 = vmul.f32 1.442695, %v3387_v15  ;;  %vm3651_vm7 = vcmp.eq.f32.partialorder %v3650_v29, 8.507059e+37 }
 0x4bb   : > { %v3658_v52 = vmul.f32 %v6679_v34, %v3657_v63  ;;  %v3653_v63 = vor.u32 1.1754944e-38, %v3652_v11 }
 0x4bd   : > { %v3659_v25 = vadd.f32 %v6679_v34, %v3658_v52 }
 0x4be   : > { %v6681_v54 = vpop.eup %6680 }
 0x4bf   : > { %v3663_v39 = vsel %vm3662_vm15, %v6679_v34, %v3659_v25  ;;  %v3642_v35 = vmul.f32 %v6681_v54, %v3479_v44  ;;  %v6683_v16 = vpop.eup %6682  ;;  %vm3647_vm1 = vweird.f32 %v6681_v54  ;;  %v3248_v44 = vsub.f32 %v9516_v26, %v9834_v5 }
 0x4c0   : > { %v3668_v10 = vsel %vm3665_vm10, %v3667_v46, %v3663_v39  ;;  %v3478_v28 = vadd.f32 1.0, %v6683_v16  ;;  %vm3648_vm4 = vmor %vm3646_vm3, %vm3647_vm1 }
 0x4c1   : > { %v3960_v58 = vmul.f32 %v3668_v10, %v9998_v43  ;;  %v3643_v41 = vsub.f32 1.0, %v3642_v35  ;;  %v3318_v43 = vmul.f32 %v9843_v57, %v3282_v37  ;;  %v3281_v26 = vmul.f32 %v9838_v30, %v3248_v44 }
 0x4c2   : > { %6684 = vrcp.f32 %v3478_v28  ;;  %v3636_v16 = vand.u32 2147483647, %v3478_v28  ;;  %vm3632_vm11 = vweird.f32 %v3478_v28 }
 0x4c3   : > { %v4304_v48 = vrot.slane %v3960_v58, 1  ;;  %4181 = vrot.lane.b32.xlu0 %v3960_v58, %s12124_s19  ;;  %v3644_v34 = vmul.f32 %v6681_v54, %v3643_v41  ;;  %6686 = vpow2.f32 %v3433_v61  ;;  %v10059_v20 = vadd.f32 %v9849_v31, %v3318_v43 }
 0x4c4   : > { %v4062_v52 = vrot.slane %v3960_v58, 7  ;;  %v3638_v58 = vand.u32 2147483648, %v3478_v28  ;;  %v3317_v15 = vmul.f32 %v9843_v57, %v3281_v26  ;;  %vm3637_vm14 = vcmp.eq.f32.partialorder %v3636_v16, 8.507059e+37 }
 0x4c5   : > { %4380 = vst.msk [vmem:[#allocation2 + $0xd8] sm:$0x7f] %vm4369_vm12, %v4304_v48  ;;  %v3645_v23 = vadd.f32 %v6681_v54, %v3644_v34  ;;  %v3386_v40 = vsub.f32 0.0, %v10059_v20  ;;  %v3252_v43 = vsub.f32 %v9570_v27, %v9834_v5  ;;  %v3255_v27 = vsub.f32 %v9612_v53, %v9834_v5 }
 0x4c6   : > { %v10083_v29 = vadd.f32 %v9849_v31, %v3317_v15  ;;  %v3639_v11 = vor.u32 1.1754944e-38, %v3638_v58  ;;  %v3258_v16 = vsub.f32 %v9642_v17, %v9834_v5 }
 0x4c7   : > { %v3649_v8 = vsel %vm3648_vm4, %v6681_v54, %v3645_v23  ;;  %v3431_v39 = vmul.f32 1.442695, %v3386_v40 }
 0x4c8   : > { %v3654_v24 = vsel %vm3651_vm7, %v3653_v63, %v3649_v8  ;;  %v6685_v32 = vpop.eup %6684  ;;  %v3385_v61 = vsub.f32 0.0, %v10083_v29  ;;  %v3253_v63 = vsub.f32 %v9576_v56, %v9834_v5  ;;  %v3256_v56 = vsub.f32 %v9626_v60, %v9834_v5 }
 0x4c9   : > { %v10062_v55 = vmul.f32 %v3654_v24, %v10011_v0  ;;  %v6687_v25 = vpop.eup %6686  ;;  %v3628_v19 = vmul.f32 %v6685_v32, %v3478_v28  ;;  %vm3633_vm6 = vweird.f32 %v6685_v32  ;;  %v11980_v28 = vrot.slane %v10001_v12, 7 }
 0x4ca   : > { %v10071_v46 = vadd.f32 1.0, %v6687_v25  ;;  %vm3634_vm2 = vmor %vm3632_vm11, %vm3633_vm6  ;;  %v3254_v25 = vsub.f32 %v9601_v59, %v9834_v5  ;;  %v3257_v59 = vsub.f32 %v9635_v42, %v9834_v5  ;;  %v3286_v58 = vmul.f32 %v9838_v30, %v3253_v63 }
 0x4cb   : > { %v11979_v6 = vrot.slane %v10062_v55, 7  ;;  %v4303_v54 = vrot.slane %v10062_v55, 1  ;;  %4179 = vrot.lane.b32.xlu2 %v10062_v55, %s12124_s19  ;;  %v3629_v10 = vsub.f32 1.0, %v3628_v19 }
 0x4cc   : > { %6688 = vrcp.f32 %v10071_v46  ;;  %v3706_v53 = vand.u32 2147483647, %v10071_v46  ;;  %v3708_v60 = vand.u32 2147483648, %v10071_v46  ;;  %vm3702_vm9 = vweird.f32 %v10071_v46 }
 0x4cd   : > { %v4063_v0 = vsel %vm1623_vm13, %v11979_v6, %v4062_v52  ;;  %v4305_v35 = vsel %vm1866_vm0, %v4303_v54, %v4304_v48  ;;  %v3630_v41 = vmul.f32 %v6685_v32, %v3629_v10  ;;  %6690 = vpow2.f32 %v3431_v39 }
 0x4ce   : > { %4379 = vst.msk [vmem:[#allocation2 + $0xc8] sm:$0xff] %vm11984_vm5, %v4305_v35  ;;  %v3251_v48 = vsub.f32 %v9558_v47, %v9834_v5  ;;  %v4300_v52 = vrot.slane %v10001_v12, 1  ;;  %vm3707_vm10 = vcmp.eq.f32.partialorder %v3706_v53, 8.507059e+37 }
 0x4cf   : > { %4138 = vst.msk [vmem:[#allocation2 + $0xd0] sm:$0xff] %vm11984_vm5, %v4063_v0  ;;  %v3631_v37 = vadd.f32 %v6685_v32, %v3630_v41  ;;  %v6272_v0 = vld [vmem:[%s11966_s12 + $0x100] sm:$0xff]  ;;  %v3285_v41 = vmul.f32 %v9838_v30, %v3252_v43 }
 0x4d0   : > { %5039 = vmatpush.msrb.mxu3 %v6272_v0 }
 0x4d1   : > { %v3635_v34 = vsel %vm3634_vm2, %v6685_v32, %v3631_v37  ;;  %v3429_v32 = vmul.f32 1.442695, %v3385_v61  ;;  %v3284_v37 = vmul.f32 %v9838_v30, %v3251_v48  ;;  %v3259_v61 = vsub.f32 %v9658_v7, %v9834_v5 }
 0x4d2   : > { %v6689_v23 = vpop.eup %6688  ;;  %v3640_v8 = vsel %vm3637_vm14, %v3639_v11, %v3635_v34  ;;  %v3289_v11 = vmul.f32 %v9838_v30, %v3256_v56  ;;  %v3288_v34 = vmul.f32 %v9838_v30, %v3255_v27  ;;  %v3321_v63 = vmul.f32 %v9843_v57, %v3285_v41 }
 0x4d3   : > { %v6691_v24 = vpop.eup %6690  ;;  %v3958_v40 = vmul.f32 %v3640_v8, %v10025_v2  ;;  %v3698_v47 = vmul.f32 %v6689_v23, %v10071_v46  ;;  %6692 = vpow2.f32 %v3429_v32  ;;  %v4416_v2 = vld [vmem:[#allocation2 + $0x58] sm:$0xff]  ;;  %vm3703_vm8 = vweird.f32 %v6689_v23 }
 0x4d4   : > { %v10102_v44 = vadd.f32 1.0, %v6691_v24  ;;  %6237 = vmatmul.msk.f32.gmra.mxu2 %vm11984_vm5, %v4416_v2  ;;  %6291 = vmatmul.msk.f32.gmra.mxu0 %vm11984_vm5, %v4416_v2  ;;  %vm3704_vm15 = vmor %vm3702_vm9, %vm3703_vm8  ;;  %v3709_v8 = vor.u32 1.1754944e-38, %v3708_v60  ;;  %v3322_v46 = vmul.f32 %v9843_v57, %v3286_v58  ;;  %v3325_v48 = vmul.f32 %v9843_v57, %v3289_v11 }
 0x4d5   : > { %v4059_v54 = vrot.slane %v3958_v40, 7  ;;  %v4301_v19 = vrot.slane %v3958_v40, 1  ;;  %4177 = vrot.lane.b32.xlu1 %v3958_v40, %s12124_s19  ;;  %v3699_v39 = vsub.f32 1.0, %v3698_v47  ;;  %v10142_v7 = vadd.f32 %v9849_v31, %v3321_v63 }
 0x4d6   : > { %6694 = vrcp.f32 %v10102_v44  ;;  %v10139_v27 = vadd.f32 %v9849_v31, %v3322_v46  ;;  %v3287_v2 = vmul.f32 %v9838_v30, %v3254_v25  ;;  %v3292_v0 = vmul.f32 %v9838_v30, %v3259_v61 }
 0x4d7   : > { %v4060_v35 = vsel %vm1623_vm13, %v11980_v28, %v4059_v54  ;;  %v4302_v10 = vsel %vm1866_vm0, %v4300_v52, %v4301_v19  ;;  %4378 = vst.msk [vmem:[#allocation2 + $0xb8] sm:$0x7f] %vm4369_vm12, %v4301_v19  ;;  %v3700_v26 = vmul.f32 %v6689_v23, %v3699_v39  ;;  %v3320_v52 = vmul.f32 %v9843_v57, %v3284_v37 }
 0x4d8   : > { %4377 = vst.msk [vmem:[#allocation2 + $0xa8] sm:$0xff] %vm11984_vm5, %v4302_v10  ;;  %v3324_v19 = vmul.f32 %v9843_v57, %v3288_v34  ;;  %vm3688_vm1 = vweird.f32 %v10102_v44  ;;  %v3692_v53 = vand.u32 2147483647, %v10102_v44  ;;  %v3390_v60 = vsub.f32 0.0, %v10139_v27 }
 0x4d9   : > { %4136 = vst.msk [vmem:[#allocation2 + $0xb0] sm:$0xff] %vm11984_vm5, %v4060_v35  ;;  %v3701_v15 = vadd.f32 %v6689_v23, %v3700_v26  ;;  %v6693_v24 = vpop.eup %6692  ;;  %v10149_v54 = vadd.f32 %v9849_v31, %v3320_v52  ;;  %v3694_v35 = vand.u32 2147483648, %v10102_v44  ;;  %v3389_v10 = vsub.f32 0.0, %v10142_v7 }
 0x4da   : > { %v10136_v32 = vadd.f32 1.0, %v6693_v24  ;;  %v3439_v58 = vmul.f32 1.442695, %v3390_v60  ;;  %v10166_v41 = vadd.f32 %v9849_v31, %v3325_v48  ;;  %v3323_v34 = vmul.f32 %v9843_v57, %v3287_v2 }
 0x4db   : > { %v3705_v43 = vsel %vm3704_vm15, %v6689_v23, %v3701_v15  ;;  %v3388_v26 = vsub.f32 0.0, %v10149_v54  ;;  %v10169_v15 = vadd.f32 %v9849_v31, %v3324_v19  ;;  %v3437_v37 = vmul.f32 1.442695, %v3389_v10 }
 0x4dc   : > { %v6695_v40 = vpop.eup %6694  ;;  %v3710_v47 = vsel %vm3707_vm10, %v3709_v8, %v3705_v43  ;;  %6696 = vrcp.f32 %v10136_v32  ;;  %v3328_v61 = vmul.f32 %v9843_v57, %v3292_v0  ;;  %v3393_v46 = vsub.f32 0.0, %v10166_v41 }
 0x4dd   : > { %v10145_v56 = vmul.f32 %v3710_v47, %v10050_v62  ;;  %v3684_v23 = vmul.f32 %v6695_v40, %v10102_v44  ;;  %vm3689_vm3 = vweird.f32 %v6695_v40  ;;  %v3435_v11 = vmul.f32 1.442695, %v3388_v26 }
 0x4de   : > { %6698 = vpow2.f32 %v3439_v58  ;;  %v3392_v63 = vsub.f32 0.0, %v10169_v15  ;;  %vm3690_vm4 = vmor %vm3688_vm1, %vm3689_vm3  ;;  %vm3693_vm7 = vcmp.eq.f32.partialorder %v3692_v53, 8.507059e+37  ;;  %v3695_v43 = vor.u32 1.1754944e-38, %v3694_v35  ;;  %v6271_v35 = vld [vmem:[%s11966_s12 + $0xf8] sm:$0xff] }
 0x4df   : > { %4187 = vrot.lane.b32.xlu0 %v10145_v56, %s12124_s19  ;;  %v3685_v62 = vsub.f32 1.0, %v3684_v23  ;;  %6700 = vpow2.f32 %v3437_v37  ;;  %v10179_v52 = vadd.f32 %v9849_v31, %v3323_v34  ;;  %v10183_v47 = vadd.f32 %v9849_v31, %v3328_v61  ;;  %v4418_v31 = vld [vmem:[#allocation2 + $0x68] sm:$0xff]  ;;  %5040 = vmatpush.msrb.mxu3 %v6271_v35 }
 0x4e0   : > { %6702 = vpow2.f32 %v3435_v11  ;;  %v3445_v19 = vmul.f32 1.442695, %v3393_v46  ;;  %v3443_v2 = vmul.f32 1.442695, %v3392_v63  ;;  %v3262_v44 = vsub.f32 %v9708_v51, %v9834_v5  ;;  %6238 = vmatmul.msk.f32.gmra.mxu2 %vm11984_vm5, %v4418_v31  ;;  %6292 = vmatmul.msk.f32.gmra.mxu0 %vm11984_vm5, %v4418_v31  ;;  %v10221_v63 = vld [vmem:[%s11963_s9] ss:$0 sm:$0xff] }
 0x4e1   : > { %v3686_v25 = vmul.f32 %v6695_v40, %v3685_v62  ;;  %v3391_v0 = vsub.f32 0.0, %v10179_v52  ;;  %vm3674_vm6 = vweird.f32 %v10136_v32  ;;  %v3680_v60 = vand.u32 2147483648, %v10136_v32  ;;  %v10245_v31 = vld [vmem:[%s11964_s10] ss:$0 sm:$0xff] }
 0x4e2   : > { %v6697_v24 = vpop.eup %6696  ;;  %6704 = vpow2.f32 %v3445_v19  ;;  %v3291_v51 = vmul.f32 %v9838_v30, %v3258_v16  ;;  %v3396_v16 = vsub.f32 0.0, %v10183_v47 }
 0x4e3   : > { %v3687_v8 = vadd.f32 %v6695_v40, %v3686_v25  ;;  %v3670_v57 = vmul.f32 %v6697_v24, %v10136_v32  ;;  %vm3675_vm11 = vweird.f32 %v6697_v24  ;;  %6706 = vpow2.f32 %v3443_v2 }
 0x4e4   : > { %v3441_v17 = vmul.f32 1.442695, %v3391_v0  ;;  %vm3676_vm14 = vmor %vm3674_vm6, %vm3675_vm11  ;;  %v3681_v46 = vor.u32 1.1754944e-38, %v3680_v60 }
 0x4e5   : > { %v3691_v48 = vsel %vm3690_vm4, %v6695_v40, %v3687_v8  ;;  %v3671_v53 = vsub.f32 1.0, %v3670_v57  ;;  %v3678_v40 = vand.u32 2147483647, %v10136_v32  ;;  %v3295_v32 = vmul.f32 %v9838_v30, %v3262_v44 }
 0x4e6   : > { %v3696_v23 = vsel %vm3693_vm7, %v3695_v43, %v3691_v48  ;;  %v3327_v43 = vmul.f32 %v10221_v63, %v3291_v51  ;;  %v3290_v48 = vmul.f32 %v9838_v30, %v3257_v59 }
 0x4e7   : > { %v10189_v62 = vmul.f32 %v3696_v23, %v10059_v20  ;;  %v6699_v20 = vpop.eup %6698  ;;  %v3672_v26 = vmul.f32 %v6697_v24, %v3671_v53  ;;  %vm3679_vm2 = vcmp.eq.f32.partialorder %v3678_v40, 8.507059e+37  ;;  %v3451_v53 = vmul.f32 1.442695, %v3396_v16 }
 0x4e8   : > { %v6701_v25 = vpop.eup %6700  ;;  %v10206_v37 = vadd.f32 1.0, %v6699_v20  ;;  %v10248_v35 = vadd.f32 %v10245_v31, %v3327_v43  ;;  %v10266_v16 = vmul.f32 %v10221_v63, %v3295_v32 }
 0x4e9   : > { %v4307_v10 = vrot.slane %v10189_v62, 1  ;;  %4185 = vrot.lane.b32.xlu2 %v10189_v62, %s12124_s19  ;;  %v6703_v11 = vpop.eup %6702  ;;  %v3673_v61 = vadd.f32 %v6697_v24, %v3672_v26  ;;  %v10212_v8 = vadd.f32 1.0, %v6701_v25  ;;  %v4065_v57 = vrot.slane %v10189_v62, 7  ;;  %v4420_v25 = vld [vmem:[#allocation2 + $0x78] sm:$0xff] }
 0x4ea   : > { %6708 = vrcp.f32 %v10206_v37  ;;  %v6705_v19 = vpop.eup %6704  ;;  %v3748_v0 = vand.u32 2147483647, %v10206_v37  ;;  %v3750_v42 = vand.u32 2147483648, %v10206_v37  ;;  %v10236_v59 = vadd.f32 1.0, %v6703_v11  ;;  %6239 = vmatmul.msk.f32.gmra.mxu2 %vm11984_vm5, %v4420_v25  ;;  %6293 = vmatmul.msk.f32.gmra.mxu0 %vm11984_vm5, %v4420_v25 }
 0x4eb   : > { %4382 = vst.msk [vmem:[#allocation2 + $0xf8] sm:$0x7f] %vm4369_vm12, %v4307_v10  ;;  %v3677_v23 = vsel %vm3676_vm14, %v6697_v24, %v3673_v61  ;;  %6710 = vrcp.f32 %v10212_v8  ;;  %v6707_v40 = vpop.eup %6706  ;;  %v10238_v62 = vadd.f32 1.0, %v6705_v19  ;;  %v3734_v24 = vand.u32 2147483647, %v10212_v8 }
 0x4ec   : > { %v3682_v2 = vsel %vm3679_vm2, %v3681_v46, %v3677_v23  ;;  %6712 = vpow2.f32 %v3441_v17  ;;  %v3736_v44 = vand.u32 2147483648, %v10212_v8  ;;  %v10258_v26 = vadd.f32 1.0, %v6707_v40 }
 0x4ed   : > { %v10233_v60 = vmul.f32 %v3682_v2, %v10083_v29  ;;  %v10251_v29 = vmul.f32 %v10221_v63, %v3290_v48  ;;  %6714 = vrcp.f32 %v10236_v59  ;;  %vm3744_vm8 = vweird.f32 %v10206_v37 }
 0x4ee   : > { %vm3730_vm9 = vweird.f32 %v10212_v8  ;;  %6716 = vrcp.f32 %v10238_v62  ;;  %vm10273_vm15 = vcmp.eq.f32.partialorder %v3748_v0, 8.507059e+37  ;;  %v3751_v23 = vor.u32 1.1754944e-38, %v3750_v42 }
 0x4ef   : > { %v11978_v51 = vrot.slane %v10233_v60, 7  ;;  %v4306_v20 = vrot.slane %v10233_v60, 1  ;;  %4183 = vrot.lane.b32.xlu1 %v10233_v60, %s12124_s19  ;;  %vm10279_vm10 = vcmp.eq.f32.partialorder %v3734_v24, 8.507059e+37  ;;  %6718 = vpow2.f32 %v3451_v53 }
 0x4f0   : > { %v6709_v17 = vpop.eup %6708  ;;  %v3737_v40 = vor.u32 1.1754944e-38, %v3736_v44  ;;  %6720 = vrcp.f32 %v10258_v26  ;;  %v3395_v42 = vsub.f32 0.0, %v10248_v35  ;;  %vm3716_vm3 = vweird.f32 %v10236_v59 }
 0x4f1   : > { %v6711_v11 = vpop.eup %6710  ;;  %v4066_v61 = vsel %vm1623_vm13, %v11978_v51, %v4065_v57  ;;  %v4308_v46 = vsel %vm1866_vm0, %v4306_v20, %v4307_v10  ;;  %v3740_v43 = vmul.f32 %v6709_v17, %v10206_v37  ;;  %v3720_v57 = vand.u32 2147483647, %v10236_v59 }
 0x4f2   : > { %v6713_v19 = vpop.eup %6712  ;;  %4381 = vst.msk [vmem:[#allocation2 + $0xe8] sm:$0xff] %vm11984_vm5, %v4308_v46  ;;  %v3726_v32 = vmul.f32 %v6711_v11, %v10212_v8  ;;  %v3722_v10 = vand.u32 2147483648, %v10236_v59  ;;  %vm3745_vm1 = vweird.f32 %v6709_v17  ;;  %v3790_v24 = vand.u32 2147483647, %v10238_v62 }
 0x4f3   : > { %4140 = vst.msk [vmem:[#allocation2 + $0xf0] sm:$0xff] %vm11984_vm5, %v4066_v61  ;;  %v3741_v0 = vsub.f32 1.0, %v3740_v43  ;;  %v6715_v25 = vpop.eup %6714  ;;  %vm3731_vm4 = vweird.f32 %v6711_v11  ;;  %vm3786_vm7 = vweird.f32 %v10238_v62  ;;  %v3792_v53 = vand.u32 2147483648, %v10238_v62  ;;  %vm3746_vm11 = vmor %vm3744_vm8, %vm3745_vm1 }
 0x4f4   : > { %v3727_v20 = vsub.f32 1.0, %v3726_v32  ;;  %v10292_v61 = vadd.f32 1.0, %v6713_v19  ;;  %v6717_v44 = vpop.eup %6716  ;;  %v3712_v51 = vmul.f32 %v6715_v25, %v10236_v59  ;;  %vm10295_vm6 = vcmp.eq.f32.partialorder %v3720_v57, 8.507059e+37  ;;  %vm3732_vm14 = vmor %vm3730_vm9, %vm3731_vm4 }
 0x4f5   : > { %v3742_v46 = vmul.f32 %v6709_v17, %v3741_v0  ;;  %v3723_v32 = vor.u32 1.1754944e-38, %v3722_v10  ;;  %v3782_v22 = vmul.f32 %v6717_v44, %v10238_v62  ;;  %v3776_v0 = vand.u32 2147483647, %v10258_v26  ;;  %v6719_v18 = vpop.eup %6718 }
 0x4f6   : > { %v3728_v43 = vmul.f32 %v6711_v11, %v3727_v20  ;;  %v3778_v38 = vand.u32 2147483648, %v10258_v26  ;;  %v3713_v20 = vsub.f32 1.0, %v3712_v51  ;;  %vm10305_vm2 = vcmp.eq.f32.partialorder %v3790_v24, 8.507059e+37  ;;  %v10310_v10 = vpop.eup %6720 }
 0x4f7   : > { %v3743_v28 = vadd.f32 %v6709_v17, %v3742_v46  ;;  %6722 = vrcp.f32 %v10292_v61  ;;  %vm3717_vm5 = vweird.f32 %v6715_v25  ;;  %v3783_v39 = vsub.f32 1.0, %v3782_v22 }
 0x4f8   : > { %v3729_v19 = vadd.f32 %v6711_v11, %v3728_v43  ;;  %v3793_v34 = vor.u32 1.1754944e-38, %v3792_v53  ;;  %vm3772_vm8 = vweird.f32 %v10258_v26  ;;  %v3714_v24 = vmul.f32 %v6715_v25, %v3713_v20 }
 0x4f9   : > { %v3747_v46 = vsel %vm3746_vm11, %v6709_v17, %v3743_v28  ;;  %v3768_v43 = vmul.f32 %v10310_v10, %v10258_v26  ;;  %v3784_v8 = vmul.f32 %v6717_v44, %v3783_v39  ;;  %vm3787_vm9 = vweird.f32 %v6717_v44 }
 0x4fa   : > { %v3752_v37 = vsel %vm10273_vm15, %v3751_v23, %v3747_v46  ;;  %v3733_v51 = vsel %vm3732_vm14, %v6711_v11, %v3729_v19  ;;  %vm10323_vm1 = vcmp.eq.f32.partialorder %v3776_v0, 8.507059e+37  ;;  %v3715_v48 = vadd.f32 %v6715_v25, %v3714_v24  ;;  %vm3718_vm15 = vmor %vm3716_vm3, %vm3717_vm5 }
 0x4fb   : > { %v3966_v58 = vmul.f32 %v3752_v37, %v10139_v27  ;;  %v3738_v28 = vsel %vm10279_vm10, %v3737_v40, %v3733_v51  ;;  %v3769_v11 = vsub.f32 1.0, %v3768_v43  ;;  %v3779_v23 = vor.u32 1.1754944e-38, %v3778_v38  ;;  %vm3788_vm10 = vmor %vm3786_vm7, %vm3787_vm9 }
 0x4fc   : > { %v10328_v17 = vmul.f32 %v3738_v28, %v10142_v7  ;;  %v3785_v27 = vadd.f32 %v6717_v44, %v3784_v8  ;;  %v3762_v39 = vand.u32 2147483647, %v10292_v61  ;;  %v3719_v38 = vsel %vm3718_vm15, %v6715_v25, %v3715_v48 }
 0x4fd   : > { %v4071_v53 = vrot.slane %v3966_v58, 7  ;;  %v4313_v19 = vrot.slane %v3966_v58, 1  ;;  %4193 = vrot.lane.b32.xlu0 %v3966_v58, %s12124_s19  ;;  %v6723_v2 = vpop.eup %6722  ;;  %v3770_v58 = vmul.f32 %v10310_v10, %v3769_v11  ;;  %v3724_v59 = vsel %vm10295_vm6, %v3723_v32, %v3719_v38 }
 0x4fe   : > { %v4070_v40 = vrot.slane %v10328_v17, 7  ;;  %v4312_v7 = vrot.slane %v10328_v17, 1  ;;  %4191 = vrot.lane.b32.xlu2 %v10328_v17, %s12124_s19  ;;  %v3789_v0 = vsel %vm3788_vm10, %v6717_v44, %v3785_v27  ;;  %vm3773_vm5 = vweird.f32 %v10310_v10  ;;  %v10832_v17 = vld [vmem:[#allocation2 + $0xd8] sm:$0xff] }
 0x4ff   : > { %4386 = vst.msk [vmem:[#allocation2 + $0x138] sm:$0x7f] %vm4369_vm12, %v4313_v19  ;;  %v3754_v20 = vmul.f32 %v6723_v2, %v10292_v61  ;;  %v3964_v62 = vmul.f32 %v3724_v59, %v10149_v54  ;;  %v3794_v37 = vsel %vm10305_vm2, %v3793_v34, %v3789_v0  ;;  %vm12135_vm3 = vcmask 523264   ;;  %vm3774_vm7 = vmor %vm3772_vm8, %vm3773_vm5 }
 0x500   : > { %v4072_v25 = vsel %vm1623_vm13, %v4070_v40, %v4071_v53  ;;  %v4314_v46 = vsel %vm1866_vm0, %v4312_v7, %v4313_v19  ;;  %v3771_v6 = vadd.f32 %v10310_v10, %v3770_v58  ;;  %v3764_v32 = vand.u32 2147483648, %v10292_v61  ;;  %vm12136_vm4 = vmmov %vm12135_vm3 }
 0x501   : > { %4385 = vst.msk [vmem:[#allocation2 + $0x128] sm:$0xff] %vm12135_vm3, %v4314_v46  ;;  %v3755_v44 = vsub.f32 1.0, %v3754_v20  ;;  %v10358_v51 = vadd.f32 1.0, %v6719_v18  ;;  %v4068_v24 = vrot.slane %v3964_v62, 7  ;;  %v4310_v43 = vrot.slane %v3964_v62, 1  ;;  %4189 = vrot.lane.b32.xlu1 %v3964_v62, %s12124_s19  ;;  %vm12139_vm11 = vmmov %vm12135_vm3  ;;  %v6270_v20 = vld [vmem:[%s11966_s12 + $0xf0] sm:$0xff] }
 0x502   : > { %4144 = vst.msk [vmem:[#allocation2 + $0x130] sm:$0xff] %vm12136_vm4, %v4072_v25  ;;  %v3449_v54 = vmul.f32 1.442695, %v3395_v42  ;;  %v10370_v34 = vadd.f32 %v10245_v31, %v10251_v29  ;;  %v10373_v18 = vmul.f32 %v3794_v37, %v10166_v41  ;;  %v3775_v57 = vsel %vm3774_vm7, %v10310_v10, %v3771_v6  ;;  %vm12140_vm14 = vmmov %vm12135_vm3  ;;  %5041 = vmatpush.msrb.mxu3 %v6270_v20  ;;  %v4422_v37 = vld [vmem:[#allocation2 + $0x88] sm:$0xff] }
 0x503   : > { %v3756_v28 = vmul.f32 %v6723_v2, %v3755_v44  ;;  %vm3759_vm6 = vweird.f32 %v6723_v2  ;;  %v12137_v8 = vrot.slane %v10145_v56, 7  ;;  %v12138_v26 = vrot.slane %v10145_v56, 1  ;;  %4384 = vst.msk [vmem:[#allocation2 + $0x118] sm:$0x7f] %vm4369_vm12, %v4310_v43 }
 0x504   : > { %v3780_v29 = vsel %vm10323_vm1, %v3779_v23, %v3775_v57  ;;  %6724 = vrcp.f32 %v10358_v51  ;;  %v3261_v41 = vsub.f32 %v9683_v33, %v9834_v5  ;;  %vm3758_vm2 = vweird.f32 %v10292_v61  ;;  %vm12142_vm1 = vmmov %vm12135_vm3 }
 0x505   : > { %v4069_v48 = vsel %vm1623_vm13, %v12137_v8, %v4068_v24  ;;  %v4311_v11 = vsel %vm1866_vm0, %v12138_v26, %v4310_v43  ;;  %4199 = vrot.lane.b32.xlu0 %v10373_v18, %s12124_s19  ;;  %v3968_v42 = vmul.f32 %v3780_v29, %v10169_v15  ;;  %v3757_v10 = vadd.f32 %v6723_v2, %v3756_v28  ;;  %vm3760_vm8 = vmor %vm3758_vm2, %vm3759_vm6 }
 0x506   : > { %4383 = vst.msk [vmem:[#allocation2 + $0x108] sm:$0xff] %vm12139_vm11, %v4311_v11  ;;  %v3765_v22 = vor.u32 1.1754944e-38, %v3764_v32  ;;  %6726 = vpow2.f32 %v3449_v54  ;;  %v3394_v23 = vsub.f32 0.0, %v10370_v34  ;;  %v10397_v33 = vadd.f32 %v10245_v31, %v10266_v16  ;;  %6240 = vmatmul.msk.f32.gmra.mxu2 %vm12142_vm1, %v4422_v37  ;;  %vm12143_vm15 = vmmov %vm12142_vm1 }
 0x507   : > { %4142 = vst.msk [vmem:[#allocation2 + $0x110] sm:$0xff] %vm12140_vm14, %v4069_v48  ;;  %v3265_v53 = vsub.f32 %v9747_v3, %v9834_v5  ;;  %v4316_v19 = vrot.slane %v3968_v42, 1  ;;  %4197 = vrot.lane.b32.xlu2 %v3968_v42, %s12124_s19  ;;  %v3761_v15 = vsel %vm3760_vm8, %v6723_v2, %v3757_v10  ;;  %vm3763_vm9 = vcmp.eq.f32.partialorder %v3762_v39, 8.507059e+37  ;;  %6294 = vmatmul.msk.f32.gmra.mxu0 %vm12143_vm15, %v4422_v37  ;;  %vm12144_vm10 = vmmov %vm12142_vm1 }
 0x508   : > { %v4074_v61 = vrot.slane %v3968_v42, 7  ;;  %v3766_v27 = vsel %vm3763_vm9, %v3765_v22, %v3761_v15  ;;  %v3447_v7 = vmul.f32 1.442695, %v3394_v23  ;;  %v3399_v38 = vsub.f32 0.0, %v10397_v33  ;;  %vm12145_vm5 = vmmov %vm12142_vm1 }
 0x509   : > { %4388 = vst.msk [vmem:[#allocation2 + $0x158] sm:$0x7f] %vm4369_vm12, %v4316_v19  ;;  %v10405_v58 = vmul.f32 %v3766_v27, %v10179_v52  ;;  %v3294_v16 = vmul.f32 %v9838_v30, %v3261_v41  ;;  %v12141_v3 = vsub.f32 %v9677_v14, %v9834_v5  ;;  %v3298_v2 = vmul.f32 %v9838_v30, %v3265_v53  ;;  %vm12146_vm2 = vmmov %vm12142_vm1 }
 0x50a   : > { %v6725_v39 = vpop.eup %6724  ;;  %v3264_v0 = vsub.f32 %v9735_v13, %v9834_v5  ;;  %6728 = vpow2.f32 %v3447_v7  ;;  %v3457_v52 = vmul.f32 1.442695, %v3399_v38  ;;  %v3834_v62 = vand.u32 2147483648, %v10358_v51  ;;  %vm12149_vm9 = vmmov %vm12142_vm1 }
 0x50b   : > { %v3293_v59 = vmul.f32 %v9838_v30, %v12141_v3  ;;  %v4073_v25 = vrot.slane %v10405_v58, 7  ;;  %v4315_v46 = vrot.slane %v10405_v58, 1  ;;  %4195 = vrot.lane.b32.xlu1 %v10405_v58, %s12124_s19  ;;  %v3824_v14 = vmul.f32 %v6725_v39, %v10358_v51  ;;  %v4471_v58 = vld [vmem:[%s11966_s12 + $0x10] sm:$0xff] }
 0x50c   : > { %v6727_v13 = vpop.eup %6726  ;;  %6730 = vpow2.f32 %v3457_v52  ;;  %v3330_v6 = vmul.f32 %v10221_v63, %v3294_v16  ;;  %v3334_v32 = vmul.f32 %v10221_v63, %v3298_v2  ;;  %v3297_v26 = vmul.f32 %v9838_v30, %v3264_v0 }
 0x50d   : > { %v3329_v44 = vmul.f32 %v10221_v63, %v3293_v59  ;;  %v4075_v24 = vsel %vm1623_vm13, %v4073_v25, %v4074_v61  ;;  %v4317_v43 = vsel %vm1866_vm0, %v4315_v46, %v4316_v19  ;;  %v3825_v54 = vsub.f32 1.0, %v3824_v14 }
 0x50e   : > { %v10433_v57 = vadd.f32 1.0, %v6727_v13  ;;  %4387 = vst.msk [vmem:[#allocation2 + $0x148] sm:$0xff] %vm12144_vm10, %v4317_v43  ;;  %v10437_v28 = vadd.f32 %v10245_v31, %v3330_v6  ;;  %v10443_v48 = vadd.f32 %v10245_v31, %v3334_v32  ;;  %vm3829_vm3 = vweird.f32 %v6725_v39  ;;  %v4424_v32 = vld [vmem:[#allocation2 + $0x98] sm:$0xff] }
 0x50f   : > { %v10440_v8 = vadd.f32 %v10245_v31, %v3329_v44  ;;  %4146 = vst.msk [vmem:[#allocation2 + $0x150] sm:$0xff] %vm12145_vm5, %v4075_v24  ;;  %v3826_v11 = vmul.f32 %v6725_v39, %v3825_v54  ;;  %v3832_v29 = vand.u32 2147483647, %v10358_v51  ;;  %v3263_v42 = vsub.f32 %v9723_v4, %v9834_v5  ;;  %v6269_v44 = vld [vmem:[%s11966_s12 + $0xe8] sm:$0xff]  ;;  %6241 = vmatmul.msk.f32.gmra.mxu2 %vm12146_vm2, %v4424_v32 }
 0x510   : > { %6732 = vrcp.f32 %v10433_v57  ;;  %v6729_v41 = vpop.eup %6728  ;;  %v3266_v10 = vsub.f32 %v9755_v50, %v9834_v5  ;;  %v3398_v22 = vsub.f32 0.0, %v10437_v28  ;;  %vm3828_vm4 = vweird.f32 %v10358_v51  ;;  %5042 = vmatpush.msrb.mxu3 %v6269_v44  ;;  %6295 = vmatmul.msk.f32.gmra.mxu0 %vm12149_vm9, %v4424_v32 }
 0x511   : > { %v3397_v23 = vsub.f32 0.0, %v10440_v8  ;;  %v3827_v53 = vadd.f32 %v6725_v39, %v3826_v11  ;;  %v10456_v19 = vadd.f32 1.0, %v6729_v41  ;;  %v3402_v15 = vsub.f32 0.0, %v10443_v48  ;;  %vm3830_vm7 = vmor %vm3828_vm4, %vm3829_vm3 }
 0x512   : > { %v6731_v61 = vpop.eup %6730  ;;  %v3835_v27 = vor.u32 1.1754944e-38, %v3834_v62  ;;  %v3455_v7 = vmul.f32 1.442695, %v3398_v22  ;;  %v3333_v4 = vmul.f32 %v10221_v63, %v3297_v26  ;;  %vm3833_vm6 = vcmp.eq.f32.partialorder %v3832_v29, 8.507059e+37 }
 0x513   : > { %v3453_v38 = vmul.f32 1.442695, %v3397_v23  ;;  %v3831_v16 = vsel %vm3830_vm7, %v6725_v39, %v3827_v53  ;;  %6734 = vrcp.f32 %v10456_v19  ;;  %v3296_v3 = vmul.f32 %v9838_v30, %v3263_v42 }
 0x514   : > { %v3836_v59 = vsel %vm3833_vm6, %v3835_v27, %v3831_v16  ;;  %v3818_v51 = vand.u32 2147483647, %v10433_v57  ;;  %v10463_v2 = vadd.f32 1.0, %v6731_v61  ;;  %6736 = vpow2.f32 %v3455_v7 }
 0x515   : > { %v10466_v20 = vmul.f32 %v3836_v59, %v10183_v47  ;;  %v3820_v52 = vand.u32 2147483648, %v10433_v57  ;;  %6738 = vpow2.f32 %v3453_v38  ;;  %v3463_v46 = vmul.f32 1.442695, %v3402_v15 }
 0x516   : > { %v6733_v0 = vpop.eup %6732  ;;  %v3804_v14 = vand.u32 2147483647, %v10456_v19  ;;  %6740 = vrcp.f32 %v10463_v2  ;;  %v10473_v62 = vadd.f32 %v10245_v31, %v3333_v4  ;;  %v3267_v37 = vsub.f32 %v9777_v45, %v9834_v5 }
 0x517   : > { %v3810_v39 = vmul.f32 %v6733_v0, %v10433_v57  ;;  %v4076_v13 = vrot.slane %v10373_v18, 7  ;;  %v4322_v47 = vrot.slane %v10466_v20, 1  ;;  %4205 = vrot.lane.b32.xlu0 %v10466_v20, %s12124_s19  ;;  %v3806_v6 = vand.u32 2147483648, %v10456_v19 }
 0x518   : > { %v4318_v24 = vrot.slane %v10373_v18, 1  ;;  %vm3814_vm11 = vweird.f32 %v10433_v57  ;;  %6742 = vpow2.f32 %v3463_v46  ;;  %vm10491_vm14 = vcmp.eq.f32.partialorder %v3818_v51, 8.507059e+37 }
 0x519   : > { %v3811_v43 = vsub.f32 1.0, %v3810_v39  ;;  %v6735_v45 = vpop.eup %6734  ;;  %4392 = vst.msk [vmem:[#allocation2 + $0x198] sm:$0x7f] %vm4369_vm12, %v4322_v47  ;;  %v3821_v26 = vor.u32 1.1754944e-38, %v3820_v52  ;;  %vm3800_vm8 = vweird.f32 %v10456_v19  ;;  %v3332_v11 = vmul.f32 %v10221_v63, %v3296_v3 }
 0x51a   : > { %v6737_v29 = vpop.eup %6736  ;;  %vm3815_vm1 = vweird.f32 %v6733_v0  ;;  %v3796_v42 = vmul.f32 %v6735_v45, %v10456_v19  ;;  %vm10499_vm15 = vcmp.eq.f32.partialorder %v3804_v14, 8.507059e+37  ;;  %v3401_v23 = vsub.f32 0.0, %v10473_v62 }
 0x51b   : > { %v3812_v41 = vmul.f32 %v6733_v0, %v3811_v43  ;;  %v6739_v53 = vpop.eup %6738  ;;  %v4080_v15 = vrot.slane %v10466_v20, 7  ;;  %v3807_v61 = vor.u32 1.1754944e-38, %v3806_v6  ;;  %vm3870_vm10 = vweird.f32 %v10463_v2  ;;  %vm3816_vm5 = vmor %vm3814_vm11, %vm3815_vm1 }
 0x51c   : > { %v10506_v27 = vadd.f32 1.0, %v6737_v29  ;;  %v6741_v7 = vpop.eup %6740  ;;  %v3797_v4 = vsub.f32 1.0, %v3796_v42  ;;  %v3874_v16 = vand.u32 2147483647, %v10463_v2  ;;  %v10509_v3 = vadd.f32 1.0, %v6739_v53  ;;  %vm12155_vm1 = vmmov %vm12146_vm2 }
 0x51d   : > { %v3813_v38 = vadd.f32 %v6733_v0, %v3812_v41  ;;  %v3866_v59 = vmul.f32 %v6741_v7, %v10463_v2  ;;  %v3876_v51 = vand.u32 2147483648, %v10463_v2  ;;  %v10517_v52 = vadd.f32 %v10245_v31, %v3332_v11 }
 0x51e   : > { %6744 = vrcp.f32 %v10506_v27  ;;  %v6743_v46 = vpop.eup %6742  ;;  %v3798_v14 = vmul.f32 %v6735_v45, %v3797_v4  ;;  %vm3801_vm3 = vweird.f32 %v6735_v45  ;;  %v3461_v6 = vmul.f32 1.442695, %v3401_v23 }
 0x51f   : > { %v3817_v39 = vsel %vm3816_vm5, %v6733_v0, %v3813_v38  ;;  %v3867_v32 = vsub.f32 1.0, %v3866_v59  ;;  %6746 = vrcp.f32 %v10509_v3  ;;  %v3300_v57 = vmul.f32 %v9838_v30, %v3267_v37  ;;  %vm3802_vm7 = vmor %vm3800_vm8, %vm3801_vm3 }
 0x520   : > { %v3822_v44 = vsel %vm10491_vm14, %v3821_v26, %v3817_v39  ;;  %v3799_v29 = vadd.f32 %v6735_v45, %v3798_v14  ;;  %vm10526_vm4 = vcmp.eq.f32.partialorder %v3874_v16, 8.507059e+37  ;;  %v3299_v0 = vmul.f32 %v9838_v30, %v3266_v10  ;;  %vm12154_vm14 = vmmov %vm12146_vm2 }
 0x521   : > { %v10524_v43 = vmul.f32 %v3822_v44, %v10248_v35  ;;  %v3868_v54 = vmul.f32 %v6741_v7, %v3867_v32  ;;  %vm3871_vm6 = vweird.f32 %v6741_v7  ;;  %v3877_v26 = vor.u32 1.1754944e-38, %v3876_v51 }
 0x522   : > { %v10536_v37 = vadd.f32 1.0, %v6743_v46  ;;  %v3803_v42 = vsel %vm3802_vm7, %v6735_v45, %v3799_v29  ;;  %6748 = vpow2.f32 %v3461_v6  ;;  %v3400_v10 = vsub.f32 0.0, %v10517_v52  ;;  %vm3872_vm11 = vmor %vm3870_vm10, %vm3871_vm6 }
 0x523   : > { %v4079_v35 = vrot.slane %v10524_v43, 7  ;;  %v4321_v41 = vrot.slane %v10524_v43, 1  ;;  %4203 = vrot.lane.b32.xlu2 %v10524_v43, %s12124_s19  ;;  %v3808_v5 = vsel %vm10499_vm15, %v3807_v61, %v3803_v42  ;;  %v3869_v30 = vadd.f32 %v6741_v7, %v3868_v54  ;;  %vm12156_vm10 = vmmov %vm12155_vm1 }
 0x524   : > { %v6745_v50 = vpop.eup %6744  ;;  %v3336_v19 = vmul.f32 %v10221_v63, %v3300_v57  ;;  %v3970_v45 = vmul.f32 %v3808_v5, %v10370_v34  ;;  %v3862_v4 = vand.u32 2147483648, %v10506_v27  ;;  %6750 = vrcp.f32 %v10536_v37  ;;  %v10673_v5 = vpop.permute.xlu0 %4163 }
 0x525   : > { %v4081_v23 = vsel %vm1623_vm13, %v4079_v35, %v4080_v15  ;;  %v4323_v53 = vsel %vm1866_vm0, %v4321_v41, %v4322_v47  ;;  %v3852_v22 = vmul.f32 %v6745_v50, %v10506_v27  ;;  %v10557_v61 = vpop.eup %6746  ;;  %v3873_v38 = vsel %vm3872_vm11, %v6741_v7, %v3869_v30 }
 0x526   : > { %4391 = vst.msk [vmem:[#allocation2 + $0x188] sm:$0xff] %vm12146_vm2, %v4323_v53  ;;  %v3335_v20 = vmul.f32 %v10221_v63, %v3299_v0  ;;  %v4077_v34 = vrot.slane %v3970_v45, 7  ;;  %v4319_v47 = vrot.slane %v3970_v45, 1  ;;  %4201 = vrot.lane.b32.xlu1 %v3970_v45, %s12124_s19  ;;  %v3878_v2 = vsel %vm10526_vm4, %v3877_v26, %v3873_v38  ;;  %v4426_v53 = vld [vmem:[#allocation2 + $0xa8] sm:$0xff]  ;;  %v4484_v45 = vld [vmem:[%s11966_s12 + $0x78] sm:$0xff]  ;;  %vm12159_vm2 = vmmov %vm12155_vm1 }
 0x527   : > { %4150 = vst.msk [vmem:[#allocation2 + $0x190] sm:$0xff] %vm12154_vm14, %v4081_v23  ;;  %v3853_v15 = vsub.f32 1.0, %v3852_v22  ;;  %v10568_v16 = vmul.f32 %v3878_v2, %v10397_v33  ;;  %vm3856_vm8 = vweird.f32 %v10506_v27  ;;  %v3860_v7 = vand.u32 2147483647, %v10506_v27  ;;  %6242 = vmatmul.msk.f32.gmra.mxu2 %vm12159_vm2, %v4426_v53  ;;  %vm12160_vm14 = vmmov %vm12155_vm1  ;;  %4589 = vmatpush.msra.mxu1 %v4484_v45  ;;  %v6266_v45 = vld [vmem:[%s11966_s12 + $0xd0] sm:$0xff] }
 0x528   : > { %v3838_v63 = vmul.f32 %v10557_v61, %v10509_v3  ;;  %v6749_v59 = vpop.eup %6748  ;;  %v4078_v51 = vsel %vm1623_vm13, %v4076_v13, %v4077_v34  ;;  %v4320_v46 = vsel %vm1866_vm0, %v4318_v24, %v4319_v47  ;;  %4390 = vst.msk [vmem:[#allocation2 + $0x178] sm:$0x7f] %vm4369_vm12, %v4319_v47  ;;  %vm3857_vm9 = vweird.f32 %v6745_v50  ;;  %6296 = vmatmul.msk.f32.gmra.mxu0 %vm12160_vm14, %v4426_v53 }
 0x529   : > { %v3854_v33 = vmul.f32 %v6745_v50, %v3853_v15  ;;  %4389 = vst.msk [vmem:[#allocation2 + $0x168] sm:$0xff] %vm12155_vm1, %v4320_v46  ;;  %4211 = vrot.lane.b32.xlu0 %v10568_v16, %s12124_s19  ;;  %vm3842_vm15 = vweird.f32 %v10509_v3  ;;  %v3846_v14 = vand.u32 2147483647, %v10509_v3  ;;  %v3848_v6 = vand.u32 2147483648, %v10509_v3  ;;  %vm3858_vm5 = vmor %vm3856_vm8, %vm3857_vm9 }
 0x52a   : > { %v3839_v39 = vsub.f32 1.0, %v3838_v63  ;;  %4148 = vst.msk [vmem:[#allocation2 + $0x170] sm:$0xff] %vm12156_vm10, %v4078_v51  ;;  %v3863_v24 = vor.u32 1.1754944e-38, %v3862_v4  ;;  %v10588_v32 = vadd.f32 1.0, %v6749_v59  ;;  %v3459_v57 = vmul.f32 1.442695, %v3400_v10  ;;  %v10590_v29 = vpop.eup %6750 }
 0x52b   : > { %v3855_v44 = vadd.f32 %v6745_v50, %v3854_v33  ;;  %vm3843_vm3 = vweird.f32 %v10557_v61  ;;  %v10597_v0 = vadd.f32 %v10245_v31, %v3336_v19  ;;  %v10600_v54 = vadd.f32 %v10245_v31, %v3335_v20  ;;  %v4483_v20 = vld [vmem:[%s11966_s12 + $0x70] sm:$0xff] }
 0x52c   : > { %v3840_v11 = vmul.f32 %v10557_v61, %v3839_v39  ;;  %vm3861_vm4 = vcmp.eq.f32.partialorder %v3860_v7, 8.507059e+37  ;;  %v3908_v41 = vmul.f32 %v10590_v29, %v10536_v37  ;;  %6752 = vrcp.f32 %v10588_v32  ;;  %vm3844_vm6 = vmor %vm3842_vm15, %vm3843_vm3  ;;  %4590 = vmatpush.msra.mxu1 %v4483_v20 }
 0x52d   : > { %v3859_v26 = vsel %vm3858_vm5, %v6745_v50, %v3855_v44  ;;  %vm10606_vm7 = vcmp.eq.f32.partialorder %v3846_v14, 8.507059e+37  ;;  %v3849_v30 = vor.u32 1.1754944e-38, %v3848_v6  ;;  %v3916_v50 = vand.u32 2147483647, %v10536_v37  ;;  %vm12161_vm15 = vmmov %vm12159_vm2 }
 0x52e   : > { %v3864_v42 = vsel %vm3861_vm4, %v3863_v24, %v3859_v26  ;;  %v3841_v27 = vadd.f32 %v10557_v61, %v3840_v11  ;;  %v3909_v31 = vsub.f32 1.0, %v3908_v41  ;;  %6754 = vpow2.f32 %v3459_v57  ;;  %vm12162_vm5 = vmmov %vm12159_vm2 }
 0x52f   : > { %v3974_v10 = vmul.f32 %v3864_v42, %v10437_v28  ;;  %v3918_v23 = vand.u32 2147483648, %v10536_v37  ;;  %v6268_v28 = vld [vmem:[%s11966_s12 + $0xe0] sm:$0xff]  ;;  %v3404_v3 = vsub.f32 0.0, %v10597_v0  ;;  %v3403_v22 = vsub.f32 0.0, %v10600_v54  ;;  %v4480_v42 = vld [vmem:[%s11966_s12 + $0x58] sm:$0xff]  ;;  %vm12163_vm4 = vmmov %vm12159_vm2 }
 0x530   : > { %v3845_v19 = vsel %vm3844_vm6, %v10557_v61, %v3841_v27  ;;  %v3910_v4 = vmul.f32 %v10590_v29, %v3909_v31  ;;  %vm3913_vm11 = vweird.f32 %v10590_v29  ;;  %v4047_v34 = vrot.slane %v9909_v36, 7  ;;  %5043 = vmatpush.msrb.mxu3 %v6268_v28  ;;  %v4482_v36 = vld [vmem:[%s11966_s12 + $0x68] sm:$0xff]  ;;  %v4162_v27 = vpop.permute.xlu2 %4161  ;;  %v6267_v31 = vld [vmem:[%s11966_s12 + $0xd8] sm:$0xff]  ;;  %v10705_v28 = vpop.permute.xlu1 %4159 }
 0x531   : > { %v4325_v38 = vrot.slane %v3974_v10, 1  ;;  %4209 = vrot.lane.b32.xlu2 %v3974_v10, %s12124_s19  ;;  %v3850_v61 = vsel %vm10606_vm7, %v3849_v30, %v3845_v19  ;;  %v4083_v47 = vrot.slane %v3974_v10, 7  ;;  %v3467_v15 = vmul.f32 1.442695, %v3404_v3  ;;  %4591 = vmatpush.msra.mxu1 %v4482_v36  ;;  %v10679_v10 = vld [vmem:[#allocation2 + $0xb8] sm:$0xff]  ;;  %vm12164_vm7 = vmmov %vm12159_vm2 }
 0x532   : > { %v10635_v2 = vmul.f32 %v3850_v61, %v10440_v8  ;;  %v10638_v7 = vpop.eup %6752  ;;  %v4046_v63 = vrot.slane %v9921_v9, 7  ;;  %v3911_v59 = vadd.f32 %v10590_v29, %v3910_v4  ;;  %vm3912_vm8 = vweird.f32 %v10536_v37  ;;  %6243 = vmatmul.msk.f32.gmra.mxu2 %vm12163_vm4, %v10679_v10  ;;  %6297 = vmatmul.msk.f32.gmra.mxu0 %vm12159_vm2, %v10679_v10 }
 0x533   : > { %4394 = vst.msk [vmem:[#allocation2 + $0x1b8] sm:$0x7f] %vm4369_vm12, %v4325_v38  ;;  %v3465_v8 = vmul.f32 1.442695, %v3403_v22  ;;  %vm3914_vm9 = vmor %vm3912_vm8, %vm3913_vm11  ;;  %v3919_v33 = vor.u32 1.1754944e-38, %v3918_v23  ;;  %v3894_v37 = vmul.f32 %v10638_v7, %v10588_v32  ;;  %vm3917_vm1 = vcmp.eq.f32.partialorder %v3916_v50, 8.507059e+37  ;;  %5044 = vmatpush.msrb.mxu3 %v6267_v31 }
 0x534   : > { %v4082_v51 = vrot.slane %v10635_v2, 7  ;;  %v4324_v46 = vrot.slane %v10635_v2, 1  ;;  %4207 = vrot.lane.b32.xlu1 %v10635_v2, %s12124_s19  ;;  %v6755_v39 = vpop.eup %6754  ;;  %v3915_v14 = vsel %vm3914_vm9, %v10590_v29, %v3911_v59  ;;  %v3904_v6 = vand.u32 2147483648, %v10588_v32  ;;  %v4481_v29 = vld [vmem:[%s11966_s12 + $0x60] sm:$0xff]  ;;  %v4479_v23 = vld [vmem:[%s11966_s12 + $0x50] sm:$0xff]  ;;  %vm12168_vm9 = vmmov %vm12159_vm2 }
 0x535   : > { %6756 = vpow2.f32 %v3467_v15  ;;  %v3920_v57 = vsel %vm3917_vm1, %v3919_v33, %v3915_v14  ;;  %v3895_v11 = vsub.f32 1.0, %v3894_v37  ;;  %v10665_v41 = vadd.f32 1.0, %v6755_v39  ;;  %4592 = vmatpush.msra.mxu1 %v4481_v29  ;;  %5045 = vmatpush.msrb.mxu3 %v6266_v45  ;;  %v6265_v15 = vld [vmem:[%s11966_s12 + $0xc8] sm:$0xff]  ;;  %v6343_v14 = vld [vmem:[%s11966_s12 + $0x238] sm:$0xff]  ;;  %vm12170_vm1 = vmmov %vm12159_vm2 }
 0x536   : > { %v4084_v44 = vsel %vm1623_vm13, %v4082_v51, %v4083_v47  ;;  %v4326_v24 = vsel %vm1866_vm0, %v4324_v46, %v4325_v38  ;;  %v10663_v26 = vmul.f32 %v3920_v57, %v10443_v48  ;;  %6758 = vpow2.f32 %v3465_v8  ;;  %v4477_v47 = vld [vmem:[%s11966_s12 + $0x40] sm:$0xff]  ;;  %v4474_v29 = vld [vmem:[%s11966_s12 + $0x28] sm:$0xff]  ;;  %5596 = vmatpush.msra.mxu2 %v6343_v14  ;;  %v6335_v14 = vld [vmem:[%s11966_s12 + $0x1f8] sm:$0xff] }
 0x537   : > { %4393 = vst.msk [vmem:[#allocation2 + $0x1a8] sm:$0xff] %vm12161_vm15, %v4326_v24  ;;  %vm4255_vm10 = vcmask 1048064   ;;  %v3896_v48 = vmul.f32 %v10638_v7, %v3895_v11  ;;  %vm3899_vm3 = vweird.f32 %v10638_v7  ;;  %v3902_v30 = vand.u32 2147483647, %v10588_v32  ;;  %4593 = vmatpush.msra.mxu1 %v4480_v42  ;;  %5046 = vmatpush.msrb.mxu3 %v6265_v15  ;;  %vm12172_vm15 = vmmov %vm12170_vm1  ;;  %v5736_v42 = vld [vmem:[%s11968_s14 + $0x18] sm:$0xff] }
 0x538   : > { %4152 = vst.msk [vmem:[#allocation2 + $0x1b0] sm:$0xff] %vm12162_vm5, %v4084_v44  ;;  %v4048_v50 = vsel %vm1623_vm13, %v4046_v63, %v4047_v34  ;;  %v4331_v19 = vrot.slane %v10663_v26, 1  ;;  %4217 = vrot.lane.b32.xlu0 %v10663_v26, %s12124_s19  ;;  %6760 = vrcp.f32 %v10665_v41  ;;  %vm4126_vm6 = vcmask 523265   ;;  %v4168_v8 = vpop.permute.xlu2 %4167  ;;  %vm12173_vm5 = vmmov %vm12170_vm1 }
 0x539   : > { %4128 = vst.msk [vmem:[#allocation2 + $0x30] sm:$0xff] %vm12164_vm7, %v4048_v50  ;;  %v3897_v53 = vadd.f32 %v10638_v7, %v3896_v48  ;;  %vm3898_vm11 = vweird.f32 %v10588_v32  ;;  %v3905_v22 = vor.u32 1.1754944e-38, %v3904_v6  ;;  %v4478_v32 = vld [vmem:[%s11966_s12 + $0x48] sm:$0xff]  ;;  %vm3903_vm8 = vcmp.eq.f32.partialorder %v3902_v30, 8.507059e+37  ;;  %4594 = vmatpush.msra.mxu1 %v4479_v23  ;;  %v4475_v6 = vld [vmem:[%s11966_s12 + $0x30] sm:$0xff]  ;;  %v10795_v30 = vpop.permute.xlu1 %4165  ;;  %v4473_v50 = vld [vmem:[%s11966_s12 + $0x20] sm:$0xff] }
 0x53a   : > { %4257 = vst.msk [vmem:[#allocation2 + $0x30] sm:$0xff] %vm4255_vm10, %v4162_v27  ;;  %vm3900_vm14 = vmor %vm3898_vm11, %vm3899_vm3  ;;  %v12165_v4 = vrot.slane %v9956_v49, 7  ;;  %v12166_v59 = vrot.slane %v9897_v1, 7  ;;  %v12167_v46 = vrot.slane %v10022_v21, 7  ;;  %v6264_v1 = vld [vmem:[%s11966_s12 + $0xc0] sm:$0xff]  ;;  %v10757_v21 = vld [vmem:[#allocation2 + $0xc8] sm:$0xff]  ;;  %vm3884_vm4 = vweird.f32 %v10665_v41 }
 0x53b   : > { %v6757_v3 = vpop.eup %6756  ;;  %4398 = vst.msk [vmem:[#allocation2 + $0x1f8] sm:$0x7f] %vm4369_vm12, %v4331_v19  ;;  %v3901_v38 = vsel %vm3900_vm14, %v10638_v7, %v3897_v53  ;;  %v4089_v7 = vrot.slane %v10663_v26, 7  ;;  %4595 = vmatpush.msra.mxu1 %v4478_v32  ;;  %6244 = vmatmul.msk.f32.gmra.mxu2 %vm12168_vm9, %v10757_v21  ;;  %v12169_v44 = vrot.slane %v10001_v12, 7  ;;  %v12171_v26 = vrot.slane %v10062_v55, 7  ;;  %vm12178_vm14 = vmmov %vm12170_vm1 }
 0x53c   : > { %v10714_v61 = vadd.f32 1.0, %v6757_v3  ;;  %4131 = vst.msk [vmem:[#allocation2 + $0x60] sm:$0xfe] %vm4126_vm6, %v12165_v4  ;;  %v6759_v20 = vpop.eup %6758  ;;  %v3906_v34 = vsel %vm3903_vm8, %v3905_v22, %v3901_v38  ;;  %5047 = vmatpush.msrb.mxu3 %v6264_v1  ;;  %6298 = vmatmul.msk.f32.gmra.mxu0 %vm12170_vm1, %v10757_v21  ;;  %v3890_v12 = vand.u32 2147483648, %v10665_v41  ;;  %v3888_v48 = vand.u32 2147483647, %v10665_v41  ;;  %vm12179_vm9 = vmmov %vm12170_vm1 }
 0x53d   : > { %4127 = vst.msk [vmem:[#allocation2 + $0x20] sm:$0xfe] %vm4126_vm6, %v4046_v63  ;;  %v10730_v49 = vmul.f32 %v3906_v34, %v10473_v62  ;;  %v10738_v9 = vadd.f32 1.0, %v6759_v20  ;;  %v4476_v63 = vld [vmem:[%s11966_s12 + $0x38] sm:$0xff]  ;;  %v10749_v62 = vpop.permute.xlu0 %4169  ;;  %4596 = vmatpush.msra.mxu1 %v4477_v47  ;;  %v12175_v53 = vrot.slane %v10145_v56, 7  ;;  %v4085_v38 = vrot.slane %v10568_v16, 7 }
 0x53e   : > { %6762 = vrcp.f32 %v10714_v61  ;;  %4129 = vst.msk [vmem:[#allocation2 + $0x40] sm:$0xfe] %vm4126_vm6, %v12166_v59  ;;  %v10736_v36 = vpop.eup %6760  ;;  %5849 = vmatpush.msra.mxu3 %v5736_v42  ;;  %v3891_v22 = vor.u32 1.1754944e-38, %v3890_v12  ;;  %v4472_v56 = vld [vmem:[%s11966_s12 + $0x18] sm:$0xff]  ;;  %vm3889_vm11 = vcmp.eq.f32.partialorder %v3888_v48, 8.507059e+37  ;;  %vm3940_vm8 = vweird.f32 %v10714_v61  ;;  %v4469_v1 = vld [vmem:[%s11966_s12] sm:$0xff]  ;;  %v10915_v42 = vpop.f32.mrf.mxu2 }
 0x53f   : > { %4133 = vst.msk [vmem:[#allocation2 + $0x80] sm:$0xfe] %vm4126_vm6, %v12167_v46  ;;  %v4088_v33 = vrot.slane %v10730_v49, 7  ;;  %v4330_v37 = vrot.slane %v10730_v49, 1  ;;  %4215 = vrot.lane.b32.xlu2 %v10730_v49, %s12124_s19  ;;  %v3880_v39 = vmul.f32 %v10736_v36, %v10665_v41  ;;  %6764 = vrcp.f32 %v10738_v9  ;;  %4597 = vmatpush.msra.mxu1 %v4476_v63 }
 0x540   : > { %4260 = vst.msk [vmem:[#allocation2 + $0x60] sm:$0xff] %vm4255_vm10, %v4168_v8  ;;  %vm3885_vm3 = vweird.f32 %v10736_v36  ;;  %v4174_v41 = vpop.permute.xlu2 %4173  ;;  %v3944_v15 = vand.u32 2147483647, %v10714_v61 }
 0x541   : > { %4135 = vst.msk [vmem:[#allocation2 + $0xa0] sm:$0xfe] %vm4126_vm6, %v12169_v44  ;;  %v4090_v24 = vsel %vm1623_vm13, %v4088_v33, %v4089_v7  ;;  %v4332_v57 = vsel %vm1866_vm0, %v4330_v37, %v4331_v19  ;;  %v3881_v11 = vsub.f32 1.0, %v3880_v39  ;;  %4598 = vmatpush.msra.mxu1 %v4475_v6  ;;  %v12174_v19 = vrot.slane %v10233_v60, 7  ;;  %vm10812_vm7 = vmor %vm3884_vm4, %vm3885_vm3  ;;  %v4172_v37 = vpop.permute.xlu1 %4171 }
 0x542   : > { %4137 = vst.msk [vmem:[#allocation2 + $0xc0] sm:$0xfe] %vm4126_vm6, %v12171_v26  ;;  %v3946_v60 = vand.u32 2147483648, %v10714_v61  ;;  %vm3926_vm3 = vweird.f32 %v10738_v9  ;;  %vm12180_vm4 = vmmov %vm12179_vm9  ;;  %v6334_v26 = vld [vmem:[%s11966_s12 + $0x1f0] sm:$0xff] }
 0x543   : > { %4397 = vst.msk [vmem:[#allocation2 + $0x1e8] sm:$0xff] %vm12172_vm15, %v4332_v57  ;;  %v3882_v55 = vmul.f32 %v10736_v36, %v3881_v11  ;;  %4599 = vmatpush.msra.mxu1 %v4474_v29  ;;  %6245 = vmatmul.msk.f32.gmra.mxu2 %vm12178_vm14, %v10832_v17  ;;  %v6785_v57 = vld [vmem:[#allocation2] sm:$0xff]  ;;  %vm12182_vm14 = vmmov %vm12180_vm4 }
 0x544   : > { %v10789_v27 = vpop.eup %6762  ;;  %4156 = vst.msk [vmem:[#allocation2 + $0x1f0] sm:$0xff] %vm12173_vm5, %v4090_v24  ;;  %6299 = vmatmul.msk.f32.gmra.mxu0 %vm12179_vm9, %v10832_v17  ;;  %vm3945_vm5 = vcmp.eq.f32.partialorder %v3944_v15, 8.507059e+37  ;;  %vm12185_vm9 = vmmov %vm12180_vm4 }
 0x545   : > { %v3936_v31 = vmul.f32 %v10789_v27, %v10714_v61  ;;  %4139 = vst.msk [vmem:[#allocation2 + $0xe0] sm:$0xfe] %vm4126_vm6, %v12174_v19  ;;  %v3883_v23 = vadd.f32 %v10736_v36, %v3882_v55  ;;  %v10810_v45 = vpop.eup %6764  ;;  %4600 = vmatpush.msra.mxu1 %v4473_v50  ;;  %vm3941_vm2 = vweird.f32 %v10789_v27  ;;  %v10917_v55 = vld [vmem:[#allocation2 + $0xf8] sm:$0xff]  ;;  %v10937_v19 = vld [vmem:[#allocation2 + $0x108] sm:$0xff] }
 0x546   : > { %4141 = vst.msk [vmem:[#allocation2 + $0x100] sm:$0xfe] %vm4126_vm6, %v12175_v53  ;;  %v3922_v20 = vmul.f32 %v10810_v45, %v10738_v9  ;;  %vm3942_vm1 = vmor %vm3940_vm8, %vm3941_vm2  ;;  %vm3927_vm15 = vweird.f32 %v10810_v45 }
 0x547   : > { %v3937_v32 = vsub.f32 1.0, %v3936_v31  ;;  %4143 = vst.msk [vmem:[#allocation2 + $0x120] sm:$0xfe] %vm4126_vm6, %v4070_v40  ;;  %v3887_v4 = vsel %vm10812_vm7, %v10736_v36, %v3883_v23  ;;  %v10834_v40 = vpop.permute.xlu0 %4175  ;;  %4601 = vmatpush.msra.mxu1 %v4472_v56  ;;  %v3930_v36 = vand.u32 2147483647, %v10738_v9  ;;  %vm3928_vm7 = vmor %vm3926_vm3, %vm3927_vm15  ;;  %v6342_v31 = vld [vmem:[%s11966_s12 + $0x230] sm:$0xff]  ;;  %v10942_v23 = vpop.f32.mrf.mxu2 }
 0x548   : > { %4145 = vst.msk [vmem:[#allocation2 + $0x140] sm:$0xfe] %vm4126_vm6, %v4073_v25  ;;  %v3892_v34 = vsel %vm3889_vm11, %v3891_v22, %v3887_v4  ;;  %v4327_v25 = vrot.slane %v10568_v16, 1  ;;  %v3923_v59 = vsub.f32 1.0, %v3922_v20  ;;  %v3932_v16 = vand.u32 2147483648, %v10738_v9  ;;  %vm12181_vm11 = vmmov %vm12180_vm4  ;;  %5597 = vmatpush.msra.mxu2 %v6342_v31  ;;  %v10948_v22 = vld [vmem:[#allocation2 + $0x118] sm:$0xff] }
 0x549   : > { %v3938_v47 = vmul.f32 %v10789_v27, %v3937_v32  ;;  %4147 = vst.msk [vmem:[#allocation2 + $0x160] sm:$0xfe] %vm4126_vm6, %v4076_v13  ;;  %v3976_v7 = vmul.f32 %v3892_v34, %v10517_v52  ;;  %v3947_v13 = vor.u32 1.1754944e-38, %v3946_v60  ;;  %4602 = vmatpush.msra.mxu1 %v4471_v58  ;;  %vm3931_vm2 = vcmp.eq.f32.partialorder %v3930_v36, 8.507059e+37  ;;  %vm12183_vm8 = vmmov %vm12180_vm4  ;;  %v6333_v56 = vld [vmem:[%s11966_s12 + $0x1e8] sm:$0xff]  ;;  %v10984_v15 = vld [vmem:[#allocation2 + $0x60] sm:$0xff] }
 0x54a   : > { %4149 = vst.msk [vmem:[#allocation2 + $0x180] sm:$0xfe] %vm4126_vm6, %v4079_v35  ;;  %v3924_v43 = vmul.f32 %v10810_v45, %v3923_v59  ;;  %v4470_v35 = vld [vmem:[%s11966_s12 + $0x8] sm:$0xff]  ;;  %v3933_v9 = vor.u32 1.1754944e-38, %v3932_v16  ;;  %v6328_v31 = vld [vmem:[%s11966_s12 + $0x1c0] sm:$0xff] }
 0x54b   : > { %v3939_v18 = vadd.f32 %v10789_v27, %v3938_v47  ;;  %4151 = vst.msk [vmem:[#allocation2 + $0x1a0] sm:$0xfe] %vm4126_vm6, %v4082_v51  ;;  %v4086_v52 = vrot.slane %v3976_v7, 7  ;;  %v4328_v61 = vrot.slane %v3976_v7, 1  ;;  %4213 = vrot.lane.b32.xlu1 %v3976_v7, %s12124_s19  ;;  %4603 = vmatpush.msra.mxu1 %v4470_v35  ;;  %v10976_v47 = vld [vmem:[#allocation2 + $0x138] sm:$0xff]  ;;  %v10991_v59 = vld [vmem:[#allocation2 + $0x148] sm:$0xff] }
 0x54c   : > { %4153 = vst.msk [vmem:[#allocation2 + $0x1c0] sm:$0xfe] %vm4126_vm6, %v4085_v38  ;;  %v3925_v46 = vadd.f32 %v10810_v45, %v3924_v43  ;;  %v6332_v43 = vld [vmem:[%s11966_s12 + $0x1e0] sm:$0xff]  ;;  %v6341_v35 = vld [vmem:[%s11966_s12 + $0x228] sm:$0xff] }
 0x54d   : > { %v3943_v2 = vsel %vm3942_vm1, %v10789_v27, %v3939_v18  ;;  %4155 = vst.msk [vmem:[#allocation2 + $0x1e0] sm:$0xfe] %vm4126_vm6, %v4088_v33  ;;  %v4087_v51 = vsel %vm1623_vm13, %v4085_v38, %v4086_v52  ;;  %v4329_v63 = vsel %vm1866_vm0, %v4327_v25, %v4328_v61  ;;  %v4180_v33 = vpop.permute.xlu2 %4179  ;;  %4604 = vmatpush.msra.mxu1 %v4469_v1  ;;  %v4178_v27 = vpop.permute.xlu1 %4177  ;;  %v10962_v38 = vld [vmem:[#allocation2 + $0x128] sm:$0xff] }
 0x54e   : > { %4396 = vst.msk [vmem:[#allocation2 + $0x1d8] sm:$0x7f] %vm4369_vm12, %v4328_v61  ;;  %v3948_v8 = vsel %vm3945_vm5, %v3947_v13, %v3943_v2  ;;  %v3929_v39 = vsel %vm3928_vm7, %v10810_v45, %v3925_v46  ;;  %4605 = vmatmul.f32.vlgmr.msra.gmra.mxu1 %v6785_v57  ;;  %v4411_v45 = vld [vmem:[#allocation2 + $0x30] sm:$0xff]  ;;  %v11001_v13 = vld [vmem:[#allocation2 + $0x158] sm:$0xff]  ;;  %5598 = vmatpush.msra.mxu2 %v6341_v35  ;;  %v11021_v2 = vld [vmem:[#allocation2 + $0x168] sm:$0xff] }
 0x54f   : > { %4395 = vst.msk [vmem:[#allocation2 + $0x1c8] sm:$0xff] %vm12180_vm4, %v4329_v63  ;;  %v3980_v49 = vmul.f32 %v3948_v8, %v10597_v0  ;;  %v3934_v44 = vsel %vm3931_vm2, %v3933_v9, %v3929_v39  ;;  %v10893_v0 = vld [vmem:[#allocation2 + $0xe8] sm:$0xff]  ;;  %v4182_v11 = vpop.permute.xlu0 %4181  ;;  %5475 = vmatpush.msrb.mxu1 %v6335_v14  ;;  %v10956_v60 = vpop.f32.mrf.mxu2  ;;  %v11033_v46 = vld [vmem:[#allocation2 + $0x178] sm:$0xff] }
 0x550   : > { %4154 = vst.msk [vmem:[#allocation2 + $0x1d0] sm:$0xff] %vm12181_vm11, %v4087_v51  ;;  %v3979_v24 = vmul.f32 %v3934_v44, %v10600_v54  ;;  %6246 = vmatmul.msk.f32.gmra.mxu2 %vm12182_vm14, %v10893_v0  ;;  %6300 = vmatmul.msk.f32.gmra.mxu0 %vm12183_vm8, %v10893_v0  ;;  %v6331_v39 = vld [vmem:[%s11966_s12 + $0x1d8] sm:$0xff]  ;;  %v11054_v14 = vld [vmem:[#allocation2 + $0x188] sm:$0xff] }
 0x551   : > { %v4334_v6 = vrot.slane %v3980_v49, 1  ;;  %4221 = vrot.lane.b32.xlu2 %v3980_v49, %s12124_s19  ;;  %4263 = vst.msk [vmem:[#allocation2 + $0x90] sm:$0xff] %vm4255_vm10, %v4174_v41  ;;  %5476 = vmatpush.msrb.mxu1 %v6334_v26  ;;  %v4092_v48 = vrot.slane %v3980_v49, 7  ;;  %v6340_v26 = vld [vmem:[%s11966_s12 + $0x220] sm:$0xff] }
 0x552   : > { %4258 = vst.msk [vmem:[#allocation2 + $0x40] sm:$0xff] %vm4255_vm10, %v10673_v5  ;;  %v4091_v54 = vrot.slane %v3979_v24, 7  ;;  %v4333_v12 = vrot.slane %v3979_v24, 1  ;;  %5599 = vmatpush.msra.mxu2 %v6340_v26  ;;  %v11171_v26 = vld [vmem:[#allocation2 + $0x1e8] sm:$0xff] }
 0x553   : > { %4400 = vst.msk [vmem:[#allocation2 + $0x218] sm:$0x7f] %vm4369_vm12, %v4334_v6  ;;  %4219 = vrot.lane.b32.xlu1 %v3979_v24, %s12124_s19  ;;  %vm12184_vm12 = vmmov %vm12180_vm4  ;;  %5477 = vmatpush.msrb.mxu1 %v6333_v56  ;;  %v6338_v56 = vld [vmem:[%s11966_s12 + $0x210] sm:$0xff]  ;;  %s523_s19 = sand.u32 1, %s6873_s22  }
 0x554   : > { %4266 = vst.msk [vmem:[#allocation2 + $0xc0] sm:$0xff] %vm4255_vm10, %v4180_v33  ;;  %v4335_v5 = vsel %vm1866_vm0, %v4333_v12, %v4334_v6  ;;  %vm12186_vm0 = vmmov %vm12180_vm4  ;;  %v5735_v33 = vld [vmem:[%s11968_s14 + $0x10] sm:$0xff]  ;;  %v11061_v6 = vpop.f32.mrf.mxu0  ;;  %v6329_v12 = vld [vmem:[%s11966_s12 + $0x1c8] sm:$0xff]  ;;  %s6105_s27 = sshll.u32 %s523_s19, 8  ;;  %s6015_s26 = scalar_lea.sflag [#allocation4], %s523_s19 }
 0x555   : > { %4256 = vst.msk [vmem:[#allocation2 + $0x20] sm:$0xff] %vm4255_vm10, %v10705_v28  ;;  %v4186_v29 = vpop.permute.xlu2 %4185  ;;  %vm12188_vm1 = vmmov %vm12186_vm0  ;;  %5478 = vmatpush.msrb.mxu1 %v6332_v43  ;;  %5850 = vmatpush.msra.mxu3 %v5735_v33  ;;  %v6327_v43 = vld [vmem:[%s11966_s12 + $0x1b8] sm:$0xff]  ;;  %s11600_s18 = scalar_lea.vmem [#allocation3], %s6105_s27 }
 0x556   : > { %4157 = vst.msk [vmem:[#allocation2 + $0x200] sm:$0xfe] %vm4126_vm6, %v4091_v54  ;;  %4608 = vmatmul.f32.gmra.mxu1 %v6785_v57  ;;  %vm12187_vm6 = vmmov %vm12186_vm0  ;;  %v6330_v57 = vld [vmem:[%s11966_s12 + $0x1d0] sm:$0xff]  ;;  %s6027_s1 = sshll.u32 %s11600_s18, 4  ;;  %s6028_s1 = int_to_ptr.vmem [resolvable:$true] %s6027_s1 }
 0x557   : > { %4399 = vst.msk [vmem:[#allocation2 + $0x208] sm:$0xff] %vm12184_vm12, %v4335_v5  ;;  %vm12189_vm15 = vmmov %vm12186_vm0  ;;  %5479 = vmatpush.msrb.mxu1 %v6331_v39 }
 0x558   : > { %4261 = vst.msk [vmem:[#allocation2 + $0x70] sm:$0xff] %vm4255_vm10, %v10749_v62  ;;  %6247 = vmatmul.msk.f32.gmra.mxu2 %vm12185_vm9, %v10917_v55  ;;  %6301 = vmatmul.msk.f32.gmra.mxu0 %vm12186_vm0, %v10917_v55  ;;  %v4188_v62 = vpop.permute.xlu0 %4187  ;;  %vm12191_vm5 = vmmov %vm12186_vm0  ;;  %v11030_v63 = vld [vmem:[#allocation2 + $0x90] sm:$0xff] }
 0x559   : > { %4269 = vst.msk [vmem:[#allocation2 + $0xf0] sm:$0xff] %vm4255_vm10, %v4186_v29  ;;  %v10954_v32 = vld [vmem:[#allocation2 + $0x40] sm:$0xff]  ;;  %vm12192_vm3 = vmmov %vm12186_vm0  ;;  %5480 = vmatpush.msrb.mxu1 %v6330_v57 }
 0x55a   : > { %4259 = vst.msk [vmem:[#allocation2 + $0x50] sm:$0xff] %vm4255_vm10, %v10795_v30  ;;  %v4093_v30 = vsel %vm1623_vm13, %v4091_v54, %v4092_v48  ;;  %vm12190_vm13 = vmmov %vm12186_vm0  ;;  %v11075_v54 = vld [vmem:[#allocation2 + $0x198] sm:$0xff] }
 0x55b   : > { %4264 = vst.msk [vmem:[#allocation2 + $0xa0] sm:$0xff] %vm4255_vm10, %v10834_v40  ;;  %vm12193_vm4 = vmmov %vm12186_vm0  ;;  %v10973_v40 = vpop.f32.mrf.mxu2  ;;  %5481 = vmatpush.msrb.mxu1 %v6329_v12  ;;  %v11089_v48 = vld [vmem:[#allocation2 + $0xc0] sm:$0xff]  ;;  %v6326_v12 = vld [vmem:[%s11966_s12 + $0x1b0] sm:$0xff] }
 0x55c   : > { %v4409_v28 = vld [vmem:[#allocation2 + $0x20] sm:$0xff]  ;;  %4262 = vst.msk [vmem:[#allocation2 + $0x80] sm:$0xff] %vm4255_vm10, %v4172_v37  ;;  %vm12195_vm7 = vmmov %vm12186_vm0 }
 0x55d   : > { %5048 = vmatmul.f32.vlgmr.msrb.gmra.mxu3 %v4409_v28  ;;  %4267 = vst.msk [vmem:[#allocation2 + $0xd0] sm:$0xff] %vm4255_vm10, %v4182_v11  ;;  %v4192_v50 = vpop.permute.xlu2 %4191  ;;  %vm12196_vm11 = vmmov %vm12186_vm0  ;;  %5482 = vmatpush.msrb.mxu1 %v6328_v31 }
 0x55e   : > { %4265 = vst.msk [vmem:[#allocation2 + $0xb0] sm:$0xff] %vm4255_vm10, %v4178_v27  ;;  %4611 = vmatmul.f32.gmra.mxu1 %v4409_v28  ;;  %vm12198_vm2 = vmmov %vm12186_vm0  ;;  %v11087_v27 = vpop.f32.mrf.mxu0  ;;  %v11092_v28 = vld [vmem:[#allocation2 + $0x1a8] sm:$0xff] }
 0x55f   : > { %4270 = vst.msk [vmem:[#allocation2 + $0x100] sm:$0xff] %vm4255_vm10, %v4188_v62  ;;  %vm12199_vm14 = vmmov %vm12186_vm0  ;;  %v10998_v18 = vld [vmem:[#allocation2 + $0x70] sm:$0xff]  ;;  %5483 = vmatpush.msrb.mxu1 %v6327_v43  ;;  %v5291_v43 = vld [vmem:[#allocation2 + $0x48] sm:$0xff] }
 0x560   : > { %4272 = vst.msk [vmem:[#allocation2 + $0x120] sm:$0xff] %vm4255_vm10, %v4192_v50  ;;  %6248 = vmatmul.msk.f32.gmra.mxu2 %vm12188_vm1, %v10937_v19  ;;  %6302 = vmatmul.msk.f32.gmra.mxu0 %vm12189_vm15, %v10937_v19  ;;  %vm12200_vm8 = vmmov %vm12186_vm0 }
 0x561   : > { %4158 = vst.msk [vmem:[#allocation2 + $0x210] sm:$0xff] %vm12187_vm6, %v4093_v30  ;;  %v4184_v53 = vpop.permute.xlu1 %4183  ;;  %v10970_v4 = vld [vmem:[#allocation2 + $0x50] sm:$0xff]  ;;  %vm12202_vm12 = vmmov %vm12186_vm0  ;;  %5484 = vmatpush.msrb.mxu1 %v6326_v12 }
 0x562   : > { %4268 = vst.msk [vmem:[#allocation2 + $0xe0] sm:$0xff] %vm4255_vm10, %v4184_v53  ;;  %vm12203_vm9 = vmmov %vm12186_vm0  ;;  %v11045_v9 = vld [vmem:[#allocation2 + $0xa0] sm:$0xff]  ;;  %v11109_v53 = vld [vmem:[#allocation2 + $0x1b8] sm:$0xff] }
 0x563   : > { %12194 = vst [vmem:[#allocation10_spill] sm:$0xff] %v10973_v40  ;;  %v10989_v7 = vpop.f32.mrf.mxu2  ;;  %v11012_v61 = vld [vmem:[#allocation2 + $0x80] sm:$0xff]  ;;  %vm12205_vm6 = vmmov %vm12186_vm0 }
 0x564   : > { %12197 = vst [vmem:[#allocation17_spill] sm:$0xff] %v10989_v7  ;;  %vm12206_vm1 = vmmov %vm12186_vm0  ;;  %v11104_v30 = vld [vmem:[#allocation2 + $0xd0] sm:$0xff] }
 0x565   : > { %5051 = vmatmul.f32.gmra.mxu3 %v4411_v45  ;;  %v4198_v3 = vpop.permute.xlu2 %4197  ;;  %vm12208_vm15 = vmmov %vm12186_vm0  ;;  %v11064_v24 = vld [vmem:[#allocation2 + $0xb0] sm:$0xff] }
 0x566   : > { %4275 = vst.msk [vmem:[#allocation2 + $0x150] sm:$0xff] %vm4255_vm10, %v4198_v3  ;;  %4614 = vmatmul.f32.gmra.mxu1 %v4411_v45  ;;  %v11107_v50 = vpop.f32.mrf.mxu0  ;;  %v6339_v45 = vld [vmem:[%s11966_s12 + $0x218] sm:$0xff] }
 0x567   : > { %5600 = vmatpush.msra.mxu2 %v6339_v45  ;;  %v11188_v45 = vld [vmem:[#allocation2 + $0x1f8] sm:$0xff] }
 0x568   : > { %6249 = vmatmul.msk.f32.gmra.mxu2 %vm12190_vm13, %v10948_v22  ;;  %6303 = vmatmul.msk.f32.gmra.mxu0 %vm12191_vm5, %v10948_v22  ;;  %vm12209_vm13 = vmmov %vm12186_vm0 }
 0x569   : > { %vm12211_vm5 = vmmov %vm12186_vm0  ;;  %5601 = vmatpush.msra.mxu2 %v6338_v56 }
 0x56b   : > { %v11006_v36 = vpop.f32.mrf.mxu2 }
 0x56c   : > { %12201 = vst [vmem:[#allocation11_spill] sm:$0xff] %v11006_v36 }
 0x56d   : > { %5054 = vmatmul.f32.gmra.mxu3 %v10954_v32 }
 0x56e   : > { %4617 = vmatmul.f32.gmra.mxu1 %v10954_v32 }
 0x56f   : > { %v4194_v41 = vpop.permute.xlu0 %4193 }
 0x570   : > { %4273 = vst.msk [vmem:[#allocation2 + $0x130] sm:$0xff] %vm4255_vm10, %v4194_v41  ;;  %6250 = vmatmul.msk.f32.gmra.mxu2 %vm12192_vm3, %v10962_v38  ;;  %6304 = vmatmul.msk.f32.gmra.mxu0 %vm12193_vm4, %v10962_v38  ;;  %vm12212_vm3 = vmmov %vm12186_vm0 }
 0x571   : > { %vm12214_vm4 = vmmov %vm12186_vm0 }
 0x573   : > { %v4190_v20 = vpop.permute.xlu1 %4189  ;;  %v11028_v51 = vpop.f32.mrf.mxu2 }
 0x574   : > { %4271 = vst.msk [vmem:[#allocation2 + $0x110] sm:$0xff] %vm4255_vm10, %v4190_v20  ;;  %v11125_v20 = vld [vmem:[#allocation2 + $0xe0] sm:$0xff] }
 0x575   : > { %5057 = vmatmul.f32.gmra.mxu3 %v10970_v4  ;;  %12204 = vst [vmem:[#allocation21_spill] sm:$0xff] %v11028_v51  ;;  %v5295_v51 = vld [vmem:[#allocation2 + $0x68] sm:$0xff] }
 0x576   : > { %4620 = vmatmul.f32.gmra.mxu1 %v10970_v4 }
 0x577   : > { %v4200_v34 = vpop.permute.xlu0 %4199 }
 0x578   : > { %4276 = vst.msk [vmem:[#allocation2 + $0x160] sm:$0xff] %vm4255_vm10, %v4200_v34  ;;  %6251 = vmatmul.msk.f32.gmra.mxu2 %vm12195_vm7, %v10976_v47  ;;  %6305 = vmatmul.msk.f32.gmra.mxu0 %vm12196_vm11, %v10976_v47  ;;  %vm12215_vm7 = vmmov %vm12186_vm0  ;;  %v11128_v34 = vld [vmem:[#allocation2 + $0x1c8] sm:$0xff] }
 0x579   : > { %vm12216_vm11 = vmmov %vm12186_vm0 }
 0x57b   : > { %v11043_v49 = vpop.f32.mrf.mxu2  ;;  %v11185_v31 = vld [vmem:[#allocation2 + $0x110] sm:$0xff] }
 0x57c   : > { %12207 = vst [vmem:[#allocation12_spill] sm:$0xff] %v11043_v49 }
 0x57d   : > { %v4204_v58 = vpop.permute.xlu2 %4203  ;;  %5060 = vmatmul.f32.gmra.mxu3 %v10984_v15  ;;  %v4196_v25 = vpop.permute.xlu1 %4195 }
 0x57e   : > { %4278 = vst.msk [vmem:[#allocation2 + $0x180] sm:$0xff] %vm4255_vm10, %v4204_v58  ;;  %4623 = vmatmul.f32.gmra.mxu1 %v10984_v15  ;;  %v6337_v58 = vld [vmem:[%s11966_s12 + $0x208] sm:$0xff] }
 0x57f   : > { %4274 = vst.msk [vmem:[#allocation2 + $0x140] sm:$0xff] %vm4255_vm10, %v4196_v25  ;;  %v6336_v25 = vld [vmem:[%s11966_s12 + $0x200] sm:$0xff]  ;;  %5602 = vmatpush.msra.mxu2 %v6337_v58 }
 0x580   : > { %6252 = vmatmul.msk.f32.gmra.mxu2 %vm12198_vm2, %v10991_v59  ;;  %6306 = vmatmul.msk.f32.gmra.mxu0 %vm12199_vm14, %v10991_v59  ;;  %vm12217_vm2 = vmmov %vm12186_vm0  ;;  %v11199_v58 = vld [vmem:[#allocation2 + $0x120] sm:$0xff] }
 0x581   : > { %vm12219_vm14 = vmmov %vm12186_vm0  ;;  %5603 = vmatpush.msra.mxu2 %v6336_v25  ;;  %v11259_v7 = vld [vmem:[#allocation2 + $0x160] sm:$0xff] }
 0x585   : > { %5063 = vmatmul.f32.gmra.mxu3 %v10998_v18 }
 0x586   : > { %4626 = vmatmul.f32.gmra.mxu1 %v10998_v18  ;;  %v11236_v49 = vld [vmem:[#allocation2 + $0x140] sm:$0xff] }
 0x588   : > { %6253 = vmatmul.msk.f32.gmra.mxu2 %vm12200_vm8, %v11001_v13  ;;  %6307 = vmatmul.msk.f32.gmra.mxu0 %vm12202_vm12, %v11001_v13  ;;  %vm12221_vm8 = vmmov %vm12186_vm0 }
 0x589   : > { %v4206_v16 = vpop.permute.xlu0 %4205  ;;  %v11069_v11 = vpop.f32.mrf.mxu2  ;;  %vm12223_vm12 = vmmov %vm12186_vm0 }
 0x58a   : > { %4279 = vst.msk [vmem:[#allocation2 + $0x190] sm:$0xff] %vm4255_vm10, %v4206_v16  ;;  %v11139_v16 = vpop.f32.mrf.mxu0 }
 0x58b   : > { %v4210_v52 = vpop.permute.xlu2 %4209  ;;  %12210 = vst [vmem:[#allocation19_spill] sm:$0xff] %v11069_v11 }
 0x58c   : > { %4281 = vst.msk [vmem:[#allocation2 + $0x1b0] sm:$0xff] %vm4255_vm10, %v4210_v52  ;;  %v5734_v52 = vld [vmem:[%s11968_s14 + $0x8] sm:$0xff] }
 0x58d   : > { %5066 = vmatmul.f32.gmra.mxu3 %v11012_v61  ;;  %12220 = vst [vmem:[#allocation14_spill] sm:$0xff] %v11139_v16 }
 0x58e   : > { %4629 = vmatmul.f32.gmra.mxu1 %v11012_v61  ;;  %5851 = vmatpush.msra.mxu3 %v5734_v52 }
 0x590   : > { %6254 = vmatmul.msk.f32.gmra.mxu2 %vm12203_vm9, %v11021_v2  ;;  %6308 = vmatmul.msk.f32.gmra.mxu0 %vm12186_vm0, %v11021_v2  ;;  %vm12224_vm9 = vmmov %vm12186_vm0 }
 0x592   : > { %v11094_v62 = vpop.f32.mrf.mxu2  ;;  %v11162_v33 = vpop.f32.mrf.mxu0 }
 0x593   : > { %12213 = vst [vmem:[#allocation13_spill] sm:$0xff] %v11094_v62  ;;  %v5293_v62 = vld [vmem:[#allocation2 + $0x58] sm:$0xff] }
 0x594   : > { %12225 = vst [vmem:[#allocation15_spill] sm:$0xff] %v11162_v33  ;;  %v5297_v33 = vld [vmem:[#allocation2 + $0x78] sm:$0xff] }
 0x595   : > { %5069 = vmatmul.f32.gmra.mxu3 %v11030_v63 }
 0x596   : > { %4632 = vmatmul.f32.gmra.mxu1 %v11030_v63 }
 0x598   : > { %v4202_v8 = vpop.permute.xlu1 %4201  ;;  %6255 = vmatmul.msk.f32.gmra.mxu2 %vm12205_vm6, %v11033_v46  ;;  %6309 = vmatmul.msk.f32.gmra.mxu0 %vm12206_vm1, %v11033_v46  ;;  %vm12230_vm6 = vmmov %vm12186_vm0 }
 0x599   : > { %v4216_v1 = vpop.permute.xlu2 %4215  ;;  %4277 = vst.msk [vmem:[#allocation2 + $0x170] sm:$0xff] %vm4255_vm10, %v4202_v8  ;;  %vm12231_vm1 = vmmov %vm12186_vm0 }
 0x59a   : > { %4284 = vst.msk [vmem:[#allocation2 + $0x1e0] sm:$0xff] %vm4255_vm10, %v4216_v1  ;;  %v11152_v1 = vld [vmem:[#allocation2 + $0xf0] sm:$0xff] }
 0x59b   : > { %v4212_v37 = vpop.permute.xlu0 %4211 }
 0x59c   : > { %4282 = vst.msk [vmem:[#allocation2 + $0x1c0] sm:$0xff] %vm4255_vm10, %v4212_v37  ;;  %v11155_v37 = vld [vmem:[#allocation2 + $0x1d8] sm:$0xff] }
 0x59d   : > { %5072 = vmatmul.f32.gmra.mxu3 %v11045_v9 }
 0x59e   : > { %4635 = vmatmul.f32.gmra.mxu1 %v11045_v9 }
 0x5a0   : > { %6256 = vmatmul.msk.f32.gmra.mxu2 %vm12208_vm15, %v11054_v14  ;;  %6310 = vmatmul.msk.f32.gmra.mxu0 %vm12209_vm13, %v11054_v14  ;;  %vm12233_vm15 = vmmov %vm12186_vm0  ;;  %v11276_v16 = vld [vmem:[#allocation2 + $0x170] sm:$0xff] }
 0x5a1   : > { %vm12234_vm13 = vmmov %vm12186_vm0 }
 0x5a5   : > { %5075 = vmatmul.f32.gmra.mxu3 %v11064_v24 }
 0x5a6   : > { %v4208_v44 = vpop.permute.xlu1 %4207  ;;  %4638 = vmatmul.f32.gmra.mxu1 %v11064_v24 }
 0x5a7   : > { %4280 = vst.msk [vmem:[#allocation2 + $0x1a0] sm:$0xff] %vm4255_vm10, %v4208_v44  ;;  %v11166_v44 = vld [vmem:[#allocation2 + $0x100] sm:$0xff] }
 0x5a8   : > { %6257 = vmatmul.msk.f32.gmra.mxu2 %vm12211_vm5, %v11075_v54  ;;  %6311 = vmatmul.msk.f32.gmra.mxu0 %vm12212_vm3, %v11075_v54  ;;  %vm12236_vm5 = vmmov %vm12186_vm0 }
 0x5a9   : > { %vm12238_vm3 = vmmov %vm12186_vm0 }
 0x5aa   : > { %v4218_v29 = vpop.permute.xlu0 %4217  ;;  %v11119_v3 = vpop.f32.mrf.mxu2 }
 0x5ab   : > { %v4222_v5 = vpop.permute.xlu2 %4221  ;;  %4285 = vst.msk [vmem:[#allocation2 + $0x1f0] sm:$0xff] %vm4255_vm10, %v4218_v29 }
 0x5ac   : > { %4287 = vst.msk [vmem:[#allocation2 + $0x210] sm:$0xff] %vm4255_vm10, %v4222_v5  ;;  %v11181_v5 = vpop.f32.mrf.mxu0 }
 0x5ad   : > { %5078 = vmatmul.f32.gmra.mxu3 %v11089_v48  ;;  %12218 = vst [vmem:[#allocation25_spill] sm:$0xff] %v11119_v3 }
 0x5ae   : > { %4641 = vmatmul.f32.gmra.mxu1 %v11089_v48  ;;  %12228 = vst [vmem:[#allocation16_spill] sm:$0xff] %v11181_v5 }
 0x5b0   : > { %6258 = vmatmul.msk.f32.gmra.mxu2 %vm12214_vm4, %v11092_v28  ;;  %6312 = vmatmul.msk.f32.gmra.mxu0 %vm12215_vm7, %v11092_v28  ;;  %vm12241_vm4 = vmmov %vm12186_vm0 }
 0x5b1   : > { %vm12245_vm7 = vmmov %vm12186_vm0 }
 0x5b4   : > { %v11204_v52 = vpop.f32.mrf.mxu0 }
 0x5b5   : > { %5081 = vmatmul.f32.gmra.mxu3 %v11104_v30  ;;  %v11149_v8 = vpop.f32.mrf.mxu2  ;;  %12232 = vst [vmem:[#allocation18_spill] sm:$0xff] %v11204_v52 }
 0x5b6   : > { %4644 = vmatmul.f32.gmra.mxu1 %v11104_v30  ;;  %12222 = vst [vmem:[#allocation23_spill] sm:$0xff] %v11149_v8  ;;  %v11219_v8 = vld [vmem:[#allocation2 + $0x130] sm:$0xff] }
 0x5b8   : > { %6259 = vmatmul.msk.f32.gmra.mxu2 %vm12216_vm11, %v11109_v53  ;;  %6313 = vmatmul.msk.f32.gmra.mxu0 %vm12217_vm2, %v11109_v53  ;;  %vm12249_vm11 = vmmov %vm12186_vm0 }
 0x5b9   : > { %vm12252_vm2 = vmmov %vm12186_vm0 }
 0x5bd   : > { %v4214_v41 = vpop.permute.xlu1 %4213  ;;  %5084 = vmatmul.f32.gmra.mxu3 %v11125_v20 }
 0x5be   : > { %4283 = vst.msk [vmem:[#allocation2 + $0x1d0] sm:$0xff] %vm4255_vm10, %v4214_v41  ;;  %4647 = vmatmul.f32.gmra.mxu1 %v11125_v20  ;;  %v11168_v57 = vpop.f32.mrf.mxu2 }
 0x5bf   : > { %12226 = vst [vmem:[#allocation28_spill] sm:$0xff] %v11168_v57 }
 0x5c0   : > { %6260 = vmatmul.msk.f32.gmra.mxu2 %vm12219_vm14, %v11128_v34  ;;  %6314 = vmatmul.msk.f32.gmra.mxu0 %vm12221_vm8, %v11128_v34  ;;  %vm12256_vm14 = vmmov %vm12186_vm0 }
 0x5c1   : > { %vm12260_vm8 = vmmov %vm12186_vm0 }
 0x5c5   : > { %v4220_v35 = vpop.permute.xlu1 %4219  ;;  %5087 = vmatmul.f32.gmra.mxu3 %v11152_v1 }
 0x5c6   : > { %4286 = vst.msk [vmem:[#allocation2 + $0x200] sm:$0xff] %vm4255_vm10, %v4220_v35  ;;  %4650 = vmatmul.f32.gmra.mxu1 %v11152_v1  ;;  %vm12227_vm10 = vmmov %vm12186_vm0  ;;  %v11190_v56 = vpop.f32.mrf.mxu2  ;;  %v11207_v35 = vld [vmem:[#allocation2 + $0x208] sm:$0xff] }
 0x5c7   : > { %12229 = vst [vmem:[#allocation26_spill] sm:$0xff] %v11190_v56  ;;  %v6325_v56 = vld [vmem:[%s11966_s12 + $0x1a8] sm:$0xff] }
 0x5c8   : > { %6261 = vmatmul.msk.f32.gmra.mxu2 %vm12223_vm12, %v11155_v37  ;;  %6315 = vmatmul.msk.f32.gmra.mxu0 %vm12224_vm9, %v11155_v37  ;;  %vm12263_vm12 = vmmov %vm12186_vm0 }
 0x5c9   : > { %5485 = vmatpush.msrb.mxu1 %v6325_v56  ;;  %vm12267_vm9 = vmmov %vm12186_vm0 }
 0x5cb   : > { %v11164_v39 = vpop.f32.mrf.mxu1 }
 0x5cd   : > { %5090 = vmatmul.f32.gmra.mxu3 %v11166_v44 }
 0x5ce   : > { %4653 = vmatmul.f32.gmra.mxu1 %v11166_v44 }
 0x5d0   : > { %6262 = vmatmul.msk.f32.gmra.mxu2 %vm12227_vm10, %v11171_v26  ;;  %6316 = vmatmul.msk.f32.gmra.mxu0 %vm12186_vm0, %v11171_v26  ;;  %vm12271_vm10 = vmmov %vm12186_vm0 }
 0x5d3   : > { %v11183_v29 = vpop.f32.mrf.mxu1  ;;  %v11212_v12 = vpop.f32.mrf.mxu2 }
 0x5d4   : > { %12235 = vst [vmem:[#allocation20_spill] sm:$0xff] %v11212_v12  ;;  %v11228_v12 = vpop.f32.mrf.mxu0 }
 0x5d5   : > { %5093 = vmatmul.f32.gmra.mxu3 %v11185_v31  ;;  %12237 = vst [vmem:[#allocation29_spill] sm:$0xff] %v11228_v12 }
 0x5d6   : > { %4656 = vmatmul.f32.gmra.mxu1 %v11185_v31 }
 0x5d8   : > { %6263 = vmatmul.msk.f32.gmra.mxu2 %vm12230_vm6, %v11188_v45  ;;  %6317 = vmatmul.msk.f32.gmra.mxu0 %vm12231_vm1, %v11188_v45  ;;  %vm12277_vm6 = vmmov %vm12186_vm0 }
 0x5d9   : > { %vm12280_vm1 = vmmov %vm12186_vm0 }
 0x5db   : > { %v11197_v41 = vpop.f32.mrf.mxu1  ;;  %v11232_v56 = vpop.f32.mrf.mxu2 }
 0x5dc   : > { %12239 = vst [vmem:[#allocation22_spill] sm:$0xff] %v11232_v56  ;;  %v11248_v56 = vld [vmem:[#allocation2 + $0x150] sm:$0xff] }
 0x5dd   : > { %5096 = vmatmul.f32.gmra.mxu3 %v11199_v58 }
 0x5de   : > { %4659 = vmatmul.f32.gmra.mxu1 %v11199_v58 }
 0x5e0   : > { %v11202_v25 = vpop.f32.mrf.mxu3  ;;  %6344 = vmatmul.msk.f32.vlgmr.msra.gmra.mxu2 %vm12233_vm15, %v5291_v43  ;;  %6318 = vmatmul.msk.f32.gmra.mxu0 %vm12234_vm13, %v11207_v35  ;;  %v11225_v43 = vld [vmem:[#allocation2 + $0x218] sm:$0xff]  ;;  %vm12284_vm15 = vmmov %vm12186_vm0 }
 0x5e1   : > { %vm12286_vm13 = vmmov %vm12186_vm0 }
 0x5e3   : > { %v11217_v57 = vpop.f32.mrf.mxu1  ;;  %v11250_v5 = vpop.f32.mrf.mxu2 }
 0x5e4   : > { %12243 = vst [vmem:[#allocation30_spill] sm:$0xff] %v11250_v5  ;;  %v5733_v5 = vld [vmem:[%s11968_s14] sm:$0xff] }
 0x5e5   : > { %5099 = vmatmul.f32.gmra.mxu3 %v11219_v8 }
 0x5e6   : > { %4662 = vmatmul.f32.gmra.mxu1 %v11219_v8  ;;  %5852 = vmatpush.msra.mxu3 %v5733_v5 }
 0x5e8   : > { %v11222_v3 = vpop.f32.mrf.mxu3  ;;  %6345 = vmatmul.msk.f32.gmra.mxu2 %vm12236_vm5, %v5293_v62  ;;  %6319 = vmatmul.msk.f32.gmra.mxu0 %vm12238_vm3, %v11225_v43  ;;  %v6324_v62 = vld [vmem:[%s11966_s12 + $0x1a0] sm:$0xff]  ;;  %vm12289_vm5 = vcmask 261120   ;;  %vm12290_vm3 = vmmov %vm12186_vm0 }
 0x5e9   : > { %5486 = vmatpush.msrb.mxu1 %v6324_v62 }
 0x5eb   : > { %v11234_v11 = vpop.f32.mrf.mxu1 }
 0x5ec   : > { %12240 = vst [vmem:[#allocation24_spill] sm:$0xff] %v11234_v11  ;;  %v11264_v11 = vpop.f32.mrf.mxu2 }
 0x5ed   : > { %5102 = vmatmul.f32.gmra.mxu3 %v11236_v49  ;;  %12248 = vst [vmem:[#allocation34_spill] sm:$0xff] %v11264_v11 }
 0x5ee   : > { %4665 = vmatmul.f32.gmra.mxu1 %v11236_v49 }
 0x5f0   : > { %v11239_v52 = vpop.f32.mrf.mxu3  ;;  %6346 = vmatmul.msk.f32.gmra.mxu2 %vm12241_vm4, %v5295_v51  ;;  %vm12292_vm4 = vmmov %vm12289_vm5 }
 0x5f3   : > { %v11246_v12 = vpop.f32.mrf.mxu1 }
 0x5f4   : > { %12242 = vst [vmem:[#allocation27_spill] sm:$0xff] %v11246_v12  ;;  %v5299_v12 = vld [vmem:[#allocation2 + $0x88] sm:$0xff] }
 0x5f5   : > { %5105 = vmatmul.f32.gmra.mxu3 %v11248_v56 }
 0x5f6   : > { %4668 = vmatmul.f32.gmra.mxu1 %v11248_v56 }
 0x5f8   : > { %v11253_v36 = vpop.f32.mrf.mxu3  ;;  %6347 = vmatmul.msk.f32.gmra.mxu2 %vm12245_vm7, %v5297_v33  ;;  %v6323_v33 = vld [vmem:[%s11966_s12 + $0x198] sm:$0xff]  ;;  %vm12293_vm7 = vmmov %vm12186_vm0 }
 0x5f9   : > { %12244 = vst [vmem:[#allocation31_spill] sm:$0xff] %v11253_v36  ;;  %5487 = vmatpush.msrb.mxu1 %v6323_v33  ;;  %v11287_v36 = vld [vmem:[#allocation2 + $0x180] sm:$0xff]  ;;  %v5303_v33 = vld [vmem:[#allocation2 + $0xa8] sm:$0xff] }
 0x5fb   : > { %v11257_v51 = vpop.f32.mrf.mxu1 }
 0x5fc   : > { %12246 = vst [vmem:[#allocation32_spill] sm:$0xff] %v11257_v51 }
 0x5fd   : > { %5108 = vmatmul.f32.gmra.mxu3 %v11259_v7 }
 0x5fe   : > { %4671 = vmatmul.f32.gmra.mxu1 %v11259_v7 }
 0x600   : > { %v11262_v62 = vpop.f32.mrf.mxu3  ;;  %6348 = vmatmul.msk.f32.gmra.mxu2 %vm12249_vm11, %v5299_v12  ;;  %v11283_v12 = vpop.f32.mrf.mxu2  ;;  %vm12295_vm11 = vmmov %vm12292_vm4 }
 0x601   : > { %12247 = vst [vmem:[#allocation33_spill] sm:$0xff] %v11262_v62  ;;  %v5301_v62 = vld [vmem:[#allocation2 + $0x98] sm:$0xff] }
 0x602   : > { %12253 = vst [vmem:[#allocation37_spill] sm:$0xff] %v11283_v12 }
 0x603   : > { %v11274_v51 = vpop.f32.mrf.mxu1 }
 0x604   : > { %12250 = vst [vmem:[#allocation35_spill] sm:$0xff] %v11274_v51 }
 0x605   : > { %5111 = vmatmul.f32.gmra.mxu3 %v11276_v16 }
 0x606   : > { %4674 = vmatmul.f32.gmra.mxu1 %v11276_v16 }
 0x608   : > { %v11279_v11 = vpop.f32.mrf.mxu3  ;;  %6349 = vmatmul.msk.f32.gmra.mxu2 %vm12252_vm2, %v5301_v62  ;;  %v6322_v62 = vld [vmem:[%s11966_s12 + $0x190] sm:$0xff]  ;;  %vm12296_vm2 = vmmov %vm12186_vm0 }
 0x609   : > { %12251 = vst [vmem:[#allocation36_spill] sm:$0xff] %v11279_v11  ;;  %v11294_v11 = vpop.f32.mrf.mxu2  ;;  %5488 = vmatpush.msrb.mxu1 %v6322_v62 }
 0x60a   : > { %12257 = vst [vmem:[#allocation40_spill] sm:$0xff] %v11294_v11  ;;  %v11311_v11 = vld [vmem:[#allocation2 + $0x1a0] sm:$0xff] }
 0x60b   : > { %v11285_v5 = vpop.f32.mrf.mxu1 }
 0x60c   : > { %12254 = vst [vmem:[#allocation38_spill] sm:$0xff] %v11285_v5  ;;  %v11301_v5 = vld [vmem:[#allocation2 + $0x190] sm:$0xff] }
 0x60d   : > { %5114 = vmatmul.f32.gmra.mxu3 %v11287_v36 }
 0x60e   : > { %4677 = vmatmul.f32.gmra.mxu1 %v11287_v36 }
 0x610   : > { %v11290_v51 = vpop.f32.mrf.mxu3  ;;  %6350 = vmatmul.msk.f32.gmra.mxu2 %vm12256_vm14, %v5303_v33  ;;  %vm12297_vm14 = vmmov %vm12292_vm4 }
 0x611   : > { %12255 = vst [vmem:[#allocation39_spill] sm:$0xff] %v11290_v51  ;;  %v11313_v51 = vpop.f32.mrf.mxu2 }
 0x612   : > { %12262 = vst [vmem:[#allocation44_spill] sm:$0xff] %v11313_v51 }
 0x613   : > { %v11299_v12 = vpop.f32.mrf.mxu1 }
 0x614   : > { %12258 = vst [vmem:[#allocation41_spill] sm:$0xff] %v11299_v12  ;;  %v6321_v12 = vld [vmem:[%s11966_s12 + $0x188] sm:$0xff] }
 0x615   : > { %5117 = vmatmul.f32.gmra.mxu3 %v11301_v5  ;;  %5489 = vmatpush.msrb.mxu1 %v6321_v12  ;;  %v6320_v12 = vld [vmem:[%s11966_s12 + $0x180] sm:$0xff] }
 0x616   : > { %4680 = vmatmul.f32.gmra.mxu1 %v11301_v5 }
 0x617   : > { %5490 = vmatpush.msrb.mxu1 %v6320_v12  ;;  %v11365_v12 = vld [vmem:[#allocation2 + $0x1e0] sm:$0xff] }
 0x618   : > { %v11304_v40 = vpop.f32.mrf.mxu3  ;;  %6351 = vmatmul.msk.f32.gmra.mxu2 %vm12260_vm8, %v10679_v10  ;;  %vm12299_vm8 = vmmov %vm12186_vm0 }
 0x619   : > { %12259 = vst [vmem:[#allocation42_spill] sm:$0xff] %v11304_v40  ;;  %v11329_v51 = vpop.f32.mrf.mxu2  ;;  %v11338_v40 = vld [vmem:[#allocation2 + $0x1c0] sm:$0xff] }
 0x61a   : > { %12266 = vst [vmem:[#allocation47_spill] sm:$0xff] %v11329_v51 }
 0x61b   : > { %v11309_v33 = vpop.f32.mrf.mxu1  ;;  %12270 = vst [vmem:[#allocation50_spill] sm:$0xff] %v11338_v40 }
 0x61c   : > { %12261 = vst [vmem:[#allocation43_spill] sm:$0xff] %v11309_v33  ;;  %v11326_v33 = vld [vmem:[#allocation2 + $0x1b0] sm:$0xff] }
 0x61d   : > { %5120 = vmatmul.f32.gmra.mxu3 %v11311_v11 }
 0x61e   : > { %4683 = vmatmul.f32.gmra.mxu1 %v11311_v11 }
 0x620   : > { %6352 = vmatmul.msk.f32.gmra.mxu2 %vm12263_vm12, %v10757_v21  ;;  %v11319_v62 = vpop.f32.mrf.mxu3  ;;  %vm12300_vm12 = vmmov %vm12292_vm4 }
 0x621   : > { %12264 = vst [vmem:[#allocation45_spill] sm:$0xff] %v11319_v62 }
 0x623   : > { %v11324_v10 = vpop.f32.mrf.mxu1 }
 0x624   : > { %12265 = vst [vmem:[#allocation46_spill] sm:$0xff] %v11324_v10 }
 0x625   : > { %5123 = vmatmul.f32.gmra.mxu3 %v11326_v33 }
 0x626   : > { %4686 = vmatmul.f32.gmra.mxu1 %v11326_v33 }
 0x628   : > { %6353 = vmatmul.msk.f32.gmra.mxu2 %vm12267_vm9, %v10832_v17  ;;  %v11334_v21 = vpop.f32.mrf.mxu3  ;;  %v11349_v17 = vpop.f32.mrf.mxu2  ;;  %vm12301_vm9 = vmmov %vm12186_vm0 }
 0x629   : > { %12268 = vst [vmem:[#allocation48_spill] sm:$0xff] %v11334_v21 }
 0x62a   : > { %12272 = vst [vmem:[#allocation51_spill] sm:$0xff] %v11349_v17 }
 0x62b   : > { %v11336_v62 = vpop.f32.mrf.mxu1 }
 0x62c   : > { %12269 = vst [vmem:[#allocation49_spill] sm:$0xff] %v11336_v62  ;;  %v11353_v62 = vld [vmem:[#allocation2 + $0x1d0] sm:$0xff] }
 0x62d   : > { %5126 = vmatmul.f32.gmra.mxu3 %v11338_v40 }
 0x62e   : > { %4689 = vmatmul.f32.gmra.mxu1 %v11338_v40 }
 0x630   : > { %6354 = vmatmul.msk.f32.gmra.mxu2 %vm12271_vm10, %v10893_v0  ;;  %v11347_v51 = vpop.f32.mrf.mxu3  ;;  %v11361_v21 = vpop.f32.mrf.mxu2  ;;  %vm12303_vm10 = vmmov %vm12292_vm4 }
 0x631   : > { %12275 = vst [vmem:[#allocation54_spill] sm:$0xff] %v11361_v21 }
 0x633   : > { %v11351_v10 = vpop.f32.mrf.mxu1 }
 0x634   : > { %12273 = vst [vmem:[#allocation52_spill] sm:$0xff] %v11351_v10 }
 0x635   : > { %5129 = vmatmul.f32.gmra.mxu3 %v11353_v62 }
 0x636   : > { %4692 = vmatmul.f32.gmra.mxu1 %v11353_v62 }
 0x638   : > { %6355 = vmatmul.msk.f32.gmra.mxu2 %vm12186_vm0, %v10917_v55  ;;  %v11359_v0 = vpop.f32.mrf.mxu3  ;;  %v11375_v55 = vld [vmem:[#allocation2 + $0x1f0] sm:$0xff] }
 0x639   : > { %12274 = vst [vmem:[#allocation53_spill] sm:$0xff] %v11359_v0  ;;  %v11377_v0 = vpop.f32.mrf.mxu2 }
 0x63a   : > { %12279 = vst [vmem:[#allocation57_spill] sm:$0xff] %v11377_v0 }
 0x63b   : > { %v11363_v40 = vpop.f32.mrf.mxu1 }
 0x63c   : > { %12276 = vst [vmem:[#allocation55_spill] sm:$0xff] %v11363_v40 }
 0x63d   : > { %5132 = vmatmul.f32.gmra.mxu3 %v11365_v12 }
 0x63e   : > { %4695 = vmatmul.f32.gmra.mxu1 %v11365_v12 }
 0x640   : > { %6356 = vmatmul.msk.f32.gmra.mxu2 %vm12277_vm6, %v10937_v19  ;;  %v11371_v17 = vpop.f32.mrf.mxu3  ;;  %v11387_v19 = vld [vmem:[#allocation2 + $0x200] sm:$0xff]  ;;  %vm12305_vm6 = vmmov %vm12292_vm4 }
 0x643   : > { %v11373_v10 = vpop.f32.mrf.mxu1 }
 0x644   : > { %12278 = vst [vmem:[#allocation56_spill] sm:$0xff] %v11373_v10  ;;  %v11390_v10 = vpop.f32.mrf.mxu2 }
 0x645   : > { %5135 = vmatmul.f32.gmra.mxu3 %v11375_v55  ;;  %12283 = vst [vmem:[#allocation60_spill] sm:$0xff] %v11390_v10 }
 0x646   : > { %4698 = vmatmul.f32.gmra.mxu1 %v11375_v55 }
 0x648   : > { %6357 = vmatmul.msk.f32.gmra.mxu2 %vm12280_vm1, %v10948_v22  ;;  %v11383_v21 = vpop.f32.mrf.mxu3  ;;  %vm12306_vm1 = vmmov %vm12186_vm0 }
 0x649   : > { %12281 = vst [vmem:[#allocation58_spill] sm:$0xff] %v11383_v21  ;;  %v11399_v21 = vld [vmem:[#allocation2 + $0x210] sm:$0xff] }
 0x64b   : > { %v11385_v40 = vpop.f32.mrf.mxu1 }
 0x64c   : > { %12282 = vst [vmem:[#allocation59_spill] sm:$0xff] %v11385_v40  ;;  %v6786_v40 = vld [vmem:[%s7041_s17] sm:$0xff] }
 0x64d   : > { %5138 = vmatmul.f32.gmra.mxu3 %v11387_v19 }
 0x64e   : > { %5491 = vmatmul.f32.vlgmr.msrb.gmra.mxu1 %v10954_v32  ;;  %v11407_v32 = vpop.f32.mrf.mxu2 }
 0x64f   : > { %12288 = vst [vmem:[#allocation63_spill] sm:$0xff] %v11407_v32  ;;  %v6788_v32 = vld [vmem:[%s7041_s17 + $0x10] sm:$0xff] }
 0x650   : > { %6358 = vmatmul.msk.f32.gmra.mxu2 %vm12284_vm15, %v10962_v38  ;;  %v11395_v0 = vpop.f32.mrf.mxu3  ;;  %vm12307_vm15 = vmmov %vm12292_vm4 }
 0x653   : > { %v11397_v22 = vpop.f32.mrf.mxu1 }
 0x654   : > { %12285 = vst [vmem:[#allocation61_spill] sm:$0xff] %v11397_v22 }
 0x655   : > { %5141 = vmatmul.f32.gmra.mxu3 %v11399_v21 }
 0x656   : > { %5494 = vmatmul.f32.gmra.mxu1 %v10970_v4  ;;  %v11418_v4 = vpop.f32.mrf.mxu2 }
 0x657   : > { %12291 = vst [vmem:[#allocation64_spill] sm:$0xff] %v11418_v4 }
 0x658   : > { %6359 = vmatmul.msk.f32.gmra.mxu2 %vm12286_vm13, %v10976_v47  ;;  %v11405_v10 = vpop.f32.mrf.mxu3  ;;  %vm12308_vm13 = vmmov %vm12186_vm0 }
 0x659   : > { %12287 = vst [vmem:[#allocation62_spill] sm:$0xff] %v11405_v10  ;;  %v6787_v10 = vld [vmem:[%s7041_s17 + $0x8] sm:$0xff] }
 0x65b   : > { %v11409_v38 = vpop.f32.mrf.mxu1 }
 0x65d   : > { %6376 = vmatmul.msk.f32.vlgmr.msra.gmra.mxu3 %vm12289_vm5, %v6786_v40  ;;  %vm12310_vm5 = vmmov %vm12292_vm4 }
 0x65e   : > { %5497 = vmatmul.f32.gmra.mxu1 %v10984_v15 }
 0x660   : > { %6360 = vmatmul.msk.f32.gmra.mxu2 %vm12290_vm3, %v10991_v59  ;;  %v11416_v22 = vpop.f32.mrf.mxu3  ;;  %v11431_v59 = vpop.f32.mrf.mxu2  ;;  %vm12311_vm3 = vmmov %vm12186_vm0 }
 0x661   : > { %12294 = vst [vmem:[#allocation65_spill] sm:$0xff] %v11431_v59  ;;  %v6792_v59 = vld [vmem:[%s7041_s17 + $0x30] sm:$0xff] }
 0x663   : > { %v11420_v47 = vpop.f32.mrf.mxu1 }
 0x665   : > { %6377 = vmatmul.msk.f32.gmra.mxu3 %vm12292_vm4, %v6787_v10 }
 0x666   : > { %5500 = vmatmul.f32.gmra.mxu1 %v10998_v18 }
 0x668   : > { %6361 = vmatmul.msk.f32.gmra.mxu2 %vm12293_vm7, %v11001_v13  ;;  %v11427_v40 = vpop.f32.mrf.mxu3  ;;  %v6789_v13 = vld [vmem:[%s7041_s17 + $0x18] sm:$0xff]  ;;  %v11444_v4 = vpop.f32.mrf.mxu2  ;;  %vm12313_vm7 = vmmov %vm12186_vm0 }
 0x669   : > { %12298 = vst [vmem:[#allocation66_spill] sm:$0xff] %v11444_v4 }
 0x66b   : > { %v11429_v15 = vpop.f32.mrf.mxu1 }
 0x66d   : > { %6378 = vmatmul.msk.f32.gmra.mxu3 %vm12295_vm11, %v6788_v32  ;;  %vm12315_vm11 = vmmov %vm12292_vm4 }
 0x66e   : > { %5503 = vmatmul.f32.gmra.mxu1 %v11012_v61 }
 0x670   : > { %6362 = vmatmul.msk.f32.gmra.mxu2 %vm12296_vm2, %v11021_v2  ;;  %v11438_v10 = vpop.f32.mrf.mxu3  ;;  %v6790_v2 = vld [vmem:[%s7041_s17 + $0x20] sm:$0xff]  ;;  %v11460_v4 = vpop.f32.mrf.mxu2  ;;  %vm12316_vm2 = vmmov %vm12186_vm0 }
 0x671   : > { %12302 = vst [vmem:[#allocation67_spill] sm:$0xff] %v11460_v4  ;;  %v6793_v4 = vld [vmem:[%s7041_s17 + $0x38] sm:$0xff] }
 0x673   : > { %v11440_v18 = vpop.f32.mrf.mxu1 }
 0x675   : > { %6379 = vmatmul.msk.f32.gmra.mxu3 %vm12297_vm14, %v6789_v13  ;;  %vm12319_vm14 = vmmov %vm12292_vm4 }
 0x676   : > { %5506 = vmatmul.f32.gmra.mxu1 %v11030_v63 }
 0x678   : > { %6363 = vmatmul.msk.f32.gmra.mxu2 %vm12299_vm8, %v11033_v46  ;;  %v11449_v32 = vpop.f32.mrf.mxu3  ;;  %v6791_v46 = vld [vmem:[%s7041_s17 + $0x28] sm:$0xff]  ;;  %vm12320_vm8 = vmmov %vm12186_vm0 }
 0x67b   : > { %v11451_v61 = vpop.f32.mrf.mxu1 }
 0x67d   : > { %6380 = vmatmul.msk.f32.gmra.mxu3 %vm12300_vm12, %v6790_v2  ;;  %vm12323_vm12 = vmmov %vm12292_vm4 }
 0x67e   : > { %5509 = vmatmul.f32.gmra.mxu1 %v11045_v9  ;;  %v11471_v9 = vpop.f32.mrf.mxu2 }
 0x67f   : > { %12304 = vst [vmem:[#allocation68_spill] sm:$0xff] %v11471_v9 }
 0x680   : > { %6364 = vmatmul.msk.f32.gmra.mxu2 %vm12301_vm9, %v11054_v14  ;;  %v11458_v13 = vpop.f32.mrf.mxu3  ;;  %vm12324_vm9 = vmmov %vm12186_vm0 }
 0x683   : > { %v11462_v63 = vpop.f32.mrf.mxu1 }
 0x685   : > { %6381 = vmatmul.msk.f32.gmra.mxu3 %vm12303_vm10, %v6791_v46  ;;  %vm12327_vm10 = vmmov %vm12292_vm4 }
 0x686   : > { %5512 = vmatmul.f32.gmra.mxu1 %v11064_v24 }
 0x688   : > { %6365 = vmatmul.msk.f32.gmra.mxu2 %vm12186_vm0, %v11075_v54  ;;  %v11469_v2 = vpop.f32.mrf.mxu3  ;;  %v11484_v54 = vpop.f32.mrf.mxu2 }
 0x68b   : > { %v11473_v14 = vpop.f32.mrf.mxu1 }
 0x68d   : > { %6382 = vmatmul.msk.f32.gmra.mxu3 %vm12305_vm6, %v6792_v59  ;;  %vm12329_vm6 = vmmov %vm12292_vm4 }
 0x68e   : > { %5515 = vmatmul.f32.gmra.mxu1 %v11089_v48 }
 0x690   : > { %6366 = vmatmul.msk.f32.gmra.mxu2 %vm12306_vm1, %v11092_v28  ;;  %v11480_v46 = vpop.f32.mrf.mxu3  ;;  %v6794_v28 = vld [vmem:[%s7041_s17 + $0x40] sm:$0xff]  ;;  %v11497_v9 = vpop.f32.mrf.mxu2  ;;  %vm12331_vm1 = vmmov %vm12292_vm4 }
 0x693   : > { %v11482_v24 = vpop.f32.mrf.mxu1 }
 0x695   : > { %6383 = vmatmul.msk.f32.gmra.mxu3 %vm12307_vm15, %v6793_v4  ;;  %vm12333_vm15 = vmmov %vm12331_vm1 }
 0x696   : > { %5518 = vmatmul.f32.gmra.mxu1 %v11104_v30 }
 0x698   : > { %6367 = vmatmul.msk.f32.gmra.mxu2 %vm12308_vm13, %v11109_v53  ;;  %v11491_v59 = vpop.f32.mrf.mxu3  ;;  %v6795_v53 = vld [vmem:[%s7041_s17 + $0x48] sm:$0xff]  ;;  %vm12334_vm13 = vmmov %vm12186_vm0 }
 0x69b   : > { %v11493_v48 = vpop.f32.mrf.mxu1 }
 0x69c   : > { %12309 = vst [vmem:[#allocation69_spill] sm:$0xff] %v11493_v48  ;;  %v11513_v48 = vpop.f32.mrf.mxu2 }
 0x69d   : > { %6384 = vmatmul.msk.f32.gmra.mxu3 %vm12310_vm5, %v6794_v28  ;;  %vm12335_vm5 = vmmov %vm12331_vm1 }
 0x69e   : > { %5521 = vmatmul.f32.gmra.mxu1 %v11125_v20 }
 0x6a0   : > { %6368 = vmatmul.msk.f32.gmra.mxu2 %vm12311_vm3, %v11128_v34  ;;  %v11502_v4 = vpop.f32.mrf.mxu3  ;;  %v6796_v34 = vld [vmem:[%s7041_s17 + $0x50] sm:$0xff]  ;;  %vm12336_vm3 = vmmov %vm12186_vm0 }
 0x6a3   : > { %v11504_v30 = vpop.f32.mrf.mxu1 }
 0x6a4   : > { %12312 = vst [vmem:[#allocation70_spill] sm:$0xff] %v11504_v30  ;;  %v6797_v30 = vld [vmem:[%s7041_s17 + $0x58] sm:$0xff] }
 0x6a5   : > { %6385 = vmatmul.msk.f32.gmra.mxu3 %vm12292_vm4, %v6795_v53  ;;  %vm12337_vm4 = vmmov %vm12331_vm1 }
 0x6a6   : > { %5524 = vmatmul.f32.gmra.mxu1 %v11152_v1  ;;  %v11524_v1 = vpop.f32.mrf.mxu2 }
 0x6a8   : > { %6369 = vmatmul.msk.f32.gmra.mxu2 %vm12313_vm7, %v11155_v37  ;;  %v11511_v28 = vpop.f32.mrf.mxu3  ;;  %vm12341_vm7 = vmmov %vm12186_vm0 }
 0x6ab   : > { %v11515_v20 = vpop.f32.mrf.mxu1 }
 0x6ac   : > { %12314 = vst [vmem:[#allocation71_spill] sm:$0xff] %v11515_v20  ;;  %v6798_v20 = vld [vmem:[%s7041_s17 + $0x60] sm:$0xff] }
 0x6ad   : > { %6386 = vmatmul.msk.f32.gmra.mxu3 %vm12315_vm11, %v6796_v34  ;;  %vm12342_vm11 = vmmov %vm12331_vm1 }
 0x6ae   : > { %5527 = vmatmul.f32.gmra.mxu1 %v11166_v44 }
 0x6b0   : > { %6370 = vmatmul.msk.f32.gmra.mxu2 %vm12316_vm2, %v11171_v26  ;;  %v11522_v53 = vpop.f32.mrf.mxu3  ;;  %v11537_v26 = vpop.f32.mrf.mxu2  ;;  %vm12347_vm2 = vmmov %vm12186_vm0 }
 0x6b1   : > { %12317 = vst [vmem:[#allocation72_spill] sm:$0xff] %v11522_v53 }
 0x6b3   : > { %v11526_v37 = vpop.f32.mrf.mxu1 }
 0x6b4   : > { %12318 = vst [vmem:[#allocation73_spill] sm:$0xff] %v11526_v37 }
 0x6b5   : > { %6387 = vmatmul.msk.f32.gmra.mxu3 %vm12319_vm14, %v6797_v30  ;;  %vm12348_vm14 = vmmov %vm12331_vm1 }
 0x6b6   : > { %5530 = vmatmul.f32.gmra.mxu1 %v11185_v31 }
 0x6b8   : > { %6371 = vmatmul.msk.f32.gmra.mxu2 %vm12320_vm8, %v11188_v45  ;;  %v11533_v34 = vpop.f32.mrf.mxu3  ;;  %v6799_v45 = vld [vmem:[%s7041_s17 + $0x68] sm:$0xff]  ;;  %v11550_v37 = vpop.f32.mrf.mxu2  ;;  %vm12353_vm8 = vmmov %vm12186_vm0 }
 0x6b9   : > { %12321 = vst [vmem:[#allocation74_spill] sm:$0xff] %v11533_v34 }
 0x6bb   : > { %v11535_v44 = vpop.f32.mrf.mxu1 }
 0x6bc   : > { %12322 = vst [vmem:[#allocation75_spill] sm:$0xff] %v11535_v44  ;;  %v6800_v44 = vld [vmem:[%s7041_s17 + $0x70] sm:$0xff] }
 0x6bd   : > { %6388 = vmatmul.msk.f32.gmra.mxu3 %vm12323_vm12, %v6798_v20  ;;  %vm12354_vm12 = vmmov %vm12331_vm1 }
 0x6be   : > { %5533 = vmatmul.f32.gmra.mxu1 %v11199_v58 }
 0x6c0   : > { %6372 = vmatmul.msk.f32.gmra.mxu2 %vm12324_vm9, %v11207_v35  ;;  %v11544_v31 = vpop.f32.mrf.mxu3  ;;  %vm12359_vm9 = vmmov %vm12186_vm0 }
 0x6c1   : > { %12325 = vst [vmem:[#allocation76_spill] sm:$0xff] %v11544_v31 }
 0x6c3   : > { %v11546_v30 = vpop.f32.mrf.mxu1 }
 0x6c4   : > { %12326 = vst [vmem:[#allocation77_spill] sm:$0xff] %v11546_v30  ;;  %v6801_v30 = vld [vmem:[%s7041_s17 + $0x78] sm:$0xff] }
 0x6c5   : > { %6389 = vmatmul.msk.f32.gmra.mxu3 %vm12327_vm10, %v6799_v45  ;;  %vm12360_vm10 = vmmov %vm12331_vm1 }
 0x6c6   : > { %5536 = vmatmul.f32.gmra.mxu1 %v11219_v8  ;;  %v4720_v8 = vadd.f32 %v10915_v42, %v11164_v39  ;;  %v6802_v39 = vld [vmem:[%s7041_s17 + $0x80] sm:$0xff] }
 0x6c8   : > { %6373 = vmatmul.msk.f32.gmra.mxu2 %vm12186_vm0, %v11225_v43  ;;  %v11555_v20 = vpop.f32.mrf.mxu3 }
 0x6c9   : > { %12328 = vst [vmem:[#allocation78_spill] sm:$0xff] %v11555_v20 }
 0x6cb   : > { %v5492_v58 = vpop.f32.mrf.mxu1 }
 0x6cc   : > { %v5606_v42 = vadd.f32 %v11484_v54, %v5492_v58 }
 0x6cd   : > { %6390 = vmatmul.msk.f32.gmra.mxu3 %vm12329_vm6, %v6800_v44  ;;  %v11572_v44 = vld [vmem:[%s11967_s13] ss:$0 sm:$0xff]  ;;  %vm12366_vm6 = vmmov %vm12331_vm1 }
 0x6ce   : > { %5539 = vmatmul.f32.gmra.mxu1 %v11236_v49  ;;  %v11574_v49 = vpop.f32.mrf.mxu2 }
 0x6d0   : > { %v11560_v35 = vpop.f32.mrf.mxu3 }
 0x6d1   : > { %12330 = vst [vmem:[#allocation79_spill] sm:$0xff] %v11560_v35  ;;  %v4815_v35 = vadd.f32 %v11572_v44, %v4720_v8 }
 0x6d3   : > { %v5495_v45 = vpop.f32.mrf.mxu1 }
 0x6d5   : > { %6391 = vmatmul.msk.f32.gmra.mxu3 %vm12331_vm1, %v6801_v30  ;;  %v5163_v30 = vadd.f32 %v11061_v6, %v11202_v25  ;;  %vm12367_vm1 = vmmov %vm12186_vm0 }
 0x6d6   : > { %5542 = vmatmul.f32.gmra.mxu1 %v11248_v56  ;;  %v11586_v56 = vld [vmem:[%s11969_s15] ss:$0 sm:$0xff]  ;;  %v11597_v31 = vpop.f32.mrf.mxu2 }
 0x6d7   : > { %v5258_v8 = vadd.f32 %v5163_v30, %v4815_v35 }
 0x6d8   : > { %v11567_v43 = vpop.f32.mrf.mxu3 }
 0x6d9   : > { %12332 = vst [vmem:[#allocation80_spill] sm:$0xff] %v11567_v43  ;;  %v4723_v43 = vadd.f32 %v10942_v23, %v11183_v29  ;;  %v5701_v25 = vadd.f32 %v5606_v42, %v5258_v8  ;;  %v5609_v23 = vadd.f32 %v11497_v9, %v5495_v45  ;;  %v11610_v45 = vpop.f32.mrf.mxu0 }
 0x6db   : > { %v5498_v20 = vpop.f32.mrf.mxu1  ;;  %v4816_v58 = vadd.f32 %v11572_v44, %v4723_v43 }
 0x6dd   : > { %6392 = vmatmul.msk.f32.gmra.mxu3 %vm12333_vm15, %v6802_v39  ;;  %v5166_v39 = vadd.f32 %v11087_v27, %v11222_v3  ;;  %v4726_v3 = vadd.f32 %v10956_v60, %v11197_v41  ;;  %v6804_v60 = vld [vmem:[%s7041_s17 + $0x90] sm:$0xff]  ;;  %vm12371_vm15 = vmmov %vm12186_vm0 }
 0x6de   : > { %5545 = vmatmul.f32.gmra.mxu1 %v11259_v7  ;;  %v6803_v7 = vld [vmem:[%s7041_s17 + $0x88] sm:$0xff]  ;;  %v11615_v8 = vpop.f32.mrf.mxu2 }
 0x6df   : > { %v5259_v29 = vadd.f32 %v5166_v39, %v4816_v58  ;;  %v4817_v42 = vadd.f32 %v11572_v44, %v4726_v3  ;;  %v12339_v58 = vld [vmem:[#allocation31_spill] sm:$0xff]  ;;  %v12340_v39 = vld [vmem:[#allocation14_spill] sm:$0xff] }
 0x6e0   : > { %v5854_v6 = vpop.f32.mrf.mxu3 }
 0x6e1   : > { %v5855_v54 = vadd.f32 %v11586_v56, %v5854_v6  ;;  %v5702_v35 = vadd.f32 %v5609_v23, %v5259_v29 }
 0x6e3   : > { %v5950_v34 = vadd.f32 %v5855_v54, %v5701_v25  ;;  %v5501_v53 = vpop.f32.mrf.mxu1 }
 0x6e5   : > { %5982 = vst.msk [vmem:[%s11600_s18] sm:$0xff] %vm12334_vm13, %v5950_v34  ;;  %6393 = vmatmul.msk.f32.gmra.mxu3 %vm12335_vm5, %v6803_v7  ;;  %v5169_v34 = vadd.f32 %v11107_v50, %v11239_v52  ;;  %v12338_v50 = vld [vmem:[#allocation10_spill] sm:$0xff]  ;;  %v11628_v7 = vpop.f32.mrf.mxu0  ;;  %vm12372_vm13 = vmmov %vm12337_vm4 }
 0x6e6   : > { %5548 = vmatmul.f32.gmra.mxu1 %v11276_v16  ;;  %v5612_v16 = vadd.f32 %v11513_v48, %v5498_v20  ;;  %v4729_v52 = vadd.f32 %v12338_v50, %v11217_v57  ;;  %v5172_v48 = vadd.f32 %v12340_v39, %v12339_v58  ;;  %v11636_v3 = vpop.f32.mrf.mxu2  ;;  %v12349_v39 = vld [vmem:[#allocation27_spill] sm:$0xff]  ;;  %vm12373_vm5 = vmmov %vm12186_vm0 }
 0x6e7   : > { %v5260_v41 = vadd.f32 %v5169_v34, %v4817_v42  ;;  %v12344_v34 = vld [vmem:[#allocation17_spill] sm:$0xff] }
 0x6e8   : > { %v5857_v27 = vpop.f32.mrf.mxu3  ;;  %v4818_v29 = vadd.f32 %v11572_v44, %v4729_v52 }
 0x6e9   : > { %v5858_v9 = vadd.f32 %v11586_v56, %v5857_v27  ;;  %v5703_v25 = vadd.f32 %v5612_v16, %v5260_v41  ;;  %v5615_v27 = vadd.f32 %v11524_v1, %v5501_v53  ;;  %v12345_v53 = vld [vmem:[#allocation33_spill] sm:$0xff]  ;;  %v12346_v1 = vld [vmem:[#allocation15_spill] sm:$0xff] }
 0x6ea   : > { %v5261_v57 = vadd.f32 %v5172_v48, %v4818_v29  ;;  %v12350_v48 = vld [vmem:[#allocation11_spill] sm:$0xff] }
 0x6eb   : > { %v5951_v43 = vadd.f32 %v5858_v9, %v5702_v35  ;;  %v5504_v30 = vpop.f32.mrf.mxu1  ;;  %v12343_v9 = vld [vmem:[#allocation24_spill] sm:$0xff] }
 0x6ec   : > { %v5704_v42 = vadd.f32 %v5615_v27, %v5261_v57  ;;  %v5618_v52 = vadd.f32 %v11537_v26, %v5504_v30  ;;  %v12351_v30 = vld [vmem:[#allocation36_spill] sm:$0xff] }
 0x6ed   : > { %5983 = vst.msk [vmem:[%s11600_s18 + $0x8] sm:$0xff] %vm12336_vm3, %v5951_v43  ;;  %6394 = vmatmul.msk.f32.gmra.mxu3 %vm12337_vm4, %v6804_v60  ;;  %v4732_v43 = vadd.f32 %v12344_v34, %v12343_v9  ;;  %v5175_v60 = vadd.f32 %v12346_v1, %v12345_v53  ;;  %v12355_v1 = vld [vmem:[#allocation32_spill] sm:$0xff]  ;;  %vm12377_vm3 = vmmov %vm12186_vm0 }
 0x6ee   : > { %5551 = vmatmul.f32.gmra.mxu1 %v11287_v36  ;;  %v6805_v36 = vld [vmem:[%s7041_s17 + $0x98] sm:$0xff]  ;;  %v11655_v29 = vpop.f32.mrf.mxu2 }
 0x6ef   : > { %v4819_v50 = vadd.f32 %v11572_v44, %v4732_v43 }
 0x6f0   : > { %v5860_v6 = vpop.f32.mrf.mxu3 }
 0x6f1   : > { %v5861_v54 = vadd.f32 %v11586_v56, %v5860_v6 }
 0x6f3   : > { %v5952_v20 = vadd.f32 %v5861_v54, %v5703_v25  ;;  %v5507_v23 = vpop.f32.mrf.mxu1  ;;  %v11650_v25 = vpop.f32.mrf.mxu0  ;;  %v5262_v54 = vadd.f32 %v5175_v60, %v4819_v50  ;;  %v12356_v60 = vld [vmem:[#allocation21_spill] sm:$0xff] }
 0x6f4   : > { %v5621_v43 = vadd.f32 %v11550_v37, %v5507_v23  ;;  %v12357_v37 = vld [vmem:[#allocation39_spill] sm:$0xff]  ;;  %v12358_v23 = vld [vmem:[#allocation18_spill] sm:$0xff] }
 0x6f5   : > { %5984 = vst.msk [vmem:[%s11600_s18 + $0x10] sm:$0xff] %vm12341_vm7, %v5952_v20  ;;  %6395 = vmatmul.msk.f32.gmra.mxu3 %vm12342_vm11, %v6805_v36  ;;  %v4735_v20 = vadd.f32 %v12350_v48, %v12349_v39  ;;  %v5705_v27 = vadd.f32 %v5618_v52, %v5262_v54  ;;  %v12352_v36 = vld [vmem:[#allocation16_spill] sm:$0xff]  ;;  %vm12380_vm7 = vmmov %vm12186_vm0 }
 0x6f6   : > { %5554 = vmatmul.f32.gmra.mxu1 %v11301_v5  ;;  %v6806_v5 = vld [vmem:[%s7041_s17 + $0xa0] sm:$0xff]  ;;  %v5178_v57 = vadd.f32 %v12352_v36, %v12351_v30  ;;  %v11674_v54 = vpop.f32.mrf.mxu2  ;;  %v12362_v36 = vld [vmem:[#allocation35_spill] sm:$0xff]  ;;  %vm12381_vm11 = vmmov %vm12337_vm4 }
 0x6f7   : > { %v4820_v34 = vadd.f32 %v11572_v44, %v4735_v20  ;;  %v6808_v20 = vld [vmem:[%s7041_s17 + $0xb0] sm:$0xff] }
 0x6f8   : > { %v5863_v35 = vpop.f32.mrf.mxu3 }
 0x6f9   : > { %v5864_v16 = vadd.f32 %v11586_v56, %v5863_v35 }
 0x6fb   : > { %v5953_v41 = vadd.f32 %v5864_v16, %v5704_v42  ;;  %v5510_v6 = vpop.f32.mrf.mxu1  ;;  %v5263_v42 = vadd.f32 %v5178_v57, %v4820_v34  ;;  %v11667_v53 = vpop.f32.mrf.mxu0  ;;  %v12363_v57 = vld [vmem:[#allocation12_spill] sm:$0xff] }
 0x6fd   : > { %5985 = vst.msk [vmem:[%s11600_s18 + $0x18] sm:$0xff] %vm12347_vm2, %v5953_v41  ;;  %6396 = vmatmul.msk.f32.gmra.mxu3 %vm12348_vm14, %v6806_v5  ;;  %v4738_v41 = vadd.f32 %v12356_v60, %v12355_v1  ;;  %v5706_v50 = vadd.f32 %v5621_v43, %v5263_v42  ;;  %v5181_v5 = vadd.f32 %v12358_v23, %v12357_v37  ;;  %v5351_v23 = vld [vmem:[#allocation2 + $0x228] sm:$0xff]  ;;  %vm12385_vm2 = vmmov %vm12186_vm0 }
 0x6fe   : > { %5557 = vmatmul.f32.gmra.mxu1 %v11311_v11  ;;  %v6807_v11 = vld [vmem:[%s7041_s17 + $0xa8] sm:$0xff]  ;;  %6374 = vmatmul.msk.f32.gmra.mxu2 %vm12367_vm1, %v5351_v23  ;;  %vm12386_vm14 = vmmov %vm12337_vm4 }
 0x6ff   : > { %v4821_v48 = vadd.f32 %v11572_v44, %v4738_v41  ;;  %v11691_v41 = vpop.f32.mrf.mxu2  ;;  %vm12402_vm1 = vmmov %vm12186_vm0 }
 0x700   : > { %v5866_v58 = vpop.f32.mrf.mxu3 }
 0x701   : > { %v5867_v26 = vadd.f32 %v11586_v56, %v5866_v58 }
 0x703   : > { %v5954_v35 = vadd.f32 %v5867_v26, %v5705_v27  ;;  %v5513_v9 = vpop.f32.mrf.mxu1  ;;  %v5264_v27 = vadd.f32 %v5181_v5, %v4821_v48  ;;  %v12361_v26 = vld [vmem:[#allocation50_spill] sm:$0xff]  ;;  %v12369_v48 = vld [vmem:[#allocation19_spill] sm:$0xff] }
 0x705   : > { %5986 = vst.msk [vmem:[%s11600_s18 + $0x20] sm:$0xff] %vm12353_vm8, %v5954_v35  ;;  %6397 = vmatmul.msk.f32.gmra.mxu3 %vm12354_vm12, %v6807_v11  ;;  %v4741_v35 = vadd.f32 %v12363_v57, %v12362_v36  ;;  %v11686_v11 = vpop.f32.mrf.mxu0  ;;  %vm12389_vm8 = vmmov %vm12186_vm0 }
 0x706   : > { %5560 = vmatmul.f32.gmra.mxu1 %v11326_v33  ;;  %v5624_v33 = vadd.f32 %v11574_v49, %v5510_v6  ;;  %v12364_v49 = vld [vmem:[#allocation42_spill] sm:$0xff]  ;;  %v12365_v6 = vld [vmem:[#allocation29_spill] sm:$0xff]  ;;  %vm12390_vm12 = vmmov %vm12337_vm4 }
 0x707   : > { %v5184_v42 = vadd.f32 %v12365_v6, %v12364_v49  ;;  %v4822_v60 = vadd.f32 %v11572_v44, %v4741_v35  ;;  %v6810_v35 = vld [vmem:[%s7041_s17 + $0xc0] sm:$0xff]  ;;  %v12374_v6 = vld [vmem:[#allocation41_spill] sm:$0xff] }
 0x708   : > { %v5869_v16 = vpop.f32.mrf.mxu3  ;;  %v5707_v34 = vadd.f32 %v5624_v33, %v5264_v27 }
 0x709   : > { %v5870_v52 = vadd.f32 %v11586_v56, %v5869_v16  ;;  %v5265_v37 = vadd.f32 %v5184_v42, %v4822_v60  ;;  %v12375_v42 = vld [vmem:[#allocation13_spill] sm:$0xff]  ;;  %v12376_v60 = vld [vmem:[#allocation48_spill] sm:$0xff] }
 0x70b   : > { %v5955_v58 = vadd.f32 %v5870_v52, %v5706_v50  ;;  %v5516_v39 = vpop.f32.mrf.mxu1  ;;  %v5627_v50 = vadd.f32 %v11597_v31, %v5513_v9  ;;  %v6809_v52 = vld [vmem:[%s7041_s17 + $0xb8] sm:$0xff] }
 0x70c   : > { %v12370_v9 = vld [vmem:[#allocation45_spill] sm:$0xff] }
 0x70d   : > { %5987 = vst.msk [vmem:[%s11600_s18 + $0x28] sm:$0xff] %vm12359_vm9, %v5955_v58  ;;  %6398 = vmatmul.msk.f32.gmra.mxu3 %vm12360_vm10, %v6808_v20  ;;  %v12368_v58 = vld [vmem:[#allocation38_spill] sm:$0xff]  ;;  %v5708_v20 = vadd.f32 %v5627_v50, %v5265_v37  ;;  %v5187_v27 = vadd.f32 %v11610_v45, %v12370_v9  ;;  %v11705_v36 = vpop.f32.mrf.mxu0  ;;  %v5353_v45 = vld [vmem:[#allocation2 + $0x238] sm:$0xff]  ;;  %v5190_v50 = vadd.f32 %v11628_v7, %v12376_v60  ;;  %v12378_v7 = vld [vmem:[#allocation43_spill] sm:$0xff] }
 0x70e   : > { %5563 = vmatmul.f32.gmra.mxu1 %v12361_v26  ;;  %v4744_v33 = vadd.f32 %v12369_v48, %v12368_v58  ;;  %6375 = vmatmul.msk.f32.gmra.mxu2 %vm12373_vm5, %v5353_v45  ;;  %vm12394_vm9 = vmmov %vm12186_vm0 }
 0x70f   : > { %vm12395_vm10 = vmmov %vm12337_vm4 }
 0x710   : > { %v5872_v30 = vpop.f32.mrf.mxu3  ;;  %v4823_v57 = vadd.f32 %v11572_v44, %v4744_v33  ;;  %vm12409_vm5 = vmmov %vm12186_vm0 }
 0x711   : > { %v5873_v43 = vadd.f32 %v11586_v56, %v5872_v30 }
 0x713   : > { %v5956_v16 = vadd.f32 %v5873_v43, %v5707_v34  ;;  %v5519_v1 = vpop.f32.mrf.mxu1  ;;  %v5266_v34 = vadd.f32 %v5187_v27, %v4823_v57  ;;  %v11713_v43 = vpop.f32.mrf.mxu2 }
 0x715   : > { %5988 = vst.msk [vmem:[%s11600_s18 + $0x30] sm:$0xff] %vm12186_vm0, %v5956_v16  ;;  %6399 = vmatmul.msk.f32.gmra.mxu3 %vm12366_vm6, %v6809_v52  ;;  %v4747_v16 = vadd.f32 %v12375_v42, %v12374_v6  ;;  %v11728_v58 = vpop.f32.mrf.mxu0  ;;  %vm12398_vm6 = vmmov %vm12337_vm4 }
 0x716   : > { %5566 = vmatmul.f32.gmra.mxu1 %v11353_v62  ;;  %v5630_v62 = vadd.f32 %v11615_v8, %v5516_v39 }
 0x717   : > { %v4824_v23 = vadd.f32 %v11572_v44, %v4747_v16 }
 0x718   : > { %v5875_v5 = vpop.f32.mrf.mxu3  ;;  %v5709_v8 = vadd.f32 %v5630_v62, %v5266_v34 }
 0x719   : > { %v5876_v31 = vadd.f32 %v11586_v56, %v5875_v5  ;;  %v5633_v5 = vadd.f32 %v11636_v3, %v5519_v1  ;;  %v5267_v48 = vadd.f32 %v5190_v50, %v4824_v23  ;;  %v5193_v1 = vadd.f32 %v11650_v25, %v11347_v51  ;;  %v12382_v51 = vld [vmem:[#allocation46_spill] sm:$0xff]  ;;  %v12383_v25 = vld [vmem:[#allocation23_spill] sm:$0xff] }
 0x71a   : > { %v4753_v6 = vadd.f32 %v12383_v25, %v12382_v51  ;;  %v12393_v51 = vld [vmem:[#allocation58_spill] sm:$0xff] }
 0x71b   : > { %v5957_v26 = vadd.f32 %v5876_v31, %v5708_v20  ;;  %v5522_v30 = vpop.f32.mrf.mxu1  ;;  %v12379_v20 = vld [vmem:[#allocation25_spill] sm:$0xff]  ;;  %v11733_v9 = vpop.f32.mrf.mxu2  ;;  %v5710_v27 = vadd.f32 %v5633_v5, %v5267_v48 }
 0x71c   : > { %v4750_v31 = vadd.f32 %v12379_v20, %v12378_v7  ;;  %v4826_v50 = vadd.f32 %v11572_v44, %v4753_v6 }
 0x71d   : > { %5989 = vst.msk [vmem:[%s11600_s18 + $0x38] sm:$0xff] %vm12371_vm15, %v5957_v26  ;;  %6400 = vmatmul.msk.f32.gmra.mxu3 %vm12372_vm13, %v6810_v35  ;;  %v5636_v35 = vadd.f32 %v11655_v29, %v5522_v30  ;;  %v12384_v29 = vld [vmem:[#allocation53_spill] sm:$0xff]  ;;  %vm12403_vm15 = vmmov %vm12337_vm4 }
 0x71e   : > { %5569 = vmatmul.f32.gmra.mxu1 %v11365_v12  ;;  %v6811_v12 = vld [vmem:[%s7041_s17 + $0xc8] sm:$0xff]  ;;  %v4825_v62 = vadd.f32 %v11572_v44, %v4750_v31  ;;  %v5196_v30 = vadd.f32 %v11667_v53, %v12384_v29  ;;  %v12387_v53 = vld [vmem:[#allocation49_spill] sm:$0xff]  ;;  %vm12406_vm13 = vmmov %vm12186_vm0 }
 0x71f   : > { %v6816_v29 = vld [vmem:[%s7041_s17 + $0xe8] sm:$0xff] }
 0x720   : > { %v5878_v49 = vpop.f32.mrf.mxu3  ;;  %v5268_v34 = vadd.f32 %v5193_v1, %v4825_v62  ;;  %v5269_v23 = vadd.f32 %v5196_v30, %v4826_v50  ;;  %v6815_v62 = vld [vmem:[#allocation2] sm:$0xff] }
 0x721   : > { %v5879_v39 = vadd.f32 %v11586_v56, %v5878_v49  ;;  %v11745_v49 = vpop.f32.mrf.mxu0 }
 0x722   : > { %v5711_v42 = vadd.f32 %v5636_v35, %v5268_v34 }
 0x723   : > { %v5958_v52 = vadd.f32 %v5879_v39, %v5709_v8  ;;  %v5525_v37 = vpop.f32.mrf.mxu1  ;;  %v11752_v8 = vpop.f32.mrf.mxu2 }
 0x725   : > { %5990 = vst.msk [vmem:[%s11600_s18 + $0x40] sm:$0xff] %vm12377_vm3, %v5958_v52  ;;  %6401 = vmatmul.msk.f32.gmra.mxu3 %vm12337_vm4, %v6811_v12  ;;  %v6813_v52 = vld [vmem:[%s7041_s17 + $0xd8] sm:$0xff]  ;;  %v12388_v12 = vld [vmem:[#allocation28_spill] sm:$0xff]  ;;  %vm12411_vm3 = vmmov %vm12186_vm0 }
 0x726   : > { %5572 = vmatmul.f32.gmra.mxu1 %v11375_v55  ;;  %v6812_v55 = vld [vmem:[%s7041_s17 + $0xd0] sm:$0xff]  ;;  %v4756_v48 = vadd.f32 %v12388_v12, %v12387_v53  ;;  %vm12413_vm4 = vmmov %vm12186_vm0 }
 0x728   : > { %v5881_v33 = vpop.f32.mrf.mxu3 }
 0x729   : > { %v5882_v3 = vadd.f32 %v11586_v56, %v5881_v33  ;;  %v5210_v20 = vpop.f32.mrf.mxu0 }
 0x72b   : > { %v5959_v26 = vadd.f32 %v5882_v3, %v5710_v27  ;;  %v5528_v57 = vpop.f32.mrf.mxu1  ;;  %v4827_v27 = vadd.f32 %v11572_v44, %v4756_v48  ;;  %v5653_v3 = vpop.f32.mrf.mxu2 }
 0x72c   : > { %v5642_v1 = vadd.f32 %v11691_v41, %v5528_v57  ;;  %v5202_v41 = vadd.f32 %v11705_v36, %v12393_v51  ;;  %v12397_v36 = vld [vmem:[#allocation20_spill] sm:$0xff] }
 0x72d   : > { %5991 = vst.msk [vmem:[%s11600_s18 + $0x48] sm:$0xff] %vm12380_vm7, %v5959_v26  ;;  %6402 = vmatmul.msk.f32.gmra.mxu3 %vm12381_vm11, %v6812_v55  ;;  %v12391_v55 = vld [vmem:[#allocation52_spill] sm:$0xff]  ;;  %vm12415_vm7 = vmmov %vm12186_vm0 }
 0x72e   : > { %5575 = vmatmul.f32.gmra.mxu1 %v11387_v19  ;;  %v5639_v19 = vadd.f32 %v11674_v54, %v5525_v37  ;;  %v5199_v54 = vadd.f32 %v11686_v11, %v11371_v17  ;;  %v12392_v17 = vld [vmem:[#allocation26_spill] sm:$0xff]  ;;  %vm12417_vm11 = vmmov %vm12186_vm0 }
 0x72f   : > { %v4759_v11 = vadd.f32 %v12392_v17, %v12391_v55 }
 0x730   : > { %v5884_v45 = vpop.f32.mrf.mxu3  ;;  %v5712_v33 = vadd.f32 %v5639_v19, %v5269_v23  ;;  %v5270_v26 = vadd.f32 %v5199_v54, %v4827_v27  ;;  %v12396_v19 = vld [vmem:[#allocation55_spill] sm:$0xff]  ;;  %v12399_v27 = vld [vmem:[#allocation56_spill] sm:$0xff] }
 0x731   : > { %v5885_v16 = vadd.f32 %v11586_v56, %v5884_v45  ;;  %v5213_v6 = vpop.f32.mrf.mxu0 }
 0x732   : > { %v5713_v34 = vadd.f32 %v5642_v1, %v5270_v26  ;;  %v12400_v1 = vld [vmem:[#allocation22_spill] sm:$0xff] }
 0x733   : > { %v5960_v39 = vadd.f32 %v5885_v16, %v5711_v42  ;;  %v5531_v60 = vpop.f32.mrf.mxu1  ;;  %v4828_v42 = vadd.f32 %v11572_v44, %v4759_v11  ;;  %v6818_v11 = vld [vmem:[%s7041_s17 + $0xf8] sm:$0xff] }
 0x734   : > { %v5645_v16 = vadd.f32 %v11713_v43, %v5531_v60  ;;  %v5205_v43 = vadd.f32 %v11728_v58, %v11395_v0 }
 0x735   : > { %5992 = vst.msk [vmem:[%s11600_s18 + $0x50] sm:$0xff] %vm12385_vm2, %v5960_v39  ;;  %6403 = vmatmul.msk.f32.gmra.mxu3 %vm12386_vm14, %v6813_v52  ;;  %v5271_v30 = vadd.f32 %v5202_v41, %v4828_v42  ;;  %v5656_v39 = vpop.f32.mrf.mxu2  ;;  %v4762_v52 = vadd.f32 %v12397_v36, %v12396_v19  ;;  %v12404_v41 = vld [vmem:[#allocation59_spill] sm:$0xff]  ;;  %vm12419_vm2 = vmmov %vm12186_vm0 }
 0x736   : > { %5578 = vmatmul.f32.gmra.mxu1 %v11399_v21  ;;  %v6814_v21 = vld [vmem:[%s7041_s17 + $0xe0] sm:$0xff]  ;;  %vm12421_vm14 = vmmov %vm12186_vm0 }
 0x737   : > { %v5714_v23 = vadd.f32 %v5645_v16, %v5271_v30  ;;  %v4829_v12 = vadd.f32 %v11572_v44, %v4762_v52 }
 0x738   : > { %v5887_v5 = vpop.f32.mrf.mxu3 }
 0x739   : > { %v5888_v7 = vadd.f32 %v11586_v56, %v5887_v5  ;;  %v5272_v54 = vadd.f32 %v5205_v43, %v4829_v12 }
 0x73b   : > { %v5961_v37 = vadd.f32 %v5888_v7, %v5712_v33  ;;  %v5534_v31 = vpop.f32.mrf.mxu1  ;;  %v6817_v33 = vld [vmem:[%s7041_s17 + $0xf0] sm:$0xff]  ;;  %v5216_v7 = vpop.f32.mrf.mxu0  ;;  %s6414_s17 = sshll.u32 %s6994_s25, 8 }
 0x73c   : > { %v5648_v48 = vadd.f32 %v11733_v9, %v5534_v31  ;;  %s6026_s20 = scalar_lea.hbm %s11970_s16, %s6414_s17 }
 0x73d   : > { %5993 = vst.msk [vmem:[%s11600_s18 + $0x58] sm:$0xff] %vm12389_vm8, %v5961_v37  ;;  %6404 = vmatmul.msk.f32.gmra.mxu3 %vm12390_vm12, %v6814_v21  ;;  %v4765_v21 = vadd.f32 %v12400_v1, %v12399_v27  ;;  %v5659_v0 = vpop.f32.mrf.mxu2  ;;  %v12410_v1 = vld [vmem:[#allocation37_spill] sm:$0xff]  ;;  %vm12423_vm8 = vmmov %vm12186_vm0  ;;  %s6029_s25 = sshll.u32 %s6026_s20, 4  ;;  %s6030_s25 = int_to_ptr.hbm [resolvable:$true] %s6029_s25 }
 0x73e   : > { %5581 = vmatmul.f32.gmra.mxu1 %v6815_v62  ;;  %v5715_v58 = vadd.f32 %v5648_v48, %v5272_v54  ;;  %vm12425_vm12 = vmmov %vm12186_vm0  ;;  %s6833_s23 = sshra.s32 %s6030_s25, 4  ;;  %s6834_s23 = int_to_ptr.hbm [resolvable:$true] %s6833_s23 }
 0x73f   : > { %v4830_v55 = vadd.f32 %v11572_v44, %v4765_v21  ;;  %v4774_v21 = vadd.f32 %v12410_v1, %v11409_v38  ;;  %s6835_s30 = scalar_lea.hbm %s6834_s23, 256  ;;  %p6840_p0 = scmp.lt.s32.totalorder %s6834_s23, %s11970_s16 }
 0x740   : > { %v5890_v35 = vpop.f32.mrf.mxu3  ;;  %p6836_p11 = scmp.ne.s32.totalorder %s6834_s23, %s6835_s30  ;;  %p6841_p1 = scmp.lt.s32.totalorder %s6839_s28, %s6835_s30 }
 0x741   : > { %v5891_v45 = vadd.f32 %v11586_v56, %v5890_v35 }
 0x742   : > { %p6837_p12 = pnand %p6836_p11, %p7011_p5  ;;  %p6842_p2 = por %p6841_p1, %p6840_p0 }
 0x743   : > { %v5962_v57 = vadd.f32 %v5891_v45, %v5713_v34  ;;  %v5537_v25 = vpop.f32.mrf.mxu1  ;;  %v5219_v51 = vpop.f32.mrf.mxu0 }
 0x744   : > { %v5651_v17 = vadd.f32 %v11752_v8, %v5537_v25  ;;  %p6838_p13 = pneg %p6837_p12 }
 0x745   : > { %5994 = vst.msk [vmem:[%s11600_s18 + $0x60] sm:$0xff] %vm12394_vm9, %v5962_v57  ;;  %6405 = vmatmul.msk.f32.gmra.mxu3 %vm12395_vm10, %v6816_v29  ;;  %v12405_v57 = vld [vmem:[#allocation30_spill] sm:$0xff]  ;;  %v5211_v29 = vadd.f32 %v5210_v20, %v11416_v22  ;;  %v5662_v30 = vpop.f32.mrf.mxu2  ;;  %v5214_v22 = vadd.f32 %v5213_v6, %v11427_v40  ;;  %vm12429_vm9 = vmmov %vm12186_vm0 }
 0x746   : > { %5584 = vmatmul.f32.gmra.mxu1 %v6815_v62  ;;  %v12401_v62 = vld [vmem:[#allocation62_spill] sm:$0xff]  ;;  %v4768_v42 = vadd.f32 %v12405_v57, %v12404_v41  ;;  %vm12433_vm10 = vmmov %vm12186_vm0  ;;  %p6843_p3 = pnand %p6842_p2, %p6838_p13 }
 0x747   : > { %v5208_v9 = vadd.f32 %v11745_v49, %v12401_v62  ;;  %v5217_v62 = vadd.f32 %v5216_v7, %v11438_v10  ;;  %v5220_v10 = vadd.f32 %v5219_v51, %v11449_v32 }
 0x748   : > { %v5893_v50 = vpop.f32.mrf.mxu3  ;;  %v4831_v25 = vadd.f32 %v11572_v44, %v4768_v42 }
 0x749   : > { %v5894_v5 = vadd.f32 %v11586_v56, %v5893_v50  ;;  %v5273_v34 = vadd.f32 %v5208_v9, %v4830_v55 }
 0x74a   : > { %v5274_v36 = vadd.f32 %v5211_v29, %v4831_v25  ;;  %v12414_v29 = vld [vmem:[#allocation44_spill] sm:$0xff] }
 0x74b   : > { %v5963_v60 = vadd.f32 %v5894_v5, %v5714_v23  ;;  %v5540_v53 = vpop.f32.mrf.mxu1  ;;  %v5716_v16 = vadd.f32 %v5651_v17, %v5273_v34  ;;  %v12407_v23 = vld [vmem:[#allocation61_spill] sm:$0xff]  ;;  %v12408_v5 = vld [vmem:[#allocation34_spill] sm:$0xff]  ;;  %v5222_v48 = vpop.f32.mrf.mxu0 }
 0x74c   : > { %v5654_v19 = vadd.f32 %v5653_v3, %v5540_v53  ;;  %v4771_v43 = vadd.f32 %v12408_v5, %v12407_v23  ;;  %v5223_v32 = vadd.f32 %v5222_v48, %v11458_v13 }
 0x74d   : > { %5995 = vst.msk [vmem:[%s11600_s18 + $0x68] sm:$0xff] %vm12186_vm0, %v5963_v60  ;;  %6406 = vmatmul.msk.f32.gmra.mxu3 %vm12398_vm6, %v6817_v33  ;;  %vm12440_vm6 = vmmov %vm12186_vm0 }
 0x74e   : > { %v5717_v60 = vadd.f32 %v5654_v19, %v5274_v36  ;;  %v4832_v54 = vadd.f32 %v11572_v44, %v4771_v43  ;;  %v12416_v43 = vld [vmem:[#allocation47_spill] sm:$0xff] }
 0x750   : > { %v5896_v37 = vpop.f32.mrf.mxu3  ;;  %v5275_v53 = vadd.f32 %v5214_v22, %v4832_v54 }
 0x751   : > { %v5897_v26 = vadd.f32 %v11586_v56, %v5896_v37  ;;  %v5665_v37 = vpop.f32.mrf.mxu2 }
 0x753   : > { %v5964_v31 = vadd.f32 %v5897_v26, %v5715_v58  ;;  %v5543_v35 = vpop.f32.mrf.mxu1  ;;  %v5225_v9 = vpop.f32.mrf.mxu0 }
 0x754   : > { %v5657_v3 = vadd.f32 %v5656_v39, %v5543_v35  ;;  %v5226_v22 = vadd.f32 %v5225_v9, %v11469_v2 }
 0x755   : > { %5996 = vst.msk [vmem:[%s11600_s18 + $0x70] sm:$0xff] %vm12402_vm1, %v5964_v31  ;;  %6407 = vmatmul.msk.f32.gmra.mxu3 %vm12403_vm15, %v6818_v11  ;;  %v4833_v31 = vadd.f32 %v11572_v44, %v4774_v21  ;;  %v12412_v11 = vld [vmem:[#allocation40_spill] sm:$0xff]  ;;  %vm12444_vm1 = vmmov %vm12186_vm0 }
 0x756   : > { %v5718_v58 = vadd.f32 %v5657_v3, %v5275_v53  ;;  %v4777_v38 = vadd.f32 %v12412_v11, %v11420_v47  ;;  %v12418_v53 = vld [vmem:[#allocation51_spill] sm:$0xff]  ;;  %vm12448_vm15 = vmmov %vm12186_vm0 }
 0x757   : > { %v5276_v39 = vadd.f32 %v5217_v62, %v4833_v31 }
 0x758   : > { %v5899_v45 = vpop.f32.mrf.mxu3  ;;  %v4834_v57 = vadd.f32 %v11572_v44, %v4777_v38 }
 0x759   : > { %v5900_v49 = vadd.f32 %v11586_v56, %v5899_v45  ;;  %v5668_v35 = vpop.f32.mrf.mxu2 }
 0x75b   : > { %v5965_v50 = vadd.f32 %v5900_v49, %v5716_v16  ;;  %v5546_v8 = vpop.f32.mrf.mxu1  ;;  %v5277_v16 = vadd.f32 %v5220_v10, %v4834_v57  ;;  %v12422_v57 = vld [vmem:[#allocation57_spill] sm:$0xff] }
 0x75c   : > { %v5660_v55 = vadd.f32 %v5659_v0, %v5546_v8  ;;  %v5228_v0 = vpop.f32.mrf.mxu0 }
 0x75d   : > { %5997 = vst.msk [vmem:[%s11600_s18 + $0x78] sm:$0xff] %vm12406_vm13, %v5965_v50  ;;  %v4780_v50 = vadd.f32 %v12414_v29, %v11429_v15  ;;  %v4783_v15 = vadd.f32 %v12416_v43, %v11440_v18  ;;  %v5229_v2 = vadd.f32 %v5228_v0, %v11480_v46  ;;  %vm12449_vm13 = vmmov %vm12186_vm0 }
 0x75e   : > { %v5719_v34 = vadd.f32 %v5660_v55, %v5276_v39  ;;  %v12420_v55 = vld [vmem:[#allocation54_spill] sm:$0xff] }
 0x75f   : > { %v4835_v36 = vadd.f32 %v11572_v44, %v4780_v50 }
 0x760   : > { %v5902_v52 = vpop.f32.mrf.mxu3 }
 0x761   : > { %v5903_v12 = vadd.f32 %v11586_v56, %v5902_v52  ;;  %v5671_v47 = vpop.f32.mrf.mxu2  ;;  %v5278_v52 = vadd.f32 %v5223_v32, %v4835_v36  ;;  %v12424_v32 = vld [vmem:[#allocation60_spill] sm:$0xff] }
 0x763   : > { %v5966_v20 = vadd.f32 %v5903_v12, %v5717_v60  ;;  %v5549_v33 = vpop.f32.mrf.mxu1 }
 0x764   : > { %v5663_v42 = vadd.f32 %v5662_v30, %v5549_v33  ;;  %v5231_v5 = vpop.f32.mrf.mxu0  ;;  %v4836_v33 = vadd.f32 %v11572_v44, %v4783_v15 }
 0x765   : > { %5998 = vst.msk [vmem:[%s11600_s18 + $0x80] sm:$0xff] %vm12409_vm5, %v5966_v20 }
 0x766   : > { %v5720_v8 = vadd.f32 %v5663_v42, %v5277_v16 }
 0x768   : > { %v5905_v27 = vpop.f32.mrf.mxu3 }
 0x769   : > { %v5906_v26 = vadd.f32 %v11586_v56, %v5905_v27  ;;  %v5674_v13 = vpop.f32.mrf.mxu2  ;;  %v4786_v27 = vadd.f32 %v12418_v53, %v11451_v61  ;;  %v4789_v61 = vadd.f32 %v12420_v55, %v11462_v63  ;;  %v4792_v63 = vadd.f32 %v12422_v57, %v11473_v14 }
 0x76b   : > { %v5967_v40 = vadd.f32 %v5906_v26, %v5718_v58  ;;  %v5552_v6 = vpop.f32.mrf.mxu1  ;;  %v4837_v62 = vadd.f32 %v11572_v44, %v4786_v27  ;;  %v4838_v38 = vadd.f32 %v11572_v44, %v4789_v61 }
 0x76c   : > { %v5666_v30 = vadd.f32 %v5665_v37, %v5552_v6  ;;  %v5279_v37 = vadd.f32 %v5226_v22, %v4836_v33  ;;  %v5234_v21 = vpop.f32.mrf.mxu0 }
 0x76d   : > { %5999 = vst.msk [vmem:[%s11600_s18 + $0x88] sm:$0xff] %vm12411_vm3, %v5967_v40  ;;  %v5280_v9 = vadd.f32 %v5229_v2, %v4837_v62  ;;  %v12432_v62 = vld [vmem:[#allocation74_spill] sm:$0xff] }
 0x76e   : > { %v5721_v60 = vadd.f32 %v5666_v30, %v5278_v52 }
 0x770   : > { %v5908_v17 = vpop.f32.mrf.mxu3 }
 0x771   : > { %v5909_v45 = vadd.f32 %v11586_v56, %v5908_v17  ;;  %v5677_v40 = vpop.f32.mrf.mxu2  ;;  %v5232_v17 = vadd.f32 %v5231_v5, %v11491_v59  ;;  %v5235_v59 = vadd.f32 %v5234_v21, %v11502_v4 }
 0x773   : > { %v5968_v7 = vadd.f32 %v5909_v45, %v5719_v34  ;;  %v5555_v41 = vpop.f32.mrf.mxu1  ;;  %v5281_v10 = vadd.f32 %v5232_v17, %v4838_v38  ;;  %v12434_v17 = vld [vmem:[#allocation71_spill] sm:$0xff] }
 0x774   : > { %v5669_v54 = vadd.f32 %v5668_v35, %v5555_v41  ;;  %v5237_v11 = vpop.f32.mrf.mxu0 }
 0x775   : > { %6000 = vst.msk [vmem:[%s11600_s18 + $0x90] sm:$0xff] %vm12413_vm4, %v5968_v7  ;;  %v5238_v4 = vadd.f32 %v5237_v11, %v11511_v28 }
 0x776   : > { %v5722_v18 = vadd.f32 %v5669_v54, %v5279_v37 }
 0x778   : > { %v5911_v49 = vpop.f32.mrf.mxu3 }
 0x779   : > { %v5912_v25 = vadd.f32 %v11586_v56, %v5911_v49  ;;  %v5680_v7 = vpop.f32.mrf.mxu2  ;;  %v4839_v49 = vadd.f32 %v11572_v44, %v4792_v63 }
 0x77b   : > { %v5969_v51 = vadd.f32 %v5912_v25, %v5720_v8  ;;  %v5558_v19 = vpop.f32.mrf.mxu1 }
 0x77c   : > { %v5672_v6 = vadd.f32 %v5671_v47, %v5558_v19  ;;  %v5240_v50 = vpop.f32.mrf.mxu0  ;;  %v5282_v47 = vadd.f32 %v5235_v59, %v4839_v49  ;;  %v12437_v49 = vld [vmem:[#allocation73_spill] sm:$0xff] }
 0x77d   : > { %6001 = vst.msk [vmem:[%s11600_s18 + $0x98] sm:$0xff] %vm12415_vm7, %v5969_v51  ;;  %v4795_v51 = vadd.f32 %v12424_v32, %v11482_v24 }
 0x77e   : > { %v5723_v39 = vadd.f32 %v5672_v6, %v5280_v9 }
 0x77f   : > { %v4840_v52 = vadd.f32 %v11572_v44, %v4795_v51 }
 0x780   : > { %v5914_v23 = vpop.f32.mrf.mxu3 }
 0x781   : > { %v5915_v12 = vadd.f32 %v11586_v56, %v5914_v23  ;;  %v5683_v14 = vpop.f32.mrf.mxu2  ;;  %v5283_v5 = vadd.f32 %v5238_v4, %v4840_v52 }
 0x783   : > { %v5970_v48 = vadd.f32 %v5915_v12, %v5721_v60  ;;  %v5561_v20 = vpop.f32.mrf.mxu1  ;;  %v12426_v60 = vld [vmem:[#allocation69_spill] sm:$0xff]  ;;  %v12427_v12 = vld [vmem:[#allocation63_spill] sm:$0xff] }
 0x784   : > { %v5675_v34 = vadd.f32 %v5674_v13, %v5561_v20  ;;  %v5243_v15 = vpop.f32.mrf.mxu0  ;;  %v4798_v22 = vadd.f32 %v12427_v12, %v12426_v60  ;;  %v12428_v20 = vld [vmem:[#allocation72_spill] sm:$0xff] }
 0x785   : > { %6002 = vst.msk [vmem:[%s11600_s18 + $0xa0] sm:$0xff] %vm12417_vm11, %v5970_v48  ;;  %v5241_v33 = vadd.f32 %v5240_v50, %v12428_v20 }
 0x786   : > { %v5724_v42 = vadd.f32 %v5675_v34, %v5281_v10  ;;  %v4841_v37 = vadd.f32 %v11572_v44, %v4798_v22  ;;  %v12443_v22 = vld [vmem:[#allocation79_spill] sm:$0xff] }
 0x788   : > { %v5917_v3 = vpop.f32.mrf.mxu3  ;;  %v5284_v53 = vadd.f32 %v5241_v33, %v4841_v37  ;;  %v12445_v37 = vld [vmem:[#allocation77_spill] sm:$0xff] }
 0x789   : > { %v5918_v1 = vadd.f32 %v11586_v56, %v5917_v3  ;;  %v5686_v28 = vpop.f32.mrf.mxu2 }
 0x78b   : > { %v5971_v58 = vadd.f32 %v5918_v1, %v5722_v18  ;;  %v5564_v26 = vpop.f32.mrf.mxu1  ;;  %v12430_v18 = vld [vmem:[#allocation70_spill] sm:$0xff]  ;;  %v12431_v1 = vld [vmem:[#allocation64_spill] sm:$0xff] }
 0x78c   : > { %v5678_v29 = vadd.f32 %v5677_v40, %v5564_v26  ;;  %v4801_v21 = vadd.f32 %v12431_v1, %v12430_v18  ;;  %v5246_v26 = vpop.f32.mrf.mxu0  ;;  %v5244_v40 = vadd.f32 %v5243_v15, %v12432_v62 }
 0x78d   : > { %6003 = vst.msk [vmem:[%s11600_s18 + $0xa8] sm:$0xff] %vm12419_vm2, %v5971_v58 }
 0x78e   : > { %v5725_v19 = vadd.f32 %v5678_v29, %v5282_v47  ;;  %v12438_v29 = vld [vmem:[#allocation66_spill] sm:$0xff] }
 0x78f   : > { %v4807_v50 = vadd.f32 %v12438_v29, %v12437_v49 }
 0x790   : > { %v5920_v31 = vpop.f32.mrf.mxu3 }
 0x791   : > { %v5921_v35 = vadd.f32 %v11586_v56, %v5920_v31  ;;  %v4842_v31 = vadd.f32 %v11572_v44, %v4801_v21  ;;  %v5689_v55 = vpop.f32.mrf.mxu2 }
 0x793   : > { %v5972_v46 = vadd.f32 %v5921_v35, %v5723_v39  ;;  %v5567_v45 = vpop.f32.mrf.mxu1  ;;  %v5285_v39 = vadd.f32 %v5244_v40, %v4842_v31 }
 0x794   : > { %v5681_v23 = vadd.f32 %v5680_v7, %v5567_v45  ;;  %v12436_v45 = vld [vmem:[#allocation76_spill] sm:$0xff] }
 0x795   : > { %6004 = vst.msk [vmem:[%s11600_s18 + $0xb0] sm:$0xff] %vm12421_vm14, %v5972_v46  ;;  %v12435_v46 = vld [vmem:[#allocation65_spill] sm:$0xff]  ;;  %v5247_v10 = vadd.f32 %v5246_v26, %v12436_v45 }
 0x796   : > { %v5726_v24 = vadd.f32 %v5681_v23, %v5283_v5  ;;  %v4804_v11 = vadd.f32 %v12435_v46, %v12434_v17  ;;  %v12441_v5 = vld [vmem:[#allocation75_spill] sm:$0xff] }
 0x798   : > { %v5923_v41 = vpop.f32.mrf.mxu3  ;;  %v4843_v57 = vadd.f32 %v11572_v44, %v4804_v11 }
 0x799   : > { %v5924_v0 = vadd.f32 %v11586_v56, %v5923_v41  ;;  %v5249_v41 = vpop.f32.mrf.mxu0  ;;  %v5692_v59 = vpop.f32.mrf.mxu2 }
 0x79b   : > { %v5973_v16 = vadd.f32 %v5924_v0, %v5724_v42  ;;  %v5570_v8 = vpop.f32.mrf.mxu1  ;;  %v5286_v0 = vadd.f32 %v5247_v10, %v4843_v57 }
 0x79c   : > { %v5684_v3 = vadd.f32 %v5683_v14, %v5570_v8  ;;  %v4844_v14 = vadd.f32 %v11572_v44, %v4807_v50 }
 0x79d   : > { %6005 = vst.msk [vmem:[%s11600_s18 + $0xb8] sm:$0xff] %vm12423_vm8, %v5973_v16 }
 0x79e   : > { %v5727_v2 = vadd.f32 %v5684_v3, %v5284_v53  ;;  %v12446_v3 = vld [vmem:[#allocation68_spill] sm:$0xff] }
 0x79f   : > { %v4813_v53 = vadd.f32 %v12446_v3, %v12445_v37 }
 0x7a0   : > { %v5926_v25 = vpop.f32.mrf.mxu3 }
 0x7a1   : > { %v5927_v36 = vadd.f32 %v11586_v56, %v5926_v25  ;;  %v12439_v25 = vld [vmem:[#allocation78_spill] sm:$0xff]  ;;  %v4846_v62 = vadd.f32 %v11572_v44, %v4813_v53 }
 0x7a2   : > { %v5250_v32 = vadd.f32 %v5249_v41, %v12439_v25 }
 0x7a3   : > { %v5974_v30 = vadd.f32 %v5927_v36, %v5725_v19  ;;  %v5573_v48 = vpop.f32.mrf.mxu1  ;;  %v5252_v36 = vpop.f32.mrf.mxu0 }
 0x7a4   : > { %v5687_v61 = vadd.f32 %v5686_v28, %v5573_v48  ;;  %v5287_v4 = vadd.f32 %v5250_v32, %v4844_v14 }
 0x7a5   : > { %6006 = vst.msk [vmem:[%s11600_s18 + $0xc0] sm:$0xff] %vm12425_vm12, %v5974_v30  ;;  %v5695_v30 = vpop.f32.mrf.mxu2 }
 0x7a6   : > { %v5728_v38 = vadd.f32 %v5687_v61, %v5285_v39 }
 0x7a8   : > { %v5929_v43 = vpop.f32.mrf.mxu3 }
 0x7a9   : > { %v5930_v13 = vadd.f32 %v11586_v56, %v5929_v43  ;;  %v12442_v43 = vld [vmem:[#allocation67_spill] sm:$0xff] }
 0x7aa   : > { %v4810_v15 = vadd.f32 %v12442_v43, %v12441_v5 }
 0x7ab   : > { %v5975_v54 = vadd.f32 %v5930_v13, %v5726_v24  ;;  %v5576_v9 = vpop.f32.mrf.mxu1  ;;  %v5253_v24 = vadd.f32 %v5252_v36, %v12443_v22 }
 0x7ac   : > { %v5690_v63 = vadd.f32 %v5689_v55, %v5576_v9  ;;  %v4845_v48 = vadd.f32 %v11572_v44, %v4810_v15 }
 0x7ad   : > { %6007 = vst.msk [vmem:[%s11600_s18 + $0xc8] sm:$0xff] %vm12429_vm9, %v5975_v54  ;;  %v5255_v54 = vpop.f32.mrf.mxu0  ;;  %v5698_v21 = vpop.f32.mrf.mxu2 }
 0x7ae   : > { %v5729_v47 = vadd.f32 %v5690_v63, %v5286_v0  ;;  %v5288_v33 = vadd.f32 %v5253_v24, %v4845_v48 }
 0x7b0   : > { %v5932_v27 = vpop.f32.mrf.mxu3 }
 0x7b1   : > { %v5933_v58 = vadd.f32 %v11586_v56, %v5932_v27 }
 0x7b3   : > { %v5976_v6 = vadd.f32 %v5933_v58, %v5727_v2  ;;  %v5579_v42 = vpop.f32.mrf.mxu1  ;;  %v12447_v2 = vld [vmem:[#allocation80_spill] sm:$0xff] }
 0x7b4   : > { %v5693_v19 = vadd.f32 %v5692_v59, %v5579_v42  ;;  %v5256_v58 = vadd.f32 %v5255_v54, %v12447_v2 }
 0x7b5   : > { %6008 = vst.msk [vmem:[%s11600_s18 + $0xd0] sm:$0xff] %vm12433_vm10, %v5976_v6 }
 0x7b6   : > { %v5730_v60 = vadd.f32 %v5693_v19, %v5287_v4  ;;  %v5289_v6 = vadd.f32 %v5256_v58, %v4846_v62 }
 0x7b8   : > { %v5935_v35 = vpop.f32.mrf.mxu3 }
 0x7b9   : > { %v5936_v34 = vadd.f32 %v11586_v56, %v5935_v35 }
 0x7bb   : > { %v5977_v7 = vadd.f32 %v5936_v34, %v5728_v38  ;;  %v5582_v52 = vpop.f32.mrf.mxu1 }
 0x7bc   : > { %v5696_v20 = vadd.f32 %v5695_v30, %v5582_v52 }
 0x7bd   : > { %6009 = vst.msk [vmem:[%s11600_s18 + $0xd8] sm:$0xff] %vm12186_vm0, %v5977_v7 }
 0x7be   : > { %v5731_v27 = vadd.f32 %v5696_v20, %v5288_v33 }
 0x7c0   : > { %v5938_v16 = vpop.f32.mrf.mxu3 }
 0x7c1   : > { %v5939_v8 = vadd.f32 %v11586_v56, %v5938_v16 }
 0x7c3   : > { %v5978_v51 = vadd.f32 %v5939_v8, %v5729_v47  ;;  %v5585_v1 = vpop.f32.mrf.mxu1 }
 0x7c4   : > { %v5699_v40 = vadd.f32 %v5698_v21, %v5585_v1 }
 0x7c5   : > { %6010 = vst.msk [vmem:[%s11600_s18 + $0xe0] sm:$0xff] %vm12440_vm6, %v5978_v51 }
 0x7c6   : > { %v5732_v31 = vadd.f32 %v5699_v40, %v5289_v6 }
 0x7c8   : > { %v5941_v23 = vpop.f32.mrf.mxu3 }
 0x7c9   : > { %v5942_v12 = vadd.f32 %v11586_v56, %v5941_v23 }
 0x7cb   : > { %v5979_v13 = vadd.f32 %v5942_v12, %v5730_v60 }
 0x7cd   : > { %6011 = vst.msk [vmem:[%s11600_s18 + $0xe8] sm:$0xff] %vm12444_vm1, %v5979_v13 }
 0x7d0   : > { %v5944_v28 = vpop.f32.mrf.mxu3 }
 0x7d1   : > { %v5945_v18 = vadd.f32 %v11586_v56, %v5944_v28 }
 0x7d3   : > { %v5980_v26 = vadd.f32 %v5945_v18, %v5731_v27 }
 0x7d5   : > { %6012 = vst.msk [vmem:[%s11600_s18 + $0xf0] sm:$0xff] %vm12448_vm15, %v5980_v26 }
 0x7d8   : > { %v5947_v9 = vpop.f32.mrf.mxu3 }
 0x7d9   : > { %v5948_v55 = vadd.f32 %v11586_v56, %v5947_v9 }
 0x7db   : > { %v5981_v61 = vadd.f32 %v5948_v55, %v5732_v31 }
 0x7dd   : > { %6013 = vst.msk [vmem:[%s11600_s18 + $0xf8] sm:$0xff] %vm12449_vm13, %v5981_v61 }
 0x7de   : > { %6846 = shalt.err (!%p6843_p3)
}
 0x7df   : > { %s6886_s19 = smov 128   ;;  %s6887_s18 = smov 8  }
 0x7e0   : > { %6451 = dma.vmem_to_hbm [thread:$0]  (%p7011_p5), %s6028_s1, 4096, %s6030_s25, %s6015_s26, %s6886_s19, %s6886_s19, %s6887_s18  }
 0x7e1 PF: > { %p6457_p4 = scmp.ge.s32.totalorder %s6881_s24, 2  ;;  %s6044_s27 = sand.u32 1, %s6869_s21  }
 0x7e2   : > { %s6045_s17 = scalar_lea.sflag [#allocation4], %s6044_s27 }
 0x7e3   : > { %p6454_p7 = pnand %p6457_p4, %p7015_p6 }
 0x7e5   : > { %p6455_p8 = pneg %p6454_p7 }
 0x7e7   : > { %6864 = dma.done.wait (%p6455_p8), %s6045_s17, 4096  }
 0x7e8   : > { %6866 = vsyncadd (%p6455_p8), %s6045_s17, 4294963200  ;;  %s12451_s24 = sld [smem:[#allocation7_spill]]  ;;  %s12454_s21 = smov %s6873_s22 }
 0x7e9   : > { %s12452_s23 = sld [smem:[#allocation6_spill]] }
 0x7ea   : > { %s12453_s30 = sld [smem:[#allocation8_spill]] }
 0x7ee   : > { %p26_p9 = scmp.ge.s32.totalorder %s12451_s24, 4  }
 0x7ef   : > { %s12455_s22 = smov %s12452_s23 }
 0x7f0   : > { %s12456_s23 = smov %s12453_s30  ;;  %28 = sbr.rel (!%p26_p9) target bundleno = 7 (0x7), region = 129 }
 0x7f5   :  { %6051 = vsyncpa [#allocation4], 1 }
 0x7f6   :  { %6053 = vsyncpa [#allocation4 + $0x1], 1 }

</bundles_post_ra>
